<compile_context>
chip_gen: v6e
topology: v6e:2x2x1
jax: 0.10.0
libtpu: 0.0.40
codegen_flags: <defaults>
</compile_context>

<pallas_src>
import functools

import jax
import jax.numpy as jnp
from jax.experimental import pallas as pl
from jax.experimental.pallas import tpu as pltpu


HP = 128       # per-gate lane padding: each gate occupies one full lane group
SUBLANE = 8    # f32 sublane count: batch is padded to a multiple of this


# ----------------------------------------------------------------------------
# Fused 4-layer LSTM encoder kernel (single invocation, no grid)
# ----------------------------------------------------------------------------
def _encoder_kernel(x_ref,
                    w0_ref, u0_ref, b0_ref,     # LSTM1 layer 0
                    w1_ref, u1_ref, b1_ref,     # LSTM1 layer 1
                    w2_ref, u2_ref, b2_ref,     # LSTM2 layer 0
                    w3_ref, u3_ref, b3_ref,     # LSTM2 layer 1
                    out_ref,                    # (2*Bp, Hp) final hiddens of LSTM2
                    seq_sc, proj_sc,            # VMEM scratch
                    *, T, Bp, Hp):
    """seq_sc : (T*Bp, Hp)    current layer's output sequence (next layer input)
       proj_sc: (T*Bp, 4*Hp)  batched input projections x_t @ W_ih + b
       Rows [t*Bp : (t+1)*Bp] of a slab correspond to timestep t (Bp is a
       multiple of 8, so every per-timestep slice is sublane-aligned)."""

    def input_proj(inp, w_ref, b_ref):
        # Non-recurrent half: one batched MXU matmul over all timesteps.
        proj_sc[...] = (
            jnp.dot(inp, w_ref[...], preferred_element_type=jnp.float32)
            + b_ref[...])

    def recurrence(u_ref, store_seq=True):
        # Sequential half: only h_prev @ W_hh is on the critical path.
        u = u_ref[...]                                  # hoisted out of the loop
        h = jnp.zeros((Bp, Hp), jnp.float32)
        c = jnp.zeros((Bp, Hp), jnp.float32)
        for t in range(T):                              # T small & static -> unroll
            g = (proj_sc[pl.ds(t * Bp, Bp), :]          # aligned whole-tile load
                 + jnp.dot(h, u, preferred_element_type=jnp.float32))
            # Gate order i, f, g, o; each slice is a whole 128-lane group.
            i_g = jax.nn.sigmoid(g[:, 0 * Hp:1 * Hp])
            f_g = jax.nn.sigmoid(g[:, 1 * Hp:2 * Hp])
            g_g = jnp.tanh(g[:, 2 * Hp:3 * Hp])
            o_g = jax.nn.sigmoid(g[:, 3 * Hp:4 * Hp])
            c = f_g * c + i_g * g_g
            h = o_g * jnp.tanh(c)
            if store_seq:
                seq_sc[pl.ds(t * Bp, Bp), :] = h        # aligned whole-tile store
        return h

    # ---- LSTM1, layer 0 (input = raw x slab) ----
    input_proj(x_ref[...], w0_ref, b0_ref)
    recurrence(u0_ref)
    # ---- LSTM1, layer 1 ----
    input_proj(seq_sc[...], w1_ref, b1_ref)
    recurrence(u1_ref)
    # ---- LSTM2, layer 0 ----
    input_proj(seq_sc[...], w2_ref, b2_ref)
    h2_0 = recurrence(u2_ref)
    # ---- LSTM2, layer 1 (its output sequence is not needed downstream) ----
    input_proj(seq_sc[...], w3_ref, b3_ref)
    h2_1 = recurrence(u3_ref, store_seq=False)

    # Final hiddens written once; both stores are (8,128)-aligned and lane-dense.
    out_ref[pl.ds(0, Bp), :] = h2_0
    out_ref[pl.ds(Bp, Bp), :] = h2_1


# ----------------------------------------------------------------------------
# Parameter padding: gate columns -> 128-lane groups, input/hidden rows padded
# ----------------------------------------------------------------------------
def _pad_lstm_layer_params(w_ih, w_hh, b, *, hidden, hp, in_pad):
    """w_ih: (Din, 4H), w_hh: (H, 4H), b: (4H,) [b_ih + b_hh], gate order i,f,g,o.
    Returns padded (in_pad, 4*hp), (hp, 4*hp), (1, 4*hp) with gate k occupying
    columns [k*hp, k*hp + H) and zeros elsewhere; padded rows are zero."""
    def pad_gate_cols(w):
        din = w.shape[0]
        out = jnp.zeros((din, 4, hp), w.dtype)
        out = out.at[:, :, :hidden].set(w.reshape(din, 4, hidden))
        return out.reshape(din, 4 * hp)

    w_ih_p = pad_gate_cols(w_ih)
    if in_pad != w_ih_p.shape[0]:
        w_ih_p = (jnp.zeros((in_pad, 4 * hp), w_ih.dtype)
                  .at[:w_ih.shape[0], :].set(w_ih_p))
    w_hh_p = (jnp.zeros((hp, 4 * hp), w_hh.dtype)
              .at[:hidden, :].set(pad_gate_cols(w_hh)))
    b_p = (jnp.zeros((1, 4, hp), b.dtype)
           .at[0, :, :hidden].set(b.reshape(4, hidden))
           .reshape(1, 4 * hp))
    return w_ih_p, w_hh_p, b_p


# ----------------------------------------------------------------------------
# Encoder forward: one fused pallas_call
# ----------------------------------------------------------------------------
def encoder_forward(x_btd, lstm1_params, lstm2_params, embedding_size):
    """x_btd: (B, T, input_size). Returns (2*B, embedding_size)."""
    B, T, D = x_btd.shape
    H1 = 2 * embedding_size          # LSTM1 hidden size
    H2 = embedding_size              # LSTM2 hidden size
    Hp = HP
    Bp = max(SUBLANE, ((B + SUBLANE - 1) // SUBLANE) * SUBLANE)   # sublane pad
    Dp = ((D + HP - 1) // HP) * HP                                # lane pad

    # Time-major slab: rows [t*Bp : (t+1)*Bp] <-> timestep t.  Padded batch
    # rows and padded input columns are zero (they never mix with real rows).
    x_tbd = jnp.transpose(x_btd, (1, 0, 2)).astype(jnp.float32)
    x_pad = jnp.zeros((T, Bp, Dp), jnp.float32).at[:, :B, :D].set(x_tbd)
    x2d = x_pad.reshape(T * Bp, Dp)

    layers = [
        _pad_lstm_layer_params(*lstm1_params[0], hidden=H1, hp=Hp, in_pad=Dp),
        _pad_lstm_layer_params(*lstm1_params[1], hidden=H1, hp=Hp, in_pad=Hp),
        _pad_lstm_layer_params(*lstm2_params[0], hidden=H2, hp=Hp, in_pad=Hp),
        _pad_lstm_layer_params(*lstm2_params[1], hidden=H2, hp=Hp, in_pad=Hp),
    ]
    flat_params = [p for layer in layers for p in layer]

    out_padded = pl.pallas_call(
        functools.partial(_encoder_kernel, T=T, Bp=Bp, Hp=Hp),
        out_shape=jax.ShapeDtypeStruct((2 * Bp, Hp), jnp.float32),
        in_specs=[pl.BlockSpec(memory_space=pltpu.MemorySpace.VMEM)]
                 * (1 + len(flat_params)),
        out_specs=pl.BlockSpec(memory_space=pltpu.MemorySpace.VMEM),
        scratch_shapes=[
            pltpu.VMEM((T * Bp, Hp), jnp.float32),       # layer output sequence
            pltpu.VMEM((T * Bp, 4 * Hp), jnp.float32),   # batched input projections
        ],
    )(x2d, *flat_params)

    # PyTorch: hidden (2,B,emb) -> view(1,1,-1,emb)[-1].view(-1,emb) = (2B, emb)
    out3 = out_padded.reshape(2, Bp, Hp)
    return out3[:, :B, :embedding_size].reshape(2 * B, embedding_size)


# ----------------------------------------------------------------------------
# Parameter construction (deterministic, PyTorch-like uniform init)
# ----------------------------------------------------------------------------
def init_lstm_stack_params(key, input_size, hidden_size, num_layers):
    """Params for a stacked unidirectional LSTM, PyTorch layout transposed:
    (w_ih (Din,4H), w_hh (H,4H), b_ih+b_hh (4H,)), gate order i,f,g,o."""
    params = []
    bound = 1.0 / jnp.sqrt(jnp.float32(hidden_size))
    in_dim = input_size
    for _ in range(num_layers):
        key, k1, k2, k3, k4 = jax.random.split(key, 5)
        w_ih = jax.random.uniform(k1, (in_dim, 4 * hidden_size), jnp.float32,
                                  -bound, bound)
        w_hh = jax.random.uniform(k2, (hidden_size, 4 * hidden_size), jnp.float32,
                                  -bound, bound)
        b_ih = jax.random.uniform(k3, (4 * hidden_size,), jnp.float32, -bound, bound)
        b_hh = jax.random.uniform(k4, (4 * hidden_size,), jnp.float32, -bound, bound)
        params.append((w_ih, w_hh, b_ih + b_hh))
        in_dim = hidden_size
    return params, key


# ----------------------------------------------------------------------------
# Pure-JAX reference (lax.scan) for a correctness check
# ----------------------------------------------------------------------------
def _ref_lstm_layer(x_tbd, w_ih, w_hh, b):
    T, B, D = x_tbd.shape
    H = w_hh.shape[0]

    def step(carry, x_t):
        h, c = carry
        g = x_t @ w_ih + h @ w_hh + b
        i = jax.nn.sigmoid(g[:, :H])
        f = jax.nn.sigmoid(g[:, H:2 * H])
        gg = jnp.tanh(g[:, 2 * H:3 * H])
        o = jax.nn.sigmoid(g[:, 3 * H:])
        c = f * c + i * gg
        h = o * jnp.tanh(c)
        return (h, c), h

    (h, _), ys = jax.lax.scan(step, (jnp.zeros((B, H)), jnp.zeros((B, H))), x_tbd)
    return ys, h


def _ref_encoder(x_btd, lstm1_params, lstm2_params):
    x = jnp.transpose(x_btd, (1, 0, 2))
    for p in lstm1_params:
        x, _ = _ref_lstm_layer(x, *p)
    finals = []
    for p in lstm2_params:
        x, h = _ref_lstm_layer(x, *p)
        finals.append(h)
    return jnp.concatenate(finals, axis=0)


if __name__ == "__main__":
    # Small, LSTM-friendly shapes: batch=2, seq=8, input_size=8, embedding=16.
    B, T = 2, 8
    input_size = 8
    embedding_size = 16

    key = jax.random.PRNGKey(0)
    key, kx = jax.random.split(key)
    x = jax.random.normal(kx, (B, T, input_size), jnp.float32)

    lstm1_params, key = init_lstm_stack_params(key, input_size,
                                               2 * embedding_size, num_layers=2)
    lstm2_params, key = init_lstm_stack_params(key, 2 * embedding_size,
                                               embedding_size, num_layers=2)

    fwd = jax.jit(functools.partial(encoder_forward,
                                    embedding_size=embedding_size))
    out = jax.block_until_ready(fwd(x, lstm1_params, lstm2_params))

    assert out.shape == (2 * B, embedding_size), out.shape

    ref = _ref_encoder(x, lstm1_params, lstm2_params)
    assert jnp.allclose(out, ref, atol=1e-4, rtol=1e-4), (
        float(jnp.max(jnp.abs(out - ref))))

    print("KERNEL_OK")
</pallas_src>

<mosaic_0001>
module attributes {stable_mosaic.version = 11 : i64} {
  func.func @_encoder_kernel(%arg0: memref<64x128xf32, #tpu.memory_space<vmem>>, %arg1: memref<128x512xf32, #tpu.memory_space<vmem>>, %arg2: memref<128x512xf32, #tpu.memory_space<vmem>>, %arg3: memref<1x512xf32, #tpu.memory_space<vmem>>, %arg4: memref<128x512xf32, #tpu.memory_space<vmem>>, %arg5: memref<128x512xf32, #tpu.memory_space<vmem>>, %arg6: memref<1x512xf32, #tpu.memory_space<vmem>>, %arg7: memref<128x512xf32, #tpu.memory_space<vmem>>, %arg8: memref<128x512xf32, #tpu.memory_space<vmem>>, %arg9: memref<1x512xf32, #tpu.memory_space<vmem>>, %arg10: memref<128x512xf32, #tpu.memory_space<vmem>>, %arg11: memref<128x512xf32, #tpu.memory_space<vmem>>, %arg12: memref<1x512xf32, #tpu.memory_space<vmem>>, %arg13: memref<16x128xf32, #tpu.memory_space<vmem>>, %arg14: memref<64x128xf32, #tpu.memory_space<vmem>>, %arg15: memref<64x512xf32, #tpu.memory_space<vmem>>) attributes {dimension_semantics = [], scalar_prefetch = 0 : i64, scratch_operands = 2 : i64, tpu.core_type = #tpu.core_type<tc>} {
    %c0 = arith.constant 0 : index
    %c0_0 = arith.constant 0 : index
    %0 = vector.load %arg0[%c0, %c0_0] : memref<64x128xf32, #tpu.memory_space<vmem>>, vector<64x128xf32>
    %c0_1 = arith.constant 0 : index
    %c0_2 = arith.constant 0 : index
    %1 = vector.load %arg1[%c0_1, %c0_2] : memref<128x512xf32, #tpu.memory_space<vmem>>, vector<128x512xf32>
    %cst = arith.constant dense<0.000000e+00> : vector<64x512xf32>
    %2 = tpu.matmul %0, %1, %cst {dimension_numbers = #tpu.dot_dimension_numbers<[1], [0], [0], [1], [0, 0, 1, 1], [], []>} : vector<64x128xf32>, vector<128x512xf32>, vector<64x512xf32> -> vector<64x512xf32>
    %c0_3 = arith.constant 0 : index
    %c0_4 = arith.constant 0 : index
    %3 = vector.load %arg3[%c0_3, %c0_4] : memref<1x512xf32, #tpu.memory_space<vmem>>, vector<1x512xf32>
    %4 = vector.broadcast %3 : vector<1x512xf32> to vector<64x512xf32>
    %5 = arith.addf %2, %4 : vector<64x512xf32>
    %c0_5 = arith.constant 0 : index
    %c0_6 = arith.constant 0 : index
    %6 = vector.load %arg15[%c0_5, %c0_6] : memref<64x512xf32, #tpu.memory_space<vmem>>, vector<64x512xf32>
    tpu.vector_store %arg15[%c0_5, %c0_6], %5 {strides = array<i32>} : memref<64x512xf32, #tpu.memory_space<vmem>>, vector<64x512xf32>,
    %c0_7 = arith.constant 0 : index
    %c0_8 = arith.constant 0 : index
    %7 = vector.load %arg2[%c0_7, %c0_8] : memref<128x512xf32, #tpu.memory_space<vmem>>, vector<128x512xf32>
    %cst_9 = arith.constant 0.000000e+00 : f32
    %8 = vector.broadcast %cst_9 : f32 to vector<8x128xf32>
    %cst_10 = arith.constant 0.000000e+00 : f32
    %9 = vector.broadcast %cst_10 : f32 to vector<8x128xf32>
    %c0_11 = arith.constant 0 : index
    %c0_12 = arith.constant 0 : index
    %10 = vector.load %arg15[%c0_11, %c0_12] : memref<64x512xf32, #tpu.memory_space<vmem>>, vector<8x512xf32>
    %cst_13 = arith.constant dense<0.000000e+00> : vector<8x512xf32>
    %11 = tpu.matmul %8, %7, %cst_13 {dimension_numbers = #tpu.dot_dimension_numbers<[1], [0], [0], [1], [0, 0, 1, 1], [], []>} : vector<8x128xf32>, vector<128x512xf32>, vector<8x512xf32> -> vector<8x512xf32>
    %12 = arith.addf %10, %11 : vector<8x512xf32>
    %13 = vector.extract_strided_slice %12 {offsets = [0, 0], sizes = [8, 128], strides = [1, 1]} : vector<8x512xf32> to vector<8x128xf32>
    %14 = arith.negf %13 : vector<8x128xf32>
    %15 = math.exp %14 : vector<8x128xf32>
    %cst_14 = arith.constant 1.000000e+00 : f32
    %16 = vector.broadcast %cst_14 : f32 to vector<8x128xf32>
    %17 = arith.addf %16, %15 : vector<8x128xf32>
    %18 = arith.divf %16, %17 : vector<8x128xf32>
    %19 = vector.extract_strided_slice %12 {offsets = [0, 128], sizes = [8, 128], strides = [1, 1]} : vector<8x512xf32> to vector<8x128xf32>
    %20 = arith.negf %19 : vector<8x128xf32>
    %21 = math.exp %20 : vector<8x128xf32>
    %cst_15 = arith.constant 1.000000e+00 : f32
    %22 = vector.broadcast %cst_15 : f32 to vector<8x128xf32>
    %23 = arith.addf %22, %21 : vector<8x128xf32>
    %24 = arith.divf %22, %23 : vector<8x128xf32>
    %25 = vector.extract_strided_slice %12 {offsets = [0, 256], sizes = [8, 128], strides = [1, 1]} : vector<8x512xf32> to vector<8x128xf32>
    %26 = math.tanh %25 : vector<8x128xf32>
    %27 = vector.extract_strided_slice %12 {offsets = [0, 384], sizes = [8, 128], strides = [1, 1]} : vector<8x512xf32> to vector<8x128xf32>
    %28 = arith.negf %27 : vector<8x128xf32>
    %29 = math.exp %28 : vector<8x128xf32>
    %cst_16 = arith.constant 1.000000e+00 : f32
    %30 = vector.broadcast %cst_16 : f32 to vector<8x128xf32>
    %31 = arith.addf %30, %29 : vector<8x128xf32>
    %32 = arith.divf %30, %31 : vector<8x128xf32>
    %33 = arith.mulf %24, %9 : vector<8x128xf32>
    %34 = arith.mulf %18, %26 : vector<8x128xf32>
    %35 = arith.addf %33, %34 : vector<8x128xf32>
    %36 = math.tanh %35 : vector<8x128xf32>
    %37 = arith.mulf %32, %36 : vector<8x128xf32>
    %c0_17 = arith.constant 0 : index
    %c0_18 = arith.constant 0 : index
    %38 = vector.load %arg14[%c0_17, %c0_18] : memref<64x128xf32, #tpu.memory_space<vmem>>, vector<8x128xf32>
    tpu.vector_store %arg14[%c0_17, %c0_18], %37 {strides = array<i32>} : memref<64x128xf32, #tpu.memory_space<vmem>>, vector<8x128xf32>,
    %c8 = arith.constant 8 : index
    %c0_19 = arith.constant 0 : index
    %39 = vector.load %arg15[%c8, %c0_19] : memref<64x512xf32, #tpu.memory_space<vmem>>, vector<8x512xf32>
    %cst_20 = arith.constant dense<0.000000e+00> : vector<8x512xf32>
    %40 = tpu.matmul %37, %7, %cst_20 {dimension_numbers = #tpu.dot_dimension_numbers<[1], [0], [0], [1], [0, 0, 1, 1], [], []>} : vector<8x128xf32>, vector<128x512xf32>, vector<8x512xf32> -> vector<8x512xf32>
    %41 = arith.addf %39, %40 : vector<8x512xf32>
    %42 = vector.extract_strided_slice %41 {offsets = [0, 0], sizes = [8, 128], strides = [1, 1]} : vector<8x512xf32> to vector<8x128xf32>
    %43 = arith.negf %42 : vector<8x128xf32>
    %44 = math.exp %43 : vector<8x128xf32>
    %cst_21 = arith.constant 1.000000e+00 : f32
    %45 = vector.broadcast %cst_21 : f32 to vector<8x128xf32>
    %46 = arith.addf %45, %44 : vector<8x128xf32>
    %47 = arith.divf %45, %46 : vector<8x128xf32>
    %48 = vector.extract_strided_slice %41 {offsets = [0, 128], sizes = [8, 128], strides = [1, 1]} : vector<8x512xf32> to vector<8x128xf32>
    %49 = arith.negf %48 : vector<8x128xf32>
    %50 = math.exp %49 : vector<8x128xf32>
    %cst_22 = arith.constant 1.000000e+00 : f32
    %51 = vector.broadcast %cst_22 : f32 to vector<8x128xf32>
    %52 = arith.addf %51, %50 : vector<8x128xf32>
    %53 = arith.divf %51, %52 : vector<8x128xf32>
    %54 = vector.extract_strided_slice %41 {offsets = [0, 256], sizes = [8, 128], strides = [1, 1]} : vector<8x512xf32> to vector<8x128xf32>
    %55 = math.tanh %54 : vector<8x128xf32>
    %56 = vector.extract_strided_slice %41 {offsets = [0, 384], sizes = [8, 128], strides = [1, 1]} : vector<8x512xf32> to vector<8x128xf32>
    %57 = arith.negf %56 : vector<8x128xf32>
    %58 = math.exp %57 : vector<8x128xf32>
    %cst_23 = arith.constant 1.000000e+00 : f32
    %59 = vector.broadcast %cst_23 : f32 to vector<8x128xf32>
    %60 = arith.addf %59, %58 : vector<8x128xf32>
    %61 = arith.divf %59, %60 : vector<8x128xf32>
    %62 = arith.mulf %53, %35 : vector<8x128xf32>
    %63 = arith.mulf %47, %55 : vector<8x128xf32>
    %64 = arith.addf %62, %63 : vector<8x128xf32>
    %65 = math.tanh %64 : vector<8x128xf32>
    %66 = arith.mulf %61, %65 : vector<8x128xf32>
    %c8_24 = arith.constant 8 : index
    %c0_25 = arith.constant 0 : index
    %67 = vector.load %arg14[%c8_24, %c0_25] : memref<64x128xf32, #tpu.memory_space<vmem>>, vector<8x128xf32>
    tpu.vector_store %arg14[%c8_24, %c0_25], %66 {strides = array<i32>} : memref<64x128xf32, #tpu.memory_space<vmem>>, vector<8x128xf32>,
    %c16 = arith.constant 16 : index
    %c0_26 = arith.constant 0 : index
    %68 = vector.load %arg15[%c16, %c0_26] : memref<64x512xf32, #tpu.memory_space<vmem>>, vector<8x512xf32>
    %cst_27 = arith.constant dense<0.000000e+00> : vector<8x512xf32>
    %69 = tpu.matmul %66, %7, %cst_27 {dimension_numbers = #tpu.dot_dimension_numbers<[1], [0], [0], [1], [0, 0, 1, 1], [], []>} : vector<8x128xf32>, vector<128x512xf32>, vector<8x512xf32> -> vector<8x512xf32>
    %70 = arith.addf %68, %69 : vector<8x512xf32>
    %71 = vector.extract_strided_slice %70 {offsets = [0, 0], sizes = [8, 128], strides = [1, 1]} : vector<8x512xf32> to vector<8x128xf32>
    %72 = arith.negf %71 : vector<8x128xf32>
    %73 = math.exp %72 : vector<8x128xf32>
    %cst_28 = arith.constant 1.000000e+00 : f32
    %74 = vector.broadcast %cst_28 : f32 to vector<8x128xf32>
    %75 = arith.addf %74, %73 : vector<8x128xf32>
    %76 = arith.divf %74, %75 : vector<8x128xf32>
    %77 = vector.extract_strided_slice %70 {offsets = [0, 128], sizes = [8, 128], strides = [1, 1]} : vector<8x512xf32> to vector<8x128xf32>
    %78 = arith.negf %77 : vector<8x128xf32>
    %79 = math.exp %78 : vector<8x128xf32>
    %cst_29 = arith.constant 1.000000e+00 : f32
    %80 = vector.broadcast %cst_29 : f32 to vector<8x128xf32>
    %81 = arith.addf %80, %79 : vector<8x128xf32>
    %82 = arith.divf %80, %81 : vector<8x128xf32>
    %83 = vector.extract_strided_slice %70 {offsets = [0, 256], sizes = [8, 128], strides = [1, 1]} : vector<8x512xf32> to vector<8x128xf32>
    %84 = math.tanh %83 : vector<8x128xf32>
    %85 = vector.extract_strided_slice %70 {offsets = [0, 384], sizes = [8, 128], strides = [1, 1]} : vector<8x512xf32> to vector<8x128xf32>
    %86 = arith.negf %85 : vector<8x128xf32>
    %87 = math.exp %86 : vector<8x128xf32>
    %cst_30 = arith.constant 1.000000e+00 : f32
    %88 = vector.broadcast %cst_30 : f32 to vector<8x128xf32>
    %89 = arith.addf %88, %87 : vector<8x128xf32>
    %90 = arith.divf %88, %89 : vector<8x128xf32>
    %91 = arith.mulf %82, %64 : vector<8x128xf32>
    %92 = arith.mulf %76, %84 : vector<8x128xf32>
    %93 = arith.addf %91, %92 : vector<8x128xf32>
    %94 = math.tanh %93 : vector<8x128xf32>
    %95 = arith.mulf %90, %94 : vector<8x128xf32>
    %c16_31 = arith.constant 16 : index
    %c0_32 = arith.constant 0 : index
    %96 = vector.load %arg14[%c16_31, %c0_32] : memref<64x128xf32, #tpu.memory_space<vmem>>, vector<8x128xf32>
    tpu.vector_store %arg14[%c16_31, %c0_32], %95 {strides = array<i32>} : memref<64x128xf32, #tpu.memory_space<vmem>>, vector<8x128xf32>,
    %c24 = arith.constant 24 : index
    %c0_33 = arith.constant 0 : index
    %97 = vector.load %arg15[%c24, %c0_33] : memref<64x512xf32, #tpu.memory_space<vmem>>, vector<8x512xf32>
    %cst_34 = arith.constant dense<0.000000e+00> : vector<8x512xf32>
    %98 = tpu.matmul %95, %7, %cst_34 {dimension_numbers = #tpu.dot_dimension_numbers<[1], [0], [0], [1], [0, 0, 1, 1], [], []>} : vector<8x128xf32>, vector<128x512xf32>, vector<8x512xf32> -> vector<8x512xf32>
    %99 = arith.addf %97, %98 : vector<8x512xf32>
    %100 = vector.extract_strided_slice %99 {offsets = [0, 0], sizes = [8, 128], strides = [1, 1]} : vector<8x512xf32> to vector<8x128xf32>
    %101 = arith.negf %100 : vector<8x128xf32>
    %102 = math.exp %101 : vector<8x128xf32>
    %cst_35 = arith.constant 1.000000e+00 : f32
    %103 = vector.broadcast %cst_35 : f32 to vector<8x128xf32>
    %104 = arith.addf %103, %102 : vector<8x128xf32>
    %105 = arith.divf %103, %104 : vector<8x128xf32>
    %106 = vector.extract_strided_slice %99 {offsets = [0, 128], sizes = [8, 128], strides = [1, 1]} : vector<8x512xf32> to vector<8x128xf32>
    %107 = arith.negf %106 : vector<8x128xf32>
    %108 = math.exp %107 : vector<8x128xf32>
    %cst_36 = arith.constant 1.000000e+00 : f32
    %109 = vector.broadcast %cst_36 : f32 to vector<8x128xf32>
    %110 = arith.addf %109, %108 : vector<8x128xf32>
    %111 = arith.divf %109, %110 : vector<8x128xf32>
    %112 = vector.extract_strided_slice %99 {offsets = [0, 256], sizes = [8, 128], strides = [1, 1]} : vector<8x512xf32> to vector<8x128xf32>
    %113 = math.tanh %112 : vector<8x128xf32>
    %114 = vector.extract_strided_slice %99 {offsets = [0, 384], sizes = [8, 128], strides = [1, 1]} : vector<8x512xf32> to vector<8x128xf32>
    %115 = arith.negf %114 : vector<8x128xf32>
    %116 = math.exp %115 : vector<8x128xf32>
    %cst_37 = arith.constant 1.000000e+00 : f32
    %117 = vector.broadcast %cst_37 : f32 to vector<8x128xf32>
    %118 = arith.addf %117, %116 : vector<8x128xf32>
    %119 = arith.divf %117, %118 : vector<8x128xf32>
    %120 = arith.mulf %111, %93 : vector<8x128xf32>
    %121 = arith.mulf %105, %113 : vector<8x128xf32>
    %122 = arith.addf %120, %121 : vector<8x128xf32>
    %123 = math.tanh %122 : vector<8x128xf32>
    %124 = arith.mulf %119, %123 : vector<8x128xf32>
    %c24_38 = arith.constant 24 : index
    %c0_39 = arith.constant 0 : index
    %125 = vector.load %arg14[%c24_38, %c0_39] : memref<64x128xf32, #tpu.memory_space<vmem>>, vector<8x128xf32>
    tpu.vector_store %arg14[%c24_38, %c0_39], %124 {strides = array<i32>} : memref<64x128xf32, #tpu.memory_space<vmem>>, vector<8x128xf32>,
    %c32 = arith.constant 32 : index
    %c0_40 = arith.constant 0 : index
    %126 = vector.load %arg15[%c32, %c0_40] : memref<64x512xf32, #tpu.memory_space<vmem>>, vector<8x512xf32>
    %cst_41 = arith.constant dense<0.000000e+00> : vector<8x512xf32>
    %127 = tpu.matmul %124, %7, %cst_41 {dimension_numbers = #tpu.dot_dimension_numbers<[1], [0], [0], [1], [0, 0, 1, 1], [], []>} : vector<8x128xf32>, vector<128x512xf32>, vector<8x512xf32> -> vector<8x512xf32>
    %128 = arith.addf %126, %127 : vector<8x512xf32>
    %129 = vector.extract_strided_slice %128 {offsets = [0, 0], sizes = [8, 128], strides = [1, 1]} : vector<8x512xf32> to vector<8x128xf32>
    %130 = arith.negf %129 : vector<8x128xf32>
    %131 = math.exp %130 : vector<8x128xf32>
    %cst_42 = arith.constant 1.000000e+00 : f32
    %132 = vector.broadcast %cst_42 : f32 to vector<8x128xf32>
    %133 = arith.addf %132, %131 : vector<8x128xf32>
    %134 = arith.divf %132, %133 : vector<8x128xf32>
    %135 = vector.extract_strided_slice %128 {offsets = [0, 128], sizes = [8, 128], strides = [1, 1]} : vector<8x512xf32> to vector<8x128xf32>
    %136 = arith.negf %135 : vector<8x128xf32>
    %137 = math.exp %136 : vector<8x128xf32>
    %cst_43 = arith.constant 1.000000e+00 : f32
    %138 = vector.broadcast %cst_43 : f32 to vector<8x128xf32>
    %139 = arith.addf %138, %137 : vector<8x128xf32>
    %140 = arith.divf %138, %139 : vector<8x128xf32>
    %141 = vector.extract_strided_slice %128 {offsets = [0, 256], sizes = [8, 128], strides = [1, 1]} : vector<8x512xf32> to vector<8x128xf32>
    %142 = math.tanh %141 : vector<8x128xf32>
    %143 = vector.extract_strided_slice %128 {offsets = [0, 384], sizes = [8, 128], strides = [1, 1]} : vector<8x512xf32> to vector<8x128xf32>
    %144 = arith.negf %143 : vector<8x128xf32>
    %145 = math.exp %144 : vector<8x128xf32>
    %cst_44 = arith.constant 1.000000e+00 : f32
    %146 = vector.broadcast %cst_44 : f32 to vector<8x128xf32>
    %147 = arith.addf %146, %145 : vector<8x128xf32>
    %148 = arith.divf %146, %147 : vector<8x128xf32>
    %149 = arith.mulf %140, %122 : vector<8x128xf32>
    %150 = arith.mulf %134, %142 : vector<8x128xf32>
    %151 = arith.addf %149, %150 : vector<8x128xf32>
    %152 = math.tanh %151 : vector<8x128xf32>
    %153 = arith.mulf %148, %152 : vector<8x128xf32>
    %c32_45 = arith.constant 32 : index
    %c0_46 = arith.constant 0 : index
    %154 = vector.load %arg14[%c32_45, %c0_46] : memref<64x128xf32, #tpu.memory_space<vmem>>, vector<8x128xf32>
    tpu.vector_store %arg14[%c32_45, %c0_46], %153 {strides = array<i32>} : memref<64x128xf32, #tpu.memory_space<vmem>>, vector<8x128xf32>,
    %c40 = arith.constant 40 : index
    %c0_47 = arith.constant 0 : index
    %155 = vector.load %arg15[%c40, %c0_47] : memref<64x512xf32, #tpu.memory_space<vmem>>, vector<8x512xf32>
    %cst_48 = arith.constant dense<0.000000e+00> : vector<8x512xf32>
    %156 = tpu.matmul %153, %7, %cst_48 {dimension_numbers = #tpu.dot_dimension_numbers<[1], [0], [0], [1], [0, 0, 1, 1], [], []>} : vector<8x128xf32>, vector<128x512xf32>, vector<8x512xf32> -> vector<8x512xf32>
    %157 = arith.addf %155, %156 : vector<8x512xf32>
    %158 = vector.extract_strided_slice %157 {offsets = [0, 0], sizes = [8, 128], strides = [1, 1]} : vector<8x512xf32> to vector<8x128xf32>
    %159 = arith.negf %158 : vector<8x128xf32>
    %160 = math.exp %159 : vector<8x128xf32>
    %cst_49 = arith.constant 1.000000e+00 : f32
    %161 = vector.broadcast %cst_49 : f32 to vector<8x128xf32>
    %162 = arith.addf %161, %160 : vector<8x128xf32>
    %163 = arith.divf %161, %162 : vector<8x128xf32>
    %164 = vector.extract_strided_slice %157 {offsets = [0, 128], sizes = [8, 128], strides = [1, 1]} : vector<8x512xf32> to vector<8x128xf32>
    %165 = arith.negf %164 : vector<8x128xf32>
    %166 = math.exp %165 : vector<8x128xf32>
    %cst_50 = arith.constant 1.000000e+00 : f32
    %167 = vector.broadcast %cst_50 : f32 to vector<8x128xf32>
    %168 = arith.addf %167, %166 : vector<8x128xf32>
    %169 = arith.divf %167, %168 : vector<8x128xf32>
    %170 = vector.extract_strided_slice %157 {offsets = [0, 256], sizes = [8, 128], strides = [1, 1]} : vector<8x512xf32> to vector<8x128xf32>
    %171 = math.tanh %170 : vector<8x128xf32>
    %172 = vector.extract_strided_slice %157 {offsets = [0, 384], sizes = [8, 128], strides = [1, 1]} : vector<8x512xf32> to vector<8x128xf32>
    %173 = arith.negf %172 : vector<8x128xf32>
    %174 = math.exp %173 : vector<8x128xf32>
    %cst_51 = arith.constant 1.000000e+00 : f32
    %175 = vector.broadcast %cst_51 : f32 to vector<8x128xf32>
    %176 = arith.addf %175, %174 : vector<8x128xf32>
    %177 = arith.divf %175, %176 : vector<8x128xf32>
    %178 = arith.mulf %169, %151 : vector<8x128xf32>
    %179 = arith.mulf %163, %171 : vector<8x128xf32>
    %180 = arith.addf %178, %179 : vector<8x128xf32>
    %181 = math.tanh %180 : vector<8x128xf32>
    %182 = arith.mulf %177, %181 : vector<8x128xf32>
    %c40_52 = arith.constant 40 : index
    %c0_53 = arith.constant 0 : index
    %183 = vector.load %arg14[%c40_52, %c0_53] : memref<64x128xf32, #tpu.memory_space<vmem>>, vector<8x128xf32>
    tpu.vector_store %arg14[%c40_52, %c0_53], %182 {strides = array<i32>} : memref<64x128xf32, #tpu.memory_space<vmem>>, vector<8x128xf32>,
    %c48 = arith.constant 48 : index
    %c0_54 = arith.constant 0 : index
    %184 = vector.load %arg15[%c48, %c0_54] : memref<64x512xf32, #tpu.memory_space<vmem>>, vector<8x512xf32>
    %cst_55 = arith.constant dense<0.000000e+00> : vector<8x512xf32>
    %185 = tpu.matmul %182, %7, %cst_55 {dimension_numbers = #tpu.dot_dimension_numbers<[1], [0], [0], [1], [0, 0, 1, 1], [], []>} : vector<8x128xf32>, vector<128x512xf32>, vector<8x512xf32> -> vector<8x512xf32>
    %186 = arith.addf %184, %185 : vector<8x512xf32>
    %187 = vector.extract_strided_slice %186 {offsets = [0, 0], sizes = [8, 128], strides = [1, 1]} : vector<8x512xf32> to vector<8x128xf32>
    %188 = arith.negf %187 : vector<8x128xf32>
    %189 = math.exp %188 : vector<8x128xf32>
    %cst_56 = arith.constant 1.000000e+00 : f32
    %190 = vector.broadcast %cst_56 : f32 to vector<8x128xf32>
    %191 = arith.addf %190, %189 : vector<8x128xf32>
    %192 = arith.divf %190, %191 : vector<8x128xf32>
    %193 = vector.extract_strided_slice %186 {offsets = [0, 128], sizes = [8, 128], strides = [1, 1]} : vector<8x512xf32> to vector<8x128xf32>
    %194 = arith.negf %193 : vector<8x128xf32>
    %195 = math.exp %194 : vector<8x128xf32>
    %cst_57 = arith.constant 1.000000e+00 : f32
    %196 = vector.broadcast %cst_57 : f32 to vector<8x128xf32>
    %197 = arith.addf %196, %195 : vector<8x128xf32>
    %198 = arith.divf %196, %197 : vector<8x128xf32>
    %199 = vector.extract_strided_slice %186 {offsets = [0, 256], sizes = [8, 128], strides = [1, 1]} : vector<8x512xf32> to vector<8x128xf32>
    %200 = math.tanh %199 : vector<8x128xf32>
    %201 = vector.extract_strided_slice %186 {offsets = [0, 384], sizes = [8, 128], strides = [1, 1]} : vector<8x512xf32> to vector<8x128xf32>
    %202 = arith.negf %201 : vector<8x128xf32>
    %203 = math.exp %202 : vector<8x128xf32>
    %cst_58 = arith.constant 1.000000e+00 : f32
    %204 = vector.broadcast %cst_58 : f32 to vector<8x128xf32>
    %205 = arith.addf %204, %203 : vector<8x128xf32>
    %206 = arith.divf %204, %205 : vector<8x128xf32>
    %207 = arith.mulf %198, %180 : vector<8x128xf32>
    %208 = arith.mulf %192, %200 : vector<8x128xf32>
    %209 = arith.addf %207, %208 : vector<8x128xf32>
    %210 = math.tanh %209 : vector<8x128xf32>
    %211 = arith.mulf %206, %210 : vector<8x128xf32>
    %c48_59 = arith.constant 48 : index
    %c0_60 = arith.constant 0 : index
    %212 = vector.load %arg14[%c48_59, %c0_60] : memref<64x128xf32, #tpu.memory_space<vmem>>, vector<8x128xf32>
    tpu.vector_store %arg14[%c48_59, %c0_60], %211 {strides = array<i32>} : memref<64x128xf32, #tpu.memory_space<vmem>>, vector<8x128xf32>,
    %c56 = arith.constant 56 : index
    %c0_61 = arith.constant 0 : index
    %213 = vector.load %arg15[%c56, %c0_61] : memref<64x512xf32, #tpu.memory_space<vmem>>, vector<8x512xf32>
    %cst_62 = arith.constant dense<0.000000e+00> : vector<8x512xf32>
    %214 = tpu.matmul %211, %7, %cst_62 {dimension_numbers = #tpu.dot_dimension_numbers<[1], [0], [0], [1], [0, 0, 1, 1], [], []>} : vector<8x128xf32>, vector<128x512xf32>, vector<8x512xf32> -> vector<8x512xf32>
    %215 = arith.addf %213, %214 : vector<8x512xf32>
    %216 = vector.extract_strided_slice %215 {offsets = [0, 0], sizes = [8, 128], strides = [1, 1]} : vector<8x512xf32> to vector<8x128xf32>
    %217 = arith.negf %216 : vector<8x128xf32>
    %218 = math.exp %217 : vector<8x128xf32>
    %cst_63 = arith.constant 1.000000e+00 : f32
    %219 = vector.broadcast %cst_63 : f32 to vector<8x128xf32>
    %220 = arith.addf %219, %218 : vector<8x128xf32>
    %221 = arith.divf %219, %220 : vector<8x128xf32>
    %222 = vector.extract_strided_slice %215 {offsets = [0, 128], sizes = [8, 128], strides = [1, 1]} : vector<8x512xf32> to vector<8x128xf32>
    %223 = arith.negf %222 : vector<8x128xf32>
    %224 = math.exp %223 : vector<8x128xf32>
    %cst_64 = arith.constant 1.000000e+00 : f32
    %225 = vector.broadcast %cst_64 : f32 to vector<8x128xf32>
    %226 = arith.addf %225, %224 : vector<8x128xf32>
    %227 = arith.divf %225, %226 : vector<8x128xf32>
    %228 = vector.extract_strided_slice %215 {offsets = [0, 256], sizes = [8, 128], strides = [1, 1]} : vector<8x512xf32> to vector<8x128xf32>
    %229 = math.tanh %228 : vector<8x128xf32>
    %230 = vector.extract_strided_slice %215 {offsets = [0, 384], sizes = [8, 128], strides = [1, 1]} : vector<8x512xf32> to vector<8x128xf32>
    %231 = arith.negf %230 : vector<8x128xf32>
    %232 = math.exp %231 : vector<8x128xf32>
    %cst_65 = arith.constant 1.000000e+00 : f32
    %233 = vector.broadcast %cst_65 : f32 to vector<8x128xf32>
    %234 = arith.addf %233, %232 : vector<8x128xf32>
    %235 = arith.divf %233, %234 : vector<8x128xf32>
    %236 = arith.mulf %227, %209 : vector<8x128xf32>
    %237 = arith.mulf %221, %229 : vector<8x128xf32>
    %238 = arith.addf %236, %237 : vector<8x128xf32>
    %239 = math.tanh %238 : vector<8x128xf32>
    %240 = arith.mulf %235, %239 : vector<8x128xf32>
    %c56_66 = arith.constant 56 : index
    %c0_67 = arith.constant 0 : index
    %241 = vector.load %arg14[%c56_66, %c0_67] : memref<64x128xf32, #tpu.memory_space<vmem>>, vector<8x128xf32>
    tpu.vector_store %arg14[%c56_66, %c0_67], %240 {strides = array<i32>} : memref<64x128xf32, #tpu.memory_space<vmem>>, vector<8x128xf32>,
    %c0_68 = arith.constant 0 : index
    %c0_69 = arith.constant 0 : index
    %242 = vector.load %arg14[%c0_68, %c0_69] : memref<64x128xf32, #tpu.memory_space<vmem>>, vector<64x128xf32>
    %c0_70 = arith.constant 0 : index
    %c0_71 = arith.constant 0 : index
    %243 = vector.load %arg4[%c0_70, %c0_71] : memref<128x512xf32, #tpu.memory_space<vmem>>, vector<128x512xf32>
    %cst_72 = arith.constant dense<0.000000e+00> : vector<64x512xf32>
    %244 = tpu.matmul %242, %243, %cst_72 {dimension_numbers = #tpu.dot_dimension_numbers<[1], [0], [0], [1], [0, 0, 1, 1], [], []>} : vector<64x128xf32>, vector<128x512xf32>, vector<64x512xf32> -> vector<64x512xf32>
    %c0_73 = arith.constant 0 : index
    %c0_74 = arith.constant 0 : index
    %245 = vector.load %arg6[%c0_73, %c0_74] : memref<1x512xf32, #tpu.memory_space<vmem>>, vector<1x512xf32>
    %246 = vector.broadcast %245 : vector<1x512xf32> to vector<64x512xf32>
    %247 = arith.addf %244, %246 : vector<64x512xf32>
    %c0_75 = arith.constant 0 : index
    %c0_76 = arith.constant 0 : index
    %248 = vector.load %arg15[%c0_75, %c0_76] : memref<64x512xf32, #tpu.memory_space<vmem>>, vector<64x512xf32>
    tpu.vector_store %arg15[%c0_75, %c0_76], %247 {strides = array<i32>} : memref<64x512xf32, #tpu.memory_space<vmem>>, vector<64x512xf32>,
    %c0_77 = arith.constant 0 : index
    %c0_78 = arith.constant 0 : index
    %249 = vector.load %arg5[%c0_77, %c0_78] : memref<128x512xf32, #tpu.memory_space<vmem>>, vector<128x512xf32>
    %cst_79 = arith.constant 0.000000e+00 : f32
    %250 = vector.broadcast %cst_79 : f32 to vector<8x128xf32>
    %cst_80 = arith.constant 0.000000e+00 : f32
    %251 = vector.broadcast %cst_80 : f32 to vector<8x128xf32>
    %c0_81 = arith.constant 0 : index
    %c0_82 = arith.constant 0 : index
    %252 = vector.load %arg15[%c0_81, %c0_82] : memref<64x512xf32, #tpu.memory_space<vmem>>, vector<8x512xf32>
    %cst_83 = arith.constant dense<0.000000e+00> : vector<8x512xf32>
    %253 = tpu.matmul %250, %249, %cst_83 {dimension_numbers = #tpu.dot_dimension_numbers<[1], [0], [0], [1], [0, 0, 1, 1], [], []>} : vector<8x128xf32>, vector<128x512xf32>, vector<8x512xf32> -> vector<8x512xf32>
    %254 = arith.addf %252, %253 : vector<8x512xf32>
    %255 = vector.extract_strided_slice %254 {offsets = [0, 0], sizes = [8, 128], strides = [1, 1]} : vector<8x512xf32> to vector<8x128xf32>
    %256 = arith.negf %255 : vector<8x128xf32>
    %257 = math.exp %256 : vector<8x128xf32>
    %cst_84 = arith.constant 1.000000e+00 : f32
    %258 = vector.broadcast %cst_84 : f32 to vector<8x128xf32>
    %259 = arith.addf %258, %257 : vector<8x128xf32>
    %260 = arith.divf %258, %259 : vector<8x128xf32>
    %261 = vector.extract_strided_slice %254 {offsets = [0, 128], sizes = [8, 128], strides = [1, 1]} : vector<8x512xf32> to vector<8x128xf32>
    %262 = arith.negf %261 : vector<8x128xf32>
    %263 = math.exp %262 : vector<8x128xf32>
    %cst_85 = arith.constant 1.000000e+00 : f32
    %264 = vector.broadcast %cst_85 : f32 to vector<8x128xf32>
    %265 = arith.addf %264, %263 : vector<8x128xf32>
    %266 = arith.divf %264, %265 : vector<8x128xf32>
    %267 = vector.extract_strided_slice %254 {offsets = [0, 256], sizes = [8, 128], strides = [1, 1]} : vector<8x512xf32> to vector<8x128xf32>
    %268 = math.tanh %267 : vector<8x128xf32>
    %269 = vector.extract_strided_slice %254 {offsets = [0, 384], sizes = [8, 128], strides = [1, 1]} : vector<8x512xf32> to vector<8x128xf32>
    %270 = arith.negf %269 : vector<8x128xf32>
    %271 = math.exp %270 : vector<8x128xf32>
    %cst_86 = arith.constant 1.000000e+00 : f32
    %272 = vector.broadcast %cst_86 : f32 to vector<8x128xf32>
    %273 = arith.addf %272, %271 : vector<8x128xf32>
    %274 = arith.divf %272, %273 : vector<8x128xf32>
    %275 = arith.mulf %266, %251 : vector<8x128xf32>
    %276 = arith.mulf %260, %268 : vector<8x128xf32>
    %277 = arith.addf %275, %276 : vector<8x128xf32>
    %278 = math.tanh %277 : vector<8x128xf32>
    %279 = arith.mulf %274, %278 : vector<8x128xf32>
    %c0_87 = arith.constant 0 : index
    %c0_88 = arith.constant 0 : index
    %280 = vector.load %arg14[%c0_87, %c0_88] : memref<64x128xf32, #tpu.memory_space<vmem>>, vector<8x128xf32>
    tpu.vector_store %arg14[%c0_87, %c0_88], %279 {strides = array<i32>} : memref<64x128xf32, #tpu.memory_space<vmem>>, vector<8x128xf32>,
    %c8_89 = arith.constant 8 : index
    %c0_90 = arith.constant 0 : index
    %281 = vector.load %arg15[%c8_89, %c0_90] : memref<64x512xf32, #tpu.memory_space<vmem>>, vector<8x512xf32>
    %cst_91 = arith.constant dense<0.000000e+00> : vector<8x512xf32>
    %282 = tpu.matmul %279, %249, %cst_91 {dimension_numbers = #tpu.dot_dimension_numbers<[1], [0], [0], [1], [0, 0, 1, 1], [], []>} : vector<8x128xf32>, vector<128x512xf32>, vector<8x512xf32> -> vector<8x512xf32>
    %283 = arith.addf %281, %282 : vector<8x512xf32>
    %284 = vector.extract_strided_slice %283 {offsets = [0, 0], sizes = [8, 128], strides = [1, 1]} : vector<8x512xf32> to vector<8x128xf32>
    %285 = arith.negf %284 : vector<8x128xf32>
    %286 = math.exp %285 : vector<8x128xf32>
    %cst_92 = arith.constant 1.000000e+00 : f32
    %287 = vector.broadcast %cst_92 : f32 to vector<8x128xf32>
    %288 = arith.addf %287, %286 : vector<8x128xf32>
    %289 = arith.divf %287, %288 : vector<8x128xf32>
    %290 = vector.extract_strided_slice %283 {offsets = [0, 128], sizes = [8, 128], strides = [1, 1]} : vector<8x512xf32> to vector<8x128xf32>
    %291 = arith.negf %290 : vector<8x128xf32>
    %292 = math.exp %291 : vector<8x128xf32>
    %cst_93 = arith.constant 1.000000e+00 : f32
    %293 = vector.broadcast %cst_93 : f32 to vector<8x128xf32>
    %294 = arith.addf %293, %292 : vector<8x128xf32>
    %295 = arith.divf %293, %294 : vector<8x128xf32>
    %296 = vector.extract_strided_slice %283 {offsets = [0, 256], sizes = [8, 128], strides = [1, 1]} : vector<8x512xf32> to vector<8x128xf32>
    %297 = math.tanh %296 : vector<8x128xf32>
    %298 = vector.extract_strided_slice %283 {offsets = [0, 384], sizes = [8, 128], strides = [1, 1]} : vector<8x512xf32> to vector<8x128xf32>
    %299 = arith.negf %298 : vector<8x128xf32>
    %300 = math.exp %299 : vector<8x128xf32>
    %cst_94 = arith.constant 1.000000e+00 : f32
    %301 = vector.broadcast %cst_94 : f32 to vector<8x128xf32>
    %302 = arith.addf %301, %300 : vector<8x128xf32>
    %303 = arith.divf %301, %302 : vector<8x128xf32>
    %304 = arith.mulf %295, %277 : vector<8x128xf32>
    %305 = arith.mulf %289, %297 : vector<8x128xf32>
    %306 = arith.addf %304, %305 : vector<8x128xf32>
    %307 = math.tanh %306 : vector<8x128xf32>
    %308 = arith.mulf %303, %307 : vector<8x128xf32>
    %c8_95 = arith.constant 8 : index
    %c0_96 = arith.constant 0 : index
    %309 = vector.load %arg14[%c8_95, %c0_96] : memref<64x128xf32, #tpu.memory_space<vmem>>, vector<8x128xf32>
    tpu.vector_store %arg14[%c8_95, %c0_96], %308 {strides = array<i32>} : memref<64x128xf32, #tpu.memory_space<vmem>>, vector<8x128xf32>,
    %c16_97 = arith.constant 16 : index
    %c0_98 = arith.constant 0 : index
    %310 = vector.load %arg15[%c16_97, %c0_98] : memref<64x512xf32, #tpu.memory_space<vmem>>, vector<8x512xf32>
    %cst_99 = arith.constant dense<0.000000e+00> : vector<8x512xf32>
    %311 = tpu.matmul %308, %249, %cst_99 {dimension_numbers = #tpu.dot_dimension_numbers<[1], [0], [0], [1], [0, 0, 1, 1], [], []>} : vector<8x128xf32>, vector<128x512xf32>, vector<8x512xf32> -> vector<8x512xf32>
    %312 = arith.addf %310, %311 : vector<8x512xf32>
    %313 = vector.extract_strided_slice %312 {offsets = [0, 0], sizes = [8, 128], strides = [1, 1]} : vector<8x512xf32> to vector<8x128xf32>
    %314 = arith.negf %313 : vector<8x128xf32>
    %315 = math.exp %314 : vector<8x128xf32>
    %cst_100 = arith.constant 1.000000e+00 : f32
    %316 = vector.broadcast %cst_100 : f32 to vector<8x128xf32>
    %317 = arith.addf %316, %315 : vector<8x128xf32>
    %318 = arith.divf %316, %317 : vector<8x128xf32>
    %319 = vector.extract_strided_slice %312 {offsets = [0, 128], sizes = [8, 128], strides = [1, 1]} : vector<8x512xf32> to vector<8x128xf32>
    %320 = arith.negf %319 : vector<8x128xf32>
    %321 = math.exp %320 : vector<8x128xf32>
    %cst_101 = arith.constant 1.000000e+00 : f32
    %322 = vector.broadcast %cst_101 : f32 to vector<8x128xf32>
    %323 = arith.addf %322, %321 : vector<8x128xf32>
    %324 = arith.divf %322, %323 : vector<8x128xf32>
    %325 = vector.extract_strided_slice %312 {offsets = [0, 256], sizes = [8, 128], strides = [1, 1]} : vector<8x512xf32> to vector<8x128xf32>
    %326 = math.tanh %325 : vector<8x128xf32>
    %327 = vector.extract_strided_slice %312 {offsets = [0, 384], sizes = [8, 128], strides = [1, 1]} : vector<8x512xf32> to vector<8x128xf32>
    %328 = arith.negf %327 : vector<8x128xf32>
    %329 = math.exp %328 : vector<8x128xf32>
    %cst_102 = arith.constant 1.000000e+00 : f32
    %330 = vector.broadcast %cst_102 : f32 to vector<8x128xf32>
    %331 = arith.addf %330, %329 : vector<8x128xf32>
    %332 = arith.divf %330, %331 : vector<8x128xf32>
    %333 = arith.mulf %324, %306 : vector<8x128xf32>
    %334 = arith.mulf %318, %326 : vector<8x128xf32>
    %335 = arith.addf %333, %334 : vector<8x128xf32>
    %336 = math.tanh %335 : vector<8x128xf32>
    %337 = arith.mulf %332, %336 : vector<8x128xf32>
    %c16_103 = arith.constant 16 : index
    %c0_104 = arith.constant 0 : index
    %338 = vector.load %arg14[%c16_103, %c0_104] : memref<64x128xf32, #tpu.memory_space<vmem>>, vector<8x128xf32>
    tpu.vector_store %arg14[%c16_103, %c0_104], %337 {strides = array<i32>} : memref<64x128xf32, #tpu.memory_space<vmem>>, vector<8x128xf32>,
    %c24_105 = arith.constant 24 : index
    %c0_106 = arith.constant 0 : index
    %339 = vector.load %arg15[%c24_105, %c0_106] : memref<64x512xf32, #tpu.memory_space<vmem>>, vector<8x512xf32>
    %cst_107 = arith.constant dense<0.000000e+00> : vector<8x512xf32>
    %340 = tpu.matmul %337, %249, %cst_107 {dimension_numbers = #tpu.dot_dimension_numbers<[1], [0], [0], [1], [0, 0, 1, 1], [], []>} : vector<8x128xf32>, vector<128x512xf32>, vector<8x512xf32> -> vector<8x512xf32>
    %341 = arith.addf %339, %340 : vector<8x512xf32>
    %342 = vector.extract_strided_slice %341 {offsets = [0, 0], sizes = [8, 128], strides = [1, 1]} : vector<8x512xf32> to vector<8x128xf32>
    %343 = arith.negf %342 : vector<8x128xf32>
    %344 = math.exp %343 : vector<8x128xf32>
    %cst_108 = arith.constant 1.000000e+00 : f32
    %345 = vector.broadcast %cst_108 : f32 to vector<8x128xf32>
    %346 = arith.addf %345, %344 : vector<8x128xf32>
    %347 = arith.divf %345, %346 : vector<8x128xf32>
    %348 = vector.extract_strided_slice %341 {offsets = [0, 128], sizes = [8, 128], strides = [1, 1]} : vector<8x512xf32> to vector<8x128xf32>
    %349 = arith.negf %348 : vector<8x128xf32>
    %350 = math.exp %349 : vector<8x128xf32>
    %cst_109 = arith.constant 1.000000e+00 : f32
    %351 = vector.broadcast %cst_109 : f32 to vector<8x128xf32>
    %352 = arith.addf %351, %350 : vector<8x128xf32>
    %353 = arith.divf %351, %352 : vector<8x128xf32>
    %354 = vector.extract_strided_slice %341 {offsets = [0, 256], sizes = [8, 128], strides = [1, 1]} : vector<8x512xf32> to vector<8x128xf32>
    %355 = math.tanh %354 : vector<8x128xf32>
    %356 = vector.extract_strided_slice %341 {offsets = [0, 384], sizes = [8, 128], strides = [1, 1]} : vector<8x512xf32> to vector<8x128xf32>
    %357 = arith.negf %356 : vector<8x128xf32>
    %358 = math.exp %357 : vector<8x128xf32>
    %cst_110 = arith.constant 1.000000e+00 : f32
    %359 = vector.broadcast %cst_110 : f32 to vector<8x128xf32>
    %360 = arith.addf %359, %358 : vector<8x128xf32>
    %361 = arith.divf %359, %360 : vector<8x128xf32>
    %362 = arith.mulf %353, %335 : vector<8x128xf32>
    %363 = arith.mulf %347, %355 : vector<8x128xf32>
    %364 = arith.addf %362, %363 : vector<8x128xf32>
    %365 = math.tanh %364 : vector<8x128xf32>
    %366 = arith.mulf %361, %365 : vector<8x128xf32>
    %c24_111 = arith.constant 24 : index
    %c0_112 = arith.constant 0 : index
    %367 = vector.load %arg14[%c24_111, %c0_112] : memref<64x128xf32, #tpu.memory_space<vmem>>, vector<8x128xf32>
    tpu.vector_store %arg14[%c24_111, %c0_112], %366 {strides = array<i32>} : memref<64x128xf32, #tpu.memory_space<vmem>>, vector<8x128xf32>,
    %c32_113 = arith.constant 32 : index
    %c0_114 = arith.constant 0 : index
    %368 = vector.load %arg15[%c32_113, %c0_114] : memref<64x512xf32, #tpu.memory_space<vmem>>, vector<8x512xf32>
    %cst_115 = arith.constant dense<0.000000e+00> : vector<8x512xf32>
    %369 = tpu.matmul %366, %249, %cst_115 {dimension_numbers = #tpu.dot_dimension_numbers<[1], [0], [0], [1], [0, 0, 1, 1], [], []>} : vector<8x128xf32>, vector<128x512xf32>, vector<8x512xf32> -> vector<8x512xf32>
    %370 = arith.addf %368, %369 : vector<8x512xf32>
    %371 = vector.extract_strided_slice %370 {offsets = [0, 0], sizes = [8, 128], strides = [1, 1]} : vector<8x512xf32> to vector<8x128xf32>
    %372 = arith.negf %371 : vector<8x128xf32>
    %373 = math.exp %372 : vector<8x128xf32>
    %cst_116 = arith.constant 1.000000e+00 : f32
    %374 = vector.broadcast %cst_116 : f32 to vector<8x128xf32>
    %375 = arith.addf %374, %373 : vector<8x128xf32>
    %376 = arith.divf %374, %375 : vector<8x128xf32>
    %377 = vector.extract_strided_slice %370 {offsets = [0, 128], sizes = [8, 128], strides = [1, 1]} : vector<8x512xf32> to vector<8x128xf32>
    %378 = arith.negf %377 : vector<8x128xf32>
    %379 = math.exp %378 : vector<8x128xf32>
    %cst_117 = arith.constant 1.000000e+00 : f32
    %380 = vector.broadcast %cst_117 : f32 to vector<8x128xf32>
    %381 = arith.addf %380, %379 : vector<8x128xf32>
    %382 = arith.divf %380, %381 : vector<8x128xf32>
    %383 = vector.extract_strided_slice %370 {offsets = [0, 256], sizes = [8, 128], strides = [1, 1]} : vector<8x512xf32> to vector<8x128xf32>
    %384 = math.tanh %383 : vector<8x128xf32>
    %385 = vector.extract_strided_slice %370 {offsets = [0, 384], sizes = [8, 128], strides = [1, 1]} : vector<8x512xf32> to vector<8x128xf32>
    %386 = arith.negf %385 : vector<8x128xf32>
    %387 = math.exp %386 : vector<8x128xf32>
    %cst_118 = arith.constant 1.000000e+00 : f32
    %388 = vector.broadcast %cst_118 : f32 to vector<8x128xf32>
    %389 = arith.addf %388, %387 : vector<8x128xf32>
    %390 = arith.divf %388, %389 : vector<8x128xf32>
    %391 = arith.mulf %382, %364 : vector<8x128xf32>
    %392 = arith.mulf %376, %384 : vector<8x128xf32>
    %393 = arith.addf %391, %392 : vector<8x128xf32>
    %394 = math.tanh %393 : vector<8x128xf32>
    %395 = arith.mulf %390, %394 : vector<8x128xf32>
    %c32_119 = arith.constant 32 : index
    %c0_120 = arith.constant 0 : index
    %396 = vector.load %arg14[%c32_119, %c0_120] : memref<64x128xf32, #tpu.memory_space<vmem>>, vector<8x128xf32>
    tpu.vector_store %arg14[%c32_119, %c0_120], %395 {strides = array<i32>} : memref<64x128xf32, #tpu.memory_space<vmem>>, vector<8x128xf32>,
    %c40_121 = arith.constant 40 : index
    %c0_122 = arith.constant 0 : index
    %397 = vector.load %arg15[%c40_121, %c0_122] : memref<64x512xf32, #tpu.memory_space<vmem>>, vector<8x512xf32>
    %cst_123 = arith.constant dense<0.000000e+00> : vector<8x512xf32>
    %398 = tpu.matmul %395, %249, %cst_123 {dimension_numbers = #tpu.dot_dimension_numbers<[1], [0], [0], [1], [0, 0, 1, 1], [], []>} : vector<8x128xf32>, vector<128x512xf32>, vector<8x512xf32> -> vector<8x512xf32>
    %399 = arith.addf %397, %398 : vector<8x512xf32>
    %400 = vector.extract_strided_slice %399 {offsets = [0, 0], sizes = [8, 128], strides = [1, 1]} : vector<8x512xf32> to vector<8x128xf32>
    %401 = arith.negf %400 : vector<8x128xf32>
    %402 = math.exp %401 : vector<8x128xf32>
    %cst_124 = arith.constant 1.000000e+00 : f32
    %403 = vector.broadcast %cst_124 : f32 to vector<8x128xf32>
    %404 = arith.addf %403, %402 : vector<8x128xf32>
    %405 = arith.divf %403, %404 : vector<8x128xf32>
    %406 = vector.extract_strided_slice %399 {offsets = [0, 128], sizes = [8, 128], strides = [1, 1]} : vector<8x512xf32> to vector<8x128xf32>
    %407 = arith.negf %406 : vector<8x128xf32>
    %408 = math.exp %407 : vector<8x128xf32>
    %cst_125 = arith.constant 1.000000e+00 : f32
    %409 = vector.broadcast %cst_125 : f32 to vector<8x128xf32>
    %410 = arith.addf %409, %408 : vector<8x128xf32>
    %411 = arith.divf %409, %410 : vector<8x128xf32>
    %412 = vector.extract_strided_slice %399 {offsets = [0, 256], sizes = [8, 128], strides = [1, 1]} : vector<8x512xf32> to vector<8x128xf32>
    %413 = math.tanh %412 : vector<8x128xf32>
    %414 = vector.extract_strided_slice %399 {offsets = [0, 384], sizes = [8, 128], strides = [1, 1]} : vector<8x512xf32> to vector<8x128xf32>
    %415 = arith.negf %414 : vector<8x128xf32>
    %416 = math.exp %415 : vector<8x128xf32>
    %cst_126 = arith.constant 1.000000e+00 : f32
    %417 = vector.broadcast %cst_126 : f32 to vector<8x128xf32>
    %418 = arith.addf %417, %416 : vector<8x128xf32>
    %419 = arith.divf %417, %418 : vector<8x128xf32>
    %420 = arith.mulf %411, %393 : vector<8x128xf32>
    %421 = arith.mulf %405, %413 : vector<8x128xf32>
    %422 = arith.addf %420, %421 : vector<8x128xf32>
    %423 = math.tanh %422 : vector<8x128xf32>
    %424 = arith.mulf %419, %423 : vector<8x128xf32>
    %c40_127 = arith.constant 40 : index
    %c0_128 = arith.constant 0 : index
    %425 = vector.load %arg14[%c40_127, %c0_128] : memref<64x128xf32, #tpu.memory_space<vmem>>, vector<8x128xf32>
    tpu.vector_store %arg14[%c40_127, %c0_128], %424 {strides = array<i32>} : memref<64x128xf32, #tpu.memory_space<vmem>>, vector<8x128xf32>,
    %c48_129 = arith.constant 48 : index
    %c0_130 = arith.constant 0 : index
    %426 = vector.load %arg15[%c48_129, %c0_130] : memref<64x512xf32, #tpu.memory_space<vmem>>, vector<8x512xf32>
    %cst_131 = arith.constant dense<0.000000e+00> : vector<8x512xf32>
    %427 = tpu.matmul %424, %249, %cst_131 {dimension_numbers = #tpu.dot_dimension_numbers<[1], [0], [0], [1], [0, 0, 1, 1], [], []>} : vector<8x128xf32>, vector<128x512xf32>, vector<8x512xf32> -> vector<8x512xf32>
    %428 = arith.addf %426, %427 : vector<8x512xf32>
    %429 = vector.extract_strided_slice %428 {offsets = [0, 0], sizes = [8, 128], strides = [1, 1]} : vector<8x512xf32> to vector<8x128xf32>
    %430 = arith.negf %429 : vector<8x128xf32>
    %431 = math.exp %430 : vector<8x128xf32>
    %cst_132 = arith.constant 1.000000e+00 : f32
    %432 = vector.broadcast %cst_132 : f32 to vector<8x128xf32>
    %433 = arith.addf %432, %431 : vector<8x128xf32>
    %434 = arith.divf %432, %433 : vector<8x128xf32>
    %435 = vector.extract_strided_slice %428 {offsets = [0, 128], sizes = [8, 128], strides = [1, 1]} : vector<8x512xf32> to vector<8x128xf32>
    %436 = arith.negf %435 : vector<8x128xf32>
    %437 = math.exp %436 : vector<8x128xf32>
    %cst_133 = arith.constant 1.000000e+00 : f32
    %438 = vector.broadcast %cst_133 : f32 to vector<8x128xf32>
    %439 = arith.addf %438, %437 : vector<8x128xf32>
    %440 = arith.divf %438, %439 : vector<8x128xf32>
    %441 = vector.extract_strided_slice %428 {offsets = [0, 256], sizes = [8, 128], strides = [1, 1]} : vector<8x512xf32> to vector<8x128xf32>
    %442 = math.tanh %441 : vector<8x128xf32>
    %443 = vector.extract_strided_slice %428 {offsets = [0, 384], sizes = [8, 128], strides = [1, 1]} : vector<8x512xf32> to vector<8x128xf32>
    %444 = arith.negf %443 : vector<8x128xf32>
    %445 = math.exp %444 : vector<8x128xf32>
    %cst_134 = arith.constant 1.000000e+00 : f32
    %446 = vector.broadcast %cst_134 : f32 to vector<8x128xf32>
    %447 = arith.addf %446, %445 : vector<8x128xf32>
    %448 = arith.divf %446, %447 : vector<8x128xf32>
    %449 = arith.mulf %440, %422 : vector<8x128xf32>
    %450 = arith.mulf %434, %442 : vector<8x128xf32>
    %451 = arith.addf %449, %450 : vector<8x128xf32>
    %452 = math.tanh %451 : vector<8x128xf32>
    %453 = arith.mulf %448, %452 : vector<8x128xf32>
    %c48_135 = arith.constant 48 : index
    %c0_136 = arith.constant 0 : index
    %454 = vector.load %arg14[%c48_135, %c0_136] : memref<64x128xf32, #tpu.memory_space<vmem>>, vector<8x128xf32>
    tpu.vector_store %arg14[%c48_135, %c0_136], %453 {strides = array<i32>} : memref<64x128xf32, #tpu.memory_space<vmem>>, vector<8x128xf32>,
    %c56_137 = arith.constant 56 : index
    %c0_138 = arith.constant 0 : index
    %455 = vector.load %arg15[%c56_137, %c0_138] : memref<64x512xf32, #tpu.memory_space<vmem>>, vector<8x512xf32>
    %cst_139 = arith.constant dense<0.000000e+00> : vector<8x512xf32>
    %456 = tpu.matmul %453, %249, %cst_139 {dimension_numbers = #tpu.dot_dimension_numbers<[1], [0], [0], [1], [0, 0, 1, 1], [], []>} : vector<8x128xf32>, vector<128x512xf32>, vector<8x512xf32> -> vector<8x512xf32>
    %457 = arith.addf %455, %456 : vector<8x512xf32>
    %458 = vector.extract_strided_slice %457 {offsets = [0, 0], sizes = [8, 128], strides = [1, 1]} : vector<8x512xf32> to vector<8x128xf32>
    %459 = arith.negf %458 : vector<8x128xf32>
    %460 = math.exp %459 : vector<8x128xf32>
    %cst_140 = arith.constant 1.000000e+00 : f32
    %461 = vector.broadcast %cst_140 : f32 to vector<8x128xf32>
    %462 = arith.addf %461, %460 : vector<8x128xf32>
    %463 = arith.divf %461, %462 : vector<8x128xf32>
    %464 = vector.extract_strided_slice %457 {offsets = [0, 128], sizes = [8, 128], strides = [1, 1]} : vector<8x512xf32> to vector<8x128xf32>
    %465 = arith.negf %464 : vector<8x128xf32>
    %466 = math.exp %465 : vector<8x128xf32>
    %cst_141 = arith.constant 1.000000e+00 : f32
    %467 = vector.broadcast %cst_141 : f32 to vector<8x128xf32>
    %468 = arith.addf %467, %466 : vector<8x128xf32>
    %469 = arith.divf %467, %468 : vector<8x128xf32>
    %470 = vector.extract_strided_slice %457 {offsets = [0, 256], sizes = [8, 128], strides = [1, 1]} : vector<8x512xf32> to vector<8x128xf32>
    %471 = math.tanh %470 : vector<8x128xf32>
    %472 = vector.extract_strided_slice %457 {offsets = [0, 384], sizes = [8, 128], strides = [1, 1]} : vector<8x512xf32> to vector<8x128xf32>
    %473 = arith.negf %472 : vector<8x128xf32>
    %474 = math.exp %473 : vector<8x128xf32>
    %cst_142 = arith.constant 1.000000e+00 : f32
    %475 = vector.broadcast %cst_142 : f32 to vector<8x128xf32>
    %476 = arith.addf %475, %474 : vector<8x128xf32>
    %477 = arith.divf %475, %476 : vector<8x128xf32>
    %478 = arith.mulf %469, %451 : vector<8x128xf32>
    %479 = arith.mulf %463, %471 : vector<8x128xf32>
    %480 = arith.addf %478, %479 : vector<8x128xf32>
    %481 = math.tanh %480 : vector<8x128xf32>
    %482 = arith.mulf %477, %481 : vector<8x128xf32>
    %c56_143 = arith.constant 56 : index
    %c0_144 = arith.constant 0 : index
    %483 = vector.load %arg14[%c56_143, %c0_144] : memref<64x128xf32, #tpu.memory_space<vmem>>, vector<8x128xf32>
    tpu.vector_store %arg14[%c56_143, %c0_144], %482 {strides = array<i32>} : memref<64x128xf32, #tpu.memory_space<vmem>>, vector<8x128xf32>,
    %c0_145 = arith.constant 0 : index
    %c0_146 = arith.constant 0 : index
    %484 = vector.load %arg14[%c0_145, %c0_146] : memref<64x128xf32, #tpu.memory_space<vmem>>, vector<64x128xf32>
    %c0_147 = arith.constant 0 : index
    %c0_148 = arith.constant 0 : index
    %485 = vector.load %arg7[%c0_147, %c0_148] : memref<128x512xf32, #tpu.memory_space<vmem>>, vector<128x512xf32>
    %cst_149 = arith.constant dense<0.000000e+00> : vector<64x512xf32>
    %486 = tpu.matmul %484, %485, %cst_149 {dimension_numbers = #tpu.dot_dimension_numbers<[1], [0], [0], [1], [0, 0, 1, 1], [], []>} : vector<64x128xf32>, vector<128x512xf32>, vector<64x512xf32> -> vector<64x512xf32>
    %c0_150 = arith.constant 0 : index
    %c0_151 = arith.constant 0 : index
    %487 = vector.load %arg9[%c0_150, %c0_151] : memref<1x512xf32, #tpu.memory_space<vmem>>, vector<1x512xf32>
    %488 = vector.broadcast %487 : vector<1x512xf32> to vector<64x512xf32>
    %489 = arith.addf %486, %488 : vector<64x512xf32>
    %c0_152 = arith.constant 0 : index
    %c0_153 = arith.constant 0 : index
    %490 = vector.load %arg15[%c0_152, %c0_153] : memref<64x512xf32, #tpu.memory_space<vmem>>, vector<64x512xf32>
    tpu.vector_store %arg15[%c0_152, %c0_153], %489 {strides = array<i32>} : memref<64x512xf32, #tpu.memory_space<vmem>>, vector<64x512xf32>,
    %c0_154 = arith.constant 0 : index
    %c0_155 = arith.constant 0 : index
    %491 = vector.load %arg8[%c0_154, %c0_155] : memref<128x512xf32, #tpu.memory_space<vmem>>, vector<128x512xf32>
    %cst_156 = arith.constant 0.000000e+00 : f32
    %492 = vector.broadcast %cst_156 : f32 to vector<8x128xf32>
    %cst_157 = arith.constant 0.000000e+00 : f32
    %493 = vector.broadcast %cst_157 : f32 to vector<8x128xf32>
    %c0_158 = arith.constant 0 : index
    %c0_159 = arith.constant 0 : index
    %494 = vector.load %arg15[%c0_158, %c0_159] : memref<64x512xf32, #tpu.memory_space<vmem>>, vector<8x512xf32>
    %cst_160 = arith.constant dense<0.000000e+00> : vector<8x512xf32>
    %495 = tpu.matmul %492, %491, %cst_160 {dimension_numbers = #tpu.dot_dimension_numbers<[1], [0], [0], [1], [0, 0, 1, 1], [], []>} : vector<8x128xf32>, vector<128x512xf32>, vector<8x512xf32> -> vector<8x512xf32>
    %496 = arith.addf %494, %495 : vector<8x512xf32>
    %497 = vector.extract_strided_slice %496 {offsets = [0, 0], sizes = [8, 128], strides = [1, 1]} : vector<8x512xf32> to vector<8x128xf32>
    %498 = arith.negf %497 : vector<8x128xf32>
    %499 = math.exp %498 : vector<8x128xf32>
    %cst_161 = arith.constant 1.000000e+00 : f32
    %500 = vector.broadcast %cst_161 : f32 to vector<8x128xf32>
    %501 = arith.addf %500, %499 : vector<8x128xf32>
    %502 = arith.divf %500, %501 : vector<8x128xf32>
    %503 = vector.extract_strided_slice %496 {offsets = [0, 128], sizes = [8, 128], strides = [1, 1]} : vector<8x512xf32> to vector<8x128xf32>
    %504 = arith.negf %503 : vector<8x128xf32>
    %505 = math.exp %504 : vector<8x128xf32>
    %cst_162 = arith.constant 1.000000e+00 : f32
    %506 = vector.broadcast %cst_162 : f32 to vector<8x128xf32>
    %507 = arith.addf %506, %505 : vector<8x128xf32>
    %508 = arith.divf %506, %507 : vector<8x128xf32>
    %509 = vector.extract_strided_slice %496 {offsets = [0, 256], sizes = [8, 128], strides = [1, 1]} : vector<8x512xf32> to vector<8x128xf32>
    %510 = math.tanh %509 : vector<8x128xf32>
    %511 = vector.extract_strided_slice %496 {offsets = [0, 384], sizes = [8, 128], strides = [1, 1]} : vector<8x512xf32> to vector<8x128xf32>
    %512 = arith.negf %511 : vector<8x128xf32>
    %513 = math.exp %512 : vector<8x128xf32>
    %cst_163 = arith.constant 1.000000e+00 : f32
    %514 = vector.broadcast %cst_163 : f32 to vector<8x128xf32>
    %515 = arith.addf %514, %513 : vector<8x128xf32>
    %516 = arith.divf %514, %515 : vector<8x128xf32>
    %517 = arith.mulf %508, %493 : vector<8x128xf32>
    %518 = arith.mulf %502, %510 : vector<8x128xf32>
    %519 = arith.addf %517, %518 : vector<8x128xf32>
    %520 = math.tanh %519 : vector<8x128xf32>
    %521 = arith.mulf %516, %520 : vector<8x128xf32>
    %c0_164 = arith.constant 0 : index
    %c0_165 = arith.constant 0 : index
    %522 = vector.load %arg14[%c0_164, %c0_165] : memref<64x128xf32, #tpu.memory_space<vmem>>, vector<8x128xf32>
    tpu.vector_store %arg14[%c0_164, %c0_165], %521 {strides = array<i32>} : memref<64x128xf32, #tpu.memory_space<vmem>>, vector<8x128xf32>,
    %c8_166 = arith.constant 8 : index
    %c0_167 = arith.constant 0 : index
    %523 = vector.load %arg15[%c8_166, %c0_167] : memref<64x512xf32, #tpu.memory_space<vmem>>, vector<8x512xf32>
    %cst_168 = arith.constant dense<0.000000e+00> : vector<8x512xf32>
    %524 = tpu.matmul %521, %491, %cst_168 {dimension_numbers = #tpu.dot_dimension_numbers<[1], [0], [0], [1], [0, 0, 1, 1], [], []>} : vector<8x128xf32>, vector<128x512xf32>, vector<8x512xf32> -> vector<8x512xf32>
    %525 = arith.addf %523, %524 : vector<8x512xf32>
    %526 = vector.extract_strided_slice %525 {offsets = [0, 0], sizes = [8, 128], strides = [1, 1]} : vector<8x512xf32> to vector<8x128xf32>
    %527 = arith.negf %526 : vector<8x128xf32>
    %528 = math.exp %527 : vector<8x128xf32>
    %cst_169 = arith.constant 1.000000e+00 : f32
    %529 = vector.broadcast %cst_169 : f32 to vector<8x128xf32>
    %530 = arith.addf %529, %528 : vector<8x128xf32>
    %531 = arith.divf %529, %530 : vector<8x128xf32>
    %532 = vector.extract_strided_slice %525 {offsets = [0, 128], sizes = [8, 128], strides = [1, 1]} : vector<8x512xf32> to vector<8x128xf32>
    %533 = arith.negf %532 : vector<8x128xf32>
    %534 = math.exp %533 : vector<8x128xf32>
    %cst_170 = arith.constant 1.000000e+00 : f32
    %535 = vector.broadcast %cst_170 : f32 to vector<8x128xf32>
    %536 = arith.addf %535, %534 : vector<8x128xf32>
    %537 = arith.divf %535, %536 : vector<8x128xf32>
    %538 = vector.extract_strided_slice %525 {offsets = [0, 256], sizes = [8, 128], strides = [1, 1]} : vector<8x512xf32> to vector<8x128xf32>
    %539 = math.tanh %538 : vector<8x128xf32>
    %540 = vector.extract_strided_slice %525 {offsets = [0, 384], sizes = [8, 128], strides = [1, 1]} : vector<8x512xf32> to vector<8x128xf32>
    %541 = arith.negf %540 : vector<8x128xf32>
    %542 = math.exp %541 : vector<8x128xf32>
    %cst_171 = arith.constant 1.000000e+00 : f32
    %543 = vector.broadcast %cst_171 : f32 to vector<8x128xf32>
    %544 = arith.addf %543, %542 : vector<8x128xf32>
    %545 = arith.divf %543, %544 : vector<8x128xf32>
    %546 = arith.mulf %537, %519 : vector<8x128xf32>
    %547 = arith.mulf %531, %539 : vector<8x128xf32>
    %548 = arith.addf %546, %547 : vector<8x128xf32>
    %549 = math.tanh %548 : vector<8x128xf32>
    %550 = arith.mulf %545, %549 : vector<8x128xf32>
    %c8_172 = arith.constant 8 : index
    %c0_173 = arith.constant 0 : index
    %551 = vector.load %arg14[%c8_172, %c0_173] : memref<64x128xf32, #tpu.memory_space<vmem>>, vector<8x128xf32>
    tpu.vector_store %arg14[%c8_172, %c0_173], %550 {strides = array<i32>} : memref<64x128xf32, #tpu.memory_space<vmem>>, vector<8x128xf32>,
    %c16_174 = arith.constant 16 : index
    %c0_175 = arith.constant 0 : index
    %552 = vector.load %arg15[%c16_174, %c0_175] : memref<64x512xf32, #tpu.memory_space<vmem>>, vector<8x512xf32>
    %cst_176 = arith.constant dense<0.000000e+00> : vector<8x512xf32>
    %553 = tpu.matmul %550, %491, %cst_176 {dimension_numbers = #tpu.dot_dimension_numbers<[1], [0], [0], [1], [0, 0, 1, 1], [], []>} : vector<8x128xf32>, vector<128x512xf32>, vector<8x512xf32> -> vector<8x512xf32>
    %554 = arith.addf %552, %553 : vector<8x512xf32>
    %555 = vector.extract_strided_slice %554 {offsets = [0, 0], sizes = [8, 128], strides = [1, 1]} : vector<8x512xf32> to vector<8x128xf32>
    %556 = arith.negf %555 : vector<8x128xf32>
    %557 = math.exp %556 : vector<8x128xf32>
    %cst_177 = arith.constant 1.000000e+00 : f32
    %558 = vector.broadcast %cst_177 : f32 to vector<8x128xf32>
    %559 = arith.addf %558, %557 : vector<8x128xf32>
    %560 = arith.divf %558, %559 : vector<8x128xf32>
    %561 = vector.extract_strided_slice %554 {offsets = [0, 128], sizes = [8, 128], strides = [1, 1]} : vector<8x512xf32> to vector<8x128xf32>
    %562 = arith.negf %561 : vector<8x128xf32>
    %563 = math.exp %562 : vector<8x128xf32>
    %cst_178 = arith.constant 1.000000e+00 : f32
    %564 = vector.broadcast %cst_178 : f32 to vector<8x128xf32>
    %565 = arith.addf %564, %563 : vector<8x128xf32>
    %566 = arith.divf %564, %565 : vector<8x128xf32>
    %567 = vector.extract_strided_slice %554 {offsets = [0, 256], sizes = [8, 128], strides = [1, 1]} : vector<8x512xf32> to vector<8x128xf32>
    %568 = math.tanh %567 : vector<8x128xf32>
    %569 = vector.extract_strided_slice %554 {offsets = [0, 384], sizes = [8, 128], strides = [1, 1]} : vector<8x512xf32> to vector<8x128xf32>
    %570 = arith.negf %569 : vector<8x128xf32>
    %571 = math.exp %570 : vector<8x128xf32>
    %cst_179 = arith.constant 1.000000e+00 : f32
    %572 = vector.broadcast %cst_179 : f32 to vector<8x128xf32>
    %573 = arith.addf %572, %571 : vector<8x128xf32>
    %574 = arith.divf %572, %573 : vector<8x128xf32>
    %575 = arith.mulf %566, %548 : vector<8x128xf32>
    %576 = arith.mulf %560, %568 : vector<8x128xf32>
    %577 = arith.addf %575, %576 : vector<8x128xf32>
    %578 = math.tanh %577 : vector<8x128xf32>
    %579 = arith.mulf %574, %578 : vector<8x128xf32>
    %c16_180 = arith.constant 16 : index
    %c0_181 = arith.constant 0 : index
    %580 = vector.load %arg14[%c16_180, %c0_181] : memref<64x128xf32, #tpu.memory_space<vmem>>, vector<8x128xf32>
    tpu.vector_store %arg14[%c16_180, %c0_181], %579 {strides = array<i32>} : memref<64x128xf32, #tpu.memory_space<vmem>>, vector<8x128xf32>,
    %c24_182 = arith.constant 24 : index
    %c0_183 = arith.constant 0 : index
    %581 = vector.load %arg15[%c24_182, %c0_183] : memref<64x512xf32, #tpu.memory_space<vmem>>, vector<8x512xf32>
    %cst_184 = arith.constant dense<0.000000e+00> : vector<8x512xf32>
    %582 = tpu.matmul %579, %491, %cst_184 {dimension_numbers = #tpu.dot_dimension_numbers<[1], [0], [0], [1], [0, 0, 1, 1], [], []>} : vector<8x128xf32>, vector<128x512xf32>, vector<8x512xf32> -> vector<8x512xf32>
    %583 = arith.addf %581, %582 : vector<8x512xf32>
    %584 = vector.extract_strided_slice %583 {offsets = [0, 0], sizes = [8, 128], strides = [1, 1]} : vector<8x512xf32> to vector<8x128xf32>
    %585 = arith.negf %584 : vector<8x128xf32>
    %586 = math.exp %585 : vector<8x128xf32>
    %cst_185 = arith.constant 1.000000e+00 : f32
    %587 = vector.broadcast %cst_185 : f32 to vector<8x128xf32>
    %588 = arith.addf %587, %586 : vector<8x128xf32>
    %589 = arith.divf %587, %588 : vector<8x128xf32>
    %590 = vector.extract_strided_slice %583 {offsets = [0, 128], sizes = [8, 128], strides = [1, 1]} : vector<8x512xf32> to vector<8x128xf32>
    %591 = arith.negf %590 : vector<8x128xf32>
    %592 = math.exp %591 : vector<8x128xf32>
    %cst_186 = arith.constant 1.000000e+00 : f32
    %593 = vector.broadcast %cst_186 : f32 to vector<8x128xf32>
    %594 = arith.addf %593, %592 : vector<8x128xf32>
    %595 = arith.divf %593, %594 : vector<8x128xf32>
    %596 = vector.extract_strided_slice %583 {offsets = [0, 256], sizes = [8, 128], strides = [1, 1]} : vector<8x512xf32> to vector<8x128xf32>
    %597 = math.tanh %596 : vector<8x128xf32>
    %598 = vector.extract_strided_slice %583 {offsets = [0, 384], sizes = [8, 128], strides = [1, 1]} : vector<8x512xf32> to vector<8x128xf32>
    %599 = arith.negf %598 : vector<8x128xf32>
    %600 = math.exp %599 : vector<8x128xf32>
    %cst_187 = arith.constant 1.000000e+00 : f32
    %601 = vector.broadcast %cst_187 : f32 to vector<8x128xf32>
    %602 = arith.addf %601, %600 : vector<8x128xf32>
    %603 = arith.divf %601, %602 : vector<8x128xf32>
    %604 = arith.mulf %595, %577 : vector<8x128xf32>
    %605 = arith.mulf %589, %597 : vector<8x128xf32>
    %606 = arith.addf %604, %605 : vector<8x128xf32>
    %607 = math.tanh %606 : vector<8x128xf32>
    %608 = arith.mulf %603, %607 : vector<8x128xf32>
    %c24_188 = arith.constant 24 : index
    %c0_189 = arith.constant 0 : index
    %609 = vector.load %arg14[%c24_188, %c0_189] : memref<64x128xf32, #tpu.memory_space<vmem>>, vector<8x128xf32>
    tpu.vector_store %arg14[%c24_188, %c0_189], %608 {strides = array<i32>} : memref<64x128xf32, #tpu.memory_space<vmem>>, vector<8x128xf32>,
    %c32_190 = arith.constant 32 : index
    %c0_191 = arith.constant 0 : index
    %610 = vector.load %arg15[%c32_190, %c0_191] : memref<64x512xf32, #tpu.memory_space<vmem>>, vector<8x512xf32>
    %cst_192 = arith.constant dense<0.000000e+00> : vector<8x512xf32>
    %611 = tpu.matmul %608, %491, %cst_192 {dimension_numbers = #tpu.dot_dimension_numbers<[1], [0], [0], [1], [0, 0, 1, 1], [], []>} : vector<8x128xf32>, vector<128x512xf32>, vector<8x512xf32> -> vector<8x512xf32>
    %612 = arith.addf %610, %611 : vector<8x512xf32>
    %613 = vector.extract_strided_slice %612 {offsets = [0, 0], sizes = [8, 128], strides = [1, 1]} : vector<8x512xf32> to vector<8x128xf32>
    %614 = arith.negf %613 : vector<8x128xf32>
    %615 = math.exp %614 : vector<8x128xf32>
    %cst_193 = arith.constant 1.000000e+00 : f32
    %616 = vector.broadcast %cst_193 : f32 to vector<8x128xf32>
    %617 = arith.addf %616, %615 : vector<8x128xf32>
    %618 = arith.divf %616, %617 : vector<8x128xf32>
    %619 = vector.extract_strided_slice %612 {offsets = [0, 128], sizes = [8, 128], strides = [1, 1]} : vector<8x512xf32> to vector<8x128xf32>
    %620 = arith.negf %619 : vector<8x128xf32>
    %621 = math.exp %620 : vector<8x128xf32>
    %cst_194 = arith.constant 1.000000e+00 : f32
    %622 = vector.broadcast %cst_194 : f32 to vector<8x128xf32>
    %623 = arith.addf %622, %621 : vector<8x128xf32>
    %624 = arith.divf %622, %623 : vector<8x128xf32>
    %625 = vector.extract_strided_slice %612 {offsets = [0, 256], sizes = [8, 128], strides = [1, 1]} : vector<8x512xf32> to vector<8x128xf32>
    %626 = math.tanh %625 : vector<8x128xf32>
    %627 = vector.extract_strided_slice %612 {offsets = [0, 384], sizes = [8, 128], strides = [1, 1]} : vector<8x512xf32> to vector<8x128xf32>
    %628 = arith.negf %627 : vector<8x128xf32>
    %629 = math.exp %628 : vector<8x128xf32>
    %cst_195 = arith.constant 1.000000e+00 : f32
    %630 = vector.broadcast %cst_195 : f32 to vector<8x128xf32>
    %631 = arith.addf %630, %629 : vector<8x128xf32>
    %632 = arith.divf %630, %631 : vector<8x128xf32>
    %633 = arith.mulf %624, %606 : vector<8x128xf32>
    %634 = arith.mulf %618, %626 : vector<8x128xf32>
    %635 = arith.addf %633, %634 : vector<8x128xf32>
    %636 = math.tanh %635 : vector<8x128xf32>
    %637 = arith.mulf %632, %636 : vector<8x128xf32>
    %c32_196 = arith.constant 32 : index
    %c0_197 = arith.constant 0 : index
    %638 = vector.load %arg14[%c32_196, %c0_197] : memref<64x128xf32, #tpu.memory_space<vmem>>, vector<8x128xf32>
    tpu.vector_store %arg14[%c32_196, %c0_197], %637 {strides = array<i32>} : memref<64x128xf32, #tpu.memory_space<vmem>>, vector<8x128xf32>,
    %c40_198 = arith.constant 40 : index
    %c0_199 = arith.constant 0 : index
    %639 = vector.load %arg15[%c40_198, %c0_199] : memref<64x512xf32, #tpu.memory_space<vmem>>, vector<8x512xf32>
    %cst_200 = arith.constant dense<0.000000e+00> : vector<8x512xf32>
    %640 = tpu.matmul %637, %491, %cst_200 {dimension_numbers = #tpu.dot_dimension_numbers<[1], [0], [0], [1], [0, 0, 1, 1], [], []>} : vector<8x128xf32>, vector<128x512xf32>, vector<8x512xf32> -> vector<8x512xf32>
    %641 = arith.addf %639, %640 : vector<8x512xf32>
    %642 = vector.extract_strided_slice %641 {offsets = [0, 0], sizes = [8, 128], strides = [1, 1]} : vector<8x512xf32> to vector<8x128xf32>
    %643 = arith.negf %642 : vector<8x128xf32>
    %644 = math.exp %643 : vector<8x128xf32>
    %cst_201 = arith.constant 1.000000e+00 : f32
    %645 = vector.broadcast %cst_201 : f32 to vector<8x128xf32>
    %646 = arith.addf %645, %644 : vector<8x128xf32>
    %647 = arith.divf %645, %646 : vector<8x128xf32>
    %648 = vector.extract_strided_slice %641 {offsets = [0, 128], sizes = [8, 128], strides = [1, 1]} : vector<8x512xf32> to vector<8x128xf32>
    %649 = arith.negf %648 : vector<8x128xf32>
    %650 = math.exp %649 : vector<8x128xf32>
    %cst_202 = arith.constant 1.000000e+00 : f32
    %651 = vector.broadcast %cst_202 : f32 to vector<8x128xf32>
    %652 = arith.addf %651, %650 : vector<8x128xf32>
    %653 = arith.divf %651, %652 : vector<8x128xf32>
    %654 = vector.extract_strided_slice %641 {offsets = [0, 256], sizes = [8, 128], strides = [1, 1]} : vector<8x512xf32> to vector<8x128xf32>
    %655 = math.tanh %654 : vector<8x128xf32>
    %656 = vector.extract_strided_slice %641 {offsets = [0, 384], sizes = [8, 128], strides = [1, 1]} : vector<8x512xf32> to vector<8x128xf32>
    %657 = arith.negf %656 : vector<8x128xf32>
    %658 = math.exp %657 : vector<8x128xf32>
    %cst_203 = arith.constant 1.000000e+00 : f32
    %659 = vector.broadcast %cst_203 : f32 to vector<8x128xf32>
    %660 = arith.addf %659, %658 : vector<8x128xf32>
    %661 = arith.divf %659, %660 : vector<8x128xf32>
    %662 = arith.mulf %653, %635 : vector<8x128xf32>
    %663 = arith.mulf %647, %655 : vector<8x128xf32>
    %664 = arith.addf %662, %663 : vector<8x128xf32>
    %665 = math.tanh %664 : vector<8x128xf32>
    %666 = arith.mulf %661, %665 : vector<8x128xf32>
    %c40_204 = arith.constant 40 : index
    %c0_205 = arith.constant 0 : index
    %667 = vector.load %arg14[%c40_204, %c0_205] : memref<64x128xf32, #tpu.memory_space<vmem>>, vector<8x128xf32>
    tpu.vector_store %arg14[%c40_204, %c0_205], %666 {strides = array<i32>} : memref<64x128xf32, #tpu.memory_space<vmem>>, vector<8x128xf32>,
    %c48_206 = arith.constant 48 : index
    %c0_207 = arith.constant 0 : index
    %668 = vector.load %arg15[%c48_206, %c0_207] : memref<64x512xf32, #tpu.memory_space<vmem>>, vector<8x512xf32>
    %cst_208 = arith.constant dense<0.000000e+00> : vector<8x512xf32>
    %669 = tpu.matmul %666, %491, %cst_208 {dimension_numbers = #tpu.dot_dimension_numbers<[1], [0], [0], [1], [0, 0, 1, 1], [], []>} : vector<8x128xf32>, vector<128x512xf32>, vector<8x512xf32> -> vector<8x512xf32>
    %670 = arith.addf %668, %669 : vector<8x512xf32>
    %671 = vector.extract_strided_slice %670 {offsets = [0, 0], sizes = [8, 128], strides = [1, 1]} : vector<8x512xf32> to vector<8x128xf32>
    %672 = arith.negf %671 : vector<8x128xf32>
    %673 = math.exp %672 : vector<8x128xf32>
    %cst_209 = arith.constant 1.000000e+00 : f32
    %674 = vector.broadcast %cst_209 : f32 to vector<8x128xf32>
    %675 = arith.addf %674, %673 : vector<8x128xf32>
    %676 = arith.divf %674, %675 : vector<8x128xf32>
    %677 = vector.extract_strided_slice %670 {offsets = [0, 128], sizes = [8, 128], strides = [1, 1]} : vector<8x512xf32> to vector<8x128xf32>
    %678 = arith.negf %677 : vector<8x128xf32>
    %679 = math.exp %678 : vector<8x128xf32>
    %cst_210 = arith.constant 1.000000e+00 : f32
    %680 = vector.broadcast %cst_210 : f32 to vector<8x128xf32>
    %681 = arith.addf %680, %679 : vector<8x128xf32>
    %682 = arith.divf %680, %681 : vector<8x128xf32>
    %683 = vector.extract_strided_slice %670 {offsets = [0, 256], sizes = [8, 128], strides = [1, 1]} : vector<8x512xf32> to vector<8x128xf32>
    %684 = math.tanh %683 : vector<8x128xf32>
    %685 = vector.extract_strided_slice %670 {offsets = [0, 384], sizes = [8, 128], strides = [1, 1]} : vector<8x512xf32> to vector<8x128xf32>
    %686 = arith.negf %685 : vector<8x128xf32>
    %687 = math.exp %686 : vector<8x128xf32>
    %cst_211 = arith.constant 1.000000e+00 : f32
    %688 = vector.broadcast %cst_211 : f32 to vector<8x128xf32>
    %689 = arith.addf %688, %687 : vector<8x128xf32>
    %690 = arith.divf %688, %689 : vector<8x128xf32>
    %691 = arith.mulf %682, %664 : vector<8x128xf32>
    %692 = arith.mulf %676, %684 : vector<8x128xf32>
    %693 = arith.addf %691, %692 : vector<8x128xf32>
    %694 = math.tanh %693 : vector<8x128xf32>
    %695 = arith.mulf %690, %694 : vector<8x128xf32>
    %c48_212 = arith.constant 48 : index
    %c0_213 = arith.constant 0 : index
    %696 = vector.load %arg14[%c48_212, %c0_213] : memref<64x128xf32, #tpu.memory_space<vmem>>, vector<8x128xf32>
    tpu.vector_store %arg14[%c48_212, %c0_213], %695 {strides = array<i32>} : memref<64x128xf32, #tpu.memory_space<vmem>>, vector<8x128xf32>,
    %c56_214 = arith.constant 56 : index
    %c0_215 = arith.constant 0 : index
    %697 = vector.load %arg15[%c56_214, %c0_215] : memref<64x512xf32, #tpu.memory_space<vmem>>, vector<8x512xf32>
    %cst_216 = arith.constant dense<0.000000e+00> : vector<8x512xf32>
    %698 = tpu.matmul %695, %491, %cst_216 {dimension_numbers = #tpu.dot_dimension_numbers<[1], [0], [0], [1], [0, 0, 1, 1], [], []>} : vector<8x128xf32>, vector<128x512xf32>, vector<8x512xf32> -> vector<8x512xf32>
    %699 = arith.addf %697, %698 : vector<8x512xf32>
    %700 = vector.extract_strided_slice %699 {offsets = [0, 0], sizes = [8, 128], strides = [1, 1]} : vector<8x512xf32> to vector<8x128xf32>
    %701 = arith.negf %700 : vector<8x128xf32>
    %702 = math.exp %701 : vector<8x128xf32>
    %cst_217 = arith.constant 1.000000e+00 : f32
    %703 = vector.broadcast %cst_217 : f32 to vector<8x128xf32>
    %704 = arith.addf %703, %702 : vector<8x128xf32>
    %705 = arith.divf %703, %704 : vector<8x128xf32>
    %706 = vector.extract_strided_slice %699 {offsets = [0, 128], sizes = [8, 128], strides = [1, 1]} : vector<8x512xf32> to vector<8x128xf32>
    %707 = arith.negf %706 : vector<8x128xf32>
    %708 = math.exp %707 : vector<8x128xf32>
    %cst_218 = arith.constant 1.000000e+00 : f32
    %709 = vector.broadcast %cst_218 : f32 to vector<8x128xf32>
    %710 = arith.addf %709, %708 : vector<8x128xf32>
    %711 = arith.divf %709, %710 : vector<8x128xf32>
    %712 = vector.extract_strided_slice %699 {offsets = [0, 256], sizes = [8, 128], strides = [1, 1]} : vector<8x512xf32> to vector<8x128xf32>
    %713 = math.tanh %712 : vector<8x128xf32>
    %714 = vector.extract_strided_slice %699 {offsets = [0, 384], sizes = [8, 128], strides = [1, 1]} : vector<8x512xf32> to vector<8x128xf32>
    %715 = arith.negf %714 : vector<8x128xf32>
    %716 = math.exp %715 : vector<8x128xf32>
    %cst_219 = arith.constant 1.000000e+00 : f32
    %717 = vector.broadcast %cst_219 : f32 to vector<8x128xf32>
    %718 = arith.addf %717, %716 : vector<8x128xf32>
    %719 = arith.divf %717, %718 : vector<8x128xf32>
    %720 = arith.mulf %711, %693 : vector<8x128xf32>
    %721 = arith.mulf %705, %713 : vector<8x128xf32>
    %722 = arith.addf %720, %721 : vector<8x128xf32>
    %723 = math.tanh %722 : vector<8x128xf32>
    %724 = arith.mulf %719, %723 : vector<8x128xf32>
    %c56_220 = arith.constant 56 : index
    %c0_221 = arith.constant 0 : index
    %725 = vector.load %arg14[%c56_220, %c0_221] : memref<64x128xf32, #tpu.memory_space<vmem>>, vector<8x128xf32>
    tpu.vector_store %arg14[%c56_220, %c0_221], %724 {strides = array<i32>} : memref<64x128xf32, #tpu.memory_space<vmem>>, vector<8x128xf32>,
    %c0_222 = arith.constant 0 : index
    %c0_223 = arith.constant 0 : index
    %726 = vector.load %arg14[%c0_222, %c0_223] : memref<64x128xf32, #tpu.memory_space<vmem>>, vector<64x128xf32>
    %c0_224 = arith.constant 0 : index
    %c0_225 = arith.constant 0 : index
    %727 = vector.load %arg10[%c0_224, %c0_225] : memref<128x512xf32, #tpu.memory_space<vmem>>, vector<128x512xf32>
    %cst_226 = arith.constant dense<0.000000e+00> : vector<64x512xf32>
    %728 = tpu.matmul %726, %727, %cst_226 {dimension_numbers = #tpu.dot_dimension_numbers<[1], [0], [0], [1], [0, 0, 1, 1], [], []>} : vector<64x128xf32>, vector<128x512xf32>, vector<64x512xf32> -> vector<64x512xf32>
    %c0_227 = arith.constant 0 : index
    %c0_228 = arith.constant 0 : index
    %729 = vector.load %arg12[%c0_227, %c0_228] : memref<1x512xf32, #tpu.memory_space<vmem>>, vector<1x512xf32>
    %730 = vector.broadcast %729 : vector<1x512xf32> to vector<64x512xf32>
    %731 = arith.addf %728, %730 : vector<64x512xf32>
    %c0_229 = arith.constant 0 : index
    %c0_230 = arith.constant 0 : index
    %732 = vector.load %arg15[%c0_229, %c0_230] : memref<64x512xf32, #tpu.memory_space<vmem>>, vector<64x512xf32>
    tpu.vector_store %arg15[%c0_229, %c0_230], %731 {strides = array<i32>} : memref<64x512xf32, #tpu.memory_space<vmem>>, vector<64x512xf32>,
    %c0_231 = arith.constant 0 : index
    %c0_232 = arith.constant 0 : index
    %733 = vector.load %arg11[%c0_231, %c0_232] : memref<128x512xf32, #tpu.memory_space<vmem>>, vector<128x512xf32>
    %cst_233 = arith.constant 0.000000e+00 : f32
    %734 = vector.broadcast %cst_233 : f32 to vector<8x128xf32>
    %cst_234 = arith.constant 0.000000e+00 : f32
    %735 = vector.broadcast %cst_234 : f32 to vector<8x128xf32>
    %c0_235 = arith.constant 0 : index
    %c0_236 = arith.constant 0 : index
    %736 = vector.load %arg15[%c0_235, %c0_236] : memref<64x512xf32, #tpu.memory_space<vmem>>, vector<8x512xf32>
    %cst_237 = arith.constant dense<0.000000e+00> : vector<8x512xf32>
    %737 = tpu.matmul %734, %733, %cst_237 {dimension_numbers = #tpu.dot_dimension_numbers<[1], [0], [0], [1], [0, 0, 1, 1], [], []>} : vector<8x128xf32>, vector<128x512xf32>, vector<8x512xf32> -> vector<8x512xf32>
    %738 = arith.addf %736, %737 : vector<8x512xf32>
    %739 = vector.extract_strided_slice %738 {offsets = [0, 0], sizes = [8, 128], strides = [1, 1]} : vector<8x512xf32> to vector<8x128xf32>
    %740 = arith.negf %739 : vector<8x128xf32>
    %741 = math.exp %740 : vector<8x128xf32>
    %cst_238 = arith.constant 1.000000e+00 : f32
    %742 = vector.broadcast %cst_238 : f32 to vector<8x128xf32>
    %743 = arith.addf %742, %741 : vector<8x128xf32>
    %744 = arith.divf %742, %743 : vector<8x128xf32>
    %745 = vector.extract_strided_slice %738 {offsets = [0, 128], sizes = [8, 128], strides = [1, 1]} : vector<8x512xf32> to vector<8x128xf32>
    %746 = arith.negf %745 : vector<8x128xf32>
    %747 = math.exp %746 : vector<8x128xf32>
    %cst_239 = arith.constant 1.000000e+00 : f32
    %748 = vector.broadcast %cst_239 : f32 to vector<8x128xf32>
    %749 = arith.addf %748, %747 : vector<8x128xf32>
    %750 = arith.divf %748, %749 : vector<8x128xf32>
    %751 = vector.extract_strided_slice %738 {offsets = [0, 256], sizes = [8, 128], strides = [1, 1]} : vector<8x512xf32> to vector<8x128xf32>
    %752 = math.tanh %751 : vector<8x128xf32>
    %753 = vector.extract_strided_slice %738 {offsets = [0, 384], sizes = [8, 128], strides = [1, 1]} : vector<8x512xf32> to vector<8x128xf32>
    %754 = arith.negf %753 : vector<8x128xf32>
    %755 = math.exp %754 : vector<8x128xf32>
    %cst_240 = arith.constant 1.000000e+00 : f32
    %756 = vector.broadcast %cst_240 : f32 to vector<8x128xf32>
    %757 = arith.addf %756, %755 : vector<8x128xf32>
    %758 = arith.divf %756, %757 : vector<8x128xf32>
    %759 = arith.mulf %750, %735 : vector<8x128xf32>
    %760 = arith.mulf %744, %752 : vector<8x128xf32>
    %761 = arith.addf %759, %760 : vector<8x128xf32>
    %762 = math.tanh %761 : vector<8x128xf32>
    %763 = arith.mulf %758, %762 : vector<8x128xf32>
    %c8_241 = arith.constant 8 : index
    %c0_242 = arith.constant 0 : index
    %764 = vector.load %arg15[%c8_241, %c0_242] : memref<64x512xf32, #tpu.memory_space<vmem>>, vector<8x512xf32>
    %cst_243 = arith.constant dense<0.000000e+00> : vector<8x512xf32>
    %765 = tpu.matmul %763, %733, %cst_243 {dimension_numbers = #tpu.dot_dimension_numbers<[1], [0], [0], [1], [0, 0, 1, 1], [], []>} : vector<8x128xf32>, vector<128x512xf32>, vector<8x512xf32> -> vector<8x512xf32>
    %766 = arith.addf %764, %765 : vector<8x512xf32>
    %767 = vector.extract_strided_slice %766 {offsets = [0, 0], sizes = [8, 128], strides = [1, 1]} : vector<8x512xf32> to vector<8x128xf32>
    %768 = arith.negf %767 : vector<8x128xf32>
    %769 = math.exp %768 : vector<8x128xf32>
    %cst_244 = arith.constant 1.000000e+00 : f32
    %770 = vector.broadcast %cst_244 : f32 to vector<8x128xf32>
    %771 = arith.addf %770, %769 : vector<8x128xf32>
    %772 = arith.divf %770, %771 : vector<8x128xf32>
    %773 = vector.extract_strided_slice %766 {offsets = [0, 128], sizes = [8, 128], strides = [1, 1]} : vector<8x512xf32> to vector<8x128xf32>
    %774 = arith.negf %773 : vector<8x128xf32>
    %775 = math.exp %774 : vector<8x128xf32>
    %cst_245 = arith.constant 1.000000e+00 : f32
    %776 = vector.broadcast %cst_245 : f32 to vector<8x128xf32>
    %777 = arith.addf %776, %775 : vector<8x128xf32>
    %778 = arith.divf %776, %777 : vector<8x128xf32>
    %779 = vector.extract_strided_slice %766 {offsets = [0, 256], sizes = [8, 128], strides = [1, 1]} : vector<8x512xf32> to vector<8x128xf32>
    %780 = math.tanh %779 : vector<8x128xf32>
    %781 = vector.extract_strided_slice %766 {offsets = [0, 384], sizes = [8, 128], strides = [1, 1]} : vector<8x512xf32> to vector<8x128xf32>
    %782 = arith.negf %781 : vector<8x128xf32>
    %783 = math.exp %782 : vector<8x128xf32>
    %cst_246 = arith.constant 1.000000e+00 : f32
    %784 = vector.broadcast %cst_246 : f32 to vector<8x128xf32>
    %785 = arith.addf %784, %783 : vector<8x128xf32>
    %786 = arith.divf %784, %785 : vector<8x128xf32>
    %787 = arith.mulf %778, %761 : vector<8x128xf32>
    %788 = arith.mulf %772, %780 : vector<8x128xf32>
    %789 = arith.addf %787, %788 : vector<8x128xf32>
    %790 = math.tanh %789 : vector<8x128xf32>
    %791 = arith.mulf %786, %790 : vector<8x128xf32>
    %c16_247 = arith.constant 16 : index
    %c0_248 = arith.constant 0 : index
    %792 = vector.load %arg15[%c16_247, %c0_248] : memref<64x512xf32, #tpu.memory_space<vmem>>, vector<8x512xf32>
    %cst_249 = arith.constant dense<0.000000e+00> : vector<8x512xf32>
    %793 = tpu.matmul %791, %733, %cst_249 {dimension_numbers = #tpu.dot_dimension_numbers<[1], [0], [0], [1], [0, 0, 1, 1], [], []>} : vector<8x128xf32>, vector<128x512xf32>, vector<8x512xf32> -> vector<8x512xf32>
    %794 = arith.addf %792, %793 : vector<8x512xf32>
    %795 = vector.extract_strided_slice %794 {offsets = [0, 0], sizes = [8, 128], strides = [1, 1]} : vector<8x512xf32> to vector<8x128xf32>
    %796 = arith.negf %795 : vector<8x128xf32>
    %797 = math.exp %796 : vector<8x128xf32>
    %cst_250 = arith.constant 1.000000e+00 : f32
    %798 = vector.broadcast %cst_250 : f32 to vector<8x128xf32>
    %799 = arith.addf %798, %797 : vector<8x128xf32>
    %800 = arith.divf %798, %799 : vector<8x128xf32>
    %801 = vector.extract_strided_slice %794 {offsets = [0, 128], sizes = [8, 128], strides = [1, 1]} : vector<8x512xf32> to vector<8x128xf32>
    %802 = arith.negf %801 : vector<8x128xf32>
    %803 = math.exp %802 : vector<8x128xf32>
    %cst_251 = arith.constant 1.000000e+00 : f32
    %804 = vector.broadcast %cst_251 : f32 to vector<8x128xf32>
    %805 = arith.addf %804, %803 : vector<8x128xf32>
    %806 = arith.divf %804, %805 : vector<8x128xf32>
    %807 = vector.extract_strided_slice %794 {offsets = [0, 256], sizes = [8, 128], strides = [1, 1]} : vector<8x512xf32> to vector<8x128xf32>
    %808 = math.tanh %807 : vector<8x128xf32>
    %809 = vector.extract_strided_slice %794 {offsets = [0, 384], sizes = [8, 128], strides = [1, 1]} : vector<8x512xf32> to vector<8x128xf32>
    %810 = arith.negf %809 : vector<8x128xf32>
    %811 = math.exp %810 : vector<8x128xf32>
    %cst_252 = arith.constant 1.000000e+00 : f32
    %812 = vector.broadcast %cst_252 : f32 to vector<8x128xf32>
    %813 = arith.addf %812, %811 : vector<8x128xf32>
    %814 = arith.divf %812, %813 : vector<8x128xf32>
    %815 = arith.mulf %806, %789 : vector<8x128xf32>
    %816 = arith.mulf %800, %808 : vector<8x128xf32>
    %817 = arith.addf %815, %816 : vector<8x128xf32>
    %818 = math.tanh %817 : vector<8x128xf32>
    %819 = arith.mulf %814, %818 : vector<8x128xf32>
    %c24_253 = arith.constant 24 : index
    %c0_254 = arith.constant 0 : index
    %820 = vector.load %arg15[%c24_253, %c0_254] : memref<64x512xf32, #tpu.memory_space<vmem>>, vector<8x512xf32>
    %cst_255 = arith.constant dense<0.000000e+00> : vector<8x512xf32>
    %821 = tpu.matmul %819, %733, %cst_255 {dimension_numbers = #tpu.dot_dimension_numbers<[1], [0], [0], [1], [0, 0, 1, 1], [], []>} : vector<8x128xf32>, vector<128x512xf32>, vector<8x512xf32> -> vector<8x512xf32>
    %822 = arith.addf %820, %821 : vector<8x512xf32>
    %823 = vector.extract_strided_slice %822 {offsets = [0, 0], sizes = [8, 128], strides = [1, 1]} : vector<8x512xf32> to vector<8x128xf32>
    %824 = arith.negf %823 : vector<8x128xf32>
    %825 = math.exp %824 : vector<8x128xf32>
    %cst_256 = arith.constant 1.000000e+00 : f32
    %826 = vector.broadcast %cst_256 : f32 to vector<8x128xf32>
    %827 = arith.addf %826, %825 : vector<8x128xf32>
    %828 = arith.divf %826, %827 : vector<8x128xf32>
    %829 = vector.extract_strided_slice %822 {offsets = [0, 128], sizes = [8, 128], strides = [1, 1]} : vector<8x512xf32> to vector<8x128xf32>
    %830 = arith.negf %829 : vector<8x128xf32>
    %831 = math.exp %830 : vector<8x128xf32>
    %cst_257 = arith.constant 1.000000e+00 : f32
    %832 = vector.broadcast %cst_257 : f32 to vector<8x128xf32>
    %833 = arith.addf %832, %831 : vector<8x128xf32>
    %834 = arith.divf %832, %833 : vector<8x128xf32>
    %835 = vector.extract_strided_slice %822 {offsets = [0, 256], sizes = [8, 128], strides = [1, 1]} : vector<8x512xf32> to vector<8x128xf32>
    %836 = math.tanh %835 : vector<8x128xf32>
    %837 = vector.extract_strided_slice %822 {offsets = [0, 384], sizes = [8, 128], strides = [1, 1]} : vector<8x512xf32> to vector<8x128xf32>
    %838 = arith.negf %837 : vector<8x128xf32>
    %839 = math.exp %838 : vector<8x128xf32>
    %cst_258 = arith.constant 1.000000e+00 : f32
    %840 = vector.broadcast %cst_258 : f32 to vector<8x128xf32>
    %841 = arith.addf %840, %839 : vector<8x128xf32>
    %842 = arith.divf %840, %841 : vector<8x128xf32>
    %843 = arith.mulf %834, %817 : vector<8x128xf32>
    %844 = arith.mulf %828, %836 : vector<8x128xf32>
    %845 = arith.addf %843, %844 : vector<8x128xf32>
    %846 = math.tanh %845 : vector<8x128xf32>
    %847 = arith.mulf %842, %846 : vector<8x128xf32>
    %c32_259 = arith.constant 32 : index
    %c0_260 = arith.constant 0 : index
    %848 = vector.load %arg15[%c32_259, %c0_260] : memref<64x512xf32, #tpu.memory_space<vmem>>, vector<8x512xf32>
    %cst_261 = arith.constant dense<0.000000e+00> : vector<8x512xf32>
    %849 = tpu.matmul %847, %733, %cst_261 {dimension_numbers = #tpu.dot_dimension_numbers<[1], [0], [0], [1], [0, 0, 1, 1], [], []>} : vector<8x128xf32>, vector<128x512xf32>, vector<8x512xf32> -> vector<8x512xf32>
    %850 = arith.addf %848, %849 : vector<8x512xf32>
    %851 = vector.extract_strided_slice %850 {offsets = [0, 0], sizes = [8, 128], strides = [1, 1]} : vector<8x512xf32> to vector<8x128xf32>
    %852 = arith.negf %851 : vector<8x128xf32>
    %853 = math.exp %852 : vector<8x128xf32>
    %cst_262 = arith.constant 1.000000e+00 : f32
    %854 = vector.broadcast %cst_262 : f32 to vector<8x128xf32>
    %855 = arith.addf %854, %853 : vector<8x128xf32>
    %856 = arith.divf %854, %855 : vector<8x128xf32>
    %857 = vector.extract_strided_slice %850 {offsets = [0, 128], sizes = [8, 128], strides = [1, 1]} : vector<8x512xf32> to vector<8x128xf32>
    %858 = arith.negf %857 : vector<8x128xf32>
    %859 = math.exp %858 : vector<8x128xf32>
    %cst_263 = arith.constant 1.000000e+00 : f32
    %860 = vector.broadcast %cst_263 : f32 to vector<8x128xf32>
    %861 = arith.addf %860, %859 : vector<8x128xf32>
    %862 = arith.divf %860, %861 : vector<8x128xf32>
    %863 = vector.extract_strided_slice %850 {offsets = [0, 256], sizes = [8, 128], strides = [1, 1]} : vector<8x512xf32> to vector<8x128xf32>
    %864 = math.tanh %863 : vector<8x128xf32>
    %865 = vector.extract_strided_slice %850 {offsets = [0, 384], sizes = [8, 128], strides = [1, 1]} : vector<8x512xf32> to vector<8x128xf32>
    %866 = arith.negf %865 : vector<8x128xf32>
    %867 = math.exp %866 : vector<8x128xf32>
    %cst_264 = arith.constant 1.000000e+00 : f32
    %868 = vector.broadcast %cst_264 : f32 to vector<8x128xf32>
    %869 = arith.addf %868, %867 : vector<8x128xf32>
    %870 = arith.divf %868, %869 : vector<8x128xf32>
    %871 = arith.mulf %862, %845 : vector<8x128xf32>
    %872 = arith.mulf %856, %864 : vector<8x128xf32>
    %873 = arith.addf %871, %872 : vector<8x128xf32>
    %874 = math.tanh %873 : vector<8x128xf32>
    %875 = arith.mulf %870, %874 : vector<8x128xf32>
    %c40_265 = arith.constant 40 : index
    %c0_266 = arith.constant 0 : index
    %876 = vector.load %arg15[%c40_265, %c0_266] : memref<64x512xf32, #tpu.memory_space<vmem>>, vector<8x512xf32>
    %cst_267 = arith.constant dense<0.000000e+00> : vector<8x512xf32>
    %877 = tpu.matmul %875, %733, %cst_267 {dimension_numbers = #tpu.dot_dimension_numbers<[1], [0], [0], [1], [0, 0, 1, 1], [], []>} : vector<8x128xf32>, vector<128x512xf32>, vector<8x512xf32> -> vector<8x512xf32>
    %878 = arith.addf %876, %877 : vector<8x512xf32>
    %879 = vector.extract_strided_slice %878 {offsets = [0, 0], sizes = [8, 128], strides = [1, 1]} : vector<8x512xf32> to vector<8x128xf32>
    %880 = arith.negf %879 : vector<8x128xf32>
    %881 = math.exp %880 : vector<8x128xf32>
    %cst_268 = arith.constant 1.000000e+00 : f32
    %882 = vector.broadcast %cst_268 : f32 to vector<8x128xf32>
    %883 = arith.addf %882, %881 : vector<8x128xf32>
    %884 = arith.divf %882, %883 : vector<8x128xf32>
    %885 = vector.extract_strided_slice %878 {offsets = [0, 128], sizes = [8, 128], strides = [1, 1]} : vector<8x512xf32> to vector<8x128xf32>
    %886 = arith.negf %885 : vector<8x128xf32>
    %887 = math.exp %886 : vector<8x128xf32>
    %cst_269 = arith.constant 1.000000e+00 : f32
    %888 = vector.broadcast %cst_269 : f32 to vector<8x128xf32>
    %889 = arith.addf %888, %887 : vector<8x128xf32>
    %890 = arith.divf %888, %889 : vector<8x128xf32>
    %891 = vector.extract_strided_slice %878 {offsets = [0, 256], sizes = [8, 128], strides = [1, 1]} : vector<8x512xf32> to vector<8x128xf32>
    %892 = math.tanh %891 : vector<8x128xf32>
    %893 = vector.extract_strided_slice %878 {offsets = [0, 384], sizes = [8, 128], strides = [1, 1]} : vector<8x512xf32> to vector<8x128xf32>
    %894 = arith.negf %893 : vector<8x128xf32>
    %895 = math.exp %894 : vector<8x128xf32>
    %cst_270 = arith.constant 1.000000e+00 : f32
    %896 = vector.broadcast %cst_270 : f32 to vector<8x128xf32>
    %897 = arith.addf %896, %895 : vector<8x128xf32>
    %898 = arith.divf %896, %897 : vector<8x128xf32>
    %899 = arith.mulf %890, %873 : vector<8x128xf32>
    %900 = arith.mulf %884, %892 : vector<8x128xf32>
    %901 = arith.addf %899, %900 : vector<8x128xf32>
    %902 = math.tanh %901 : vector<8x128xf32>
    %903 = arith.mulf %898, %902 : vector<8x128xf32>
    %c48_271 = arith.constant 48 : index
    %c0_272 = arith.constant 0 : index
    %904 = vector.load %arg15[%c48_271, %c0_272] : memref<64x512xf32, #tpu.memory_space<vmem>>, vector<8x512xf32>
    %cst_273 = arith.constant dense<0.000000e+00> : vector<8x512xf32>
    %905 = tpu.matmul %903, %733, %cst_273 {dimension_numbers = #tpu.dot_dimension_numbers<[1], [0], [0], [1], [0, 0, 1, 1], [], []>} : vector<8x128xf32>, vector<128x512xf32>, vector<8x512xf32> -> vector<8x512xf32>
    %906 = arith.addf %904, %905 : vector<8x512xf32>
    %907 = vector.extract_strided_slice %906 {offsets = [0, 0], sizes = [8, 128], strides = [1, 1]} : vector<8x512xf32> to vector<8x128xf32>
    %908 = arith.negf %907 : vector<8x128xf32>
    %909 = math.exp %908 : vector<8x128xf32>
    %cst_274 = arith.constant 1.000000e+00 : f32
    %910 = vector.broadcast %cst_274 : f32 to vector<8x128xf32>
    %911 = arith.addf %910, %909 : vector<8x128xf32>
    %912 = arith.divf %910, %911 : vector<8x128xf32>
    %913 = vector.extract_strided_slice %906 {offsets = [0, 128], sizes = [8, 128], strides = [1, 1]} : vector<8x512xf32> to vector<8x128xf32>
    %914 = arith.negf %913 : vector<8x128xf32>
    %915 = math.exp %914 : vector<8x128xf32>
    %cst_275 = arith.constant 1.000000e+00 : f32
    %916 = vector.broadcast %cst_275 : f32 to vector<8x128xf32>
    %917 = arith.addf %916, %915 : vector<8x128xf32>
    %918 = arith.divf %916, %917 : vector<8x128xf32>
    %919 = vector.extract_strided_slice %906 {offsets = [0, 256], sizes = [8, 128], strides = [1, 1]} : vector<8x512xf32> to vector<8x128xf32>
    %920 = math.tanh %919 : vector<8x128xf32>
    %921 = vector.extract_strided_slice %906 {offsets = [0, 384], sizes = [8, 128], strides = [1, 1]} : vector<8x512xf32> to vector<8x128xf32>
    %922 = arith.negf %921 : vector<8x128xf32>
    %923 = math.exp %922 : vector<8x128xf32>
    %cst_276 = arith.constant 1.000000e+00 : f32
    %924 = vector.broadcast %cst_276 : f32 to vector<8x128xf32>
    %925 = arith.addf %924, %923 : vector<8x128xf32>
    %926 = arith.divf %924, %925 : vector<8x128xf32>
    %927 = arith.mulf %918, %901 : vector<8x128xf32>
    %928 = arith.mulf %912, %920 : vector<8x128xf32>
    %929 = arith.addf %927, %928 : vector<8x128xf32>
    %930 = math.tanh %929 : vector<8x128xf32>
    %931 = arith.mulf %926, %930 : vector<8x128xf32>
    %c56_277 = arith.constant 56 : index
    %c0_278 = arith.constant 0 : index
    %932 = vector.load %arg15[%c56_277, %c0_278] : memref<64x512xf32, #tpu.memory_space<vmem>>, vector<8x512xf32>
    %cst_279 = arith.constant dense<0.000000e+00> : vector<8x512xf32>
    %933 = tpu.matmul %931, %733, %cst_279 {dimension_numbers = #tpu.dot_dimension_numbers<[1], [0], [0], [1], [0, 0, 1, 1], [], []>} : vector<8x128xf32>, vector<128x512xf32>, vector<8x512xf32> -> vector<8x512xf32>
    %934 = arith.addf %932, %933 : vector<8x512xf32>
    %935 = vector.extract_strided_slice %934 {offsets = [0, 0], sizes = [8, 128], strides = [1, 1]} : vector<8x512xf32> to vector<8x128xf32>
    %936 = arith.negf %935 : vector<8x128xf32>
    %937 = math.exp %936 : vector<8x128xf32>
    %cst_280 = arith.constant 1.000000e+00 : f32
    %938 = vector.broadcast %cst_280 : f32 to vector<8x128xf32>
    %939 = arith.addf %938, %937 : vector<8x128xf32>
    %940 = arith.divf %938, %939 : vector<8x128xf32>
    %941 = vector.extract_strided_slice %934 {offsets = [0, 128], sizes = [8, 128], strides = [1, 1]} : vector<8x512xf32> to vector<8x128xf32>
    %942 = arith.negf %941 : vector<8x128xf32>
    %943 = math.exp %942 : vector<8x128xf32>
    %cst_281 = arith.constant 1.000000e+00 : f32
    %944 = vector.broadcast %cst_281 : f32 to vector<8x128xf32>
    %945 = arith.addf %944, %943 : vector<8x128xf32>
    %946 = arith.divf %944, %945 : vector<8x128xf32>
    %947 = vector.extract_strided_slice %934 {offsets = [0, 256], sizes = [8, 128], strides = [1, 1]} : vector<8x512xf32> to vector<8x128xf32>
    %948 = math.tanh %947 : vector<8x128xf32>
    %949 = vector.extract_strided_slice %934 {offsets = [0, 384], sizes = [8, 128], strides = [1, 1]} : vector<8x512xf32> to vector<8x128xf32>
    %950 = arith.negf %949 : vector<8x128xf32>
    %951 = math.exp %950 : vector<8x128xf32>
    %cst_282 = arith.constant 1.000000e+00 : f32
    %952 = vector.broadcast %cst_282 : f32 to vector<8x128xf32>
    %953 = arith.addf %952, %951 : vector<8x128xf32>
    %954 = arith.divf %952, %953 : vector<8x128xf32>
    %955 = arith.mulf %946, %929 : vector<8x128xf32>
    %956 = arith.mulf %940, %948 : vector<8x128xf32>
    %957 = arith.addf %955, %956 : vector<8x128xf32>
    %958 = math.tanh %957 : vector<8x128xf32>
    %959 = arith.mulf %954, %958 : vector<8x128xf32>
    %c0_283 = arith.constant 0 : index
    %c0_284 = arith.constant 0 : index
    %960 = vector.load %arg13[%c0_283, %c0_284] : memref<16x128xf32, #tpu.memory_space<vmem>>, vector<8x128xf32>
    tpu.vector_store %arg13[%c0_283, %c0_284], %724 {strides = array<i32>} : memref<16x128xf32, #tpu.memory_space<vmem>>, vector<8x128xf32>,
    %c8_285 = arith.constant 8 : index
    %c0_286 = arith.constant 0 : index
    %961 = vector.load %arg13[%c8_285, %c0_286] : memref<16x128xf32, #tpu.memory_space<vmem>>, vector<8x128xf32>
    tpu.vector_store %arg13[%c8_285, %c0_286], %959 {strides = array<i32>} : memref<16x128xf32, #tpu.memory_space<vmem>>, vector<8x128xf32>,
    return
  }
}

</mosaic_0001>

<bundles_post_ra>
// kernel: encoder_forward.1
= control target key start
LH: loop header
LB: loop body
LE: loop exit
PB: predicated region body
PF: predicated region fallthrough
CT: control target
= control target key end

     0   :  { %v14547_v3 = vmov 0.0   ;;  %s14533_s1 = inlined_call_operand.vmem [shape: f32[128,512], index: 1, kind: input, shape index: {}]   ;;  %s14534_s0 = inlined_call_operand.vmem [shape: f32[64,128], index: 0, kind: input, shape index: {}]   ;;  %s14535_s2 = inlined_call_operand.vmem [shape: f32[128,512], index: 2, kind: input, shape index: {}]   ;;  %s14536_s3 = inlined_call_operand.vmem [shape: f32[1,512], index: 3, kind: input, shape index: {}]   ;;  %s14537_s4 = inlined_call_operand.vmem [shape: f32[128,512], index: 4, kind: input, shape index: {}]   ;;  %s14538_s5 = inlined_call_operand.vmem [shape: f32[128,512], index: 5, kind: input, shape index: {}]   ;;  %s14539_s6 = inlined_call_operand.vmem [shape: f32[1,512], index: 6, kind: input, shape index: {}]   ;;  %s14540_s7 = inlined_call_operand.vmem [shape: f32[128,512], index: 7, kind: input, shape index: {}]   ;;  %s14541_s8 = inlined_call_operand.vmem [shape: f32[128,512], index: 8, kind: input, shape index: {}]   ;;  %s14542_s9 = inlined_call_operand.vmem [shape: f32[1,512], index: 9, kind: input, shape index: {}]   ;;  %s14543_s10 = inlined_call_operand.vmem [shape: f32[128,512], index: 10, kind: input, shape index: {}]   ;;  %s14544_s11 = inlined_call_operand.vmem [shape: f32[128,512], index: 11, kind: input, shape index: {}]   ;;  %s14545_s13 = inlined_call_operand.vmem [shape: f32[16,128], index: 13, kind: output, shape index: {}]   ;;  %s14546_s12 = inlined_call_operand.vmem [shape: f32[1,512], index: 12, kind: input, shape index: {}]  }
   0x1   :  { %v113_v0 = vld [vmem:[%s14533_s1 + $0x1e8] sm:$0xff]  ;;  %v115_v1 = vld [vmem:[%s14533_s1 + $0x1f8] sm:$0xff]  ;;  %v112_v2 = vld [vmem:[%s14533_s1 + $0x1e0] sm:$0xff]  ;;  %202 = vmatprep.mubr.f32.mxu0 %v14547_v3  ;;  %315 = vmatprep.mubr.f32.mxu1 %v14547_v3 }
   0x2   :  { %138 = vmatprep.subr.mxu0 %v113_v0  ;;  %251 = vmatprep.subr.mxu1 %v115_v1  ;;  %v114_v4 = vld [vmem:[%s14533_s1 + $0x1f0] sm:$0xff]  ;;  %v109_v5 = vld [vmem:[%s14533_s1 + $0x1c8] sm:$0xff]  ;;  %v111_v6 = vld [vmem:[%s14533_s1 + $0x1d8] sm:$0xff] }
   0x3   :  { %139 = vmatpush1.msra.mxu0 %v112_v2  ;;  %252 = vmatpush1.msra.mxu1 %v114_v4  ;;  %v108_v7 = vld [vmem:[%s14533_s1 + $0x1c0] sm:$0xff]  ;;  %v110_v8 = vld [vmem:[%s14533_s1 + $0x1d0] sm:$0xff]  ;;  %v105_v9 = vld [vmem:[%s14533_s1 + $0x1a8] sm:$0xff] }
   0x4   :  { %140 = vmatprep.subr.mxu0 %v109_v5  ;;  %253 = vmatprep.subr.mxu1 %v111_v6  ;;  %v107_v10 = vld [vmem:[%s14533_s1 + $0x1b8] sm:$0xff]  ;;  %v104_v11 = vld [vmem:[%s14533_s1 + $0x1a0] sm:$0xff]  ;;  %v106_v12 = vld [vmem:[%s14533_s1 + $0x1b0] sm:$0xff] }
   0x5   :  { %141 = vmatpush1.msra.mxu0 %v108_v7  ;;  %254 = vmatpush1.msra.mxu1 %v110_v8  ;;  %v101_v13 = vld [vmem:[%s14533_s1 + $0x188] sm:$0xff]  ;;  %v103_v14 = vld [vmem:[%s14533_s1 + $0x198] sm:$0xff]  ;;  %v100_v15 = vld [vmem:[%s14533_s1 + $0x180] sm:$0xff] }
   0x6   :  { %142 = vmatprep.subr.mxu0 %v105_v9  ;;  %255 = vmatprep.subr.mxu1 %v107_v10  ;;  %v102_v16 = vld [vmem:[%s14533_s1 + $0x190] sm:$0xff]  ;;  %v97_v17 = vld [vmem:[%s14533_s1 + $0x168] sm:$0xff]  ;;  %v99_v18 = vld [vmem:[%s14533_s1 + $0x178] sm:$0xff] }
   0x7   :  { %143 = vmatpush1.msra.mxu0 %v104_v11  ;;  %256 = vmatpush1.msra.mxu1 %v106_v12  ;;  %v96_v19 = vld [vmem:[%s14533_s1 + $0x160] sm:$0xff]  ;;  %v98_v20 = vld [vmem:[%s14533_s1 + $0x170] sm:$0xff]  ;;  %v93_v21 = vld [vmem:[%s14533_s1 + $0x148] sm:$0xff] }
   0x8   :  { %144 = vmatprep.subr.mxu0 %v101_v13  ;;  %257 = vmatprep.subr.mxu1 %v103_v14  ;;  %v95_v22 = vld [vmem:[%s14533_s1 + $0x158] sm:$0xff]  ;;  %v92_v23 = vld [vmem:[%s14533_s1 + $0x140] sm:$0xff]  ;;  %v94_v24 = vld [vmem:[%s14533_s1 + $0x150] sm:$0xff] }
   0x9   :  { %145 = vmatpush1.msra.mxu0 %v100_v15  ;;  %258 = vmatpush1.msra.mxu1 %v102_v16  ;;  %v89_v25 = vld [vmem:[%s14533_s1 + $0x128] sm:$0xff]  ;;  %v91_v26 = vld [vmem:[%s14533_s1 + $0x138] sm:$0xff]  ;;  %v88_v27 = vld [vmem:[%s14533_s1 + $0x120] sm:$0xff] }
   0xa   :  { %146 = vmatprep.subr.mxu0 %v97_v17  ;;  %259 = vmatprep.subr.mxu1 %v99_v18  ;;  %v90_v28 = vld [vmem:[%s14533_s1 + $0x130] sm:$0xff]  ;;  %v85_v29 = vld [vmem:[%s14533_s1 + $0x108] sm:$0xff]  ;;  %v87_v30 = vld [vmem:[%s14533_s1 + $0x118] sm:$0xff] }
   0xb   :  { %147 = vmatpush1.msra.mxu0 %v96_v19  ;;  %260 = vmatpush1.msra.mxu1 %v98_v20  ;;  %v84_v31 = vld [vmem:[%s14533_s1 + $0x100] sm:$0xff]  ;;  %v86_v32 = vld [vmem:[%s14533_s1 + $0x110] sm:$0xff]  ;;  %v81_v33 = vld [vmem:[%s14533_s1 + $0xe8] sm:$0xff] }
   0xc   :  { %148 = vmatprep.subr.mxu0 %v93_v21  ;;  %261 = vmatprep.subr.mxu1 %v95_v22  ;;  %v83_v34 = vld [vmem:[%s14533_s1 + $0xf8] sm:$0xff]  ;;  %v80_v35 = vld [vmem:[%s14533_s1 + $0xe0] sm:$0xff]  ;;  %v82_v36 = vld [vmem:[%s14533_s1 + $0xf0] sm:$0xff] }
   0xd   :  { %149 = vmatpush1.msra.mxu0 %v92_v23  ;;  %262 = vmatpush1.msra.mxu1 %v94_v24  ;;  %v77_v37 = vld [vmem:[%s14533_s1 + $0xc8] sm:$0xff]  ;;  %v79_v38 = vld [vmem:[%s14533_s1 + $0xd8] sm:$0xff]  ;;  %v76_v39 = vld [vmem:[%s14533_s1 + $0xc0] sm:$0xff] }
   0xe   :  { %150 = vmatprep.subr.mxu0 %v89_v25  ;;  %263 = vmatprep.subr.mxu1 %v91_v26  ;;  %v78_v40 = vld [vmem:[%s14533_s1 + $0xd0] sm:$0xff]  ;;  %v73_v41 = vld [vmem:[%s14533_s1 + $0xa8] sm:$0xff]  ;;  %v75_v42 = vld [vmem:[%s14533_s1 + $0xb8] sm:$0xff] }
   0xf   :  { %151 = vmatpush1.msra.mxu0 %v88_v27  ;;  %264 = vmatpush1.msra.mxu1 %v90_v28  ;;  %v72_v43 = vld [vmem:[%s14533_s1 + $0xa0] sm:$0xff]  ;;  %v74_v44 = vld [vmem:[%s14533_s1 + $0xb0] sm:$0xff]  ;;  %v69_v45 = vld [vmem:[%s14533_s1 + $0x88] sm:$0xff] }
  0x10   :  { %152 = vmatprep.subr.mxu0 %v85_v29  ;;  %265 = vmatprep.subr.mxu1 %v87_v30  ;;  %v71_v46 = vld [vmem:[%s14533_s1 + $0x98] sm:$0xff]  ;;  %v68_v47 = vld [vmem:[%s14533_s1 + $0x80] sm:$0xff]  ;;  %v70_v48 = vld [vmem:[%s14533_s1 + $0x90] sm:$0xff] }
  0x11   :  { %153 = vmatpush1.msra.mxu0 %v84_v31  ;;  %266 = vmatpush1.msra.mxu1 %v86_v32  ;;  %v65_v49 = vld [vmem:[%s14533_s1 + $0x68] sm:$0xff]  ;;  %v67_v50 = vld [vmem:[%s14533_s1 + $0x78] sm:$0xff]  ;;  %v64_v51 = vld [vmem:[%s14533_s1 + $0x60] sm:$0xff] }
  0x12   :  { %154 = vmatprep.subr.mxu0 %v81_v33  ;;  %267 = vmatprep.subr.mxu1 %v83_v34  ;;  %v66_v52 = vld [vmem:[%s14533_s1 + $0x70] sm:$0xff]  ;;  %v61_v53 = vld [vmem:[%s14533_s1 + $0x48] sm:$0xff]  ;;  %v63_v54 = vld [vmem:[%s14533_s1 + $0x58] sm:$0xff] }
  0x13   :  { %155 = vmatpush1.msra.mxu0 %v80_v35  ;;  %268 = vmatpush1.msra.mxu1 %v82_v36  ;;  %v60_v55 = vld [vmem:[%s14533_s1 + $0x40] sm:$0xff]  ;;  %v62_v56 = vld [vmem:[%s14533_s1 + $0x50] sm:$0xff]  ;;  %v57_v57 = vld [vmem:[%s14533_s1 + $0x28] sm:$0xff] }
  0x14   :  { %156 = vmatprep.subr.mxu0 %v77_v37  ;;  %269 = vmatprep.subr.mxu1 %v79_v38  ;;  %v59_v58 = vld [vmem:[%s14533_s1 + $0x38] sm:$0xff]  ;;  %v56_v59 = vld [vmem:[%s14533_s1 + $0x20] sm:$0xff]  ;;  %v58_v60 = vld [vmem:[%s14533_s1 + $0x30] sm:$0xff] }
  0x15   :  { %157 = vmatpush1.msra.mxu0 %v76_v39  ;;  %270 = vmatpush1.msra.mxu1 %v78_v40  ;;  %v53_v61 = vld [vmem:[%s14533_s1 + $0x8] sm:$0xff]  ;;  %v55_v62 = vld [vmem:[%s14533_s1 + $0x18] sm:$0xff]  ;;  %v52_v63 = vld [vmem:[%s14533_s1] sm:$0xff] }
  0x16   :  { %158 = vmatprep.subr.mxu0 %v73_v41  ;;  %271 = vmatprep.subr.mxu1 %v75_v42  ;;  %v54_v0 = vld [vmem:[%s14533_s1 + $0x10] sm:$0xff]  ;;  %v44_v1 = vld [vmem:[%s14534_s0] sm:$0xff]  ;;  %v8442_v2 = vld [vmem:[%s14535_s2 + $0x1e8] sm:$0xff] }
  0x17   :  { %159 = vmatpush1.msra.mxu0 %v72_v43  ;;  %272 = vmatpush1.msra.mxu1 %v74_v44  ;;  %14991 = vst [vmem:[#allocation4_spill] sm:$0xff] %v8442_v2  ;;  %v8447_v4 = vld [vmem:[%s14535_s2 + $0x1f8] sm:$0xff]  ;;  %v8452_v5 = vld [vmem:[%s14535_s2 + $0x1e0] sm:$0xff]  ;;  %v8457_v6 = vld [vmem:[%s14535_s2 + $0x1f0] sm:$0xff] }
  0x18   :  { %160 = vmatprep.subr.mxu0 %v69_v45  ;;  %273 = vmatprep.subr.mxu1 %v71_v46  ;;  %14992 = vst [vmem:[#allocation5_spill] sm:$0xff] %v8447_v4  ;;  %v8462_v7 = vld [vmem:[%s14535_s2 + $0x1c8] sm:$0xff]  ;;  %v8467_v8 = vld [vmem:[%s14535_s2 + $0x1d8] sm:$0xff]  ;;  %v8476_v9 = vld [vmem:[%s14535_s2 + $0x1c0] sm:$0xff] }
  0x19   :  { %161 = vmatpush1.msra.mxu0 %v68_v47  ;;  %274 = vmatpush1.msra.mxu1 %v70_v48  ;;  %v8481_v10 = vld [vmem:[%s14535_s2 + $0x1d0] sm:$0xff]  ;;  %v45_v11 = vld [vmem:[%s14534_s0 + $0x8] sm:$0xff]  ;;  %v8498_v13 = vld [vmem:[%s14535_s2 + $0x1b8] sm:$0xff] }
  0x1a   :  { %162 = vmatprep.subr.mxu0 %v65_v49  ;;  %275 = vmatprep.subr.mxu1 %v67_v50  ;;  %v8493_v12 = vld [vmem:[%s14535_s2 + $0x1a8] sm:$0xff]  ;;  %v8505_v14 = vld [vmem:[%s14535_s2 + $0x1a0] sm:$0xff]  ;;  %v8510_v15 = vld [vmem:[%s14535_s2 + $0x1b0] sm:$0xff] }
  0x1b   :  { %163 = vmatpush1.msra.mxu0 %v64_v51  ;;  %276 = vmatpush1.msra.mxu1 %v66_v52  ;;  %v8515_v16 = vld [vmem:[%s14535_s2 + $0x188] sm:$0xff]  ;;  %v8520_v17 = vld [vmem:[%s14535_s2 + $0x198] sm:$0xff]  ;;  %v8529_v18 = vld [vmem:[%s14535_s2 + $0x180] sm:$0xff] }
  0x1c   :  { %164 = vmatprep.subr.mxu0 %v61_v53  ;;  %277 = vmatprep.subr.mxu1 %v63_v54  ;;  %v8534_v19 = vld [vmem:[%s14535_s2 + $0x190] sm:$0xff]  ;;  %v8546_v21 = vld [vmem:[%s14535_s2 + $0x168] sm:$0xff]  ;;  %v8551_v22 = vld [vmem:[%s14535_s2 + $0x178] sm:$0xff] }
  0x1d   :  { %165 = vmatpush1.msra.mxu0 %v60_v55  ;;  %278 = vmatpush1.msra.mxu1 %v62_v56  ;;  %v46_v20 = vld [vmem:[%s14534_s0 + $0x10] sm:$0xff]  ;;  %v8558_v23 = vld [vmem:[%s14535_s2 + $0x160] sm:$0xff]  ;;  %v8568_v25 = vld [vmem:[%s14535_s2 + $0x148] sm:$0xff] }
  0x1e   :  { %166 = vmatprep.subr.mxu0 %v57_v57  ;;  %279 = vmatprep.subr.mxu1 %v59_v58  ;;  %v8563_v24 = vld [vmem:[%s14535_s2 + $0x170] sm:$0xff]  ;;  %v8573_v26 = vld [vmem:[%s14535_s2 + $0x158] sm:$0xff]  ;;  %v8582_v27 = vld [vmem:[%s14535_s2 + $0x140] sm:$0xff] }
  0x1f   :  { %167 = vmatpush1.msra.mxu0 %v56_v59  ;;  %280 = vmatpush1.msra.mxu1 %v58_v60  ;;  %v8587_v28 = vld [vmem:[%s14535_s2 + $0x150] sm:$0xff]  ;;  %v47_v29 = vld [vmem:[%s14534_s0 + $0x18] sm:$0xff]  ;;  %v8599_v30 = vld [vmem:[%s14535_s2 + $0x128] sm:$0xff] }
  0x20   :  { %168 = vmatprep.subr.mxu0 %v53_v61  ;;  %281 = vmatprep.subr.mxu1 %v55_v62  ;;  %v8604_v31 = vld [vmem:[%s14535_s2 + $0x138] sm:$0xff]  ;;  %v8611_v32 = vld [vmem:[%s14535_s2 + $0x120] sm:$0xff]  ;;  %v8616_v33 = vld [vmem:[%s14535_s2 + $0x130] sm:$0xff] }
  0x21   :  { %169 = vmatpush1.msra.mxu0 %v52_v63  ;;  %282 = vmatpush1.msra.mxu1 %v54_v0  ;;  %v8621_v34 = vld [vmem:[%s14535_s2 + $0x108] sm:$0xff]  ;;  %v8626_v35 = vld [vmem:[%s14535_s2 + $0x118] sm:$0xff]  ;;  %v8635_v36 = vld [vmem:[%s14535_s2 + $0x100] sm:$0xff] }
  0x22   :  { %203 = vmatmul.mubr.f32.vlgmr.msra.gmra.mxu0 %v44_v1  ;;  %316 = vmatmul.mubr.f32.vlgmr.msra.gmra.mxu1 %v44_v1  ;;  %v8640_v37 = vld [vmem:[%s14535_s2 + $0x110] sm:$0xff]  ;;  %v48_v38 = vld [vmem:[%s14534_s0 + $0x20] sm:$0xff]  ;;  %v8652_v39 = vld [vmem:[%s14535_s2 + $0xe8] sm:$0xff] }
  0x23   :  { %464 = vmatprep.subr.mxu0 %v8442_v2  ;;  %535 = vmatprep.subr.mxu1 %v8447_v4  ;;  %v8657_v40 = vld [vmem:[%s14535_s2 + $0xf8] sm:$0xff]  ;;  %v8664_v41 = vld [vmem:[%s14535_s2 + $0xe0] sm:$0xff]  ;;  %v8669_v42 = vld [vmem:[%s14535_s2 + $0xf0] sm:$0xff] }
  0x24   :  { %465 = vmatpush1.msra.mxu0 %v8452_v5  ;;  %536 = vmatpush1.msra.mxu1 %v8457_v6  ;;  %v8674_v43 = vld [vmem:[%s14535_s2 + $0xc8] sm:$0xff]  ;;  %v8679_v44 = vld [vmem:[%s14535_s2 + $0xd8] sm:$0xff]  ;;  %v8688_v45 = vld [vmem:[%s14535_s2 + $0xc0] sm:$0xff] }
  0x25   :  { %466 = vmatprep.subr.mxu0 %v8462_v7  ;;  %537 = vmatprep.subr.mxu1 %v8467_v8  ;;  %v8693_v46 = vld [vmem:[%s14535_s2 + $0xd0] sm:$0xff]  ;;  %v49_v47 = vld [vmem:[%s14534_s0 + $0x28] sm:$0xff]  ;;  %v8710_v49 = vld [vmem:[%s14535_s2 + $0xb8] sm:$0xff] }
  0x26   :  { %208 = vmatprep.mubr.f32.mxu0 %v14547_v3  ;;  %321 = vmatprep.mubr.f32.mxu1 %v14547_v3  ;;  %v8705_v48 = vld [vmem:[%s14535_s2 + $0xa8] sm:$0xff]  ;;  %v8717_v50 = vld [vmem:[%s14535_s2 + $0xa0] sm:$0xff]  ;;  %v8722_v51 = vld [vmem:[%s14535_s2 + $0xb0] sm:$0xff] }
  0x27   :  { %467 = vmatpush1.msra.mxu0 %v8476_v9  ;;  %538 = vmatpush1.msra.mxu1 %v8481_v10  ;;  %14993 = vst [vmem:[#allocation6_spill] sm:$0xff] %v8722_v51  ;;  %v8727_v52 = vld [vmem:[%s14535_s2 + $0x88] sm:$0xff]  ;;  %v8732_v53 = vld [vmem:[%s14535_s2 + $0x98] sm:$0xff]  ;;  %v8741_v54 = vld [vmem:[%s14535_s2 + $0x80] sm:$0xff] }
  0x28   :  { %209 = vmatmul.mubr.f32.gmra.mxu0 %v45_v11  ;;  %322 = vmatmul.mubr.f32.gmra.mxu1 %v45_v11  ;;  %14994 = vst [vmem:[#allocation7_spill] sm:$0xff] %v8727_v52  ;;  %14995 = vst [vmem:[#allocation8_spill] sm:$0xff] %v8732_v53  ;;  %v8746_v55 = vld [vmem:[%s14535_s2 + $0x90] sm:$0xff]  ;;  %v8758_v57 = vld [vmem:[%s14535_s2 + $0x68] sm:$0xff] }
  0x29   :  { %468 = vmatprep.subr.mxu0 %v8493_v12  ;;  %539 = vmatprep.subr.mxu1 %v8498_v13  ;;  %14996 = vst [vmem:[#allocation9_spill] sm:$0xff] %v8741_v54  ;;  %14997 = vst [vmem:[#allocation10_spill] sm:$0xff] %v8746_v55  ;;  %v50_v56 = vld [vmem:[%s14534_s0 + $0x30] sm:$0xff]  ;;  %v8763_v58 = vld [vmem:[%s14535_s2 + $0x78] sm:$0xff] }
  0x2a   :  { %469 = vmatpush1.msra.mxu0 %v8505_v14  ;;  %540 = vmatpush1.msra.mxu1 %v8510_v15  ;;  %14998 = vst [vmem:[#allocation11_spill] sm:$0xff] %v8758_v57  ;;  %14999 = vst [vmem:[#allocation12_spill] sm:$0xff] %v8763_v58  ;;  %v8770_v59 = vld [vmem:[%s14535_s2 + $0x60] sm:$0xff]  ;;  %v8775_v60 = vld [vmem:[%s14535_s2 + $0x70] sm:$0xff] }
  0x2b   :  { %470 = vmatprep.subr.mxu0 %v8515_v16  ;;  %541 = vmatprep.subr.mxu1 %v8520_v17  ;;  %15000 = vst [vmem:[#allocation13_spill] sm:$0xff] %v8770_v59  ;;  %15001 = vst [vmem:[#allocation14_spill] sm:$0xff] %v8775_v60  ;;  %v8780_v61 = vld [vmem:[%s14535_s2 + $0x48] sm:$0xff]  ;;  %v8785_v62 = vld [vmem:[%s14535_s2 + $0x58] sm:$0xff] }
  0x2c   :  { %214 = vmatprep.mubr.f32.mxu0 %v14547_v3  ;;  %327 = vmatprep.mubr.f32.mxu1 %v14547_v3  ;;  %15002 = vst [vmem:[#allocation15_spill] sm:$0xff] %v8780_v61  ;;  %15003 = vst [vmem:[#allocation16_spill] sm:$0xff] %v8785_v62  ;;  %v8794_v63 = vld [vmem:[%s14535_s2 + $0x40] sm:$0xff]  ;;  %v8799_v0 = vld [vmem:[%s14535_s2 + $0x50] sm:$0xff] }
  0x2d   :  { %471 = vmatpush1.msra.mxu0 %v8529_v18  ;;  %542 = vmatpush1.msra.mxu1 %v8534_v19  ;;  %15004 = vst [vmem:[#allocation17_spill] sm:$0xff] %v8794_v63  ;;  %15005 = vst [vmem:[#allocation18_spill] sm:$0xff] %v8799_v0  ;;  %v51_v1 = vld [vmem:[%s14534_s0 + $0x38] sm:$0xff]  ;;  %v8811_v11 = vld [vmem:[%s14535_s2 + $0x28] sm:$0xff] }
  0x2e   :  { %215 = vmatmul.mubr.f32.gmra.mxu0 %v46_v20  ;;  %328 = vmatmul.mubr.f32.gmra.mxu1 %v46_v20  ;;  %15006 = vst [vmem:[#allocation19_spill] sm:$0xff] %v8811_v11  ;;  %v8816_v20 = vld [vmem:[%s14535_s2 + $0x38] sm:$0xff] }
  0x2f   :  { %472 = vmatprep.subr.mxu0 %v8546_v21  ;;  %543 = vmatprep.subr.mxu1 %v8551_v22  ;;  %15007 = vst [vmem:[#allocation20_spill] sm:$0xff] %v8816_v20 }
  0x30   :  { %473 = vmatpush1.msra.mxu0 %v8558_v23  ;;  %544 = vmatpush1.msra.mxu1 %v8563_v24 }
  0x31   :  { %474 = vmatprep.subr.mxu0 %v8568_v25  ;;  %545 = vmatprep.subr.mxu1 %v8573_v26 }
  0x32   :  { %220 = vmatprep.mubr.f32.mxu0 %v14547_v3  ;;  %333 = vmatprep.mubr.f32.mxu1 %v14547_v3 }
  0x33   :  { %475 = vmatpush1.msra.mxu0 %v8582_v27  ;;  %546 = vmatpush1.msra.mxu1 %v8587_v28 }
  0x34   :  { %221 = vmatmul.mubr.f32.gmra.mxu0 %v47_v29  ;;  %334 = vmatmul.mubr.f32.gmra.mxu1 %v47_v29  ;;  %v8823_v29 = vld [vmem:[%s14535_s2 + $0x20] sm:$0xff] }
  0x35   :  { %476 = vmatprep.subr.mxu0 %v8599_v30  ;;  %547 = vmatprep.subr.mxu1 %v8604_v31  ;;  %15008 = vst [vmem:[#allocation21_spill] sm:$0xff] %v8823_v29 }
  0x36   :  { %477 = vmatpush1.msra.mxu0 %v8611_v32  ;;  %548 = vmatpush1.msra.mxu1 %v8616_v33 }
  0x37   :  { %478 = vmatprep.subr.mxu0 %v8621_v34  ;;  %549 = vmatprep.subr.mxu1 %v8626_v35 }
  0x38   :  { %226 = vmatprep.mubr.f32.mxu0 %v14547_v3  ;;  %339 = vmatprep.mubr.f32.mxu1 %v14547_v3 }
  0x39   :  { %479 = vmatpush1.msra.mxu0 %v8635_v36  ;;  %550 = vmatpush1.msra.mxu1 %v8640_v37 }
  0x3a   :  { %227 = vmatmul.mubr.f32.gmra.mxu0 %v48_v38  ;;  %340 = vmatmul.mubr.f32.gmra.mxu1 %v48_v38  ;;  %v8828_v38 = vld [vmem:[%s14535_s2 + $0x30] sm:$0xff] }
  0x3b   :  { %480 = vmatprep.subr.mxu0 %v8652_v39  ;;  %551 = vmatprep.subr.mxu1 %v8657_v40  ;;  %15009 = vst [vmem:[#allocation22_spill] sm:$0xff] %v8828_v38 }
  0x3c   :  { %481 = vmatpush1.msra.mxu0 %v8664_v41  ;;  %552 = vmatpush1.msra.mxu1 %v8669_v42 }
  0x3d   :  { %482 = vmatprep.subr.mxu0 %v8674_v43  ;;  %553 = vmatprep.subr.mxu1 %v8679_v44 }
  0x3e   :  { %232 = vmatprep.mubr.f32.mxu0 %v14547_v3  ;;  %345 = vmatprep.mubr.f32.mxu1 %v14547_v3 }
  0x3f   :  { %483 = vmatpush1.msra.mxu0 %v8688_v45  ;;  %554 = vmatpush1.msra.mxu1 %v8693_v46 }
  0x40   :  { %233 = vmatmul.mubr.f32.gmra.mxu0 %v49_v47  ;;  %346 = vmatmul.mubr.f32.gmra.mxu1 %v49_v47  ;;  %v8833_v47 = vld [vmem:[%s14535_s2 + $0x8] sm:$0xff] }
  0x41   :  { %484 = vmatprep.subr.mxu0 %v8705_v48  ;;  %555 = vmatprep.subr.mxu1 %v8710_v49  ;;  %15010 = vst [vmem:[#allocation23_spill] sm:$0xff] %v8833_v47 }
  0x42   :  { %485 = vmatpush1.msra.mxu0 %v8717_v50  ;;  %556 = vmatpush1.msra.mxu1 %v8722_v51 }
  0x43   :  { %486 = vmatprep.subr.mxu0 %v8727_v52  ;;  %557 = vmatprep.subr.mxu1 %v8732_v53 }
  0x44   :  { %238 = vmatprep.mubr.f32.mxu0 %v14547_v3  ;;  %351 = vmatprep.mubr.f32.mxu1 %v14547_v3 }
  0x45   :  { %487 = vmatpush1.msra.mxu0 %v8741_v54  ;;  %558 = vmatpush1.msra.mxu1 %v8746_v55 }
  0x46   :  { %239 = vmatmul.mubr.f32.gmra.mxu0 %v50_v56  ;;  %352 = vmatmul.mubr.f32.gmra.mxu1 %v50_v56  ;;  %v8838_v56 = vld [vmem:[%s14535_s2 + $0x18] sm:$0xff] }
  0x47   :  { %488 = vmatprep.subr.mxu0 %v8758_v57  ;;  %559 = vmatprep.subr.mxu1 %v8763_v58  ;;  %15011 = vst [vmem:[#allocation24_spill] sm:$0xff] %v8838_v56 }
  0x48   :  { %489 = vmatpush1.msra.mxu0 %v8770_v59  ;;  %560 = vmatpush1.msra.mxu1 %v8775_v60 }
  0x49   :  { %490 = vmatprep.subr.mxu0 %v8780_v61  ;;  %561 = vmatprep.subr.mxu1 %v8785_v62 }
  0x4a   :  { %244 = vmatprep.mubr.f32.mxu0 %v14547_v3  ;;  %357 = vmatprep.mubr.f32.mxu1 %v14547_v3  ;;  %v8845_v3 = vld [vmem:[%s14535_s2] sm:$0xff] }
  0x4b   :  { %491 = vmatpush1.msra.mxu0 %v8794_v63  ;;  %562 = vmatpush1.msra.mxu1 %v8799_v0  ;;  %15012 = vst [vmem:[#allocation25_spill] sm:$0xff] %v8845_v3 }
  0x4c   :  { %245 = vmatmul.mubr.f32.gmra.mxu0 %v51_v1  ;;  %358 = vmatmul.mubr.f32.gmra.mxu1 %v51_v1  ;;  %v8852_v1 = vld [vmem:[%s14535_s2 + $0x10] sm:$0xff] }
  0x4d   :  { %492 = vmatprep.subr.mxu0 %v8811_v11  ;;  %563 = vmatprep.subr.mxu1 %v8816_v20  ;;  %15013 = vst [vmem:[#allocation26_spill] sm:$0xff] %v8852_v1  ;;  %v15014_v20 = vmov 0.0  }
  0x4e   :  { %493 = vmatpush1.msra.mxu0 %v8823_v29  ;;  %564 = vmatpush1.msra.mxu1 %v8828_v38 }
  0x4f   :  { %494 = vmatprep.subr.mxu0 %v8833_v47  ;;  %565 = vmatprep.subr.mxu1 %v8838_v56 }
  0x50   :  { %495 = vmatpush1.msra.mxu0 %v8845_v3  ;;  %528 = vmatprep.mubr.f32.mxu0 %v15014_v20 }
  0x51   :  { %566 = vmatpush1.msra.mxu1 %v8852_v1  ;;  %599 = vmatprep.mubr.f32.mxu1 %v15014_v20 }
  0x52   :  { %529 = vmatmul.mubr.f32.vlgmr.msra.gmra.mxu0 %v15014_v20  ;;  %600 = vmatmul.mubr.f32.vlgmr.msra.gmra.mxu1 %v15014_v20 }
  0x53   :  { %639 = vmatprep.subr.mxu0 %v8442_v2  ;;  %710 = vmatprep.subr.mxu1 %v8447_v4 }
  0x54   :  { %640 = vmatpush1.msra.mxu0 %v8452_v5  ;;  %711 = vmatpush1.msra.mxu1 %v8457_v6 }
  0x55   :  { %641 = vmatprep.subr.mxu0 %v8462_v7  ;;  %712 = vmatprep.subr.mxu1 %v8467_v8 }
  0x56   :  { %642 = vmatpush1.msra.mxu0 %v8476_v9  ;;  %713 = vmatpush1.msra.mxu1 %v8481_v10 }
  0x57   :  { %643 = vmatprep.subr.mxu0 %v8493_v12  ;;  %714 = vmatprep.subr.mxu1 %v8498_v13 }
  0x58   :  { %644 = vmatpush1.msra.mxu0 %v8505_v14  ;;  %715 = vmatpush1.msra.mxu1 %v8510_v15 }
  0x59   :  { %645 = vmatprep.subr.mxu0 %v8515_v16  ;;  %716 = vmatprep.subr.mxu1 %v8520_v17 }
  0x5a   :  { %646 = vmatpush1.msra.mxu0 %v8529_v18  ;;  %717 = vmatpush1.msra.mxu1 %v8534_v19 }
  0x5b   :  { %647 = vmatprep.subr.mxu0 %v8546_v21  ;;  %718 = vmatprep.subr.mxu1 %v8551_v22 }
  0x5c   :  { %648 = vmatpush1.msra.mxu0 %v8558_v23  ;;  %719 = vmatpush1.msra.mxu1 %v8563_v24 }
  0x5d   :  { %649 = vmatprep.subr.mxu0 %v8568_v25  ;;  %720 = vmatprep.subr.mxu1 %v8573_v26 }
  0x5e   :  { %650 = vmatpush1.msra.mxu0 %v8582_v27  ;;  %721 = vmatpush1.msra.mxu1 %v8587_v28 }
  0x5f   :  { %651 = vmatprep.subr.mxu0 %v8599_v30  ;;  %722 = vmatprep.subr.mxu1 %v8604_v31 }
  0x60   :  { %652 = vmatpush1.msra.mxu0 %v8611_v32  ;;  %723 = vmatpush1.msra.mxu1 %v8616_v33 }
  0x61   :  { %653 = vmatprep.subr.mxu0 %v8621_v34  ;;  %724 = vmatprep.subr.mxu1 %v8626_v35 }
  0x62   :  { %654 = vmatpush1.msra.mxu0 %v8635_v36  ;;  %725 = vmatpush1.msra.mxu1 %v8640_v37 }
  0x63   :  { %655 = vmatprep.subr.mxu0 %v8652_v39  ;;  %726 = vmatprep.subr.mxu1 %v8657_v40 }
  0x64   :  { %656 = vmatpush1.msra.mxu0 %v8664_v41  ;;  %727 = vmatpush1.msra.mxu1 %v8669_v42 }
  0x65   :  { %657 = vmatprep.subr.mxu0 %v8674_v43  ;;  %728 = vmatprep.subr.mxu1 %v8679_v44 }
  0x66   :  { %658 = vmatpush1.msra.mxu0 %v8688_v45  ;;  %729 = vmatpush1.msra.mxu1 %v8693_v46 }
  0x67   :  { %659 = vmatprep.subr.mxu0 %v8705_v48  ;;  %730 = vmatprep.subr.mxu1 %v8710_v49 }
  0x68   :  { %660 = vmatpush1.msra.mxu0 %v8717_v50  ;;  %731 = vmatpush1.msra.mxu1 %v8722_v51 }
  0x69   :  { %661 = vmatprep.subr.mxu0 %v8727_v52  ;;  %732 = vmatprep.subr.mxu1 %v8732_v53 }
  0x6a   :  { %662 = vmatpush1.msra.mxu0 %v8741_v54  ;;  %733 = vmatpush1.msra.mxu1 %v8746_v55  ;;  %v15015_v54 = vld [vmem:[#allocation20_spill] sm:$0xff] }
  0x6b   :  { %663 = vmatprep.subr.mxu0 %v8758_v57  ;;  %734 = vmatprep.subr.mxu1 %v8763_v58 }
  0x6c   :  { %664 = vmatpush1.msra.mxu0 %v8770_v59  ;;  %735 = vmatpush1.msra.mxu1 %v8775_v60 }
  0x6d   :  { %665 = vmatprep.subr.mxu0 %v8780_v61  ;;  %736 = vmatprep.subr.mxu1 %v8785_v62 }
  0x6e   :  { %666 = vmatpush1.msra.mxu0 %v8794_v63  ;;  %737 = vmatpush1.msra.mxu1 %v8799_v0 }
  0x6f   :  { %667 = vmatprep.subr.mxu0 %v8811_v11  ;;  %738 = vmatprep.subr.mxu1 %v15015_v54  ;;  %v118_v54 = vlaneseq }
  0x70   :  { %668 = vmatpush1.msra.mxu0 %v8823_v29  ;;  %739 = vmatpush1.msra.mxu1 %v8828_v38 }
  0x71   :  { %669 = vmatprep.subr.mxu0 %v8833_v47  ;;  %740 = vmatprep.subr.mxu1 %v8838_v56  ;;  %v119_v29 = vshrl.u32 %v118_v54, 7 }
  0x72   :  { %670 = vmatpush1.msra.mxu0 %v8845_v3  ;;  %703 = vmatprep.mubr.f32.mxu0 %v15014_v20  ;;  %v116_v3 = vld [vmem:[%s14536_s3] sm:$0xf] }
  0x73   :  { %741 = vmatpush1.msra.mxu1 %v8852_v1  ;;  %774 = vmatprep.mubr.f32.mxu1 %v15014_v20  ;;  %v8932_v47 = vsub.s32 0, %v119_v29  ;;  %v8934_v56 = vsub.s32 2, %v119_v29 }
  0x74   :  { %814 = vmatprep.subr.mxu0 %v8442_v2  ;;  %885 = vmatprep.subr.mxu1 %v8447_v4 }
  0x75   :  { %15016 = vst [vmem:[#allocation27_spill] sm:$0xff] %v8932_v47  ;;  %15017 = vst [vmem:[#allocation28_spill] sm:$0xff] %v8934_v56  ;;  %v121_v20 = vrot.slane %v116_v3, %v8932_v47  ;;  %v129_v2 = vrot.slane %v116_v3, %v8934_v56 }
  0xe2   :  { %v204_v11 = vpop.f32.mrf.mxu0  ;;  %v8930_v38 = vpop.f32.mrf.mxu1 }
  0xe4   :  { %v206_v1 = vpop.f32.mrf.mxu0  ;;  %v319_v0 = vpop.f32.mrf.mxu1 }
  0xe8   :  { %v210_v4 = vpop.f32.mrf.mxu0  ;;  %v323_v63 = vpop.f32.mrf.mxu1 }
  0xe9   :  { %v8941_v54 = vadd.f32 %v210_v4, %v121_v20  ;;  %v8943_v62 = vadd.f32 %v323_v63, %v129_v2 }
  0xea   :  { %v8945_v61 = vpop.f32.mrf.mxu0  ;;  %v8947_v60 = vpop.f32.mrf.mxu1 }
  0xeb   :  { %15018 = vst [vmem:[#allocation29_spill] sm:$0xff] %v8941_v54  ;;  %15019 = vst [vmem:[#allocation30_spill] sm:$0xff] %v8943_v62 }
  0xec   :  { %15020 = vst [vmem:[#allocation31_spill] sm:$0xff] %v8945_v61  ;;  %15021 = vst [vmem:[#allocation32_spill] sm:$0xff] %v8947_v60 }
  0xee   :  { %v216_v59 = vpop.f32.mrf.mxu0  ;;  %v329_v58 = vpop.f32.mrf.mxu1 }
  0xef   :  { %v8949_v57 = vadd.f32 %v216_v59, %v121_v20  ;;  %v8951_v55 = vadd.f32 %v329_v58, %v129_v2 }
  0xf0   :  { %v8953_v53 = vpop.f32.mrf.mxu0  ;;  %v8955_v47 = vpop.f32.mrf.mxu1 }
  0xf1   :  { %15022 = vst [vmem:[#allocation33_spill] sm:$0xff] %v8949_v57  ;;  %15023 = vst [vmem:[#allocation34_spill] sm:$0xff] %v8951_v55 }
  0xf2   :  { %15024 = vst [vmem:[#allocation35_spill] sm:$0xff] %v8953_v53  ;;  %15025 = vst [vmem:[#allocation36_spill] sm:$0xff] %v8955_v47 }
  0xf4   :  { %v222_v56 = vpop.f32.mrf.mxu0  ;;  %v335_v52 = vpop.f32.mrf.mxu1 }
  0xf5   :  { %v8957_v4 = vadd.f32 %v222_v56, %v121_v20  ;;  %v8959_v63 = vadd.f32 %v335_v52, %v129_v2 }
  0xf6   :  { %v8961_v62 = vpop.f32.mrf.mxu0  ;;  %v8963_v54 = vpop.f32.mrf.mxu1 }
  0xf7   :  { %15026 = vst [vmem:[#allocation37_spill] sm:$0xff] %v8957_v4  ;;  %15027 = vst [vmem:[#allocation38_spill] sm:$0xff] %v8959_v63 }
  0xf8   :  { %15028 = vst [vmem:[#allocation39_spill] sm:$0xff] %v8961_v62  ;;  %15029 = vst [vmem:[#allocation40_spill] sm:$0xff] %v8963_v54 }
  0xfa   :  { %v228_v60 = vpop.f32.mrf.mxu0  ;;  %v341_v61 = vpop.f32.mrf.mxu1 }
  0xfb   :  { %v8965_v59 = vadd.f32 %v228_v60, %v121_v20  ;;  %v8967_v58 = vadd.f32 %v341_v61, %v129_v2 }
  0xfc   :  { %v8969_v55 = vpop.f32.mrf.mxu0  ;;  %v8971_v57 = vpop.f32.mrf.mxu1 }
  0xfd   :  { %15030 = vst [vmem:[#allocation41_spill] sm:$0xff] %v8965_v59  ;;  %15031 = vst [vmem:[#allocation42_spill] sm:$0xff] %v8967_v58 }
  0xfe   :  { %15032 = vst [vmem:[#allocation43_spill] sm:$0xff] %v8969_v55  ;;  %15033 = vst [vmem:[#allocation44_spill] sm:$0xff] %v8971_v57  ;;  %v8989_v57 = vsub.s32 1, %v119_v29 }
 0x100   :  { %v234_v47 = vpop.f32.mrf.mxu0  ;;  %v347_v53 = vpop.f32.mrf.mxu1  ;;  %15042 = vst [vmem:[#allocation53_spill] sm:$0xff] %v8989_v57 }
 0x101   :  { %v8973_v56 = vadd.f32 %v234_v47, %v121_v20  ;;  %v8975_v52 = vadd.f32 %v347_v53, %v129_v2 }
 0x102   :  { %v8977_v63 = vpop.f32.mrf.mxu0  ;;  %v8979_v4 = vpop.f32.mrf.mxu1 }
 0x103   :  { %15034 = vst [vmem:[#allocation45_spill] sm:$0xff] %v8973_v56  ;;  %15035 = vst [vmem:[#allocation46_spill] sm:$0xff] %v8975_v52 }
 0x104   :  { %15036 = vst [vmem:[#allocation47_spill] sm:$0xff] %v8977_v63  ;;  %15037 = vst [vmem:[#allocation48_spill] sm:$0xff] %v8979_v4  ;;  %v8998_v4 = vrot.slane %v116_v3, %v8989_v57 }
 0x106   :  { %v240_v54 = vpop.f32.mrf.mxu0  ;;  %v353_v62 = vpop.f32.mrf.mxu1 }
 0x107   :  { %v8981_v60 = vadd.f32 %v240_v54, %v121_v20  ;;  %v8983_v61 = vadd.f32 %v353_v62, %v129_v2  ;;  %v205_v54 = vadd.f32 %v204_v11, %v121_v20 }
 0x108   :  { %v8985_v58 = vpop.f32.mrf.mxu0  ;;  %v8987_v59 = vpop.f32.mrf.mxu1 }
 0x109   :  { %15038 = vst [vmem:[#allocation49_spill] sm:$0xff] %v8981_v60  ;;  %15039 = vst [vmem:[#allocation50_spill] sm:$0xff] %v8983_v61  ;;  %v207_v61 = vadd.f32 %v206_v1, %v8998_v4  ;;  %v318_v1 = vadd.f32 %v8930_v38, %v129_v2 }
 0x10a   :  { %15040 = vst [vmem:[#allocation51_spill] sm:$0xff] %v8985_v58  ;;  %15041 = vst [vmem:[#allocation52_spill] sm:$0xff] %v8987_v59  ;;  %v9003_v58 = vsub.s32 3, %v119_v29 }
 0x10c   :  { %v246_v47 = vpop.f32.mrf.mxu0  ;;  %v359_v56 = vpop.f32.mrf.mxu1  ;;  %15047 = vst [vmem:[#allocation58_spill] sm:$0xff] %v9003_v58 }
 0x10d   :  { %v8991_v53 = vadd.f32 %v246_v47, %v121_v20  ;;  %v8993_v52 = vadd.f32 %v359_v56, %v129_v2 }
 0x10e   :  { %v8995_v63 = vpop.f32.mrf.mxu0  ;;  %v9001_v60 = vpop.f32.mrf.mxu1 }
 0x10f   :  { %15043 = vst [vmem:[#allocation54_spill] sm:$0xff] %v8991_v53  ;;  %15044 = vst [vmem:[#allocation55_spill] sm:$0xff] %v8993_v52  ;;  %v9006_v53 = vrot.slane %v116_v3, %v9003_v58  ;;  %v15067_v58 = vld [vmem:[#allocation24_spill] sm:$0xff] }
 0x110   :  { %15045 = vst [vmem:[#allocation56_spill] sm:$0xff] %v8995_v63  ;;  %15046 = vst [vmem:[#allocation57_spill] sm:$0xff] %v9001_v60 }
 0x111   :  { %v320_v11 = vadd.f32 %v319_v0, %v9006_v53 }
 0x112   :  { %v530_v62 = vpop.f32.mrf.mxu0  ;;  %v601_v56 = vpop.f32.mrf.mxu1 }
 0x113   :  { %v606_v59 = vadd.f32 %v530_v62, %v205_v54  ;;  %v608_v29 = vadd.f32 %v601_v56, %v318_v1  ;;  %v15053_v1 = vld [vmem:[#allocation10_spill] sm:$0xff] }
 0x114   :  { %v532_v55 = vpop.f32.mrf.mxu0  ;;  %v603_v57 = vpop.f32.mrf.mxu1 }
 0x115   :  { %v7306_v51 = vmul.f32 -1.442695, %v606_v59  ;;  %v607_v47 = vadd.f32 %v532_v55, %v207_v61  ;;  %v609_v20 = vadd.f32 %v603_v57, %v320_v11  ;;  %v15051_v11 = vld [vmem:[#allocation8_spill] sm:$0xff] }
 0x117   :  { %7403 = vpow2.f32 %v7306_v51  ;;  %v7307_v52 = vmul.f32 -1.442695, %v607_v47  ;;  %v7308_v60 = vmul.f32 -1.442695, %v609_v20  ;;  %v15052_v20 = vld [vmem:[#allocation9_spill] sm:$0xff] }
 0x119   :  { %7405 = vpow2.f32 %v7307_v52 }
 0x11a   :  { %7407 = vpow2.f32 %v7308_v60  ;;  %v15050_v60 = vld [vmem:[#allocation7_spill] sm:$0xff] }
 0x124   :  { %v7404_v54 = vpop.eup %7403 }
 0x125   :  { %v613_v62 = vadd.f32 1.0, %v7404_v54  ;;  %v15054_v54 = vld [vmem:[#allocation11_spill] sm:$0xff] }
 0x126   :  { %v7406_v63 = vpop.eup %7405 }
 0x127   :  { %7409 = vrcp.f32 %v613_v62  ;;  %v619_v51 = vadd.f32 1.0, %v7406_v63  ;;  %v7408_v55 = vpop.eup %7407  ;;  %v15049_v63 = vld [vmem:[#allocation6_spill] sm:$0xff]  ;;  %v15056_v62 = vld [vmem:[#allocation13_spill] sm:$0xff] }
 0x128   :  { %7411 = vtanh.f32 %v608_v29  ;;  %v626_v61 = vadd.f32 1.0, %v7408_v55  ;;  %v15055_v29 = vld [vmem:[#allocation12_spill] sm:$0xff]  ;;  %v15058_v55 = vld [vmem:[#allocation15_spill] sm:$0xff] }
 0x129   :  { %7413 = vrcp.f32 %v619_v51  ;;  %v15057_v51 = vld [vmem:[#allocation14_spill] sm:$0xff] }
 0x12a   :  { %7415 = vrcp.f32 %v626_v61  ;;  %v15062_v61 = vld [vmem:[#allocation19_spill] sm:$0xff] }
 0x134   :  { %v7410_v3 = vpop.eup %7409 }
 0x135   :  { %v7412_v59 = vpop.eup %7411 }
 0x136   :  { %v7414_v52 = vpop.eup %7413  ;;  %v630_v0 = vmul.f32 %v7412_v59, %v7410_v3  ;;  %v15059_v3 = vld [vmem:[#allocation16_spill] sm:$0xff]  ;;  %v15060_v59 = vld [vmem:[#allocation17_spill] sm:$0xff] }
 0x137   :  { %v629_v47 = vmul.f32 0.0, %v7414_v52  ;;  %v7416_v2 = vpop.eup %7415  ;;  %v15061_v52 = vld [vmem:[#allocation18_spill] sm:$0xff] }
 0x139   :  { %v9010_v57 = vadd.f32 %v630_v0, %v629_v47  ;;  %v15063_v47 = vld [vmem:[#allocation20_spill] sm:$0xff]  ;;  %v15064_v0 = vld [vmem:[#allocation21_spill] sm:$0xff] }
 0x13b   :  { %7417 = vtanh.f32 %v9010_v57 }
 0x148   :  { %v7418_v38 = vpop.eup %7417 }
 0x149   :  { %v9013_v56 = vmul.f32 %v7418_v38, %v7416_v2  ;;  %v15065_v2 = vld [vmem:[#allocation22_spill] sm:$0xff]  ;;  %v15066_v38 = vld [vmem:[#allocation23_spill] sm:$0xff] }
 0x14b   :  { %15048 = vst [vmem:[#allocation59_spill] sm:$0xff] %v9013_v56  ;;  %704 = vmatmul.mubr.f32.vlgmr.msra.gmra.mxu0 %v9013_v56  ;;  %775 = vmatmul.mubr.f32.vlgmr.msra.gmra.mxu1 %v9013_v56  ;;  %v15068_v56 = vld [vmem:[#allocation25_spill] sm:$0xff] }
 0x14c   :  { %815 = vmatpush1.msra.mxu0 %v8452_v5  ;;  %886 = vmatpush1.msra.mxu1 %v8457_v6 }
 0x14d   :  { %816 = vmatprep.subr.mxu0 %v8462_v7  ;;  %887 = vmatprep.subr.mxu1 %v8467_v8 }
 0x14e   :  { %817 = vmatpush1.msra.mxu0 %v8476_v9  ;;  %888 = vmatpush1.msra.mxu1 %v8481_v10 }
 0x14f   :  { %818 = vmatprep.subr.mxu0 %v8493_v12  ;;  %889 = vmatprep.subr.mxu1 %v8498_v13 }
 0x150   :  { %819 = vmatpush1.msra.mxu0 %v8505_v14  ;;  %890 = vmatpush1.msra.mxu1 %v8510_v15 }
 0x151   :  { %820 = vmatprep.subr.mxu0 %v8515_v16  ;;  %891 = vmatprep.subr.mxu1 %v8520_v17 }
 0x152   :  { %821 = vmatpush1.msra.mxu0 %v8529_v18  ;;  %892 = vmatpush1.msra.mxu1 %v8534_v19 }
 0x153   :  { %822 = vmatprep.subr.mxu0 %v8546_v21  ;;  %893 = vmatprep.subr.mxu1 %v8551_v22 }
 0x154   :  { %823 = vmatpush1.msra.mxu0 %v8558_v23  ;;  %894 = vmatpush1.msra.mxu1 %v8563_v24 }
 0x155   :  { %824 = vmatprep.subr.mxu0 %v8568_v25  ;;  %895 = vmatprep.subr.mxu1 %v8573_v26 }
 0x156   :  { %825 = vmatpush1.msra.mxu0 %v8582_v27  ;;  %896 = vmatpush1.msra.mxu1 %v8587_v28 }
 0x157   :  { %826 = vmatprep.subr.mxu0 %v8599_v30  ;;  %897 = vmatprep.subr.mxu1 %v8604_v31 }
 0x158   :  { %827 = vmatpush1.msra.mxu0 %v8611_v32  ;;  %898 = vmatpush1.msra.mxu1 %v8616_v33 }
 0x159   :  { %828 = vmatprep.subr.mxu0 %v8621_v34  ;;  %899 = vmatprep.subr.mxu1 %v8626_v35 }
 0x15a   :  { %829 = vmatpush1.msra.mxu0 %v8635_v36  ;;  %900 = vmatpush1.msra.mxu1 %v8640_v37 }
 0x15b   :  { %830 = vmatprep.subr.mxu0 %v8652_v39  ;;  %901 = vmatprep.subr.mxu1 %v8657_v40 }
 0x15c   :  { %831 = vmatpush1.msra.mxu0 %v8664_v41  ;;  %902 = vmatpush1.msra.mxu1 %v8669_v42 }
 0x15d   :  { %832 = vmatprep.subr.mxu0 %v8674_v43  ;;  %903 = vmatprep.subr.mxu1 %v8679_v44 }
 0x15e   :  { %833 = vmatpush1.msra.mxu0 %v8688_v45  ;;  %904 = vmatpush1.msra.mxu1 %v8693_v46 }
 0x15f   :  { %834 = vmatprep.subr.mxu0 %v8705_v48  ;;  %905 = vmatprep.subr.mxu1 %v8710_v49 }
 0x160   :  { %835 = vmatpush1.msra.mxu0 %v8717_v50  ;;  %906 = vmatpush1.msra.mxu1 %v15049_v63 }
 0x161   :  { %836 = vmatprep.subr.mxu0 %v15050_v60  ;;  %907 = vmatprep.subr.mxu1 %v15051_v11 }
 0x162   :  { %837 = vmatpush1.msra.mxu0 %v15052_v20  ;;  %908 = vmatpush1.msra.mxu1 %v15053_v1  ;;  %v15076_v1 = vld [vmem:[#allocation30_spill] sm:$0xff] }
 0x163   :  { %838 = vmatprep.subr.mxu0 %v15054_v54  ;;  %909 = vmatprep.subr.mxu1 %v15055_v29 }
 0x164   :  { %839 = vmatpush1.msra.mxu0 %v15056_v62  ;;  %910 = vmatpush1.msra.mxu1 %v15057_v51 }
 0x165   :  { %840 = vmatprep.subr.mxu0 %v15058_v55  ;;  %911 = vmatprep.subr.mxu1 %v15059_v3  ;;  %v15069_v55 = vmov 0.0   ;;  %v15070_v3 = vld [vmem:[#allocation26_spill] sm:$0xff] }
 0x166   :  { %841 = vmatpush1.msra.mxu0 %v15060_v59  ;;  %912 = vmatpush1.msra.mxu1 %v15061_v52  ;;  %v15071_v52 = vld [vmem:[#allocation4_spill] sm:$0xff]  ;;  %v15074_v59 = vld [vmem:[#allocation29_spill] sm:$0xff] }
 0x167   :  { %842 = vmatprep.subr.mxu0 %v15062_v61  ;;  %913 = vmatprep.subr.mxu1 %v15063_v47  ;;  %v15072_v61 = vld [vmem:[#allocation5_spill] sm:$0xff] }
 0x168   :  { %843 = vmatpush1.msra.mxu0 %v15064_v0  ;;  %914 = vmatpush1.msra.mxu1 %v15065_v2  ;;  %v15073_v0 = vld [vmem:[#allocation31_spill] sm:$0xff] }
 0x169   :  { %844 = vmatprep.subr.mxu0 %v15066_v38  ;;  %915 = vmatprep.subr.mxu1 %v15067_v58  ;;  %v213_v2 = vadd.f32 %v15073_v0, %v8998_v4 }
 0x16a   :  { %845 = vmatpush1.msra.mxu0 %v15068_v56  ;;  %878 = vmatprep.mubr.f32.mxu0 %v15069_v55 }
 0x16b   :  { %916 = vmatpush1.msra.mxu1 %v15070_v3  ;;  %949 = vmatprep.mubr.f32.mxu1 %v15069_v55  ;;  %v15075_v55 = vld [vmem:[#allocation32_spill] sm:$0xff] }
 0x16c   :  { %989 = vmatprep.subr.mxu0 %v15071_v52  ;;  %1060 = vmatprep.subr.mxu1 %v15072_v61  ;;  %v326_v54 = vadd.f32 %v15075_v55, %v9006_v53 }
 0x20b   :  { %v705_v47 = vpop.f32.mrf.mxu0  ;;  %v776_v56 = vpop.f32.mrf.mxu1 }
 0x20c   :  { %v781_v38 = vadd.f32 %v705_v47, %v15074_v59  ;;  %v783_v61 = vadd.f32 %v776_v56, %v15076_v1 }
 0x20d   :  { %v707_v51 = vpop.f32.mrf.mxu0  ;;  %v778_v3 = vpop.f32.mrf.mxu1 }
 0x20e   :  { %v7309_v58 = vmul.f32 -1.442695, %v781_v38  ;;  %v782_v62 = vadd.f32 %v707_v51, %v213_v2  ;;  %v784_v52 = vadd.f32 %v778_v3, %v326_v54  ;;  %v15102_v38 = vld [vmem:[#allocation33_spill] sm:$0xff] }
 0x210   :  { %7419 = vpow2.f32 %v7309_v58  ;;  %v7310_v29 = vmul.f32 -1.442695, %v782_v62  ;;  %v7311_v20 = vmul.f32 -1.442695, %v784_v52  ;;  %v15101_v52 = vld [vmem:[#allocation35_spill] sm:$0xff] }
 0x212   :  { %7421 = vpow2.f32 %v7310_v29 }
 0x213   :  { %7423 = vtanh.f32 %v783_v61  ;;  %v219_v61 = vadd.f32 %v15101_v52, %v8998_v4 }
 0x214   :  { %7425 = vpow2.f32 %v7311_v20  ;;  %v15100_v20 = vld [vmem:[#allocation5_spill] sm:$0xff] }
 0x21d   :  { %v7420_v11 = vpop.eup %7419 }
 0x21e   :  { %v788_v60 = vadd.f32 1.0, %v7420_v11 }
 0x21f   :  { %v7422_v0 = vpop.eup %7421 }
 0x220   :  { %7427 = vrcp.f32 %v788_v60  ;;  %v794_v59 = vadd.f32 1.0, %v7422_v0  ;;  %v7424_v58 = vpop.eup %7423  ;;  %v15099_v60 = vld [vmem:[#allocation4_spill] sm:$0xff] }
 0x221   :  { %v7426_v51 = vpop.eup %7425 }
 0x222   :  { %7429 = vrcp.f32 %v794_v59  ;;  %v801_v2 = vadd.f32 1.0, %v7426_v51 }
 0x224   :  { %7431 = vrcp.f32 %v801_v2  ;;  %v15103_v2 = vld [vmem:[#allocation36_spill] sm:$0xff] }
 0x22d   :  { %v7428_v62 = vpop.eup %7427 }
 0x22e   :  { %v805_v29 = vmul.f32 %v7428_v62, %v7424_v58 }
 0x22f   :  { %v7430_v47 = vpop.eup %7429 }
 0x230   :  { %v804_v55 = vmul.f32 %v7430_v47, %v9010_v57  ;;  %v15098_v57 = vld [vmem:[#allocation26_spill] sm:$0xff] }
 0x231   :  { %v7432_v56 = vpop.eup %7431 }
 0x232   :  { %v9090_v54 = vadd.f32 %v805_v29, %v804_v55  ;;  %v332_v55 = vadd.f32 %v15103_v2, %v9006_v53 }
 0x234   :  { %7433 = vtanh.f32 %v9090_v54 }
 0x241   :  { %v7434_v11 = vpop.eup %7433 }
 0x242   :  { %v9093_v1 = vmul.f32 %v7434_v11, %v7432_v56  ;;  %v15104_v11 = vld [vmem:[#allocation34_spill] sm:$0xff] }
 0x244   :  { %15077 = vst [vmem:[#allocation6_spill] sm:$0xff] %v9093_v1  ;;  %879 = vmatmul.mubr.f32.vlgmr.msra.gmra.mxu0 %v9093_v1  ;;  %950 = vmatmul.mubr.f32.vlgmr.msra.gmra.mxu1 %v9093_v1 }
 0x245   :  { %990 = vmatpush1.msra.mxu0 %v8452_v5  ;;  %1061 = vmatpush1.msra.mxu1 %v8457_v6  ;;  %v15078_v5 = vld [vmem:[#allocation7_spill] sm:$0xff]  ;;  %v15079_v6 = vld [vmem:[#allocation8_spill] sm:$0xff] }
 0x246   :  { %991 = vmatprep.subr.mxu0 %v8462_v7  ;;  %1062 = vmatprep.subr.mxu1 %v8467_v8  ;;  %v15080_v7 = vld [vmem:[#allocation9_spill] sm:$0xff]  ;;  %v15081_v8 = vld [vmem:[#allocation10_spill] sm:$0xff] }
 0x247   :  { %992 = vmatpush1.msra.mxu0 %v8476_v9  ;;  %1063 = vmatpush1.msra.mxu1 %v8481_v10  ;;  %v15082_v9 = vld [vmem:[#allocation11_spill] sm:$0xff]  ;;  %v15083_v10 = vld [vmem:[#allocation12_spill] sm:$0xff] }
 0x248   :  { %993 = vmatprep.subr.mxu0 %v8493_v12  ;;  %1064 = vmatprep.subr.mxu1 %v8498_v13  ;;  %v15084_v12 = vld [vmem:[#allocation13_spill] sm:$0xff]  ;;  %v15085_v13 = vld [vmem:[#allocation14_spill] sm:$0xff] }
 0x249   :  { %994 = vmatpush1.msra.mxu0 %v8505_v14  ;;  %1065 = vmatpush1.msra.mxu1 %v8510_v15  ;;  %v15086_v14 = vld [vmem:[#allocation15_spill] sm:$0xff]  ;;  %v15087_v15 = vld [vmem:[#allocation16_spill] sm:$0xff] }
 0x24a   :  { %995 = vmatprep.subr.mxu0 %v8515_v16  ;;  %1066 = vmatprep.subr.mxu1 %v8520_v17  ;;  %v15088_v16 = vld [vmem:[#allocation17_spill] sm:$0xff]  ;;  %v15089_v17 = vld [vmem:[#allocation18_spill] sm:$0xff] }
 0x24b   :  { %996 = vmatpush1.msra.mxu0 %v8529_v18  ;;  %1067 = vmatpush1.msra.mxu1 %v8534_v19  ;;  %v15090_v18 = vld [vmem:[#allocation19_spill] sm:$0xff]  ;;  %v15091_v19 = vld [vmem:[#allocation20_spill] sm:$0xff] }
 0x24c   :  { %997 = vmatprep.subr.mxu0 %v8546_v21  ;;  %1068 = vmatprep.subr.mxu1 %v8551_v22  ;;  %v15092_v21 = vld [vmem:[#allocation21_spill] sm:$0xff]  ;;  %v15093_v22 = vld [vmem:[#allocation22_spill] sm:$0xff] }
 0x24d   :  { %998 = vmatpush1.msra.mxu0 %v8558_v23  ;;  %1069 = vmatpush1.msra.mxu1 %v8563_v24  ;;  %v15094_v23 = vld [vmem:[#allocation23_spill] sm:$0xff]  ;;  %v15095_v24 = vld [vmem:[#allocation24_spill] sm:$0xff] }
 0x24e   :  { %999 = vmatprep.subr.mxu0 %v8568_v25  ;;  %1070 = vmatprep.subr.mxu1 %v8573_v26  ;;  %v15096_v25 = vld [vmem:[#allocation25_spill] sm:$0xff]  ;;  %v15097_v26 = vmov 0.0  }
 0x24f   :  { %1000 = vmatpush1.msra.mxu0 %v8582_v27  ;;  %1071 = vmatpush1.msra.mxu1 %v8587_v28 }
 0x250   :  { %1001 = vmatprep.subr.mxu0 %v8599_v30  ;;  %1072 = vmatprep.subr.mxu1 %v8604_v31 }
 0x251   :  { %1002 = vmatpush1.msra.mxu0 %v8611_v32  ;;  %1073 = vmatpush1.msra.mxu1 %v8616_v33 }
 0x252   :  { %1003 = vmatprep.subr.mxu0 %v8621_v34  ;;  %1074 = vmatprep.subr.mxu1 %v8626_v35 }
 0x253   :  { %1004 = vmatpush1.msra.mxu0 %v8635_v36  ;;  %1075 = vmatpush1.msra.mxu1 %v8640_v37 }
 0x254   :  { %1005 = vmatprep.subr.mxu0 %v8652_v39  ;;  %1076 = vmatprep.subr.mxu1 %v8657_v40 }
 0x255   :  { %1006 = vmatpush1.msra.mxu0 %v8664_v41  ;;  %1077 = vmatpush1.msra.mxu1 %v8669_v42 }
 0x256   :  { %1007 = vmatprep.subr.mxu0 %v8674_v43  ;;  %1078 = vmatprep.subr.mxu1 %v8679_v44 }
 0x257   :  { %1008 = vmatpush1.msra.mxu0 %v8688_v45  ;;  %1079 = vmatpush1.msra.mxu1 %v8693_v46 }
 0x258   :  { %1009 = vmatprep.subr.mxu0 %v8705_v48  ;;  %1080 = vmatprep.subr.mxu1 %v8710_v49 }
 0x259   :  { %1010 = vmatpush1.msra.mxu0 %v8717_v50  ;;  %1081 = vmatpush1.msra.mxu1 %v15049_v63 }
 0x25a   :  { %1011 = vmatprep.subr.mxu0 %v15078_v5  ;;  %1082 = vmatprep.subr.mxu1 %v15079_v6 }
 0x25b   :  { %1012 = vmatpush1.msra.mxu0 %v15080_v7  ;;  %1083 = vmatpush1.msra.mxu1 %v15081_v8 }
 0x25c   :  { %1013 = vmatprep.subr.mxu0 %v15082_v9  ;;  %1084 = vmatprep.subr.mxu1 %v15083_v10 }
 0x25d   :  { %1014 = vmatpush1.msra.mxu0 %v15084_v12  ;;  %1085 = vmatpush1.msra.mxu1 %v15085_v13 }
 0x25e   :  { %1015 = vmatprep.subr.mxu0 %v15086_v14  ;;  %1086 = vmatprep.subr.mxu1 %v15087_v15 }
 0x25f   :  { %1016 = vmatpush1.msra.mxu0 %v15088_v16  ;;  %1087 = vmatpush1.msra.mxu1 %v15089_v17 }
 0x260   :  { %1017 = vmatprep.subr.mxu0 %v15090_v18  ;;  %1088 = vmatprep.subr.mxu1 %v15091_v19 }
 0x261   :  { %1018 = vmatpush1.msra.mxu0 %v15092_v21  ;;  %1089 = vmatpush1.msra.mxu1 %v15093_v22 }
 0x262   :  { %1019 = vmatprep.subr.mxu0 %v15094_v23  ;;  %1090 = vmatprep.subr.mxu1 %v15095_v24 }
 0x263   :  { %1020 = vmatpush1.msra.mxu0 %v15096_v25  ;;  %1053 = vmatprep.mubr.f32.mxu0 %v15097_v26 }
 0x264   :  { %1091 = vmatpush1.msra.mxu1 %v15098_v57  ;;  %1124 = vmatprep.mubr.f32.mxu1 %v15097_v26 }
 0x265   :  { %1164 = vmatprep.subr.mxu0 %v15099_v60  ;;  %1235 = vmatprep.subr.mxu1 %v15100_v20 }
 0x304   :  { %v880_v3 = vpop.f32.mrf.mxu0  ;;  %v951_v62 = vpop.f32.mrf.mxu1 }
 0x305   :  { %v956_v0 = vadd.f32 %v880_v3, %v15102_v38  ;;  %v958_v60 = vadd.f32 %v951_v62, %v15104_v11  ;;  %v9204_v11 = vld [vmem:[%s14535_s2 + $0x1c0] sm:$0xff] }
 0x306   :  { %v882_v59 = vpop.f32.mrf.mxu0  ;;  %v953_v47 = vpop.f32.mrf.mxu1 }
 0x307   :  { %v7312_v58 = vmul.f32 -1.442695, %v956_v0  ;;  %v957_v51 = vadd.f32 %v882_v59, %v219_v61  ;;  %v959_v56 = vadd.f32 %v953_v47, %v332_v55  ;;  %v9192_v55 = vld [vmem:[%s14535_s2 + $0x1c8] sm:$0xff] }
 0x309   :  { %7435 = vpow2.f32 %v7312_v58  ;;  %v7313_v29 = vmul.f32 -1.442695, %v957_v51  ;;  %v7314_v20 = vmul.f32 -1.442695, %v959_v56  ;;  %v9198_v56 = vld [vmem:[%s14535_s2 + $0x1d8] sm:$0xff] }
 0x30b   :  { %7437 = vpow2.f32 %v7313_v29 }
 0x30c   :  { %7439 = vtanh.f32 %v958_v60  ;;  %v9210_v60 = vld [vmem:[%s14535_s2 + $0x1d0] sm:$0xff] }
 0x30d   :  { %7441 = vpow2.f32 %v7314_v20  ;;  %v9216_v20 = vld [vmem:[%s14535_s2 + $0x1a8] sm:$0xff] }
 0x316   :  { %v7436_v1 = vpop.eup %7435 }
 0x317   :  { %v963_v57 = vadd.f32 1.0, %v7436_v1 }
 0x318   :  { %v7438_v52 = vpop.eup %7437 }
 0x319   :  { %7443 = vrcp.f32 %v963_v57  ;;  %v969_v3 = vadd.f32 1.0, %v7438_v52  ;;  %v7440_v61 = vpop.eup %7439  ;;  %v9180_v57 = vld [vmem:[%s14535_s2 + $0x1e0] sm:$0xff]  ;;  %v9222_v52 = vld [vmem:[%s14535_s2 + $0x1b8] sm:$0xff] }
 0x31a   :  { %v7442_v38 = vpop.eup %7441 }
 0x31b   :  { %7445 = vrcp.f32 %v969_v3  ;;  %v976_v51 = vadd.f32 1.0, %v7442_v38  ;;  %v9228_v3 = vld [vmem:[%s14535_s2 + $0x1a0] sm:$0xff]  ;;  %v9240_v38 = vld [vmem:[%s14535_s2 + $0x188] sm:$0xff] }
 0x31d   :  { %7447 = vrcp.f32 %v976_v51  ;;  %v9264_v51 = vld [vmem:[%s14535_s2 + $0x168] sm:$0xff] }
 0x326   :  { %v7444_v0 = vpop.eup %7443 }
 0x327   :  { %v980_v59 = vmul.f32 %v7444_v0, %v7440_v61  ;;  %v9234_v61 = vld [vmem:[%s14535_s2 + $0x1b0] sm:$0xff]  ;;  %v9246_v0 = vld [vmem:[%s14535_s2 + $0x198] sm:$0xff] }
 0x328   :  { %v7446_v58 = vpop.eup %7445 }
 0x329   :  { %v979_v29 = vmul.f32 %v7446_v58, %v9090_v54  ;;  %v9186_v54 = vld [vmem:[%s14535_s2 + $0x1f0] sm:$0xff] }
 0x32a   :  { %v7448_v1 = vpop.eup %7447  ;;  %v9258_v58 = vld [vmem:[%s14535_s2 + $0x190] sm:$0xff] }
 0x32b   :  { %v9170_v47 = vadd.f32 %v980_v59, %v979_v29  ;;  %v9252_v59 = vld [vmem:[%s14535_s2 + $0x180] sm:$0xff]  ;;  %v9270_v29 = vld [vmem:[%s14535_s2 + $0x178] sm:$0xff] }
 0x32c   :  { %15106 = vst [vmem:[#allocation29_spill] sm:$0xff] %v9270_v29 }
 0x32d   :  { %7449 = vtanh.f32 %v9170_v47 }
 0x33a   :  { %v7450_v62 = vpop.eup %7449 }
 0x33b   :  { %v9173_v2 = vmul.f32 %v7450_v62, %v7448_v1  ;;  %v9276_v1 = vld [vmem:[%s14535_s2 + $0x160] sm:$0xff]  ;;  %v9282_v62 = vld [vmem:[%s14535_s2 + $0x170] sm:$0xff] }
 0x33d   :  { %15105 = vst [vmem:[#allocation31_spill] sm:$0xff] %v9173_v2  ;;  %1054 = vmatmul.mubr.f32.vlgmr.msra.gmra.mxu0 %v9173_v2  ;;  %1125 = vmatmul.mubr.f32.vlgmr.msra.gmra.mxu1 %v9173_v2  ;;  %v9288_v2 = vld [vmem:[%s14535_s2 + $0x148] sm:$0xff] }
 0x33e   :  { %1165 = vmatpush1.msra.mxu0 %v9180_v57  ;;  %1236 = vmatpush1.msra.mxu1 %v9186_v54 }
 0x33f   :  { %1166 = vmatprep.subr.mxu0 %v9192_v55  ;;  %1237 = vmatprep.subr.mxu1 %v9198_v56 }
 0x340   :  { %1167 = vmatpush1.msra.mxu0 %v9204_v11  ;;  %1238 = vmatpush1.msra.mxu1 %v9210_v60 }
 0x341   :  { %1168 = vmatprep.subr.mxu0 %v9216_v20  ;;  %1239 = vmatprep.subr.mxu1 %v9222_v52 }
 0x342   :  { %1169 = vmatpush1.msra.mxu0 %v9228_v3  ;;  %1240 = vmatpush1.msra.mxu1 %v9234_v61 }
 0x343   :  { %1170 = vmatprep.subr.mxu0 %v9240_v38  ;;  %1241 = vmatprep.subr.mxu1 %v9246_v0 }
 0x344   :  { %1171 = vmatpush1.msra.mxu0 %v9252_v59  ;;  %1242 = vmatpush1.msra.mxu1 %v9258_v58 }
 0x345   :  { %1172 = vmatprep.subr.mxu0 %v9264_v51  ;;  %1243 = vmatprep.subr.mxu1 %v9270_v29  ;;  %v9294_v29 = vld [vmem:[%s14535_s2 + $0x158] sm:$0xff] }
 0x346   :  { %1173 = vmatpush1.msra.mxu0 %v9276_v1  ;;  %1244 = vmatpush1.msra.mxu1 %v9282_v62 }
 0x347   :  { %1174 = vmatprep.subr.mxu0 %v9288_v2  ;;  %1245 = vmatprep.subr.mxu1 %v9294_v29 }
 0x348   :  { %1175 = vmatpush1.msra.mxu0 %v8582_v27  ;;  %1246 = vmatpush1.msra.mxu1 %v8587_v28  ;;  %v15107_v27 = vld [vmem:[#allocation26_spill] sm:$0xff]  ;;  %v9344_v28 = vld [vmem:[%s14535_s2 + $0x1e8] sm:$0xff] }
 0x349   :  { %1176 = vmatprep.subr.mxu0 %v8599_v30  ;;  %1247 = vmatprep.subr.mxu1 %v8604_v31  ;;  %15108 = vst [vmem:[#allocation32_spill] sm:$0xff] %v9344_v28  ;;  %v9350_v30 = vld [vmem:[%s14535_s2 + $0x1f8] sm:$0xff] }
 0x34a   :  { %1177 = vmatpush1.msra.mxu0 %v8611_v32  ;;  %1248 = vmatpush1.msra.mxu1 %v8616_v33  ;;  %15109 = vst [vmem:[#allocation30_spill] sm:$0xff] %v9350_v30  ;;  %v15110_v32 = vld [vmem:[#allocation39_spill] sm:$0xff] }
 0x34b   :  { %1178 = vmatprep.subr.mxu0 %v8621_v34  ;;  %1249 = vmatprep.subr.mxu1 %v8626_v35  ;;  %v225_v33 = vadd.f32 %v15110_v32, %v8998_v4  ;;  %v15111_v34 = vld [vmem:[#allocation37_spill] sm:$0xff]  ;;  %v9438_v32 = vld [vmem:[%s14535_s2 + $0x100] sm:$0xff] }
 0x34c   :  { %1179 = vmatpush1.msra.mxu0 %v8635_v36  ;;  %1250 = vmatpush1.msra.mxu1 %v8640_v37 }
 0x34d   :  { %1180 = vmatprep.subr.mxu0 %v8652_v39  ;;  %1251 = vmatprep.subr.mxu1 %v8657_v40 }
 0x34e   :  { %1181 = vmatpush1.msra.mxu0 %v8664_v41  ;;  %1252 = vmatpush1.msra.mxu1 %v8669_v42 }
 0x34f   :  { %1182 = vmatprep.subr.mxu0 %v8674_v43  ;;  %1253 = vmatprep.subr.mxu1 %v8679_v44  ;;  %v15112_v43 = vld [vmem:[#allocation40_spill] sm:$0xff] }
 0x350   :  { %1183 = vmatpush1.msra.mxu0 %v8688_v45  ;;  %1254 = vmatpush1.msra.mxu1 %v8693_v46  ;;  %v338_v44 = vadd.f32 %v15112_v43, %v9006_v53  ;;  %v15113_v46 = vld [vmem:[#allocation38_spill] sm:$0xff]  ;;  %v9498_v43 = vld [vmem:[%s14535_s2 + $0xa8] sm:$0xff] }
 0x351   :  { %1184 = vmatprep.subr.mxu0 %v8705_v48  ;;  %1255 = vmatprep.subr.mxu1 %v8710_v49 }
 0x352   :  { %1185 = vmatpush1.msra.mxu0 %v8717_v50  ;;  %1256 = vmatpush1.msra.mxu1 %v15049_v63 }
 0x353   :  { %1186 = vmatprep.subr.mxu0 %v15078_v5  ;;  %1257 = vmatprep.subr.mxu1 %v15079_v6 }
 0x354   :  { %1187 = vmatpush1.msra.mxu0 %v15080_v7  ;;  %1258 = vmatpush1.msra.mxu1 %v15081_v8 }
 0x355   :  { %1188 = vmatprep.subr.mxu0 %v15082_v9  ;;  %1259 = vmatprep.subr.mxu1 %v15083_v10 }
 0x356   :  { %1189 = vmatpush1.msra.mxu0 %v15084_v12  ;;  %1260 = vmatpush1.msra.mxu1 %v15085_v13 }
 0x357   :  { %1190 = vmatprep.subr.mxu0 %v15086_v14  ;;  %1261 = vmatprep.subr.mxu1 %v15087_v15 }
 0x358   :  { %1191 = vmatpush1.msra.mxu0 %v15088_v16  ;;  %1262 = vmatpush1.msra.mxu1 %v15089_v17 }
 0x359   :  { %1192 = vmatprep.subr.mxu0 %v15090_v18  ;;  %1263 = vmatprep.subr.mxu1 %v15091_v19  ;;  %v15115_v19 = vld [vmem:[#allocation29_spill] sm:$0xff] }
 0x35a   :  { %1193 = vmatpush1.msra.mxu0 %v15092_v21  ;;  %1264 = vmatpush1.msra.mxu1 %v15093_v22  ;;  %v9390_v21 = vld [vmem:[%s14535_s2 + $0x140] sm:$0xff]  ;;  %v9396_v22 = vld [vmem:[%s14535_s2 + $0x150] sm:$0xff] }
 0x35b   :  { %1194 = vmatprep.subr.mxu0 %v15094_v23  ;;  %1265 = vmatprep.subr.mxu1 %v15095_v24  ;;  %v9402_v23 = vld [vmem:[%s14535_s2 + $0x128] sm:$0xff]  ;;  %v9408_v24 = vld [vmem:[%s14535_s2 + $0x138] sm:$0xff] }
 0x35c   :  { %1195 = vmatpush1.msra.mxu0 %v15096_v25  ;;  %1228 = vmatprep.mubr.f32.mxu0 %v15097_v26  ;;  %v9414_v25 = vld [vmem:[%s14535_s2 + $0x120] sm:$0xff] }
 0x35d   :  { %1266 = vmatpush1.msra.mxu1 %v15107_v27  ;;  %1299 = vmatprep.mubr.f32.mxu1 %v15097_v26  ;;  %v9426_v27 = vld [vmem:[%s14535_s2 + $0x108] sm:$0xff] }
 0x35e   :  { %1339 = vmatprep.subr.mxu0 %v9344_v28  ;;  %1410 = vmatprep.subr.mxu1 %v9350_v30 }
 0x3fd   :  { %v1055_v31 = vpop.f32.mrf.mxu0  ;;  %v1126_v40 = vpop.f32.mrf.mxu1 }
 0x3fe   :  { %v1131_v35 = vadd.f32 %v1055_v31, %v15111_v34  ;;  %v1133_v48 = vadd.f32 %v1126_v40, %v15113_v46  ;;  %v9432_v31 = vld [vmem:[%s14535_s2 + $0x118] sm:$0xff]  ;;  %v9450_v34 = vld [vmem:[%s14535_s2 + $0xe8] sm:$0xff]  ;;  %v9516_v46 = vld [vmem:[%s14535_s2 + $0xb0] sm:$0xff] }
 0x3ff   :  { %v1057_v36 = vpop.f32.mrf.mxu0  ;;  %v1128_v42 = vpop.f32.mrf.mxu1  ;;  %v9480_v40 = vld [vmem:[%s14535_s2 + $0xd8] sm:$0xff] }
 0x400   :  { %v7315_v37 = vmul.f32 -1.442695, %v1131_v35  ;;  %v1132_v39 = vadd.f32 %v1057_v36, %v225_v33  ;;  %v1134_v45 = vadd.f32 %v1128_v42, %v338_v44  ;;  %v9444_v33 = vld [vmem:[%s14535_s2 + $0x110] sm:$0xff]  ;;  %v9456_v35 = vld [vmem:[%s14535_s2 + $0xf8] sm:$0xff]  ;;  %v9462_v36 = vld [vmem:[%s14535_s2 + $0xe0] sm:$0xff] }
 0x401   :  { %v9492_v42 = vld [vmem:[%s14535_s2 + $0xd0] sm:$0xff]  ;;  %v9504_v44 = vld [vmem:[%s14535_s2 + $0xb8] sm:$0xff] }
 0x402   :  { %7451 = vpow2.f32 %v7315_v37  ;;  %v7316_v41 = vmul.f32 -1.442695, %v1132_v39  ;;  %v7317_v49 = vmul.f32 -1.442695, %v1134_v45  ;;  %v9468_v37 = vld [vmem:[%s14535_s2 + $0xf0] sm:$0xff]  ;;  %v9474_v39 = vld [vmem:[%s14535_s2 + $0xc8] sm:$0xff] }
 0x403   :  { %v9510_v45 = vld [vmem:[%s14535_s2 + $0xa0] sm:$0xff] }
 0x404   :  { %7453 = vpow2.f32 %v7316_v41  ;;  %v9486_v41 = vld [vmem:[%s14535_s2 + $0xc0] sm:$0xff] }
 0x405   :  { %7455 = vtanh.f32 %v1133_v48  ;;  %v9522_v48 = vld [vmem:[%s14535_s2 + $0x88] sm:$0xff] }
 0x406   :  { %7457 = vpow2.f32 %v7317_v49  ;;  %15116 = vst [vmem:[#allocation8_spill] sm:$0xff] %v9522_v48  ;;  %v9528_v49 = vld [vmem:[%s14535_s2 + $0x98] sm:$0xff] }
 0x407   :  { %15117 = vst [vmem:[#allocation9_spill] sm:$0xff] %v9528_v49 }
 0x40f   :  { %v7452_v50 = vpop.eup %7451 }
 0x410   :  { %v1138_v63 = vadd.f32 1.0, %v7452_v50  ;;  %v9534_v50 = vld [vmem:[%s14535_s2 + $0x80] sm:$0xff] }
 0x411   :  { %v7454_v5 = vpop.eup %7453  ;;  %15118 = vst [vmem:[#allocation10_spill] sm:$0xff] %v9534_v50 }
 0x412   :  { %7459 = vrcp.f32 %v1138_v63  ;;  %v1144_v6 = vadd.f32 1.0, %v7454_v5  ;;  %v7456_v7 = vpop.eup %7455  ;;  %v9540_v63 = vld [vmem:[%s14535_s2 + $0x90] sm:$0xff]  ;;  %v9546_v5 = vld [vmem:[%s14535_s2 + $0x68] sm:$0xff] }
 0x413   :  { %v7458_v8 = vpop.eup %7457  ;;  %15119 = vst [vmem:[#allocation11_spill] sm:$0xff] %v9540_v63  ;;  %15120 = vst [vmem:[#allocation12_spill] sm:$0xff] %v9546_v5 }
 0x414   :  { %7461 = vrcp.f32 %v1144_v6  ;;  %v1151_v13 = vadd.f32 1.0, %v7458_v8  ;;  %v9552_v6 = vld [vmem:[%s14535_s2 + $0x78] sm:$0xff]  ;;  %v9564_v8 = vld [vmem:[%s14535_s2 + $0x70] sm:$0xff] }
 0x415   :  { %15121 = vst [vmem:[#allocation13_spill] sm:$0xff] %v9552_v6  ;;  %15123 = vst [vmem:[#allocation15_spill] sm:$0xff] %v9564_v8 }
 0x416   :  { %7463 = vrcp.f32 %v1151_v13  ;;  %v9588_v13 = vld [vmem:[%s14535_s2 + $0x50] sm:$0xff] }
 0x417   :  { %15127 = vst [vmem:[#allocation19_spill] sm:$0xff] %v9588_v13 }
 0x41f   :  { %v7460_v9 = vpop.eup %7459 }
 0x420   :  { %v1155_v10 = vmul.f32 %v7460_v9, %v7456_v7  ;;  %v9558_v7 = vld [vmem:[%s14535_s2 + $0x60] sm:$0xff]  ;;  %v9570_v9 = vld [vmem:[%s14535_s2 + $0x48] sm:$0xff] }
 0x421   :  { %v7462_v12 = vpop.eup %7461  ;;  %15122 = vst [vmem:[#allocation14_spill] sm:$0xff] %v9558_v7  ;;  %15124 = vst [vmem:[#allocation16_spill] sm:$0xff] %v9570_v9 }
 0x422   :  { %v1154_v14 = vmul.f32 %v7462_v12, %v9170_v47  ;;  %v9420_v47 = vld [vmem:[%s14535_s2 + $0x130] sm:$0xff]  ;;  %v9582_v12 = vld [vmem:[%s14535_s2 + $0x40] sm:$0xff] }
 0x423   :  { %v7464_v16 = vpop.eup %7463  ;;  %15126 = vst [vmem:[#allocation18_spill] sm:$0xff] %v9582_v12 }
 0x424   :  { %v9360_v15 = vadd.f32 %v1155_v10, %v1154_v14  ;;  %v9576_v10 = vld [vmem:[%s14535_s2 + $0x58] sm:$0xff]  ;;  %v9594_v14 = vld [vmem:[%s14535_s2 + $0x28] sm:$0xff] }
 0x425   :  { %15125 = vst [vmem:[#allocation17_spill] sm:$0xff] %v9576_v10  ;;  %15128 = vst [vmem:[#allocation20_spill] sm:$0xff] %v9594_v14 }
 0x426   :  { %7465 = vtanh.f32 %v9360_v15 }
 0x433   :  { %v7466_v17 = vpop.eup %7465 }
 0x434   :  { %v9363_v18 = vmul.f32 %v7466_v17, %v7464_v16  ;;  %v9600_v16 = vld [vmem:[%s14535_s2 + $0x38] sm:$0xff]  ;;  %v9606_v17 = vld [vmem:[%s14535_s2 + $0x20] sm:$0xff] }
 0x435   :  { %15129 = vst [vmem:[#allocation21_spill] sm:$0xff] %v9600_v16  ;;  %15130 = vst [vmem:[#allocation22_spill] sm:$0xff] %v9606_v17 }
 0x436   :  { %15114 = vst [vmem:[#allocation7_spill] sm:$0xff] %v9363_v18  ;;  %1229 = vmatmul.mubr.f32.vlgmr.msra.gmra.mxu0 %v9363_v18  ;;  %1300 = vmatmul.mubr.f32.vlgmr.msra.gmra.mxu1 %v9363_v18  ;;  %v9612_v18 = vld [vmem:[%s14535_s2 + $0x30] sm:$0xff] }
 0x437   :  { %1340 = vmatpush1.msra.mxu0 %v9180_v57  ;;  %1411 = vmatpush1.msra.mxu1 %v9186_v54  ;;  %15131 = vst [vmem:[#allocation23_spill] sm:$0xff] %v9612_v18 }
 0x438   :  { %1341 = vmatprep.subr.mxu0 %v9192_v55  ;;  %1412 = vmatprep.subr.mxu1 %v9198_v56 }
 0x439   :  { %1342 = vmatpush1.msra.mxu0 %v9204_v11  ;;  %1413 = vmatpush1.msra.mxu1 %v9210_v60 }
 0x43a   :  { %1343 = vmatprep.subr.mxu0 %v9216_v20  ;;  %1414 = vmatprep.subr.mxu1 %v9222_v52 }
 0x43b   :  { %1344 = vmatpush1.msra.mxu0 %v9228_v3  ;;  %1415 = vmatpush1.msra.mxu1 %v9234_v61 }
 0x43c   :  { %1345 = vmatprep.subr.mxu0 %v9240_v38  ;;  %1416 = vmatprep.subr.mxu1 %v9246_v0 }
 0x43d   :  { %1346 = vmatpush1.msra.mxu0 %v9252_v59  ;;  %1417 = vmatpush1.msra.mxu1 %v9258_v58 }
 0x43e   :  { %1347 = vmatprep.subr.mxu0 %v9264_v51  ;;  %1418 = vmatprep.subr.mxu1 %v15115_v19 }
 0x43f   :  { %1348 = vmatpush1.msra.mxu0 %v9276_v1  ;;  %1419 = vmatpush1.msra.mxu1 %v9282_v62 }
 0x440   :  { %1349 = vmatprep.subr.mxu0 %v9288_v2  ;;  %1420 = vmatprep.subr.mxu1 %v9294_v29 }
 0x441   :  { %1350 = vmatpush1.msra.mxu0 %v9390_v21  ;;  %1421 = vmatpush1.msra.mxu1 %v9396_v22 }
 0x442   :  { %1351 = vmatprep.subr.mxu0 %v9402_v23  ;;  %1422 = vmatprep.subr.mxu1 %v9408_v24 }
 0x443   :  { %1352 = vmatpush1.msra.mxu0 %v9414_v25  ;;  %1423 = vmatpush1.msra.mxu1 %v9420_v47 }
 0x444   :  { %1353 = vmatprep.subr.mxu0 %v9426_v27  ;;  %1424 = vmatprep.subr.mxu1 %v9432_v31 }
 0x445   :  { %1354 = vmatpush1.msra.mxu0 %v9438_v32  ;;  %1425 = vmatpush1.msra.mxu1 %v9444_v33 }
 0x446   :  { %1355 = vmatprep.subr.mxu0 %v9450_v34  ;;  %1426 = vmatprep.subr.mxu1 %v9456_v35 }
 0x447   :  { %1356 = vmatpush1.msra.mxu0 %v9462_v36  ;;  %1427 = vmatpush1.msra.mxu1 %v9468_v37 }
 0x448   :  { %1357 = vmatprep.subr.mxu0 %v9474_v39  ;;  %1428 = vmatprep.subr.mxu1 %v9480_v40 }
 0x449   :  { %1358 = vmatpush1.msra.mxu0 %v9486_v41  ;;  %1429 = vmatpush1.msra.mxu1 %v9492_v42 }
 0x44a   :  { %1359 = vmatprep.subr.mxu0 %v9498_v43  ;;  %1430 = vmatprep.subr.mxu1 %v9504_v44 }
 0x44b   :  { %1360 = vmatpush1.msra.mxu0 %v9510_v45  ;;  %1431 = vmatpush1.msra.mxu1 %v9516_v46 }
 0x44c   :  { %1361 = vmatprep.subr.mxu0 %v9522_v48  ;;  %1432 = vmatprep.subr.mxu1 %v9528_v49 }
 0x44d   :  { %1362 = vmatpush1.msra.mxu0 %v9534_v50  ;;  %1433 = vmatpush1.msra.mxu1 %v9540_v63  ;;  %v15139_v63 = vld [vmem:[#allocation42_spill] sm:$0xff] }
 0x44e   :  { %1363 = vmatprep.subr.mxu0 %v9546_v5  ;;  %1434 = vmatprep.subr.mxu1 %v9552_v6 }
 0x44f   :  { %1364 = vmatpush1.msra.mxu0 %v9558_v7  ;;  %1435 = vmatpush1.msra.mxu1 %v9564_v8 }
 0x450   :  { %1365 = vmatprep.subr.mxu0 %v9570_v9  ;;  %1436 = vmatprep.subr.mxu1 %v9576_v10 }
 0x451   :  { %1366 = vmatpush1.msra.mxu0 %v9582_v12  ;;  %1437 = vmatpush1.msra.mxu1 %v9588_v13 }
 0x452   :  { %1367 = vmatprep.subr.mxu0 %v9594_v14  ;;  %1438 = vmatprep.subr.mxu1 %v9600_v16  ;;  %v9618_v14 = vld [vmem:[%s14535_s2 + $0x8] sm:$0xff]  ;;  %v9624_v16 = vld [vmem:[%s14535_s2 + $0x18] sm:$0xff] }
 0x453   :  { %1368 = vmatpush1.msra.mxu0 %v9606_v17  ;;  %1439 = vmatpush1.msra.mxu1 %v9612_v18  ;;  %15132 = vst [vmem:[#allocation24_spill] sm:$0xff] %v9618_v14  ;;  %15133 = vst [vmem:[#allocation25_spill] sm:$0xff] %v9624_v16  ;;  %v9630_v17 = vld [vmem:[%s14535_s2] sm:$0xff]  ;;  %v15136_v18 = vld [vmem:[#allocation43_spill] sm:$0xff] }
 0x454   :  { %1369 = vmatprep.subr.mxu0 %v9618_v14  ;;  %1440 = vmatprep.subr.mxu1 %v9624_v16  ;;  %15134 = vst [vmem:[#allocation4_spill] sm:$0xff] %v9630_v17  ;;  %v9637_v14 = vld [vmem:[%s14535_s2 + $0x10] sm:$0xff]  ;;  %v231_v13 = vadd.f32 %v15136_v18, %v8998_v4 }
 0x455   :  { %1370 = vmatpush1.msra.mxu0 %v9630_v17  ;;  %1403 = vmatprep.mubr.f32.mxu0 %v15097_v26  ;;  %15135 = vst [vmem:[#allocation5_spill] sm:$0xff] %v9637_v14  ;;  %v15137_v17 = vld [vmem:[#allocation41_spill] sm:$0xff] }
 0x456   :  { %1441 = vmatpush1.msra.mxu1 %v9637_v14  ;;  %1474 = vmatprep.mubr.f32.mxu1 %v15097_v26  ;;  %v15138_v26 = vld [vmem:[#allocation44_spill] sm:$0xff] }
 0x457   :  { %1514 = vmatprep.subr.mxu0 %v9344_v28  ;;  %1585 = vmatprep.subr.mxu1 %v9350_v30  ;;  %v344_v5 = vadd.f32 %v15138_v26, %v9006_v53 }
 0x4f6   :  { %v1230_v16 = vpop.f32.mrf.mxu0  ;;  %v1301_v7 = vpop.f32.mrf.mxu1 }
 0x4f7   :  { %v1306_v12 = vadd.f32 %v1230_v16, %v15137_v17  ;;  %v1308_v30 = vadd.f32 %v1301_v7, %v15139_v63  ;;  %v15144_v63 = vld [vmem:[#allocation11_spill] sm:$0xff]  ;;  %v15145_v7 = vld [vmem:[#allocation12_spill] sm:$0xff]  ;;  %v15147_v17 = vld [vmem:[#allocation14_spill] sm:$0xff] }
 0x4f8   :  { %v1232_v10 = vpop.f32.mrf.mxu0  ;;  %v1303_v14 = vpop.f32.mrf.mxu1 }
 0x4f9   :  { %v7318_v9 = vmul.f32 -1.442695, %v1306_v12  ;;  %v1307_v8 = vadd.f32 %v1232_v10, %v231_v13  ;;  %v1309_v28 = vadd.f32 %v1303_v14, %v344_v5  ;;  %v15146_v14 = vld [vmem:[#allocation13_spill] sm:$0xff] }
 0x4fb   :  { %7467 = vpow2.f32 %v7318_v9  ;;  %v7319_v6 = vmul.f32 -1.442695, %v1307_v8  ;;  %v7320_v50 = vmul.f32 -1.442695, %v1309_v28 }
 0x4fd   :  { %7469 = vpow2.f32 %v7319_v6 }
 0x4fe   :  { %7471 = vtanh.f32 %v1308_v30 }
 0x4ff   :  { %7473 = vpow2.f32 %v7320_v50  ;;  %v15143_v50 = vld [vmem:[#allocation10_spill] sm:$0xff] }
 0x508   :  { %v7468_v49 = vpop.eup %7467 }
 0x509   :  { %v1313_v48 = vadd.f32 1.0, %v7468_v49 }
 0x50a   :  { %v7470_v18 = vpop.eup %7469 }
 0x50b   :  { %7475 = vrcp.f32 %v1313_v48  ;;  %v1319_v12 = vadd.f32 1.0, %v7470_v18  ;;  %v7472_v9 = vpop.eup %7471  ;;  %v15142_v48 = vld [vmem:[#allocation9_spill] sm:$0xff]  ;;  %v15148_v18 = vld [vmem:[#allocation15_spill] sm:$0xff] }
 0x50c   :  { %v7474_v10 = vpop.eup %7473 }
 0x50d   :  { %7477 = vrcp.f32 %v1319_v12  ;;  %v1326_v16 = vadd.f32 1.0, %v7474_v10  ;;  %v15149_v12 = vld [vmem:[#allocation16_spill] sm:$0xff]  ;;  %v15151_v10 = vld [vmem:[#allocation18_spill] sm:$0xff] }
 0x50f   :  { %7479 = vrcp.f32 %v1326_v16  ;;  %v15155_v16 = vld [vmem:[#allocation22_spill] sm:$0xff] }
 0x518   :  { %v7476_v8 = vpop.eup %7475 }
 0x519   :  { %v1330_v6 = vmul.f32 %v7476_v8, %v7472_v9  ;;  %v15150_v9 = vld [vmem:[#allocation17_spill] sm:$0xff]  ;;  %v15152_v8 = vld [vmem:[#allocation19_spill] sm:$0xff] }
 0x51a   :  { %v7478_v13 = vpop.eup %7477 }
 0x51b   :  { %v1329_v26 = vmul.f32 %v7478_v13, %v9360_v15  ;;  %v15141_v15 = vld [vmem:[#allocation8_spill] sm:$0xff]  ;;  %v15154_v13 = vld [vmem:[#allocation21_spill] sm:$0xff] }
 0x51c   :  { %v7480_v28 = vpop.eup %7479 }
 0x51d   :  { %v9650_v5 = vadd.f32 %v1330_v6, %v1329_v26  ;;  %v15153_v6 = vld [vmem:[#allocation20_spill] sm:$0xff]  ;;  %v15156_v26 = vld [vmem:[#allocation23_spill] sm:$0xff] }
 0x51f   :  { %7481 = vtanh.f32 %v9650_v5 }
 0x52c   :  { %v7482_v30 = vpop.eup %7481 }
 0x52d   :  { %v9653_v49 = vmul.f32 %v7482_v30, %v7480_v28  ;;  %v15157_v28 = vld [vmem:[#allocation24_spill] sm:$0xff]  ;;  %v15158_v30 = vld [vmem:[#allocation25_spill] sm:$0xff] }
 0x52f   :  { %15140 = vst [vmem:[#allocation35_spill] sm:$0xff] %v9653_v49  ;;  %1404 = vmatmul.mubr.f32.vlgmr.msra.gmra.mxu0 %v9653_v49  ;;  %1475 = vmatmul.mubr.f32.vlgmr.msra.gmra.mxu1 %v9653_v49  ;;  %v15159_v49 = vld [vmem:[#allocation4_spill] sm:$0xff] }
 0x530   :  { %1515 = vmatpush1.msra.mxu0 %v9180_v57  ;;  %1586 = vmatpush1.msra.mxu1 %v9186_v54 }
 0x531   :  { %1516 = vmatprep.subr.mxu0 %v9192_v55  ;;  %1587 = vmatprep.subr.mxu1 %v9198_v56 }
 0x532   :  { %1517 = vmatpush1.msra.mxu0 %v9204_v11  ;;  %1588 = vmatpush1.msra.mxu1 %v9210_v60 }
 0x533   :  { %1518 = vmatprep.subr.mxu0 %v9216_v20  ;;  %1589 = vmatprep.subr.mxu1 %v9222_v52 }
 0x534   :  { %1519 = vmatpush1.msra.mxu0 %v9228_v3  ;;  %1590 = vmatpush1.msra.mxu1 %v9234_v61 }
 0x535   :  { %1520 = vmatprep.subr.mxu0 %v9240_v38  ;;  %1591 = vmatprep.subr.mxu1 %v9246_v0 }
 0x536   :  { %1521 = vmatpush1.msra.mxu0 %v9252_v59  ;;  %1592 = vmatpush1.msra.mxu1 %v9258_v58 }
 0x537   :  { %1522 = vmatprep.subr.mxu0 %v9264_v51  ;;  %1593 = vmatprep.subr.mxu1 %v15115_v19 }
 0x538   :  { %1523 = vmatpush1.msra.mxu0 %v9276_v1  ;;  %1594 = vmatpush1.msra.mxu1 %v9282_v62 }
 0x539   :  { %1524 = vmatprep.subr.mxu0 %v9288_v2  ;;  %1595 = vmatprep.subr.mxu1 %v9294_v29 }
 0x53a   :  { %1525 = vmatpush1.msra.mxu0 %v9390_v21  ;;  %1596 = vmatpush1.msra.mxu1 %v9396_v22 }
 0x53b   :  { %1526 = vmatprep.subr.mxu0 %v9402_v23  ;;  %1597 = vmatprep.subr.mxu1 %v9408_v24 }
 0x53c   :  { %1527 = vmatpush1.msra.mxu0 %v9414_v25  ;;  %1598 = vmatpush1.msra.mxu1 %v9420_v47 }
 0x53d   :  { %1528 = vmatprep.subr.mxu0 %v9426_v27  ;;  %1599 = vmatprep.subr.mxu1 %v9432_v31 }
 0x53e   :  { %1529 = vmatpush1.msra.mxu0 %v9438_v32  ;;  %1600 = vmatpush1.msra.mxu1 %v9444_v33 }
 0x53f   :  { %1530 = vmatprep.subr.mxu0 %v9450_v34  ;;  %1601 = vmatprep.subr.mxu1 %v9456_v35 }
 0x540   :  { %1531 = vmatpush1.msra.mxu0 %v9462_v36  ;;  %1602 = vmatpush1.msra.mxu1 %v9468_v37 }
 0x541   :  { %1532 = vmatprep.subr.mxu0 %v9474_v39  ;;  %1603 = vmatprep.subr.mxu1 %v9480_v40 }
 0x542   :  { %1533 = vmatpush1.msra.mxu0 %v9486_v41  ;;  %1604 = vmatpush1.msra.mxu1 %v9492_v42 }
 0x543   :  { %1534 = vmatprep.subr.mxu0 %v9498_v43  ;;  %1605 = vmatprep.subr.mxu1 %v9504_v44 }
 0x544   :  { %1535 = vmatpush1.msra.mxu0 %v9510_v45  ;;  %1606 = vmatpush1.msra.mxu1 %v9516_v46 }
 0x545   :  { %1536 = vmatprep.subr.mxu0 %v15141_v15  ;;  %1607 = vmatprep.subr.mxu1 %v15142_v48 }
 0x546   :  { %1537 = vmatpush1.msra.mxu0 %v15143_v50  ;;  %1608 = vmatpush1.msra.mxu1 %v15144_v63  ;;  %v15167_v63 = vld [vmem:[#allocation46_spill] sm:$0xff] }
 0x547   :  { %1538 = vmatprep.subr.mxu0 %v15145_v7  ;;  %1609 = vmatprep.subr.mxu1 %v15146_v14 }
 0x548   :  { %1539 = vmatpush1.msra.mxu0 %v15147_v17  ;;  %1610 = vmatpush1.msra.mxu1 %v15148_v18 }
 0x549   :  { %1540 = vmatprep.subr.mxu0 %v15149_v12  ;;  %1611 = vmatprep.subr.mxu1 %v15150_v9  ;;  %v15160_v12 = vmov 0.0   ;;  %v15161_v9 = vld [vmem:[#allocation5_spill] sm:$0xff] }
 0x54a   :  { %1541 = vmatpush1.msra.mxu0 %v15151_v10  ;;  %1612 = vmatpush1.msra.mxu1 %v15152_v8  ;;  %v15162_v8 = vld [vmem:[#allocation32_spill] sm:$0xff]  ;;  %v15165_v10 = vld [vmem:[#allocation45_spill] sm:$0xff] }
 0x54b   :  { %1542 = vmatprep.subr.mxu0 %v15153_v6  ;;  %1613 = vmatprep.subr.mxu1 %v15154_v13  ;;  %v15163_v6 = vld [vmem:[#allocation30_spill] sm:$0xff] }
 0x54c   :  { %1543 = vmatpush1.msra.mxu0 %v15155_v16  ;;  %1614 = vmatpush1.msra.mxu1 %v15156_v26  ;;  %v15164_v16 = vld [vmem:[#allocation47_spill] sm:$0xff] }
 0x54d   :  { %1544 = vmatprep.subr.mxu0 %v15157_v28  ;;  %1615 = vmatprep.subr.mxu1 %v15158_v30  ;;  %v237_v26 = vadd.f32 %v15164_v16, %v8998_v4 }
 0x54e   :  { %1545 = vmatpush1.msra.mxu0 %v15159_v49  ;;  %1578 = vmatprep.mubr.f32.mxu0 %v15160_v12 }
 0x54f   :  { %1616 = vmatpush1.msra.mxu1 %v15161_v9  ;;  %1649 = vmatprep.mubr.f32.mxu1 %v15160_v12  ;;  %v15166_v12 = vld [vmem:[#allocation48_spill] sm:$0xff] }
 0x550   :  { %1689 = vmatprep.subr.mxu0 %v15162_v8  ;;  %1760 = vmatprep.subr.mxu1 %v15163_v6  ;;  %v350_v7 = vadd.f32 %v15166_v12, %v9006_v53 }
 0x5ef   :  { %v1405_v13 = vpop.f32.mrf.mxu0  ;;  %v1476_v49 = vpop.f32.mrf.mxu1 }
 0x5f0   :  { %v1481_v28 = vadd.f32 %v1405_v13, %v15165_v10  ;;  %v1483_v6 = vadd.f32 %v1476_v49, %v15167_v63 }
 0x5f1   :  { %v1407_v18 = vpop.f32.mrf.mxu0  ;;  %v1478_v9 = vpop.f32.mrf.mxu1 }
 0x5f2   :  { %v7321_v30 = vmul.f32 -1.442695, %v1481_v28  ;;  %v1482_v17 = vadd.f32 %v1407_v18, %v237_v26  ;;  %v1484_v8 = vadd.f32 %v1478_v9, %v350_v7 }
 0x5f4   :  { %7483 = vpow2.f32 %v7321_v30  ;;  %v7322_v14 = vmul.f32 -1.442695, %v1482_v17  ;;  %v7323_v50 = vmul.f32 -1.442695, %v1484_v8 }
 0x5f6   :  { %7485 = vpow2.f32 %v7322_v14 }
 0x5f7   :  { %7487 = vtanh.f32 %v1483_v6 }
 0x5f8   :  { %7489 = vpow2.f32 %v7323_v50 }
 0x601   :  { %v7484_v48 = vpop.eup %7483 }
 0x602   :  { %v1488_v15 = vadd.f32 1.0, %v7484_v48 }
 0x603   :  { %v7486_v16 = vpop.eup %7485 }
 0x604   :  { %7491 = vrcp.f32 %v1488_v15  ;;  %v1494_v10 = vadd.f32 1.0, %v7486_v16  ;;  %v7488_v18 = vpop.eup %7487 }
 0x605   :  { %v7490_v13 = vpop.eup %7489 }
 0x606   :  { %7493 = vrcp.f32 %v1494_v10  ;;  %v1501_v28 = vadd.f32 1.0, %v7490_v13 }
 0x608   :  { %7495 = vrcp.f32 %v1501_v28  ;;  %v1930_v28 = vld [vmem:[%s14537_s4 + $0x1f0] sm:$0xff] }
 0x611   :  { %v7492_v17 = vpop.eup %7491 }
 0x612   :  { %v1505_v14 = vmul.f32 %v7492_v17, %v7488_v18 }
 0x613   :  { %v7494_v26 = vpop.eup %7493 }
 0x614   :  { %v1504_v12 = vmul.f32 %v7494_v26, %v9650_v5  ;;  %v1928_v26 = vld [vmem:[%s14537_s4 + $0x1e0] sm:$0xff] }
 0x615   :  { %v7496_v49 = vpop.eup %7495 }
 0x616   :  { %v9730_v7 = vadd.f32 %v1505_v14, %v1504_v12  ;;  %v1925_v12 = vld [vmem:[%s14537_s4 + $0x1c8] sm:$0xff] }
 0x618   :  { %7497 = vtanh.f32 %v9730_v7 }
 0x625   :  { %v7498_v48 = vpop.eup %7497 }
 0x626   :  { %v9733_v63 = vmul.f32 %v7498_v48, %v7496_v49  ;;  %v1924_v49 = vld [vmem:[%s14537_s4 + $0x1c0] sm:$0xff]  ;;  %v1926_v48 = vld [vmem:[%s14537_s4 + $0x1d0] sm:$0xff] }
 0x628   :  { %1579 = vmatmul.mubr.f32.vlgmr.msra.gmra.mxu0 %v9733_v63  ;;  %1650 = vmatmul.mubr.f32.vlgmr.msra.gmra.mxu1 %v9733_v63 }
 0x629   :  { %1690 = vmatpush1.msra.mxu0 %v9180_v57  ;;  %1761 = vmatpush1.msra.mxu1 %v9186_v54  ;;  %v15169_v57 = vld [vmem:[#allocation9_spill] sm:$0xff]  ;;  %v15170_v54 = vld [vmem:[#allocation10_spill] sm:$0xff] }
 0x62a   :  { %1691 = vmatprep.subr.mxu0 %v9192_v55  ;;  %1762 = vmatprep.subr.mxu1 %v9198_v56  ;;  %v15171_v55 = vld [vmem:[#allocation11_spill] sm:$0xff]  ;;  %v15172_v56 = vld [vmem:[#allocation12_spill] sm:$0xff] }
 0x62b   :  { %1692 = vmatpush1.msra.mxu0 %v9204_v11  ;;  %1763 = vmatpush1.msra.mxu1 %v9210_v60  ;;  %v15173_v11 = vld [vmem:[#allocation13_spill] sm:$0xff]  ;;  %v15174_v60 = vld [vmem:[#allocation14_spill] sm:$0xff] }
 0x62c   :  { %1693 = vmatprep.subr.mxu0 %v9216_v20  ;;  %1764 = vmatprep.subr.mxu1 %v9222_v52  ;;  %v15175_v20 = vld [vmem:[#allocation15_spill] sm:$0xff]  ;;  %v15176_v52 = vld [vmem:[#allocation16_spill] sm:$0xff] }
 0x62d   :  { %1694 = vmatpush1.msra.mxu0 %v9228_v3  ;;  %1765 = vmatpush1.msra.mxu1 %v9234_v61  ;;  %v15177_v3 = vld [vmem:[#allocation17_spill] sm:$0xff]  ;;  %v15178_v61 = vld [vmem:[#allocation18_spill] sm:$0xff] }
 0x62e   :  { %1695 = vmatprep.subr.mxu0 %v9240_v38  ;;  %1766 = vmatprep.subr.mxu1 %v9246_v0  ;;  %v15179_v38 = vld [vmem:[#allocation19_spill] sm:$0xff]  ;;  %v15180_v0 = vld [vmem:[#allocation20_spill] sm:$0xff] }
 0x62f   :  { %1696 = vmatpush1.msra.mxu0 %v9252_v59  ;;  %1767 = vmatpush1.msra.mxu1 %v9258_v58  ;;  %v15181_v59 = vld [vmem:[#allocation21_spill] sm:$0xff]  ;;  %v15182_v58 = vld [vmem:[#allocation22_spill] sm:$0xff] }
 0x630   :  { %1697 = vmatprep.subr.mxu0 %v9264_v51  ;;  %1768 = vmatprep.subr.mxu1 %v15115_v19  ;;  %v15183_v51 = vld [vmem:[#allocation23_spill] sm:$0xff]  ;;  %v15187_v19 = vld [vmem:[#allocation5_spill] sm:$0xff] }
 0x631   :  { %1698 = vmatpush1.msra.mxu0 %v9276_v1  ;;  %1769 = vmatpush1.msra.mxu1 %v9282_v62  ;;  %v15185_v1 = vld [vmem:[#allocation25_spill] sm:$0xff]  ;;  %v15186_v62 = vld [vmem:[#allocation4_spill] sm:$0xff] }
 0x632   :  { %1699 = vmatprep.subr.mxu0 %v9288_v2  ;;  %1770 = vmatprep.subr.mxu1 %v9294_v29  ;;  %v15168_v2 = vld [vmem:[#allocation8_spill] sm:$0xff] }
 0x633   :  { %1700 = vmatpush1.msra.mxu0 %v9390_v21  ;;  %1771 = vmatpush1.msra.mxu1 %v9396_v22  ;;  %v15184_v29 = vld [vmem:[#allocation24_spill] sm:$0xff]  ;;  %v15188_v21 = vmov 0.0   ;;  %v1929_v22 = vld [vmem:[%s14537_s4 + $0x1e8] sm:$0xff] }
 0x634   :  { %1701 = vmatprep.subr.mxu0 %v9402_v23  ;;  %1772 = vmatprep.subr.mxu1 %v9408_v24  ;;  %v1931_v23 = vld [vmem:[%s14537_s4 + $0x1f8] sm:$0xff] }
 0x635   :  { %1702 = vmatpush1.msra.mxu0 %v9414_v25  ;;  %1773 = vmatpush1.msra.mxu1 %v9420_v47  ;;  %v15189_v25 = vld [vmem:[#allocation51_spill] sm:$0xff] }
 0x636   :  { %1703 = vmatprep.subr.mxu0 %v9426_v27  ;;  %1774 = vmatprep.subr.mxu1 %v9432_v31  ;;  %v243_v47 = vadd.f32 %v15189_v25, %v8998_v4  ;;  %v15190_v27 = vld [vmem:[#allocation49_spill] sm:$0xff]  ;;  %v1902_v25 = vld [vmem:[%s14537_s4 + $0x110] sm:$0xff] }
 0x637   :  { %1704 = vmatpush1.msra.mxu0 %v9438_v32  ;;  %1775 = vmatpush1.msra.mxu1 %v9444_v33 }
 0x638   :  { %1705 = vmatprep.subr.mxu0 %v9450_v34  ;;  %1776 = vmatprep.subr.mxu1 %v9456_v35 }
 0x639   :  { %1706 = vmatpush1.msra.mxu0 %v9462_v36  ;;  %1777 = vmatpush1.msra.mxu1 %v9468_v37 }
 0x63a   :  { %1707 = vmatprep.subr.mxu0 %v9474_v39  ;;  %1778 = vmatprep.subr.mxu1 %v9480_v40  ;;  %v15191_v39 = vld [vmem:[#allocation52_spill] sm:$0xff] }
 0x63b   :  { %1708 = vmatpush1.msra.mxu0 %v9486_v41  ;;  %1779 = vmatpush1.msra.mxu1 %v9492_v42  ;;  %v356_v40 = vadd.f32 %v15191_v39, %v9006_v53  ;;  %v15192_v42 = vld [vmem:[#allocation50_spill] sm:$0xff]  ;;  %v1891_v39 = vld [vmem:[%s14537_s4 + $0xb8] sm:$0xff] }
 0x63c   :  { %1709 = vmatprep.subr.mxu0 %v9498_v43  ;;  %1780 = vmatprep.subr.mxu1 %v9504_v44 }
 0x63d   :  { %1710 = vmatpush1.msra.mxu0 %v9510_v45  ;;  %1781 = vmatpush1.msra.mxu1 %v9516_v46 }
 0x63e   :  { %1711 = vmatprep.subr.mxu0 %v15168_v2  ;;  %1782 = vmatprep.subr.mxu1 %v15169_v57  ;;  %v1921_v2 = vld [vmem:[%s14537_s4 + $0x1a8] sm:$0xff]  ;;  %v1923_v57 = vld [vmem:[%s14537_s4 + $0x1b8] sm:$0xff] }
 0x63f   :  { %1712 = vmatpush1.msra.mxu0 %v15170_v54  ;;  %1783 = vmatpush1.msra.mxu1 %v15171_v55  ;;  %v1920_v54 = vld [vmem:[%s14537_s4 + $0x1a0] sm:$0xff]  ;;  %v1922_v55 = vld [vmem:[%s14537_s4 + $0x1b0] sm:$0xff] }
 0x640   :  { %1713 = vmatprep.subr.mxu0 %v15172_v56  ;;  %1784 = vmatprep.subr.mxu1 %v15173_v11  ;;  %v1917_v56 = vld [vmem:[%s14537_s4 + $0x188] sm:$0xff]  ;;  %v1919_v11 = vld [vmem:[%s14537_s4 + $0x198] sm:$0xff] }
 0x641   :  { %1714 = vmatpush1.msra.mxu0 %v15174_v60  ;;  %1785 = vmatpush1.msra.mxu1 %v15175_v20  ;;  %v1916_v60 = vld [vmem:[%s14537_s4 + $0x180] sm:$0xff]  ;;  %v1918_v20 = vld [vmem:[%s14537_s4 + $0x190] sm:$0xff] }
 0x642   :  { %1715 = vmatprep.subr.mxu0 %v15176_v52  ;;  %1786 = vmatprep.subr.mxu1 %v15177_v3  ;;  %v1913_v52 = vld [vmem:[%s14537_s4 + $0x168] sm:$0xff]  ;;  %v1915_v3 = vld [vmem:[%s14537_s4 + $0x178] sm:$0xff] }
 0x643   :  { %1716 = vmatpush1.msra.mxu0 %v15178_v61  ;;  %1787 = vmatpush1.msra.mxu1 %v15179_v38  ;;  %v1912_v61 = vld [vmem:[%s14537_s4 + $0x160] sm:$0xff]  ;;  %v1914_v38 = vld [vmem:[%s14537_s4 + $0x170] sm:$0xff] }
 0x644   :  { %1717 = vmatprep.subr.mxu0 %v15180_v0  ;;  %1788 = vmatprep.subr.mxu1 %v15181_v59  ;;  %v1909_v0 = vld [vmem:[%s14537_s4 + $0x148] sm:$0xff]  ;;  %v1911_v59 = vld [vmem:[%s14537_s4 + $0x158] sm:$0xff] }
 0x645   :  { %1718 = vmatpush1.msra.mxu0 %v15182_v58  ;;  %1789 = vmatpush1.msra.mxu1 %v15183_v51  ;;  %v1908_v58 = vld [vmem:[%s14537_s4 + $0x140] sm:$0xff]  ;;  %v1910_v51 = vld [vmem:[%s14537_s4 + $0x150] sm:$0xff] }
 0x646   :  { %1719 = vmatprep.subr.mxu0 %v15184_v29  ;;  %1790 = vmatprep.subr.mxu1 %v15185_v1  ;;  %v1905_v29 = vld [vmem:[%s14537_s4 + $0x128] sm:$0xff]  ;;  %v1907_v1 = vld [vmem:[%s14537_s4 + $0x138] sm:$0xff] }
 0x647   :  { %1720 = vmatpush1.msra.mxu0 %v15186_v62  ;;  %1791 = vmatpush1.msra.mxu1 %v15187_v19  ;;  %v1904_v62 = vld [vmem:[%s14537_s4 + $0x120] sm:$0xff]  ;;  %v1906_v19 = vld [vmem:[%s14537_s4 + $0x130] sm:$0xff] }
 0x648   :  { %1753 = vmatprep.mubr.f32.mxu0 %v15188_v21  ;;  %1824 = vmatprep.mubr.f32.mxu1 %v15188_v21 }
 0x649   :  { %1954 = vmatprep.subr.mxu0 %v1929_v22  ;;  %2067 = vmatprep.subr.mxu1 %v1931_v23  ;;  %v1901_v22 = vld [vmem:[%s14537_s4 + $0x108] sm:$0xff]  ;;  %v1903_v23 = vld [vmem:[%s14537_s4 + $0x118] sm:$0xff] }
 0x6e8   :  { %v1580_v24 = vpop.f32.mrf.mxu0  ;;  %v1651_v35 = vpop.f32.mrf.mxu1 }
 0x6e9   :  { %v1656_v31 = vadd.f32 %v1580_v24, %v15190_v27  ;;  %v1658_v43 = vadd.f32 %v1651_v35, %v15192_v42  ;;  %v1900_v24 = vld [vmem:[%s14537_s4 + $0x100] sm:$0xff]  ;;  %v1899_v27 = vld [vmem:[%s14537_s4 + $0xf8] sm:$0xff]  ;;  %v1885_v42 = vld [vmem:[%s14537_s4 + $0x88] sm:$0xff] }
 0x6ea   :  { %v1582_v32 = vpop.f32.mrf.mxu0  ;;  %v1653_v37 = vpop.f32.mrf.mxu1  ;;  %v1892_v35 = vld [vmem:[%s14537_s4 + $0xc0] sm:$0xff] }
 0x6eb   :  { %v7324_v33 = vmul.f32 -1.442695, %v1656_v31  ;;  %v1657_v34 = vadd.f32 %v1582_v32, %v243_v47  ;;  %v1659_v41 = vadd.f32 %v1653_v37, %v356_v40  ;;  %v1897_v47 = vld [vmem:[%s14537_s4 + $0xe8] sm:$0xff]  ;;  %v1896_v31 = vld [vmem:[%s14537_s4 + $0xe0] sm:$0xff]  ;;  %v1898_v32 = vld [vmem:[%s14537_s4 + $0xf0] sm:$0xff] }
 0x6ec   :  { %v1889_v37 = vld [vmem:[%s14537_s4 + $0xa8] sm:$0xff]  ;;  %v1888_v40 = vld [vmem:[%s14537_s4 + $0xa0] sm:$0xff] }
 0x6ed   :  { %7499 = vpow2.f32 %v7324_v33  ;;  %v7325_v36 = vmul.f32 -1.442695, %v1657_v34  ;;  %v7326_v44 = vmul.f32 -1.442695, %v1659_v41  ;;  %v1893_v33 = vld [vmem:[%s14537_s4 + $0xc8] sm:$0xff]  ;;  %v1895_v34 = vld [vmem:[%s14537_s4 + $0xd8] sm:$0xff] }
 0x6ee   :  { %v1890_v41 = vld [vmem:[%s14537_s4 + $0xb0] sm:$0xff] }
 0x6ef   :  { %7501 = vpow2.f32 %v7325_v36  ;;  %v1894_v36 = vld [vmem:[%s14537_s4 + $0xd0] sm:$0xff] }
 0x6f0   :  { %7503 = vtanh.f32 %v1658_v43  ;;  %v1887_v43 = vld [vmem:[%s14537_s4 + $0x98] sm:$0xff] }
 0x6f1   :  { %7505 = vpow2.f32 %v7326_v44  ;;  %v1884_v44 = vld [vmem:[%s14537_s4 + $0x80] sm:$0xff] }
 0x6fa   :  { %v7500_v45 = vpop.eup %7499 }
 0x6fb   :  { %v1663_v46 = vadd.f32 1.0, %v7500_v45  ;;  %v1886_v45 = vld [vmem:[%s14537_s4 + $0x90] sm:$0xff] }
 0x6fc   :  { %v7502_v5 = vpop.eup %7501 }
 0x6fd   :  { %7507 = vrcp.f32 %v1663_v46  ;;  %v1669_v15 = vadd.f32 1.0, %v7502_v5  ;;  %v7504_v50 = vpop.eup %7503  ;;  %v1881_v46 = vld [vmem:[%s14537_s4 + $0x68] sm:$0xff]  ;;  %v1883_v5 = vld [vmem:[%s14537_s4 + $0x78] sm:$0xff] }
 0x6fe   :  { %v7506_v9 = vpop.eup %7505 }
 0x6ff   :  { %7509 = vrcp.f32 %v1669_v15  ;;  %v1676_v16 = vadd.f32 1.0, %v7506_v9  ;;  %v1880_v15 = vld [vmem:[%s14537_s4 + $0x60] sm:$0xff]  ;;  %v1877_v9 = vld [vmem:[%s14537_s4 + $0x48] sm:$0xff] }
 0x701   :  { %7511 = vrcp.f32 %v1676_v16  ;;  %v1873_v16 = vld [vmem:[%s14537_s4 + $0x28] sm:$0xff] }
 0x70a   :  { %v7508_v30 = vpop.eup %7507 }
 0x70b   :  { %v1680_v8 = vmul.f32 %v7508_v30, %v7504_v50  ;;  %v1882_v50 = vld [vmem:[%s14537_s4 + $0x70] sm:$0xff]  ;;  %v1879_v30 = vld [vmem:[%s14537_s4 + $0x58] sm:$0xff] }
 0x70c   :  { %v7510_v6 = vpop.eup %7509 }
 0x70d   :  { %v1679_v10 = vmul.f32 %v7510_v6, %v9730_v7  ;;  %v1927_v7 = vld [vmem:[%s14537_s4 + $0x1d8] sm:$0xff]  ;;  %v1878_v6 = vld [vmem:[%s14537_s4 + $0x50] sm:$0xff] }
 0x70e   :  { %v7512_v13 = vpop.eup %7511 }
 0x70f   :  { %v9814_v18 = vadd.f32 %v1680_v8, %v1679_v10  ;;  %v1876_v8 = vld [vmem:[%s14537_s4 + $0x40] sm:$0xff]  ;;  %v1875_v10 = vld [vmem:[%s14537_s4 + $0x38] sm:$0xff] }
 0x711   :  { %7513 = vtanh.f32 %v9814_v18 }
 0x71e   :  { %v7514_v17 = vpop.eup %7513 }
 0x71f   :  { %v9817_v14 = vmul.f32 %v7514_v17, %v7512_v13  ;;  %v1872_v13 = vld [vmem:[%s14537_s4 + $0x20] sm:$0xff]  ;;  %v1874_v17 = vld [vmem:[%s14537_s4 + $0x30] sm:$0xff] }
 0x721   :  { %1754 = vmatmul.mubr.f32.vlgmr.msra.gmra.mxu0 %v9817_v14  ;;  %1825 = vmatmul.mubr.f32.vlgmr.msra.gmra.mxu1 %v9817_v14 }
 0x722   :  { %1955 = vmatpush1.msra.mxu0 %v1928_v26  ;;  %2068 = vmatpush1.msra.mxu1 %v1930_v28  ;;  %v1869_v26 = vld [vmem:[%s14537_s4 + $0x8] sm:$0xff]  ;;  %v1871_v28 = vld [vmem:[%s14537_s4 + $0x18] sm:$0xff] }
 0x723   :  { %1956 = vmatprep.subr.mxu0 %v1925_v12  ;;  %2069 = vmatprep.subr.mxu1 %v1927_v7  ;;  %v1868_v12 = vld [vmem:[%s14537_s4] sm:$0xff]  ;;  %v1870_v7 = vld [vmem:[%s14537_s4 + $0x10] sm:$0xff] }
 0x724   :  { %1957 = vmatpush1.msra.mxu0 %v1924_v49  ;;  %2070 = vmatpush1.msra.mxu1 %v1926_v48  ;;  %v15193_v49 = vld [vmem:[#allocation59_spill] sm:$0xff]  ;;  %v15194_v48 = vld [vmem:[#allocation6_spill] sm:$0xff] }
 0x725   :  { %1958 = vmatprep.subr.mxu0 %v1921_v2  ;;  %2071 = vmatprep.subr.mxu1 %v1923_v57  ;;  %v15195_v2 = vld [vmem:[#allocation31_spill] sm:$0xff] }
 0x726   :  { %1959 = vmatpush1.msra.mxu0 %v1920_v54  ;;  %2072 = vmatpush1.msra.mxu1 %v1922_v55  ;;  %v15196_v57 = vld [vmem:[#allocation7_spill] sm:$0xff]  ;;  %v10040_v55 = vld [vmem:[%s14538_s5 + $0x1e8] sm:$0xff] }
 0x727   :  { %1960 = vmatprep.subr.mxu0 %v1917_v56  ;;  %2073 = vmatprep.subr.mxu1 %v1919_v11  ;;  %v15197_v54 = vld [vmem:[#allocation35_spill] sm:$0xff]  ;;  %15198 = vst [vmem:[#allocation33_spill] sm:$0xff] %v10040_v55  ;;  %v10057_v56 = vld [vmem:[%s14538_s5 + $0x1f0] sm:$0xff]  ;;  %v10064_v11 = vld [vmem:[%s14538_s5 + $0x1c8] sm:$0xff] }
 0x728   :  { %1961 = vmatpush1.msra.mxu0 %v1916_v60  ;;  %2074 = vmatpush1.msra.mxu1 %v1918_v20  ;;  %v10069_v60 = vld [vmem:[%s14538_s5 + $0x1d8] sm:$0xff]  ;;  %v10076_v20 = vld [vmem:[%s14538_s5 + $0x1c0] sm:$0xff] }
 0x729   :  { %1962 = vmatprep.subr.mxu0 %v1913_v52  ;;  %2075 = vmatprep.subr.mxu1 %v1915_v3  ;;  %v10081_v52 = vld [vmem:[%s14538_s5 + $0x1d0] sm:$0xff]  ;;  %v10088_v3 = vld [vmem:[%s14538_s5 + $0x1a8] sm:$0xff] }
 0x72a   :  { %1963 = vmatpush1.msra.mxu0 %v1912_v61  ;;  %2076 = vmatpush1.msra.mxu1 %v1914_v38  ;;  %v10093_v61 = vld [vmem:[%s14538_s5 + $0x1b8] sm:$0xff]  ;;  %v10100_v38 = vld [vmem:[%s14538_s5 + $0x1a0] sm:$0xff] }
 0x72b   :  { %1964 = vmatprep.subr.mxu0 %v1909_v0  ;;  %2077 = vmatprep.subr.mxu1 %v1911_v59  ;;  %v10105_v0 = vld [vmem:[%s14538_s5 + $0x1b0] sm:$0xff]  ;;  %v10112_v59 = vld [vmem:[%s14538_s5 + $0x188] sm:$0xff] }
 0x72c   :  { %1965 = vmatpush1.msra.mxu0 %v1908_v58  ;;  %2078 = vmatpush1.msra.mxu1 %v1910_v51  ;;  %v10117_v58 = vld [vmem:[%s14538_s5 + $0x198] sm:$0xff]  ;;  %v10124_v51 = vld [vmem:[%s14538_s5 + $0x180] sm:$0xff] }
 0x72d   :  { %1966 = vmatprep.subr.mxu0 %v1905_v29  ;;  %2079 = vmatprep.subr.mxu1 %v1907_v1  ;;  %v10129_v29 = vld [vmem:[%s14538_s5 + $0x190] sm:$0xff]  ;;  %v10136_v1 = vld [vmem:[%s14538_s5 + $0x168] sm:$0xff] }
 0x72e   :  { %1967 = vmatpush1.msra.mxu0 %v1904_v62  ;;  %2080 = vmatpush1.msra.mxu1 %v1906_v19  ;;  %v10141_v62 = vld [vmem:[%s14538_s5 + $0x178] sm:$0xff]  ;;  %v10148_v19 = vld [vmem:[%s14538_s5 + $0x160] sm:$0xff] }
 0x72f   :  { %1968 = vmatprep.subr.mxu0 %v1901_v22  ;;  %2081 = vmatprep.subr.mxu1 %v1903_v23  ;;  %v10153_v22 = vld [vmem:[%s14538_s5 + $0x170] sm:$0xff]  ;;  %v10160_v23 = vld [vmem:[%s14538_s5 + $0x148] sm:$0xff] }
 0x730   :  { %1969 = vmatpush1.msra.mxu0 %v1900_v24  ;;  %2082 = vmatpush1.msra.mxu1 %v1902_v25  ;;  %v10165_v24 = vld [vmem:[%s14538_s5 + $0x158] sm:$0xff]  ;;  %v10172_v25 = vld [vmem:[%s14538_s5 + $0x140] sm:$0xff] }
 0x731   :  { %1970 = vmatprep.subr.mxu0 %v1897_v47  ;;  %2083 = vmatprep.subr.mxu1 %v1899_v27  ;;  %v10177_v47 = vld [vmem:[%s14538_s5 + $0x150] sm:$0xff]  ;;  %v10184_v27 = vld [vmem:[%s14538_s5 + $0x128] sm:$0xff] }
 0x732   :  { %1971 = vmatpush1.msra.mxu0 %v1896_v31  ;;  %2084 = vmatpush1.msra.mxu1 %v1898_v32  ;;  %v10189_v31 = vld [vmem:[%s14538_s5 + $0x138] sm:$0xff]  ;;  %v10196_v32 = vld [vmem:[%s14538_s5 + $0x120] sm:$0xff] }
 0x733   :  { %1972 = vmatprep.subr.mxu0 %v1893_v33  ;;  %2085 = vmatprep.subr.mxu1 %v1895_v34  ;;  %v10201_v33 = vld [vmem:[%s14538_s5 + $0x130] sm:$0xff]  ;;  %v10208_v34 = vld [vmem:[%s14538_s5 + $0x108] sm:$0xff] }
 0x734   :  { %1973 = vmatpush1.msra.mxu0 %v1892_v35  ;;  %2086 = vmatpush1.msra.mxu1 %v1894_v36  ;;  %v10213_v35 = vld [vmem:[%s14538_s5 + $0x118] sm:$0xff]  ;;  %v10220_v36 = vld [vmem:[%s14538_s5 + $0x100] sm:$0xff] }
 0x735   :  { %1974 = vmatprep.subr.mxu0 %v1889_v37  ;;  %2087 = vmatprep.subr.mxu1 %v1891_v39  ;;  %v10225_v37 = vld [vmem:[%s14538_s5 + $0x110] sm:$0xff]  ;;  %v10232_v39 = vld [vmem:[%s14538_s5 + $0xe8] sm:$0xff] }
 0x736   :  { %1975 = vmatpush1.msra.mxu0 %v1888_v40  ;;  %2088 = vmatpush1.msra.mxu1 %v1890_v41  ;;  %v10237_v40 = vld [vmem:[%s14538_s5 + $0xf8] sm:$0xff]  ;;  %v10244_v41 = vld [vmem:[%s14538_s5 + $0xe0] sm:$0xff] }
 0x737   :  { %1976 = vmatprep.subr.mxu0 %v1885_v42  ;;  %2089 = vmatprep.subr.mxu1 %v1887_v43  ;;  %v10249_v42 = vld [vmem:[%s14538_s5 + $0xf0] sm:$0xff]  ;;  %v10256_v43 = vld [vmem:[%s14538_s5 + $0xc8] sm:$0xff] }
 0x738   :  { %1977 = vmatpush1.msra.mxu0 %v1884_v44  ;;  %2090 = vmatpush1.msra.mxu1 %v1886_v45  ;;  %v10261_v44 = vld [vmem:[%s14538_s5 + $0xd8] sm:$0xff]  ;;  %v10268_v45 = vld [vmem:[%s14538_s5 + $0xc0] sm:$0xff] }
 0x739   :  { %1978 = vmatprep.subr.mxu0 %v1881_v46  ;;  %2091 = vmatprep.subr.mxu1 %v1883_v5  ;;  %v10273_v46 = vld [vmem:[%s14538_s5 + $0xd0] sm:$0xff]  ;;  %v10280_v5 = vld [vmem:[%s14538_s5 + $0xa8] sm:$0xff] }
 0x73a   :  { %1979 = vmatpush1.msra.mxu0 %v1880_v15  ;;  %2092 = vmatpush1.msra.mxu1 %v1882_v50  ;;  %v10285_v15 = vld [vmem:[%s14538_s5 + $0xb8] sm:$0xff]  ;;  %v10292_v50 = vld [vmem:[%s14538_s5 + $0xa0] sm:$0xff] }
 0x73b   :  { %1980 = vmatprep.subr.mxu0 %v1877_v9  ;;  %2093 = vmatprep.subr.mxu1 %v1879_v30  ;;  %v10297_v9 = vld [vmem:[%s14538_s5 + $0xb0] sm:$0xff]  ;;  %v10304_v30 = vld [vmem:[%s14538_s5 + $0x88] sm:$0xff] }
 0x73c   :  { %1981 = vmatpush1.msra.mxu0 %v1876_v8  ;;  %2094 = vmatpush1.msra.mxu1 %v1878_v6  ;;  %15200 = vst [vmem:[#allocation34_spill] sm:$0xff] %v10297_v9  ;;  %15201 = vst [vmem:[#allocation26_spill] sm:$0xff] %v10304_v30  ;;  %v10309_v8 = vld [vmem:[%s14538_s5 + $0x98] sm:$0xff]  ;;  %v10316_v6 = vld [vmem:[%s14538_s5 + $0x80] sm:$0xff] }
 0x73d   :  { %1982 = vmatprep.subr.mxu0 %v1873_v16  ;;  %2095 = vmatprep.subr.mxu1 %v1875_v10  ;;  %15202 = vst [vmem:[#allocation39_spill] sm:$0xff] %v10309_v8  ;;  %15203 = vst [vmem:[#allocation37_spill] sm:$0xff] %v10316_v6  ;;  %v10321_v16 = vld [vmem:[%s14538_s5 + $0x90] sm:$0xff]  ;;  %v10328_v10 = vld [vmem:[%s14538_s5 + $0x68] sm:$0xff] }
 0x73e   :  { %1983 = vmatpush1.msra.mxu0 %v1872_v13  ;;  %2096 = vmatpush1.msra.mxu1 %v1874_v17  ;;  %15204 = vst [vmem:[#allocation40_spill] sm:$0xff] %v10321_v16  ;;  %15205 = vst [vmem:[#allocation38_spill] sm:$0xff] %v10328_v10  ;;  %v10333_v13 = vld [vmem:[%s14538_s5 + $0x78] sm:$0xff]  ;;  %v10340_v17 = vld [vmem:[%s14538_s5 + $0x60] sm:$0xff] }
 0x73f   :  { %1984 = vmatprep.subr.mxu0 %v1869_v26  ;;  %2097 = vmatprep.subr.mxu1 %v1871_v28  ;;  %15206 = vst [vmem:[#allocation29_spill] sm:$0xff] %v10333_v13  ;;  %15207 = vst [vmem:[#allocation43_spill] sm:$0xff] %v10340_v17  ;;  %v10345_v26 = vld [vmem:[%s14538_s5 + $0x70] sm:$0xff]  ;;  %v10352_v28 = vld [vmem:[%s14538_s5 + $0x48] sm:$0xff] }
 0x740   :  { %1985 = vmatpush1.msra.mxu0 %v1868_v12  ;;  %2018 = vmatprep.mubr.f32.mxu0 %v15188_v21  ;;  %15208 = vst [vmem:[#allocation41_spill] sm:$0xff] %v10345_v26  ;;  %15209 = vst [vmem:[#allocation44_spill] sm:$0xff] %v10352_v28  ;;  %v10357_v12 = vld [vmem:[%s14538_s5 + $0x58] sm:$0xff] }
 0x741   :  { %2098 = vmatpush1.msra.mxu1 %v1870_v7  ;;  %2131 = vmatprep.mubr.f32.mxu1 %v15188_v21  ;;  %15210 = vst [vmem:[#allocation42_spill] sm:$0xff] %v10357_v12  ;;  %v10364_v7 = vld [vmem:[%s14538_s5 + $0x40] sm:$0xff] }
 0x742   :  { %2019 = vmatmul.mubr.f32.vlgmr.msra.gmra.mxu0 %v15193_v49  ;;  %2132 = vmatmul.mubr.f32.vlgmr.msra.gmra.mxu1 %v15193_v49  ;;  %15211 = vst [vmem:[#allocation32_spill] sm:$0xff] %v10364_v7  ;;  %v10369_v49 = vld [vmem:[%s14538_s5 + $0x50] sm:$0xff] }
 0x743   :  { %2024 = vmatprep.mubr.f32.mxu0 %v15188_v21  ;;  %2137 = vmatprep.mubr.f32.mxu1 %v15188_v21  ;;  %15212 = vst [vmem:[#allocation30_spill] sm:$0xff] %v10369_v49 }
 0x744   :  { %2280 = vmatprep.subr.mxu0 %v10040_v55 }
 0x746   :  { %2025 = vmatmul.mubr.f32.gmra.mxu0 %v15194_v48  ;;  %2138 = vmatmul.mubr.f32.gmra.mxu1 %v15194_v48  ;;  %v10376_v48 = vld [vmem:[%s14538_s5 + $0x28] sm:$0xff] }
 0x747   :  { %2030 = vmatprep.mubr.f32.mxu0 %v15188_v21  ;;  %2143 = vmatprep.mubr.f32.mxu1 %v15188_v21  ;;  %15213 = vst [vmem:[#allocation47_spill] sm:$0xff] %v10376_v48 }
 0x74a   :  { %2031 = vmatmul.mubr.f32.gmra.mxu0 %v15195_v2  ;;  %2144 = vmatmul.mubr.f32.gmra.mxu1 %v15195_v2  ;;  %v10381_v2 = vld [vmem:[%s14538_s5 + $0x38] sm:$0xff] }
 0x74b   :  { %2036 = vmatprep.mubr.f32.mxu0 %v15188_v21  ;;  %2149 = vmatprep.mubr.f32.mxu1 %v15188_v21  ;;  %15214 = vst [vmem:[#allocation45_spill] sm:$0xff] %v10381_v2 }
 0x74e   :  { %2037 = vmatmul.mubr.f32.gmra.mxu0 %v15196_v57  ;;  %2150 = vmatmul.mubr.f32.gmra.mxu1 %v15196_v57  ;;  %v10388_v57 = vld [vmem:[%s14538_s5 + $0x20] sm:$0xff] }
 0x74f   :  { %2042 = vmatprep.mubr.f32.mxu0 %v15188_v21  ;;  %2155 = vmatprep.mubr.f32.mxu1 %v15188_v21  ;;  %15215 = vst [vmem:[#allocation48_spill] sm:$0xff] %v10388_v57 }
 0x752   :  { %2043 = vmatmul.mubr.f32.gmra.mxu0 %v15197_v54  ;;  %2156 = vmatmul.mubr.f32.gmra.mxu1 %v15197_v54  ;;  %v10393_v54 = vld [vmem:[%s14538_s5 + $0x30] sm:$0xff] }
 0x753   :  { %2048 = vmatprep.mubr.f32.mxu0 %v15188_v21  ;;  %2161 = vmatprep.mubr.f32.mxu1 %v15188_v21  ;;  %15216 = vst [vmem:[#allocation46_spill] sm:$0xff] %v10393_v54 }
 0x756   :  { %2049 = vmatmul.mubr.f32.gmra.mxu0 %v9733_v63  ;;  %2162 = vmatmul.mubr.f32.gmra.mxu1 %v9733_v63  ;;  %v10045_v63 = vld [vmem:[%s14538_s5 + $0x1f8] sm:$0xff] }
 0x757   :  { %2054 = vmatprep.mubr.f32.mxu0 %v15188_v21  ;;  %2167 = vmatprep.mubr.f32.mxu1 %v15188_v21  ;;  %15199 = vst [vmem:[#allocation36_spill] sm:$0xff] %v10045_v63 }
 0x758   :  { %2351 = vmatprep.subr.mxu1 %v10045_v63 }
 0x759   :  { %2352 = vmatpush1.msra.mxu1 %v10057_v56 }
 0x75a   :  { %2055 = vmatmul.mubr.f32.gmra.mxu0 %v9817_v14  ;;  %2168 = vmatmul.mubr.f32.gmra.mxu1 %v9817_v14  ;;  %v10052_v14 = vld [vmem:[%s14538_s5 + $0x1e0] sm:$0xff] }
 0x75b   :  { %2060 = vmatprep.mubr.f32.mxu0 %v15188_v21  ;;  %2173 = vmatprep.mubr.f32.mxu1 %v15188_v21 }
 0x75c   :  { %2281 = vmatpush1.msra.mxu0 %v10052_v14  ;;  %2353 = vmatprep.subr.mxu1 %v10069_v60 }
 0x75d   :  { %2282 = vmatprep.subr.mxu0 %v10064_v11  ;;  %2354 = vmatpush1.msra.mxu1 %v10081_v52 }
 0x75e   :  { %2283 = vmatpush1.msra.mxu0 %v10076_v20  ;;  %2355 = vmatprep.subr.mxu1 %v10093_v61 }
 0x75f   :  { %2284 = vmatprep.subr.mxu0 %v10088_v3  ;;  %2356 = vmatpush1.msra.mxu1 %v10105_v0 }
 0x760   :  { %2285 = vmatpush1.msra.mxu0 %v10100_v38  ;;  %2357 = vmatprep.subr.mxu1 %v10117_v58 }
 0x761   :  { %2286 = vmatprep.subr.mxu0 %v10112_v59  ;;  %2358 = vmatpush1.msra.mxu1 %v10129_v29 }
 0x762   :  { %2287 = vmatpush1.msra.mxu0 %v10124_v51  ;;  %2359 = vmatprep.subr.mxu1 %v10141_v62 }
 0x763   :  { %2288 = vmatprep.subr.mxu0 %v10136_v1  ;;  %2360 = vmatpush1.msra.mxu1 %v10153_v22 }
 0x764   :  { %2289 = vmatpush1.msra.mxu0 %v10148_v19  ;;  %2361 = vmatprep.subr.mxu1 %v10165_v24 }
 0x765   :  { %2290 = vmatprep.subr.mxu0 %v10160_v23  ;;  %2362 = vmatpush1.msra.mxu1 %v10177_v47 }
 0x766   :  { %2291 = vmatpush1.msra.mxu0 %v10172_v25  ;;  %2363 = vmatprep.subr.mxu1 %v10189_v31 }
 0x767   :  { %2292 = vmatprep.subr.mxu0 %v10184_v27  ;;  %2364 = vmatpush1.msra.mxu1 %v10201_v33 }
 0x768   :  { %2293 = vmatpush1.msra.mxu0 %v10196_v32  ;;  %2365 = vmatprep.subr.mxu1 %v10213_v35 }
 0x769   :  { %2294 = vmatprep.subr.mxu0 %v10208_v34  ;;  %2366 = vmatpush1.msra.mxu1 %v10225_v37 }
 0x76a   :  { %2295 = vmatpush1.msra.mxu0 %v10220_v36  ;;  %2367 = vmatprep.subr.mxu1 %v10237_v40 }
 0x76b   :  { %2296 = vmatprep.subr.mxu0 %v10232_v39  ;;  %2368 = vmatpush1.msra.mxu1 %v10249_v42 }
 0x76c   :  { %2297 = vmatpush1.msra.mxu0 %v10244_v41  ;;  %2369 = vmatprep.subr.mxu1 %v10261_v44 }
 0x76d   :  { %2298 = vmatprep.subr.mxu0 %v10256_v43  ;;  %2370 = vmatpush1.msra.mxu1 %v10273_v46 }
 0x76e   :  { %2299 = vmatpush1.msra.mxu0 %v10268_v45  ;;  %2371 = vmatprep.subr.mxu1 %v10285_v15 }
 0x76f   :  { %2300 = vmatprep.subr.mxu0 %v10280_v5  ;;  %2372 = vmatpush1.msra.mxu1 %v10297_v9 }
 0x770   :  { %2301 = vmatpush1.msra.mxu0 %v10292_v50  ;;  %2373 = vmatprep.subr.mxu1 %v10309_v8 }
 0x771   :  { %2302 = vmatprep.subr.mxu0 %v10304_v30  ;;  %2374 = vmatpush1.msra.mxu1 %v10321_v16 }
 0x772   :  { %2303 = vmatpush1.msra.mxu0 %v10316_v6  ;;  %2375 = vmatprep.subr.mxu1 %v10333_v13  ;;  %v15224_v6 = vld [vmem:[#allocation55_spill] sm:$0xff] }
 0x773   :  { %2304 = vmatprep.subr.mxu0 %v10328_v10  ;;  %2376 = vmatpush1.msra.mxu1 %v10345_v26 }
 0x774   :  { %2305 = vmatpush1.msra.mxu0 %v10340_v17  ;;  %2377 = vmatprep.subr.mxu1 %v10357_v12 }
 0x775   :  { %2306 = vmatprep.subr.mxu0 %v10352_v28  ;;  %2378 = vmatpush1.msra.mxu1 %v10369_v49  ;;  %v10410_v49 = vld [vmem:[%s14538_s5] sm:$0xff] }
 0x776   :  { %2307 = vmatpush1.msra.mxu0 %v10364_v7  ;;  %2379 = vmatprep.subr.mxu1 %v10381_v2  ;;  %v10405_v2 = vld [vmem:[%s14538_s5 + $0x18] sm:$0xff]  ;;  %15219 = vst [vmem:[#allocation10_spill] sm:$0xff] %v10410_v49  ;;  %v15221_v7 = vld [vmem:[#allocation56_spill] sm:$0xff] }
 0x777   :  { %2308 = vmatprep.subr.mxu0 %v10376_v48  ;;  %2380 = vmatpush1.msra.mxu1 %v10393_v54  ;;  %v10400_v48 = vld [vmem:[%s14538_s5 + $0x8] sm:$0xff]  ;;  %15218 = vst [vmem:[#allocation9_spill] sm:$0xff] %v10405_v2  ;;  %v10417_v54 = vld [vmem:[%s14538_s5 + $0x10] sm:$0xff]  ;;  %v249_v12 = vadd.f32 %v15221_v7, %v8998_v4 }
 0x778   :  { %2309 = vmatpush1.msra.mxu0 %v10388_v57  ;;  %15217 = vst [vmem:[#allocation8_spill] sm:$0xff] %v10400_v48  ;;  %2381 = vmatprep.subr.mxu1 %v10405_v2  ;;  %15220 = vst [vmem:[#allocation11_spill] sm:$0xff] %v10417_v54 }
 0x779   :  { %2310 = vmatprep.subr.mxu0 %v10400_v48  ;;  %2382 = vmatpush1.msra.mxu1 %v10417_v54  ;;  %v15222_v48 = vld [vmem:[#allocation54_spill] sm:$0xff]  ;;  %v15223_v54 = vld [vmem:[#allocation57_spill] sm:$0xff] }
 0x77a   :  { %2311 = vmatpush1.msra.mxu0 %v10410_v49  ;;  %2526 = vmatprep.subr.mxu1 %v10045_v63  ;;  %v362_v16 = vadd.f32 %v15223_v54, %v9006_v53  ;;  %v15233_v54 = vld [vmem:[#allocation41_spill] sm:$0xff] }
 0x77b   :  { %2455 = vmatprep.subr.mxu0 %v10040_v55 }
 0x7e1   :  { %v1755_v57 = vpop.f32.mrf.mxu0  ;;  %v1826_v13 = vpop.f32.mrf.mxu1 }
 0x7e2   :  { %v1831_v28 = vadd.f32 %v1755_v57, %v15222_v48  ;;  %v1833_v63 = vadd.f32 %v1826_v13, %v15224_v6  ;;  %v15229_v13 = vld [vmem:[#allocation40_spill] sm:$0xff]  ;;  %v15232_v57 = vld [vmem:[#allocation43_spill] sm:$0xff] }
 0x7e3   :  { %v1757_v2 = vpop.f32.mrf.mxu0  ;;  %v1828_v49 = vpop.f32.mrf.mxu1 }
 0x7e4   :  { %v7327_v26 = vmul.f32 -1.442695, %v1831_v28  ;;  %v1832_v17 = vadd.f32 %v1757_v2, %v249_v12  ;;  %v1834_v55 = vadd.f32 %v1828_v49, %v362_v16  ;;  %v15230_v49 = vld [vmem:[#allocation38_spill] sm:$0xff]  ;;  %v15231_v2 = vld [vmem:[#allocation29_spill] sm:$0xff] }
 0x7e6   :  { %7515 = vpow2.f32 %v7327_v26  ;;  %v7328_v10 = vmul.f32 -1.442695, %v1832_v17  ;;  %v7329_v8 = vmul.f32 -1.442695, %v1834_v55 }
 0x7e8   :  { %7517 = vpow2.f32 %v7328_v10 }
 0x7e9   :  { %7519 = vtanh.f32 %v1833_v63  ;;  %v15226_v63 = vld [vmem:[#allocation26_spill] sm:$0xff] }
 0x7ea   :  { %7521 = vpow2.f32 %v7329_v8  ;;  %v15228_v8 = vld [vmem:[#allocation37_spill] sm:$0xff] }
 0x7f3   :  { %v7516_v30 = vpop.eup %7515 }
 0x7f4   :  { %v1838_v9 = vadd.f32 1.0, %v7516_v30 }
 0x7f5   :  { %v7518_v4 = vpop.eup %7517 }
 0x7f6   :  { %7523 = vrcp.f32 %v1838_v9  ;;  %v1844_v28 = vadd.f32 1.0, %v7518_v4  ;;  %v7520_v26 = vpop.eup %7519  ;;  %v15227_v9 = vld [vmem:[#allocation39_spill] sm:$0xff]  ;;  %v15234_v4 = vld [vmem:[#allocation44_spill] sm:$0xff] }
 0x7f7   :  { %v7522_v12 = vpop.eup %7521 }
 0x7f8   :  { %7525 = vrcp.f32 %v1844_v28  ;;  %v1851_v48 = vadd.f32 1.0, %v7522_v12  ;;  %v15235_v28 = vld [vmem:[#allocation42_spill] sm:$0xff] }
 0x7f9   :  { %v15237_v12 = vld [vmem:[#allocation30_spill] sm:$0xff] }
 0x7fa   :  { %7527 = vrcp.f32 %v1851_v48  ;;  %v15241_v48 = vld [vmem:[#allocation46_spill] sm:$0xff] }
 0x803   :  { %v7524_v17 = vpop.eup %7523 }
 0x804   :  { %v1855_v10 = vmul.f32 %v7524_v17, %v7520_v26  ;;  %v15236_v26 = vld [vmem:[#allocation32_spill] sm:$0xff]  ;;  %v15238_v17 = vld [vmem:[#allocation47_spill] sm:$0xff] }
 0x805   :  { %v7526_v7 = vpop.eup %7525 }
 0x806   :  { %v1854_v53 = vmul.f32 %v7526_v7, %v9814_v18  ;;  %v15225_v18 = vld [vmem:[#allocation34_spill] sm:$0xff]  ;;  %v15240_v7 = vld [vmem:[#allocation48_spill] sm:$0xff] }
 0x807   :  { %v7528_v55 = vpop.eup %7527 }
 0x808   :  { %v1856_v16 = vadd.f32 %v1855_v10, %v1854_v53  ;;  %v15239_v10 = vld [vmem:[#allocation45_spill] sm:$0xff]  ;;  %v15242_v53 = vld [vmem:[#allocation8_spill] sm:$0xff] }
 0x80a   :  { %7529 = vtanh.f32 %v1856_v16  ;;  %v15243_v16 = vld [vmem:[#allocation9_spill] sm:$0xff] }
 0x817   :  { %v7530_v6 = vpop.eup %7529 }
 0x818   :  { %v1858_v30 = vmul.f32 %v7530_v6, %v7528_v55  ;;  %v15244_v55 = vld [vmem:[#allocation10_spill] sm:$0xff]  ;;  %v15245_v6 = vld [vmem:[#allocation11_spill] sm:$0xff] }
 0x81a   :  { %2061 = vmatmul.mubr.f32.gmra.mxu0 %v1858_v30  ;;  %2174 = vmatmul.mubr.f32.gmra.mxu1 %v1858_v30  ;;  %v15246_v30 = vld [vmem:[#allocation33_spill] sm:$0xff] }
 0x81b   :  { %2344 = vmatprep.mubr.f32.mxu0 %v15188_v21  ;;  %2415 = vmatprep.mubr.f32.mxu1 %v15188_v21 }
 0x81e   :  { %2345 = vmatmul.mubr.f32.vlgmr.msra.gmra.mxu0 %v15188_v21  ;;  %2416 = vmatmul.mubr.f32.vlgmr.msra.gmra.mxu1 %v15188_v21 }
 0x81f   :  { %2456 = vmatpush1.msra.mxu0 %v10052_v14  ;;  %2527 = vmatpush1.msra.mxu1 %v10057_v56 }
 0x820   :  { %2457 = vmatprep.subr.mxu0 %v10064_v11  ;;  %2528 = vmatprep.subr.mxu1 %v10069_v60 }
 0x821   :  { %2458 = vmatpush1.msra.mxu0 %v10076_v20  ;;  %2529 = vmatpush1.msra.mxu1 %v10081_v52 }
 0x822   :  { %2459 = vmatprep.subr.mxu0 %v10088_v3  ;;  %2530 = vmatprep.subr.mxu1 %v10093_v61 }
 0x823   :  { %2460 = vmatpush1.msra.mxu0 %v10100_v38  ;;  %2531 = vmatpush1.msra.mxu1 %v10105_v0 }
 0x824   :  { %2461 = vmatprep.subr.mxu0 %v10112_v59  ;;  %2532 = vmatprep.subr.mxu1 %v10117_v58 }
 0x825   :  { %2462 = vmatpush1.msra.mxu0 %v10124_v51  ;;  %2533 = vmatpush1.msra.mxu1 %v10129_v29 }
 0x826   :  { %2463 = vmatprep.subr.mxu0 %v10136_v1  ;;  %2534 = vmatprep.subr.mxu1 %v10141_v62 }
 0x827   :  { %2464 = vmatpush1.msra.mxu0 %v10148_v19  ;;  %2535 = vmatpush1.msra.mxu1 %v10153_v22 }
 0x828   :  { %2465 = vmatprep.subr.mxu0 %v10160_v23  ;;  %2536 = vmatprep.subr.mxu1 %v10165_v24 }
 0x829   :  { %2466 = vmatpush1.msra.mxu0 %v10172_v25  ;;  %2537 = vmatpush1.msra.mxu1 %v10177_v47 }
 0x82a   :  { %2467 = vmatprep.subr.mxu0 %v10184_v27  ;;  %2538 = vmatprep.subr.mxu1 %v10189_v31 }
 0x82b   :  { %2468 = vmatpush1.msra.mxu0 %v10196_v32  ;;  %2539 = vmatpush1.msra.mxu1 %v10201_v33 }
 0x82c   :  { %2469 = vmatprep.subr.mxu0 %v10208_v34  ;;  %2540 = vmatprep.subr.mxu1 %v10213_v35 }
 0x82d   :  { %2470 = vmatpush1.msra.mxu0 %v10220_v36  ;;  %2541 = vmatpush1.msra.mxu1 %v10225_v37 }
 0x82e   :  { %2471 = vmatprep.subr.mxu0 %v10232_v39  ;;  %2542 = vmatprep.subr.mxu1 %v10237_v40 }
 0x82f   :  { %2472 = vmatpush1.msra.mxu0 %v10244_v41  ;;  %2543 = vmatpush1.msra.mxu1 %v10249_v42 }
 0x830   :  { %2473 = vmatprep.subr.mxu0 %v10256_v43  ;;  %2544 = vmatprep.subr.mxu1 %v10261_v44 }
 0x831   :  { %2474 = vmatpush1.msra.mxu0 %v10268_v45  ;;  %2545 = vmatpush1.msra.mxu1 %v10273_v46 }
 0x832   :  { %2475 = vmatprep.subr.mxu0 %v10280_v5  ;;  %2546 = vmatprep.subr.mxu1 %v10285_v15 }
 0x833   :  { %2476 = vmatpush1.msra.mxu0 %v10292_v50  ;;  %2547 = vmatpush1.msra.mxu1 %v15225_v18 }
 0x834   :  { %2477 = vmatprep.subr.mxu0 %v15226_v63  ;;  %2548 = vmatprep.subr.mxu1 %v15227_v9 }
 0x835   :  { %2478 = vmatpush1.msra.mxu0 %v15228_v8  ;;  %2549 = vmatpush1.msra.mxu1 %v15229_v13 }
 0x836   :  { %2479 = vmatprep.subr.mxu0 %v15230_v49  ;;  %2550 = vmatprep.subr.mxu1 %v15231_v2 }
 0x837   :  { %2480 = vmatpush1.msra.mxu0 %v15232_v57  ;;  %2551 = vmatpush1.msra.mxu1 %v15233_v54 }
 0x838   :  { %2481 = vmatprep.subr.mxu0 %v15234_v4  ;;  %2552 = vmatprep.subr.mxu1 %v15235_v28 }
 0x839   :  { %2482 = vmatpush1.msra.mxu0 %v15236_v26  ;;  %2553 = vmatpush1.msra.mxu1 %v15237_v12 }
 0x83a   :  { %2483 = vmatprep.subr.mxu0 %v15238_v17  ;;  %2554 = vmatprep.subr.mxu1 %v15239_v10  ;;  %v15247_v17 = vld [vmem:[#allocation36_spill] sm:$0xff]  ;;  %v2020_v10 = vpop.f32.mrf.mxu0 }
 0x83b   :  { %2484 = vmatpush1.msra.mxu0 %v15240_v7  ;;  %2555 = vmatpush1.msra.mxu1 %v15241_v48  ;;  %v2133_v7 = vpop.f32.mrf.mxu1 }
 0x83c   :  { %2485 = vmatprep.subr.mxu0 %v15242_v53  ;;  %2556 = vmatprep.subr.mxu1 %v15243_v16  ;;  %v2022_v12 = vpop.f32.mrf.mxu0 }
 0x83d   :  { %2486 = vmatpush1.msra.mxu0 %v15244_v55  ;;  %2519 = vmatprep.mubr.f32.mxu0 %v15188_v21  ;;  %v2135_v48 = vpop.f32.mrf.mxu1 }
 0x83e   :  { %2557 = vmatpush1.msra.mxu1 %v15245_v6  ;;  %2590 = vmatprep.mubr.f32.mxu1 %v15188_v21  ;;  %v10500_v26 = vpop.f32.mrf.mxu0 }
 0x83f   :  { %2630 = vmatprep.subr.mxu0 %v15246_v30  ;;  %2701 = vmatprep.subr.mxu1 %v15247_v17  ;;  %15248 = vst [vmem:[#allocation12_spill] sm:$0xff] %v10500_v26  ;;  %v10502_v53 = vpop.f32.mrf.mxu1 }
 0x840   :  { %15249 = vst [vmem:[#allocation13_spill] sm:$0xff] %v10502_v53  ;;  %v10504_v16 = vpop.f32.mrf.mxu0 }
 0x841   :  { %15250 = vst [vmem:[#allocation14_spill] sm:$0xff] %v10504_v16  ;;  %v10506_v55 = vpop.f32.mrf.mxu1 }
 0x842   :  { %15251 = vst [vmem:[#allocation15_spill] sm:$0xff] %v10506_v55  ;;  %v10508_v28 = vpop.f32.mrf.mxu0 }
 0x843   :  { %15252 = vst [vmem:[#allocation16_spill] sm:$0xff] %v10508_v28  ;;  %v10510_v6 = vpop.f32.mrf.mxu1 }
 0x844   :  { %15253 = vst [vmem:[#allocation17_spill] sm:$0xff] %v10510_v6  ;;  %v10512_v21 = vpop.f32.mrf.mxu0 }
 0x845   :  { %15254 = vst [vmem:[#allocation18_spill] sm:$0xff] %v10512_v21  ;;  %v10514_v30 = vpop.f32.mrf.mxu1 }
 0x846   :  { %15255 = vst [vmem:[#allocation19_spill] sm:$0xff] %v10514_v30  ;;  %v10516_v17 = vpop.f32.mrf.mxu0 }
 0x847   :  { %15256 = vst [vmem:[#allocation20_spill] sm:$0xff] %v10516_v17  ;;  %v10518_v4 = vpop.f32.mrf.mxu1 }
 0x848   :  { %15257 = vst [vmem:[#allocation21_spill] sm:$0xff] %v10518_v4  ;;  %v10520_v54 = vpop.f32.mrf.mxu0 }
 0x849   :  { %15258 = vst [vmem:[#allocation22_spill] sm:$0xff] %v10520_v54  ;;  %v10522_v26 = vpop.f32.mrf.mxu1 }
 0x84a   :  { %15259 = vst [vmem:[#allocation23_spill] sm:$0xff] %v10522_v26  ;;  %v10524_v53 = vpop.f32.mrf.mxu0 }
 0x84b   :  { %15260 = vst [vmem:[#allocation24_spill] sm:$0xff] %v10524_v53  ;;  %v10526_v16 = vpop.f32.mrf.mxu1 }
 0x84c   :  { %15261 = vst [vmem:[#allocation25_spill] sm:$0xff] %v10526_v16  ;;  %v10528_v55 = vpop.f32.mrf.mxu0  ;;  %v1932_v16 = vld [vmem:[%s14539_s6] sm:$0xf] }
 0x84d   :  { %15262 = vst [vmem:[#allocation4_spill] sm:$0xff] %v10528_v55  ;;  %v10530_v28 = vpop.f32.mrf.mxu1  ;;  %v15271_v55 = vld [vmem:[#allocation27_spill] sm:$0xff] }
 0x84e   :  { %15263 = vst [vmem:[#allocation5_spill] sm:$0xff] %v10530_v28  ;;  %v10532_v6 = vpop.f32.mrf.mxu0  ;;  %v10550_v28 = vrot.slane %v1932_v16, %v15271_v55 }
 0x84f   :  { %15264 = vst [vmem:[#allocation51_spill] sm:$0xff] %v10532_v6  ;;  %v10534_v21 = vpop.f32.mrf.mxu1 }
 0x850   :  { %15265 = vst [vmem:[#allocation49_spill] sm:$0xff] %v10534_v21  ;;  %v10536_v30 = vpop.f32.mrf.mxu0  ;;  %15272 = vst [vmem:[#allocation7_spill] sm:$0xff] %v10550_v28 }
 0x851   :  { %15266 = vst [vmem:[#allocation52_spill] sm:$0xff] %v10536_v30  ;;  %v10538_v17 = vpop.f32.mrf.mxu1  ;;  %v15275_v30 = vld [vmem:[#allocation53_spill] sm:$0xff] }
 0x852   :  { %15267 = vst [vmem:[#allocation50_spill] sm:$0xff] %v10538_v17  ;;  %v10540_v4 = vpop.f32.mrf.mxu0  ;;  %v10557_v26 = vrot.slane %v1932_v16, %v15275_v30  ;;  %v15279_v30 = vld [vmem:[#allocation58_spill] sm:$0xff] }
 0x853   :  { %15268 = vst [vmem:[#allocation59_spill] sm:$0xff] %v10540_v4  ;;  %v10542_v54 = vpop.f32.mrf.mxu1  ;;  %v10568_v9 = vrot.slane %v1932_v16, %v15279_v30 }
 0x854   :  { %15269 = vst [vmem:[#allocation6_spill] sm:$0xff] %v10542_v54  ;;  %v10547_v53 = vpop.f32.mrf.mxu0  ;;  %v2021_v54 = vadd.f32 %v2020_v10, %v10550_v28  ;;  %v2023_v2 = vadd.f32 %v2022_v12, %v10557_v26  ;;  %v15281_v10 = vld [vmem:[#allocation28_spill] sm:$0xff] }
 0x855   :  { %15270 = vst [vmem:[#allocation31_spill] sm:$0xff] %v10547_v53  ;;  %v10552_v6 = vpop.f32.mrf.mxu1  ;;  %15280 = vst [vmem:[#allocation60_spill] sm:$0xff] %v10568_v9  ;;  %v10572_v28 = vrot.slane %v1932_v16, %v15281_v10 }
 0x856   :  { %15273 = vst [vmem:[#allocation35_spill] sm:$0xff] %v10552_v6 }
 0x8da   :  { %v10554_v21 = vpop.f32.mrf.mxu0  ;;  %v10559_v17 = vpop.f32.mrf.mxu1 }
 0x8db   :  { %15274 = vst [vmem:[#allocation56_spill] sm:$0xff] %v10554_v21  ;;  %15276 = vst [vmem:[#allocation54_spill] sm:$0xff] %v10559_v17 }
 0x8dc   :  { %v10561_v4 = vpop.f32.mrf.mxu0  ;;  %v10565_v53 = vpop.f32.mrf.mxu1 }
 0x8dd   :  { %15277 = vst [vmem:[#allocation57_spill] sm:$0xff] %v10561_v4  ;;  %15278 = vst [vmem:[#allocation55_spill] sm:$0xff] %v10565_v53  ;;  %v2136_v4 = vadd.f32 %v2135_v48, %v10568_v9  ;;  %v2134_v53 = vadd.f32 %v2133_v7, %v10572_v28 }
 0x8de   :  { %v2346_v57 = vpop.f32.mrf.mxu0  ;;  %v2417_v21 = vpop.f32.mrf.mxu1 }
 0x8df   :  { %v2422_v55 = vadd.f32 %v2346_v57, %v2021_v54 }
 0x8e0   :  { %v2348_v49 = vpop.f32.mrf.mxu0  ;;  %v2419_v17 = vpop.f32.mrf.mxu1 }
 0x8e1   :  { %v7330_v13 = vmul.f32 -1.442695, %v2422_v55  ;;  %v2423_v6 = vadd.f32 %v2348_v49, %v2023_v2  ;;  %v2425_v12 = vadd.f32 %v2419_v17, %v2136_v4  ;;  %v2424_v55 = vadd.f32 %v2417_v21, %v2134_v53  ;;  %v15284_v53 = vld [vmem:[#allocation37_spill] sm:$0xff] }
 0x8e3   :  { %7531 = vpow2.f32 %v7330_v13  ;;  %v7331_v8 = vmul.f32 -1.442695, %v2423_v6  ;;  %v7332_v57 = vmul.f32 -1.442695, %v2425_v12  ;;  %v15287_v12 = vld [vmem:[#allocation29_spill] sm:$0xff] }
 0x8e5   :  { %7533 = vpow2.f32 %v7331_v8 }
 0x8e6   :  { %7535 = vpow2.f32 %v7332_v57  ;;  %v15288_v57 = vld [vmem:[#allocation43_spill] sm:$0xff] }
 0x8f0   :  { %v7532_v54 = vpop.eup %7531 }
 0x8f1   :  { %v2429_v49 = vadd.f32 1.0, %v7532_v54  ;;  %v15289_v54 = vld [vmem:[#allocation41_spill] sm:$0xff] }
 0x8f2   :  { %v7534_v13 = vpop.eup %7533 }
 0x8f3   :  { %7537 = vrcp.f32 %v2429_v49  ;;  %v2435_v2 = vadd.f32 1.0, %v7534_v13  ;;  %v7536_v8 = vpop.eup %7535  ;;  %v15291_v49 = vld [vmem:[#allocation42_spill] sm:$0xff]  ;;  %v15292_v13 = vld [vmem:[#allocation32_spill] sm:$0xff] }
 0x8f4   :  { %7539 = vtanh.f32 %v2424_v55  ;;  %v2442_v9 = vadd.f32 1.0, %v7536_v8  ;;  %v15290_v55 = vld [vmem:[#allocation44_spill] sm:$0xff]  ;;  %v15294_v8 = vld [vmem:[#allocation47_spill] sm:$0xff] }
 0x8f5   :  { %7541 = vrcp.f32 %v2435_v2  ;;  %v15293_v2 = vld [vmem:[#allocation30_spill] sm:$0xff] }
 0x8f6   :  { %7543 = vrcp.f32 %v2442_v9  ;;  %v15283_v9 = vld [vmem:[#allocation39_spill] sm:$0xff] }
 0x900   :  { %v7538_v6 = vpop.eup %7537 }
 0x901   :  { %v7540_v30 = vpop.eup %7539 }
 0x902   :  { %v7542_v48 = vpop.eup %7541  ;;  %v2446_v10 = vmul.f32 %v7540_v30, %v7538_v6  ;;  %v15285_v30 = vld [vmem:[#allocation40_spill] sm:$0xff]  ;;  %v15295_v6 = vld [vmem:[#allocation45_spill] sm:$0xff] }
 0x903   :  { %v2445_v16 = vmul.f32 0.0, %v7542_v48  ;;  %v7544_v21 = vpop.eup %7543  ;;  %v15296_v48 = vld [vmem:[#allocation48_spill] sm:$0xff] }
 0x905   :  { %v10575_v4 = vadd.f32 %v2446_v10, %v2445_v16  ;;  %v15286_v10 = vld [vmem:[#allocation38_spill] sm:$0xff] }
 0x906   :  { %v15297_v16 = vld [vmem:[#allocation46_spill] sm:$0xff] }
 0x907   :  { %7545 = vtanh.f32 %v10575_v4 }
 0x914   :  { %v7546_v17 = vpop.eup %7545 }
 0x915   :  { %v10578_v7 = vmul.f32 %v7546_v17, %v7544_v21  ;;  %v15298_v21 = vld [vmem:[#allocation8_spill] sm:$0xff]  ;;  %v15299_v17 = vld [vmem:[#allocation9_spill] sm:$0xff] }
 0x917   :  { %15282 = vst [vmem:[#allocation61_spill] sm:$0xff] %v10578_v7  ;;  %2520 = vmatmul.mubr.f32.vlgmr.msra.gmra.mxu0 %v10578_v7  ;;  %2591 = vmatmul.mubr.f32.vlgmr.msra.gmra.mxu1 %v10578_v7  ;;  %v15300_v7 = vld [vmem:[#allocation10_spill] sm:$0xff] }
 0x918   :  { %2631 = vmatpush1.msra.mxu0 %v10052_v14  ;;  %2702 = vmatpush1.msra.mxu1 %v10057_v56 }
 0x919   :  { %2632 = vmatprep.subr.mxu0 %v10064_v11  ;;  %2703 = vmatprep.subr.mxu1 %v10069_v60 }
 0x91a   :  { %2633 = vmatpush1.msra.mxu0 %v10076_v20  ;;  %2704 = vmatpush1.msra.mxu1 %v10081_v52 }
 0x91b   :  { %2634 = vmatprep.subr.mxu0 %v10088_v3  ;;  %2705 = vmatprep.subr.mxu1 %v10093_v61 }
 0x91c   :  { %2635 = vmatpush1.msra.mxu0 %v10100_v38  ;;  %2706 = vmatpush1.msra.mxu1 %v10105_v0 }
 0x91d   :  { %2636 = vmatprep.subr.mxu0 %v10112_v59  ;;  %2707 = vmatprep.subr.mxu1 %v10117_v58 }
 0x91e   :  { %2637 = vmatpush1.msra.mxu0 %v10124_v51  ;;  %2708 = vmatpush1.msra.mxu1 %v10129_v29 }
 0x91f   :  { %2638 = vmatprep.subr.mxu0 %v10136_v1  ;;  %2709 = vmatprep.subr.mxu1 %v10141_v62 }
 0x920   :  { %2639 = vmatpush1.msra.mxu0 %v10148_v19  ;;  %2710 = vmatpush1.msra.mxu1 %v10153_v22 }
 0x921   :  { %2640 = vmatprep.subr.mxu0 %v10160_v23  ;;  %2711 = vmatprep.subr.mxu1 %v10165_v24 }
 0x922   :  { %2641 = vmatpush1.msra.mxu0 %v10172_v25  ;;  %2712 = vmatpush1.msra.mxu1 %v10177_v47 }
 0x923   :  { %2642 = vmatprep.subr.mxu0 %v10184_v27  ;;  %2713 = vmatprep.subr.mxu1 %v10189_v31 }
 0x924   :  { %2643 = vmatpush1.msra.mxu0 %v10196_v32  ;;  %2714 = vmatpush1.msra.mxu1 %v10201_v33 }
 0x925   :  { %2644 = vmatprep.subr.mxu0 %v10208_v34  ;;  %2715 = vmatprep.subr.mxu1 %v10213_v35 }
 0x926   :  { %2645 = vmatpush1.msra.mxu0 %v10220_v36  ;;  %2716 = vmatpush1.msra.mxu1 %v10225_v37 }
 0x927   :  { %2646 = vmatprep.subr.mxu0 %v10232_v39  ;;  %2717 = vmatprep.subr.mxu1 %v10237_v40 }
 0x928   :  { %2647 = vmatpush1.msra.mxu0 %v10244_v41  ;;  %2718 = vmatpush1.msra.mxu1 %v10249_v42 }
 0x929   :  { %2648 = vmatprep.subr.mxu0 %v10256_v43  ;;  %2719 = vmatprep.subr.mxu1 %v10261_v44 }
 0x92a   :  { %2649 = vmatpush1.msra.mxu0 %v10268_v45  ;;  %2720 = vmatpush1.msra.mxu1 %v10273_v46 }
 0x92b   :  { %2650 = vmatprep.subr.mxu0 %v10280_v5  ;;  %2721 = vmatprep.subr.mxu1 %v10285_v15 }
 0x92c   :  { %2651 = vmatpush1.msra.mxu0 %v10292_v50  ;;  %2722 = vmatpush1.msra.mxu1 %v15225_v18 }
 0x92d   :  { %2652 = vmatprep.subr.mxu0 %v15226_v63  ;;  %2723 = vmatprep.subr.mxu1 %v15283_v9  ;;  %v15310_v9 = vld [vmem:[#allocation13_spill] sm:$0xff] }
 0x92e   :  { %2653 = vmatpush1.msra.mxu0 %v15284_v53  ;;  %2724 = vmatpush1.msra.mxu1 %v15285_v30  ;;  %v15308_v30 = vld [vmem:[#allocation60_spill] sm:$0xff] }
 0x92f   :  { %2654 = vmatprep.subr.mxu0 %v15286_v10  ;;  %2725 = vmatprep.subr.mxu1 %v15287_v12 }
 0x930   :  { %2655 = vmatpush1.msra.mxu0 %v15288_v57  ;;  %2726 = vmatpush1.msra.mxu1 %v15289_v54 }
 0x931   :  { %2656 = vmatprep.subr.mxu0 %v15290_v55  ;;  %2727 = vmatprep.subr.mxu1 %v15291_v49  ;;  %v15301_v55 = vmov 0.0   ;;  %v15302_v49 = vld [vmem:[#allocation11_spill] sm:$0xff] }
 0x932   :  { %2657 = vmatpush1.msra.mxu0 %v15292_v13  ;;  %2728 = vmatpush1.msra.mxu1 %v15293_v2  ;;  %v15303_v2 = vld [vmem:[#allocation33_spill] sm:$0xff] }
 0x933   :  { %2658 = vmatprep.subr.mxu0 %v15294_v8  ;;  %2729 = vmatprep.subr.mxu1 %v15295_v6  ;;  %v15304_v8 = vld [vmem:[#allocation36_spill] sm:$0xff]  ;;  %v15305_v6 = vld [vmem:[#allocation7_spill] sm:$0xff] }
 0x934   :  { %2659 = vmatpush1.msra.mxu0 %v15296_v48  ;;  %2730 = vmatpush1.msra.mxu1 %v15297_v16  ;;  %v15306_v48 = vld [vmem:[#allocation12_spill] sm:$0xff] }
 0x935   :  { %2660 = vmatprep.subr.mxu0 %v15298_v21  ;;  %2731 = vmatprep.subr.mxu1 %v15299_v17  ;;  %v2027_v13 = vadd.f32 %v15306_v48, %v15305_v6  ;;  %v15307_v21 = vld [vmem:[#allocation14_spill] sm:$0xff]  ;;  %v2140_v48 = vadd.f32 %v15310_v9, %v10572_v28 }
 0x936   :  { %2661 = vmatpush1.msra.mxu0 %v15300_v7  ;;  %2694 = vmatprep.mubr.f32.mxu0 %v15301_v55  ;;  %v2029_v54 = vadd.f32 %v15307_v21, %v10557_v26 }
 0x937   :  { %2732 = vmatpush1.msra.mxu1 %v15302_v49  ;;  %2765 = vmatprep.mubr.f32.mxu1 %v15301_v55 }
 0x938   :  { %2805 = vmatprep.subr.mxu0 %v15303_v2  ;;  %2876 = vmatprep.subr.mxu1 %v15304_v8  ;;  %v15309_v2 = vld [vmem:[#allocation15_spill] sm:$0xff] }
 0x939   :  { %v2142_v53 = vadd.f32 %v15309_v2, %v15308_v30 }
 0x9d7   :  { %v2521_v16 = vpop.f32.mrf.mxu0  ;;  %v2592_v10 = vpop.f32.mrf.mxu1 }
 0x9d8   :  { %v2597_v17 = vadd.f32 %v2521_v16, %v2027_v13  ;;  %v2599_v6 = vadd.f32 %v2592_v10, %v2140_v48  ;;  %v15331_v48 = vld [vmem:[#allocation10_spill] sm:$0xff] }
 0x9d9   :  { %v2523_v57 = vpop.f32.mrf.mxu0  ;;  %v2594_v55 = vpop.f32.mrf.mxu1 }
 0x9da   :  { %v7333_v7 = vmul.f32 -1.442695, %v2597_v17  ;;  %v2598_v12 = vadd.f32 %v2523_v57, %v2029_v54  ;;  %v2600_v8 = vadd.f32 %v2594_v55, %v2142_v53  ;;  %v15330_v17 = vld [vmem:[#allocation9_spill] sm:$0xff] }
 0x9dc   :  { %7547 = vpow2.f32 %v7333_v7  ;;  %v7334_v49 = vmul.f32 -1.442695, %v2598_v12  ;;  %v7335_v63 = vmul.f32 -1.442695, %v2600_v8  ;;  %v15328_v8 = vld [vmem:[#allocation46_spill] sm:$0xff] }
 0x9de   :  { %7549 = vpow2.f32 %v7334_v49 }
 0x9df   :  { %7551 = vtanh.f32 %v2599_v6  ;;  %v15329_v6 = vld [vmem:[#allocation8_spill] sm:$0xff] }
 0x9e0   :  { %7553 = vpow2.f32 %v7335_v63  ;;  %v15326_v63 = vld [vmem:[#allocation45_spill] sm:$0xff] }
 0x9e9   :  { %v7548_v18 = vpop.eup %7547 }
 0x9ea   :  { %v2604_v21 = vadd.f32 1.0, %v7548_v18 }
 0x9eb   :  { %v7550_v13 = vpop.eup %7549 }
 0x9ec   :  { %7555 = vrcp.f32 %v2604_v21  ;;  %v2610_v7 = vadd.f32 1.0, %v7550_v13  ;;  %v7552_v12 = vpop.eup %7551  ;;  %v15332_v21 = vmov 0.0   ;;  %v15333_v13 = vld [vmem:[#allocation11_spill] sm:$0xff] }
 0x9ed   :  { %v7554_v57 = vpop.eup %7553 }
 0x9ee   :  { %7557 = vrcp.f32 %v2610_v7  ;;  %v2617_v2 = vadd.f32 1.0, %v7554_v57  ;;  %v15334_v7 = vld [vmem:[#allocation33_spill] sm:$0xff]  ;;  %v15336_v57 = vld [vmem:[#allocation7_spill] sm:$0xff] }
 0x9f0   :  { %7559 = vrcp.f32 %v2617_v2  ;;  %v15338_v2 = vld [vmem:[#allocation18_spill] sm:$0xff] }
 0x9f9   :  { %v7556_v54 = vpop.eup %7555 }
 0x9fa   :  { %v2621_v49 = vmul.f32 %v7556_v54, %v7552_v12  ;;  %v15335_v12 = vld [vmem:[#allocation36_spill] sm:$0xff] }
 0x9fb   :  { %v7558_v16 = vpop.eup %7557  ;;  %v15337_v54 = vld [vmem:[#allocation16_spill] sm:$0xff] }
 0x9fc   :  { %v2620_v53 = vmul.f32 %v7558_v16, %v10575_v4  ;;  %v15327_v4 = vld [vmem:[#allocation48_spill] sm:$0xff] }
 0x9fd   :  { %v7560_v18 = vpop.eup %7559 }
 0x9fe   :  { %v10657_v55 = vadd.f32 %v2621_v49, %v2620_v53  ;;  %v2033_v49 = vadd.f32 %v15337_v54, %v15336_v57  ;;  %v2035_v53 = vadd.f32 %v15338_v2, %v10557_v26 }
 0xa00   :  { %7561 = vtanh.f32 %v10657_v55 }
 0xa0d   :  { %v7562_v9 = vpop.eup %7561 }
 0xa0e   :  { %v10660_v10 = vmul.f32 %v7562_v9, %v7560_v18 }
 0xa10   :  { %15311 = vst [vmem:[#allocation12_spill] sm:$0xff] %v10660_v10  ;;  %2695 = vmatmul.mubr.f32.vlgmr.msra.gmra.mxu0 %v10660_v10  ;;  %2766 = vmatmul.mubr.f32.vlgmr.msra.gmra.mxu1 %v10660_v10 }
 0xa11   :  { %2806 = vmatpush1.msra.mxu0 %v10052_v14  ;;  %2877 = vmatpush1.msra.mxu1 %v10057_v56  ;;  %v15312_v14 = vld [vmem:[#allocation34_spill] sm:$0xff] }
 0xa12   :  { %2807 = vmatprep.subr.mxu0 %v10064_v11  ;;  %2878 = vmatprep.subr.mxu1 %v10069_v60  ;;  %v15313_v56 = vld [vmem:[#allocation26_spill] sm:$0xff]  ;;  %v15314_v11 = vld [vmem:[#allocation39_spill] sm:$0xff]  ;;  %v15315_v60 = vld [vmem:[#allocation37_spill] sm:$0xff] }
 0xa13   :  { %2808 = vmatpush1.msra.mxu0 %v10076_v20  ;;  %2879 = vmatpush1.msra.mxu1 %v10081_v52  ;;  %v15316_v20 = vld [vmem:[#allocation40_spill] sm:$0xff]  ;;  %v15317_v52 = vld [vmem:[#allocation38_spill] sm:$0xff] }
 0xa14   :  { %2809 = vmatprep.subr.mxu0 %v10088_v3  ;;  %2880 = vmatprep.subr.mxu1 %v10093_v61  ;;  %v15318_v3 = vld [vmem:[#allocation29_spill] sm:$0xff]  ;;  %v15319_v61 = vld [vmem:[#allocation43_spill] sm:$0xff] }
 0xa15   :  { %2810 = vmatpush1.msra.mxu0 %v10100_v38  ;;  %2881 = vmatpush1.msra.mxu1 %v10105_v0  ;;  %v15320_v38 = vld [vmem:[#allocation41_spill] sm:$0xff]  ;;  %v15321_v0 = vld [vmem:[#allocation44_spill] sm:$0xff] }
 0xa16   :  { %2811 = vmatprep.subr.mxu0 %v10112_v59  ;;  %2882 = vmatprep.subr.mxu1 %v10117_v58  ;;  %v15322_v59 = vld [vmem:[#allocation42_spill] sm:$0xff]  ;;  %v15323_v58 = vld [vmem:[#allocation32_spill] sm:$0xff] }
 0xa17   :  { %2812 = vmatpush1.msra.mxu0 %v10124_v51  ;;  %2883 = vmatpush1.msra.mxu1 %v10129_v29  ;;  %v15324_v51 = vld [vmem:[#allocation30_spill] sm:$0xff]  ;;  %v15325_v29 = vld [vmem:[#allocation47_spill] sm:$0xff] }
 0xa18   :  { %2813 = vmatprep.subr.mxu0 %v10136_v1  ;;  %2884 = vmatprep.subr.mxu1 %v10141_v62 }
 0xa19   :  { %2814 = vmatpush1.msra.mxu0 %v10148_v19  ;;  %2885 = vmatpush1.msra.mxu1 %v10153_v22 }
 0xa1a   :  { %2815 = vmatprep.subr.mxu0 %v10160_v23  ;;  %2886 = vmatprep.subr.mxu1 %v10165_v24 }
 0xa1b   :  { %2816 = vmatpush1.msra.mxu0 %v10172_v25  ;;  %2887 = vmatpush1.msra.mxu1 %v10177_v47 }
 0xa1c   :  { %2817 = vmatprep.subr.mxu0 %v10184_v27  ;;  %2888 = vmatprep.subr.mxu1 %v10189_v31 }
 0xa1d   :  { %2818 = vmatpush1.msra.mxu0 %v10196_v32  ;;  %2889 = vmatpush1.msra.mxu1 %v10201_v33 }
 0xa1e   :  { %2819 = vmatprep.subr.mxu0 %v10208_v34  ;;  %2890 = vmatprep.subr.mxu1 %v10213_v35 }
 0xa1f   :  { %2820 = vmatpush1.msra.mxu0 %v10220_v36  ;;  %2891 = vmatpush1.msra.mxu1 %v10225_v37 }
 0xa20   :  { %2821 = vmatprep.subr.mxu0 %v10232_v39  ;;  %2892 = vmatprep.subr.mxu1 %v10237_v40 }
 0xa21   :  { %2822 = vmatpush1.msra.mxu0 %v10244_v41  ;;  %2893 = vmatpush1.msra.mxu1 %v10249_v42 }
 0xa22   :  { %2823 = vmatprep.subr.mxu0 %v10256_v43  ;;  %2894 = vmatprep.subr.mxu1 %v10261_v44 }
 0xa23   :  { %2824 = vmatpush1.msra.mxu0 %v10268_v45  ;;  %2895 = vmatpush1.msra.mxu1 %v10273_v46 }
 0xa24   :  { %2825 = vmatprep.subr.mxu0 %v10280_v5  ;;  %2896 = vmatprep.subr.mxu1 %v10285_v15 }
 0xa25   :  { %2826 = vmatpush1.msra.mxu0 %v10292_v50  ;;  %2897 = vmatpush1.msra.mxu1 %v15312_v14 }
 0xa26   :  { %2827 = vmatprep.subr.mxu0 %v15313_v56  ;;  %2898 = vmatprep.subr.mxu1 %v15314_v11 }
 0xa27   :  { %2828 = vmatpush1.msra.mxu0 %v15315_v60  ;;  %2899 = vmatpush1.msra.mxu1 %v15316_v20 }
 0xa28   :  { %2829 = vmatprep.subr.mxu0 %v15317_v52  ;;  %2900 = vmatprep.subr.mxu1 %v15318_v3 }
 0xa29   :  { %2830 = vmatpush1.msra.mxu0 %v15319_v61  ;;  %2901 = vmatpush1.msra.mxu1 %v15320_v38 }
 0xa2a   :  { %2831 = vmatprep.subr.mxu0 %v15321_v0  ;;  %2902 = vmatprep.subr.mxu1 %v15322_v59 }
 0xa2b   :  { %2832 = vmatpush1.msra.mxu0 %v15323_v58  ;;  %2903 = vmatpush1.msra.mxu1 %v15324_v51 }
 0xa2c   :  { %2833 = vmatprep.subr.mxu0 %v15325_v29  ;;  %2904 = vmatprep.subr.mxu1 %v15326_v63 }
 0xa2d   :  { %2834 = vmatpush1.msra.mxu0 %v15327_v4  ;;  %2905 = vmatpush1.msra.mxu1 %v15328_v8  ;;  %v15340_v8 = vld [vmem:[#allocation17_spill] sm:$0xff] }
 0xa2e   :  { %2835 = vmatprep.subr.mxu0 %v15329_v6  ;;  %2906 = vmatprep.subr.mxu1 %v15330_v17  ;;  %v2146_v54 = vadd.f32 %v15340_v8, %v10572_v28 }
 0xa2f   :  { %2836 = vmatpush1.msra.mxu0 %v15331_v48  ;;  %2869 = vmatprep.mubr.f32.mxu0 %v15332_v21 }
 0xa30   :  { %2907 = vmatpush1.msra.mxu1 %v15333_v13  ;;  %2940 = vmatprep.mubr.f32.mxu1 %v15332_v21 }
 0xa31   :  { %2980 = vmatprep.subr.mxu0 %v15334_v7  ;;  %3051 = vmatprep.subr.mxu1 %v15335_v12  ;;  %v15339_v7 = vld [vmem:[#allocation19_spill] sm:$0xff] }
 0xa32   :  { %v2148_v6 = vadd.f32 %v15339_v7, %v15308_v30  ;;  %v10767_v7 = vld [vmem:[%s14538_s5 + $0x1d8] sm:$0xff] }
 0xad0   :  { %v2696_v16 = vpop.f32.mrf.mxu0  ;;  %v2767_v17 = vpop.f32.mrf.mxu1 }
 0xad1   :  { %v2772_v18 = vadd.f32 %v2696_v16, %v2033_v49  ;;  %v2774_v57 = vadd.f32 %v2767_v17, %v2146_v54  ;;  %v10779_v54 = vld [vmem:[%s14538_s5 + $0x1d0] sm:$0xff] }
 0xad2   :  { %v2698_v9 = vpop.f32.mrf.mxu0  ;;  %v2769_v21 = vpop.f32.mrf.mxu1 }
 0xad3   :  { %v7336_v10 = vmul.f32 -1.442695, %v2772_v18  ;;  %v2773_v48 = vadd.f32 %v2698_v9, %v2035_v53  ;;  %v2775_v12 = vadd.f32 %v2769_v21, %v2148_v6 }
 0xad5   :  { %7563 = vpow2.f32 %v7336_v10  ;;  %v7337_v13 = vmul.f32 -1.442695, %v2773_v48  ;;  %v7338_v4 = vmul.f32 -1.442695, %v2775_v12  ;;  %v10773_v12 = vld [vmem:[%s14538_s5 + $0x1c0] sm:$0xff] }
 0xad7   :  { %7565 = vpow2.f32 %v7337_v13 }
 0xad8   :  { %7567 = vtanh.f32 %v2774_v57  ;;  %v10761_v57 = vld [vmem:[%s14538_s5 + $0x1c8] sm:$0xff] }
 0xad9   :  { %7569 = vpow2.f32 %v7338_v4  ;;  %v10749_v4 = vld [vmem:[%s14538_s5 + $0x1e0] sm:$0xff] }
 0xae2   :  { %v7564_v63 = vpop.eup %7563 }
 0xae3   :  { %v2779_v2 = vadd.f32 1.0, %v7564_v63 }
 0xae4   :  { %v7566_v49 = vpop.eup %7565 }
 0xae5   :  { %7571 = vrcp.f32 %v2779_v2  ;;  %v2785_v10 = vadd.f32 1.0, %v7566_v49  ;;  %v7568_v48 = vpop.eup %7567  ;;  %v10785_v2 = vld [vmem:[%s14538_s5 + $0x1a8] sm:$0xff]  ;;  %v10791_v49 = vld [vmem:[%s14538_s5 + $0x1b8] sm:$0xff] }
 0xae6   :  { %v7570_v13 = vpop.eup %7569 }
 0xae7   :  { %7573 = vrcp.f32 %v2785_v10  ;;  %v2792_v9 = vadd.f32 1.0, %v7570_v13  ;;  %v10797_v10 = vld [vmem:[%s14538_s5 + $0x1a0] sm:$0xff]  ;;  %v10809_v13 = vld [vmem:[%s14538_s5 + $0x188] sm:$0xff] }
 0xae9   :  { %7575 = vrcp.f32 %v2792_v9 }
 0xaf2   :  { %v7572_v16 = vpop.eup %7571 }
 0xaf3   :  { %v2796_v53 = vmul.f32 %v7572_v16, %v7568_v48  ;;  %v10803_v48 = vld [vmem:[%s14538_s5 + $0x1b0] sm:$0xff]  ;;  %v10815_v16 = vld [vmem:[%s14538_s5 + $0x198] sm:$0xff] }
 0xaf4   :  { %v7574_v18 = vpop.eup %7573 }
 0xaf5   :  { %v2795_v6 = vmul.f32 %v7574_v18, %v10657_v55  ;;  %v10755_v55 = vld [vmem:[%s14538_s5 + $0x1f0] sm:$0xff] }
 0xaf6   :  { %v7576_v63 = vpop.eup %7575  ;;  %v10827_v18 = vld [vmem:[%s14538_s5 + $0x190] sm:$0xff] }
 0xaf7   :  { %v10739_v21 = vadd.f32 %v2796_v53, %v2795_v6  ;;  %v10821_v53 = vld [vmem:[%s14538_s5 + $0x180] sm:$0xff] }
 0xaf9   :  { %7577 = vtanh.f32 %v10739_v21 }
 0xb06   :  { %v7578_v8 = vpop.eup %7577 }
 0xb07   :  { %v10742_v17 = vmul.f32 %v7578_v8, %v7576_v63 }
 0xb09   :  { %15341 = vst [vmem:[#allocation14_spill] sm:$0xff] %v10742_v17  ;;  %2870 = vmatmul.mubr.f32.vlgmr.msra.gmra.mxu0 %v10742_v17  ;;  %2941 = vmatmul.mubr.f32.vlgmr.msra.gmra.mxu1 %v10742_v17  ;;  %v11171_v17 = vld [vmem:[%s14538_s5 + $0x38] sm:$0xff] }
 0xb0a   :  { %2981 = vmatpush1.msra.mxu0 %v10749_v4  ;;  %3052 = vmatpush1.msra.mxu1 %v10755_v55  ;;  %15372 = vst [vmem:[#allocation33_spill] sm:$0xff] %v11171_v17 }
 0xb0b   :  { %2982 = vmatprep.subr.mxu0 %v10761_v57  ;;  %3053 = vmatprep.subr.mxu1 %v10767_v7 }
 0xb0c   :  { %2983 = vmatpush1.msra.mxu0 %v10773_v12  ;;  %3054 = vmatpush1.msra.mxu1 %v10779_v54 }
 0xb0d   :  { %2984 = vmatprep.subr.mxu0 %v10785_v2  ;;  %3055 = vmatprep.subr.mxu1 %v10791_v49 }
 0xb0e   :  { %2985 = vmatpush1.msra.mxu0 %v10797_v10  ;;  %3056 = vmatpush1.msra.mxu1 %v10803_v48 }
 0xb0f   :  { %2986 = vmatprep.subr.mxu0 %v10809_v13  ;;  %3057 = vmatprep.subr.mxu1 %v10815_v16 }
 0xb10   :  { %2987 = vmatpush1.msra.mxu0 %v10821_v53  ;;  %3058 = vmatpush1.msra.mxu1 %v10827_v18 }
 0xb11   :  { %2988 = vmatprep.subr.mxu0 %v10136_v1  ;;  %3059 = vmatprep.subr.mxu1 %v10141_v62  ;;  %v15342_v1 = vld [vmem:[#allocation45_spill] sm:$0xff]  ;;  %v15343_v62 = vld [vmem:[#allocation48_spill] sm:$0xff] }
 0xb12   :  { %2989 = vmatpush1.msra.mxu0 %v10148_v19  ;;  %3060 = vmatpush1.msra.mxu1 %v10153_v22  ;;  %v15344_v19 = vld [vmem:[#allocation46_spill] sm:$0xff]  ;;  %v15345_v22 = vld [vmem:[#allocation8_spill] sm:$0xff] }
 0xb13   :  { %2990 = vmatprep.subr.mxu0 %v10160_v23  ;;  %3061 = vmatprep.subr.mxu1 %v10165_v24  ;;  %v15346_v23 = vld [vmem:[#allocation9_spill] sm:$0xff]  ;;  %v15347_v24 = vld [vmem:[#allocation10_spill] sm:$0xff] }
 0xb14   :  { %2991 = vmatpush1.msra.mxu0 %v10172_v25  ;;  %3062 = vmatpush1.msra.mxu1 %v10177_v47  ;;  %v15348_v25 = vmov 0.0   ;;  %v15349_v47 = vld [vmem:[#allocation11_spill] sm:$0xff] }
 0xb15   :  { %2992 = vmatprep.subr.mxu0 %v10184_v27  ;;  %3063 = vmatprep.subr.mxu1 %v10189_v31  ;;  %v10883_v27 = vld [vmem:[%s14538_s5 + $0x1e8] sm:$0xff]  ;;  %v10889_v31 = vld [vmem:[%s14538_s5 + $0x1f8] sm:$0xff] }
 0xb16   :  { %2993 = vmatpush1.msra.mxu0 %v10196_v32  ;;  %3064 = vmatpush1.msra.mxu1 %v10201_v33  ;;  %15350 = vst [vmem:[#allocation60_spill] sm:$0xff] %v10883_v27  ;;  %15351 = vst [vmem:[#allocation15_spill] sm:$0xff] %v10889_v31  ;;  %v15352_v32 = vld [vmem:[#allocation7_spill] sm:$0xff]  ;;  %v15353_v33 = vld [vmem:[#allocation20_spill] sm:$0xff] }
 0xb17   :  { %2994 = vmatprep.subr.mxu0 %v10208_v34  ;;  %3065 = vmatprep.subr.mxu1 %v10213_v35  ;;  %v2039_v34 = vadd.f32 %v15353_v33, %v15352_v32  ;;  %v10973_v33 = vld [vmem:[%s14538_s5 + $0x128] sm:$0xff] }
 0xb18   :  { %2995 = vmatpush1.msra.mxu0 %v10220_v36  ;;  %3066 = vmatpush1.msra.mxu1 %v10225_v37  ;;  %v15354_v36 = vld [vmem:[#allocation22_spill] sm:$0xff] }
 0xb19   :  { %2996 = vmatprep.subr.mxu0 %v10232_v39  ;;  %3067 = vmatprep.subr.mxu1 %v10237_v40  ;;  %v2041_v37 = vadd.f32 %v15354_v36, %v10557_v26  ;;  %v10991_v36 = vld [vmem:[%s14538_s5 + $0x130] sm:$0xff] }
 0xb1a   :  { %2997 = vmatpush1.msra.mxu0 %v10244_v41  ;;  %3068 = vmatpush1.msra.mxu1 %v10249_v42 }
 0xb1b   :  { %2998 = vmatprep.subr.mxu0 %v10256_v43  ;;  %3069 = vmatprep.subr.mxu1 %v10261_v44 }
 0xb1c   :  { %2999 = vmatpush1.msra.mxu0 %v10268_v45  ;;  %3070 = vmatpush1.msra.mxu1 %v10273_v46  ;;  %v15355_v46 = vld [vmem:[#allocation23_spill] sm:$0xff] }
 0xb1d   :  { %3000 = vmatprep.subr.mxu0 %v10280_v5  ;;  %3071 = vmatprep.subr.mxu1 %v10285_v15  ;;  %v2154_v5 = vadd.f32 %v15355_v46, %v15308_v30  ;;  %v11045_v46 = vld [vmem:[%s14538_s5 + $0xc8] sm:$0xff] }
 0xb1e   :  { %3001 = vmatpush1.msra.mxu0 %v10292_v50  ;;  %3072 = vmatpush1.msra.mxu1 %v15312_v14  ;;  %v15356_v50 = vld [vmem:[#allocation21_spill] sm:$0xff] }
 0xb1f   :  { %3002 = vmatprep.subr.mxu0 %v15313_v56  ;;  %3073 = vmatprep.subr.mxu1 %v15314_v11  ;;  %v2152_v14 = vadd.f32 %v15356_v50, %v10572_v28  ;;  %v11063_v50 = vld [vmem:[%s14538_s5 + $0xd0] sm:$0xff] }
 0xb20   :  { %3003 = vmatpush1.msra.mxu0 %v15315_v60  ;;  %3074 = vmatpush1.msra.mxu1 %v15316_v20 }
 0xb21   :  { %3004 = vmatprep.subr.mxu0 %v15317_v52  ;;  %3075 = vmatprep.subr.mxu1 %v15318_v3 }
 0xb22   :  { %3005 = vmatpush1.msra.mxu0 %v15319_v61  ;;  %3076 = vmatpush1.msra.mxu1 %v15320_v38 }
 0xb23   :  { %3006 = vmatprep.subr.mxu0 %v15321_v0  ;;  %3077 = vmatprep.subr.mxu1 %v15322_v59 }
 0xb24   :  { %3007 = vmatpush1.msra.mxu0 %v15323_v58  ;;  %3078 = vmatpush1.msra.mxu1 %v15324_v51 }
 0xb25   :  { %3008 = vmatprep.subr.mxu0 %v15325_v29  ;;  %3079 = vmatprep.subr.mxu1 %v15342_v1  ;;  %v10931_v1 = vld [vmem:[%s14538_s5 + $0x178] sm:$0xff] }
 0xb26   :  { %3009 = vmatpush1.msra.mxu0 %v15343_v62  ;;  %3080 = vmatpush1.msra.mxu1 %v15344_v19  ;;  %v10937_v62 = vld [vmem:[%s14538_s5 + $0x160] sm:$0xff]  ;;  %v10943_v19 = vld [vmem:[%s14538_s5 + $0x170] sm:$0xff] }
 0xb27   :  { %3010 = vmatprep.subr.mxu0 %v15345_v22  ;;  %3081 = vmatprep.subr.mxu1 %v15346_v23  ;;  %v10949_v22 = vld [vmem:[%s14538_s5 + $0x148] sm:$0xff]  ;;  %v10955_v23 = vld [vmem:[%s14538_s5 + $0x158] sm:$0xff] }
 0xb28   :  { %3011 = vmatpush1.msra.mxu0 %v15347_v24  ;;  %3044 = vmatprep.mubr.f32.mxu0 %v15348_v25  ;;  %v10961_v24 = vld [vmem:[%s14538_s5 + $0x140] sm:$0xff] }
 0xb29   :  { %3082 = vmatpush1.msra.mxu1 %v15349_v47  ;;  %3115 = vmatprep.mubr.f32.mxu1 %v15348_v25  ;;  %v10967_v47 = vld [vmem:[%s14538_s5 + $0x150] sm:$0xff] }
 0xb2a   :  { %3155 = vmatprep.subr.mxu0 %v10883_v27  ;;  %3226 = vmatprep.subr.mxu1 %v10889_v31 }
 0xbc9   :  { %v2871_v35 = vpop.f32.mrf.mxu0  ;;  %v2942_v43 = vpop.f32.mrf.mxu1 }
 0xbca   :  { %v2947_v39 = vadd.f32 %v2871_v35, %v2039_v34  ;;  %v2949_v56 = vadd.f32 %v2942_v43, %v2152_v14  ;;  %v10979_v34 = vld [vmem:[%s14538_s5 + $0x138] sm:$0xff]  ;;  %v10985_v35 = vld [vmem:[%s14538_s5 + $0x120] sm:$0xff]  ;;  %v11069_v14 = vld [vmem:[%s14538_s5 + $0xa8] sm:$0xff] }
 0xbcb   :  { %v2873_v40 = vpop.f32.mrf.mxu0  ;;  %v2944_v45 = vpop.f32.mrf.mxu1  ;;  %v11027_v43 = vld [vmem:[%s14538_s5 + $0xf8] sm:$0xff] }
 0xbcc   :  { %v7339_v41 = vmul.f32 -1.442695, %v2947_v39  ;;  %v2948_v42 = vadd.f32 %v2873_v40, %v2041_v37  ;;  %v2950_v15 = vadd.f32 %v2944_v45, %v2154_v5  ;;  %v10997_v37 = vld [vmem:[%s14538_s5 + $0x108] sm:$0xff]  ;;  %v11003_v39 = vld [vmem:[%s14538_s5 + $0x118] sm:$0xff]  ;;  %v11009_v40 = vld [vmem:[%s14538_s5 + $0x100] sm:$0xff] }
 0xbcd   :  { %v11039_v45 = vld [vmem:[%s14538_s5 + $0xf0] sm:$0xff]  ;;  %v11051_v5 = vld [vmem:[%s14538_s5 + $0xd8] sm:$0xff] }
 0xbce   :  { %7579 = vpow2.f32 %v7339_v41  ;;  %v7340_v44 = vmul.f32 -1.442695, %v2948_v42  ;;  %v7341_v11 = vmul.f32 -1.442695, %v2950_v15  ;;  %v11015_v41 = vld [vmem:[%s14538_s5 + $0x110] sm:$0xff]  ;;  %v11021_v42 = vld [vmem:[%s14538_s5 + $0xe8] sm:$0xff] }
 0xbcf   :  { %v11057_v15 = vld [vmem:[%s14538_s5 + $0xc0] sm:$0xff] }
 0xbd0   :  { %7581 = vpow2.f32 %v7340_v44  ;;  %v11033_v44 = vld [vmem:[%s14538_s5 + $0xe0] sm:$0xff] }
 0xbd1   :  { %7583 = vtanh.f32 %v2949_v56  ;;  %v11075_v56 = vld [vmem:[%s14538_s5 + $0xb8] sm:$0xff] }
 0xbd2   :  { %7585 = vpow2.f32 %v7341_v11  ;;  %v11081_v11 = vld [vmem:[%s14538_s5 + $0xa0] sm:$0xff] }
 0xbdb   :  { %v7580_v60 = vpop.eup %7579 }
 0xbdc   :  { %v2954_v20 = vadd.f32 1.0, %v7580_v60  ;;  %v11087_v60 = vld [vmem:[%s14538_s5 + $0xb0] sm:$0xff] }
 0xbdd   :  { %v7582_v52 = vpop.eup %7581  ;;  %15358 = vst [vmem:[#allocation34_spill] sm:$0xff] %v11087_v60 }
 0xbde   :  { %7587 = vrcp.f32 %v2954_v20  ;;  %v2960_v3 = vadd.f32 1.0, %v7582_v52  ;;  %v7584_v61 = vpop.eup %7583  ;;  %v11093_v20 = vld [vmem:[%s14538_s5 + $0x88] sm:$0xff]  ;;  %v11099_v52 = vld [vmem:[%s14538_s5 + $0x98] sm:$0xff] }
 0xbdf   :  { %v7586_v38 = vpop.eup %7585  ;;  %15359 = vst [vmem:[#allocation26_spill] sm:$0xff] %v11093_v20  ;;  %15360 = vst [vmem:[#allocation39_spill] sm:$0xff] %v11099_v52 }
 0xbe0   :  { %7589 = vrcp.f32 %v2960_v3  ;;  %v2967_v51 = vadd.f32 1.0, %v7586_v38  ;;  %v11105_v3 = vld [vmem:[%s14538_s5 + $0x80] sm:$0xff]  ;;  %v11117_v38 = vld [vmem:[%s14538_s5 + $0x68] sm:$0xff] }
 0xbe1   :  { %15361 = vst [vmem:[#allocation37_spill] sm:$0xff] %v11105_v3  ;;  %15363 = vst [vmem:[#allocation38_spill] sm:$0xff] %v11117_v38 }
 0xbe2   :  { %7591 = vrcp.f32 %v2967_v51  ;;  %v11141_v51 = vld [vmem:[%s14538_s5 + $0x48] sm:$0xff] }
 0xbe3   :  { %15367 = vst [vmem:[#allocation44_spill] sm:$0xff] %v11141_v51 }
 0xbeb   :  { %v7588_v0 = vpop.eup %7587 }
 0xbec   :  { %v2971_v59 = vmul.f32 %v7588_v0, %v7584_v61  ;;  %v11111_v61 = vld [vmem:[%s14538_s5 + $0x90] sm:$0xff]  ;;  %v11123_v0 = vld [vmem:[%s14538_s5 + $0x78] sm:$0xff] }
 0xbed   :  { %v7590_v58 = vpop.eup %7589  ;;  %15362 = vst [vmem:[#allocation40_spill] sm:$0xff] %v11111_v61  ;;  %15364 = vst [vmem:[#allocation29_spill] sm:$0xff] %v11123_v0 }
 0xbee   :  { %v2970_v29 = vmul.f32 %v7590_v58, %v10739_v21  ;;  %v10925_v21 = vld [vmem:[%s14538_s5 + $0x168] sm:$0xff]  ;;  %v11135_v58 = vld [vmem:[%s14538_s5 + $0x70] sm:$0xff] }
 0xbef   :  { %v7592_v6 = vpop.eup %7591  ;;  %15366 = vst [vmem:[#allocation41_spill] sm:$0xff] %v11135_v58 }
 0xbf0   :  { %v10901_v9 = vadd.f32 %v2971_v59, %v2970_v29  ;;  %v11129_v59 = vld [vmem:[%s14538_s5 + $0x60] sm:$0xff]  ;;  %v11147_v29 = vld [vmem:[%s14538_s5 + $0x58] sm:$0xff] }
 0xbf1   :  { %15365 = vst [vmem:[#allocation43_spill] sm:$0xff] %v11129_v59  ;;  %15368 = vst [vmem:[#allocation42_spill] sm:$0xff] %v11147_v29 }
 0xbf2   :  { %7593 = vtanh.f32 %v10901_v9 }
 0xbff   :  { %v7594_v63 = vpop.eup %7593 }
 0xc00   :  { %v10904_v8 = vmul.f32 %v7594_v63, %v7592_v6  ;;  %v11153_v6 = vld [vmem:[%s14538_s5 + $0x40] sm:$0xff]  ;;  %v11159_v63 = vld [vmem:[%s14538_s5 + $0x50] sm:$0xff] }
 0xc01   :  { %15369 = vst [vmem:[#allocation32_spill] sm:$0xff] %v11153_v6  ;;  %15370 = vst [vmem:[#allocation30_spill] sm:$0xff] %v11159_v63 }
 0xc02   :  { %15357 = vst [vmem:[#allocation13_spill] sm:$0xff] %v10904_v8  ;;  %3045 = vmatmul.mubr.f32.vlgmr.msra.gmra.mxu0 %v10904_v8  ;;  %3116 = vmatmul.mubr.f32.vlgmr.msra.gmra.mxu1 %v10904_v8  ;;  %v11165_v8 = vld [vmem:[%s14538_s5 + $0x28] sm:$0xff] }
 0xc03   :  { %3156 = vmatpush1.msra.mxu0 %v10749_v4  ;;  %3227 = vmatpush1.msra.mxu1 %v10755_v55  ;;  %15371 = vst [vmem:[#allocation47_spill] sm:$0xff] %v11165_v8 }
 0xc04   :  { %3157 = vmatprep.subr.mxu0 %v10761_v57  ;;  %3228 = vmatprep.subr.mxu1 %v10767_v7 }
 0xc05   :  { %3158 = vmatpush1.msra.mxu0 %v10773_v12  ;;  %3229 = vmatpush1.msra.mxu1 %v10779_v54 }
 0xc06   :  { %3159 = vmatprep.subr.mxu0 %v10785_v2  ;;  %3230 = vmatprep.subr.mxu1 %v10791_v49 }
 0xc07   :  { %3160 = vmatpush1.msra.mxu0 %v10797_v10  ;;  %3231 = vmatpush1.msra.mxu1 %v10803_v48 }
 0xc08   :  { %3161 = vmatprep.subr.mxu0 %v10809_v13  ;;  %3232 = vmatprep.subr.mxu1 %v10815_v16 }
 0xc09   :  { %3162 = vmatpush1.msra.mxu0 %v10821_v53  ;;  %3233 = vmatpush1.msra.mxu1 %v10827_v18 }
 0xc0a   :  { %3163 = vmatprep.subr.mxu0 %v10925_v21  ;;  %3234 = vmatprep.subr.mxu1 %v10931_v1 }
 0xc0b   :  { %3164 = vmatpush1.msra.mxu0 %v10937_v62  ;;  %3235 = vmatpush1.msra.mxu1 %v10943_v19 }
 0xc0c   :  { %3165 = vmatprep.subr.mxu0 %v10949_v22  ;;  %3236 = vmatprep.subr.mxu1 %v10955_v23 }
 0xc0d   :  { %3166 = vmatpush1.msra.mxu0 %v10961_v24  ;;  %3237 = vmatpush1.msra.mxu1 %v10967_v47 }
 0xc0e   :  { %3167 = vmatprep.subr.mxu0 %v10973_v33  ;;  %3238 = vmatprep.subr.mxu1 %v10979_v34 }
 0xc0f   :  { %3168 = vmatpush1.msra.mxu0 %v10985_v35  ;;  %3239 = vmatpush1.msra.mxu1 %v10991_v36 }
 0xc10   :  { %3169 = vmatprep.subr.mxu0 %v10997_v37  ;;  %3240 = vmatprep.subr.mxu1 %v11003_v39 }
 0xc11   :  { %3170 = vmatpush1.msra.mxu0 %v11009_v40  ;;  %3241 = vmatpush1.msra.mxu1 %v11015_v41 }
 0xc12   :  { %3171 = vmatprep.subr.mxu0 %v11021_v42  ;;  %3242 = vmatprep.subr.mxu1 %v11027_v43 }
 0xc13   :  { %3172 = vmatpush1.msra.mxu0 %v11033_v44  ;;  %3243 = vmatpush1.msra.mxu1 %v11039_v45 }
 0xc14   :  { %3173 = vmatprep.subr.mxu0 %v11045_v46  ;;  %3244 = vmatprep.subr.mxu1 %v11051_v5 }
 0xc15   :  { %3174 = vmatpush1.msra.mxu0 %v11057_v15  ;;  %3245 = vmatpush1.msra.mxu1 %v11063_v50 }
 0xc16   :  { %3175 = vmatprep.subr.mxu0 %v11069_v14  ;;  %3246 = vmatprep.subr.mxu1 %v11075_v56 }
 0xc17   :  { %3176 = vmatpush1.msra.mxu0 %v11081_v11  ;;  %3247 = vmatpush1.msra.mxu1 %v11087_v60 }
 0xc18   :  { %3177 = vmatprep.subr.mxu0 %v11093_v20  ;;  %3248 = vmatprep.subr.mxu1 %v11099_v52  ;;  %v15382_v52 = vld [vmem:[#allocation25_spill] sm:$0xff] }
 0xc19   :  { %3178 = vmatpush1.msra.mxu0 %v11105_v3  ;;  %3249 = vmatpush1.msra.mxu1 %v11111_v61 }
 0xc1a   :  { %3179 = vmatprep.subr.mxu0 %v11117_v38  ;;  %3250 = vmatprep.subr.mxu1 %v11123_v0 }
 0xc1b   :  { %3180 = vmatpush1.msra.mxu0 %v11129_v59  ;;  %3251 = vmatpush1.msra.mxu1 %v11135_v58 }
 0xc1c   :  { %3181 = vmatprep.subr.mxu0 %v11141_v51  ;;  %3252 = vmatprep.subr.mxu1 %v11147_v29 }
 0xc1d   :  { %3182 = vmatpush1.msra.mxu0 %v11153_v6  ;;  %3253 = vmatpush1.msra.mxu1 %v11159_v63  ;;  %v11177_v6 = vld [vmem:[%s14538_s5 + $0x20] sm:$0xff]  ;;  %v11183_v63 = vld [vmem:[%s14538_s5 + $0x30] sm:$0xff] }
 0xc1e   :  { %3183 = vmatprep.subr.mxu0 %v11165_v8  ;;  %3254 = vmatprep.subr.mxu1 %v11171_v17  ;;  %15373 = vst [vmem:[#allocation36_spill] sm:$0xff] %v11177_v6  ;;  %15374 = vst [vmem:[#allocation16_spill] sm:$0xff] %v11183_v63  ;;  %v11189_v8 = vld [vmem:[%s14538_s5 + $0x8] sm:$0xff]  ;;  %v11195_v17 = vld [vmem:[%s14538_s5 + $0x18] sm:$0xff] }
 0xc1f   :  { %3184 = vmatpush1.msra.mxu0 %v11177_v6  ;;  %3255 = vmatpush1.msra.mxu1 %v11183_v63  ;;  %15375 = vst [vmem:[#allocation18_spill] sm:$0xff] %v11189_v8  ;;  %15376 = vst [vmem:[#allocation19_spill] sm:$0xff] %v11195_v17  ;;  %v11201_v6 = vld [vmem:[%s14538_s5] sm:$0xff] }
 0xc20   :  { %3185 = vmatprep.subr.mxu0 %v11189_v8  ;;  %3256 = vmatprep.subr.mxu1 %v11195_v17  ;;  %15377 = vst [vmem:[#allocation17_spill] sm:$0xff] %v11201_v6  ;;  %v11208_v8 = vld [vmem:[%s14538_s5 + $0x10] sm:$0xff]  ;;  %v15379_v17 = vld [vmem:[#allocation24_spill] sm:$0xff] }
 0xc21   :  { %3186 = vmatpush1.msra.mxu0 %v11201_v6  ;;  %3219 = vmatprep.mubr.f32.mxu0 %v15348_v25  ;;  %15378 = vst [vmem:[#allocation45_spill] sm:$0xff] %v11208_v8  ;;  %v2045_v63 = vadd.f32 %v15379_v17, %v15352_v32  ;;  %v15380_v6 = vld [vmem:[#allocation4_spill] sm:$0xff]  ;;  %v2158_v17 = vadd.f32 %v15382_v52, %v10572_v28  ;;  %v15386_v52 = vld [vmem:[#allocation39_spill] sm:$0xff] }
 0xc22   :  { %3257 = vmatpush1.msra.mxu1 %v11208_v8  ;;  %3290 = vmatprep.mubr.f32.mxu1 %v15348_v25  ;;  %v2047_v51 = vadd.f32 %v15380_v6, %v10557_v26 }
 0xc23   :  { %3330 = vmatprep.subr.mxu0 %v10883_v27  ;;  %3401 = vmatprep.subr.mxu1 %v10889_v31  ;;  %v15381_v27 = vld [vmem:[#allocation5_spill] sm:$0xff] }
 0xc24   :  { %v2160_v3 = vadd.f32 %v15381_v27, %v15308_v30 }
 0xcc2   :  { %v3046_v29 = vpop.f32.mrf.mxu0  ;;  %v3117_v61 = vpop.f32.mrf.mxu1 }
 0xcc3   :  { %v3122_v58 = vadd.f32 %v3046_v29, %v2045_v63  ;;  %v3124_v32 = vadd.f32 %v3117_v61, %v2158_v17  ;;  %v15387_v61 = vld [vmem:[#allocation37_spill] sm:$0xff]  ;;  %v15388_v63 = vld [vmem:[#allocation40_spill] sm:$0xff]  ;;  %v15389_v17 = vld [vmem:[#allocation38_spill] sm:$0xff] }
 0xcc4   :  { %v3048_v59 = vpop.f32.mrf.mxu0  ;;  %v3119_v25 = vpop.f32.mrf.mxu1 }
 0xcc5   :  { %v7342_v0 = vmul.f32 -1.442695, %v3122_v58  ;;  %v3123_v38 = vadd.f32 %v3048_v59, %v2047_v51  ;;  %v3125_v31 = vadd.f32 %v3119_v25, %v2160_v3 }
 0xcc7   :  { %7595 = vpow2.f32 %v7342_v0  ;;  %v7343_v8 = vmul.f32 -1.442695, %v3123_v38  ;;  %v7344_v20 = vmul.f32 -1.442695, %v3125_v31 }
 0xcc9   :  { %7597 = vpow2.f32 %v7343_v8 }
 0xcca   :  { %7599 = vtanh.f32 %v3124_v32 }
 0xccb   :  { %7601 = vpow2.f32 %v7344_v20  ;;  %v15385_v20 = vld [vmem:[#allocation26_spill] sm:$0xff] }
 0xcd4   :  { %v7596_v60 = vpop.eup %7595 }
 0xcd5   :  { %v3129_v6 = vadd.f32 1.0, %v7596_v60 }
 0xcd6   :  { %v7598_v29 = vpop.eup %7597 }
 0xcd7   :  { %7603 = vrcp.f32 %v3129_v6  ;;  %v3135_v0 = vadd.f32 1.0, %v7598_v29  ;;  %v7600_v38 = vpop.eup %7599  ;;  %v15390_v6 = vld [vmem:[#allocation29_spill] sm:$0xff]  ;;  %v15391_v29 = vld [vmem:[#allocation43_spill] sm:$0xff] }
 0xcd8   :  { %v7602_v8 = vpop.eup %7601 }
 0xcd9   :  { %7605 = vrcp.f32 %v3135_v0  ;;  %v3142_v27 = vadd.f32 1.0, %v7602_v8  ;;  %v15392_v0 = vld [vmem:[#allocation41_spill] sm:$0xff]  ;;  %v15394_v8 = vld [vmem:[#allocation42_spill] sm:$0xff] }
 0xcdb   :  { %7607 = vrcp.f32 %v3142_v27  ;;  %v15398_v27 = vld [vmem:[#allocation33_spill] sm:$0xff] }
 0xce4   :  { %v7604_v59 = vpop.eup %7603 }
 0xce5   :  { %v3146_v58 = vmul.f32 %v7604_v59, %v7600_v38  ;;  %v15393_v38 = vld [vmem:[#allocation44_spill] sm:$0xff] }
 0xce6   :  { %v7606_v51 = vpop.eup %7605  ;;  %v15395_v59 = vld [vmem:[#allocation32_spill] sm:$0xff] }
 0xce7   :  { %v3145_v25 = vmul.f32 %v7606_v51, %v10901_v9  ;;  %v15384_v9 = vld [vmem:[#allocation34_spill] sm:$0xff]  ;;  %v15397_v51 = vld [vmem:[#allocation47_spill] sm:$0xff] }
 0xce8   :  { %v7608_v31 = vpop.eup %7607 }
 0xce9   :  { %v11223_v3 = vadd.f32 %v3146_v58, %v3145_v25  ;;  %v15396_v58 = vld [vmem:[#allocation30_spill] sm:$0xff]  ;;  %v15399_v25 = vld [vmem:[#allocation36_spill] sm:$0xff] }
 0xceb   :  { %7609 = vtanh.f32 %v11223_v3 }
 0xcf8   :  { %v7610_v32 = vpop.eup %7609 }
 0xcf9   :  { %v11226_v60 = vmul.f32 %v7610_v32, %v7608_v31  ;;  %v15400_v31 = vld [vmem:[#allocation16_spill] sm:$0xff]  ;;  %v15401_v32 = vld [vmem:[#allocation18_spill] sm:$0xff] }
 0xcfb   :  { %15383 = vst [vmem:[#allocation48_spill] sm:$0xff] %v11226_v60  ;;  %3220 = vmatmul.mubr.f32.vlgmr.msra.gmra.mxu0 %v11226_v60  ;;  %3291 = vmatmul.mubr.f32.vlgmr.msra.gmra.mxu1 %v11226_v60  ;;  %v15402_v60 = vld [vmem:[#allocation19_spill] sm:$0xff] }
 0xcfc   :  { %3331 = vmatpush1.msra.mxu0 %v10749_v4  ;;  %3402 = vmatpush1.msra.mxu1 %v10755_v55 }
 0xcfd   :  { %3332 = vmatprep.subr.mxu0 %v10761_v57  ;;  %3403 = vmatprep.subr.mxu1 %v10767_v7 }
 0xcfe   :  { %3333 = vmatpush1.msra.mxu0 %v10773_v12  ;;  %3404 = vmatpush1.msra.mxu1 %v10779_v54 }
 0xcff   :  { %3334 = vmatprep.subr.mxu0 %v10785_v2  ;;  %3405 = vmatprep.subr.mxu1 %v10791_v49 }
 0xd00   :  { %3335 = vmatpush1.msra.mxu0 %v10797_v10  ;;  %3406 = vmatpush1.msra.mxu1 %v10803_v48 }
 0xd01   :  { %3336 = vmatprep.subr.mxu0 %v10809_v13  ;;  %3407 = vmatprep.subr.mxu1 %v10815_v16 }
 0xd02   :  { %3337 = vmatpush1.msra.mxu0 %v10821_v53  ;;  %3408 = vmatpush1.msra.mxu1 %v10827_v18 }
 0xd03   :  { %3338 = vmatprep.subr.mxu0 %v10925_v21  ;;  %3409 = vmatprep.subr.mxu1 %v10931_v1 }
 0xd04   :  { %3339 = vmatpush1.msra.mxu0 %v10937_v62  ;;  %3410 = vmatpush1.msra.mxu1 %v10943_v19 }
 0xd05   :  { %3340 = vmatprep.subr.mxu0 %v10949_v22  ;;  %3411 = vmatprep.subr.mxu1 %v10955_v23 }
 0xd06   :  { %3341 = vmatpush1.msra.mxu0 %v10961_v24  ;;  %3412 = vmatpush1.msra.mxu1 %v10967_v47 }
 0xd07   :  { %3342 = vmatprep.subr.mxu0 %v10973_v33  ;;  %3413 = vmatprep.subr.mxu1 %v10979_v34 }
 0xd08   :  { %3343 = vmatpush1.msra.mxu0 %v10985_v35  ;;  %3414 = vmatpush1.msra.mxu1 %v10991_v36 }
 0xd09   :  { %3344 = vmatprep.subr.mxu0 %v10997_v37  ;;  %3415 = vmatprep.subr.mxu1 %v11003_v39 }
 0xd0a   :  { %3345 = vmatpush1.msra.mxu0 %v11009_v40  ;;  %3416 = vmatpush1.msra.mxu1 %v11015_v41 }
 0xd0b   :  { %3346 = vmatprep.subr.mxu0 %v11021_v42  ;;  %3417 = vmatprep.subr.mxu1 %v11027_v43 }
 0xd0c   :  { %3347 = vmatpush1.msra.mxu0 %v11033_v44  ;;  %3418 = vmatpush1.msra.mxu1 %v11039_v45 }
 0xd0d   :  { %3348 = vmatprep.subr.mxu0 %v11045_v46  ;;  %3419 = vmatprep.subr.mxu1 %v11051_v5 }
 0xd0e   :  { %3349 = vmatpush1.msra.mxu0 %v11057_v15  ;;  %3420 = vmatpush1.msra.mxu1 %v11063_v50 }
 0xd0f   :  { %3350 = vmatprep.subr.mxu0 %v11069_v14  ;;  %3421 = vmatprep.subr.mxu1 %v11075_v56 }
 0xd10   :  { %3351 = vmatpush1.msra.mxu0 %v11081_v11  ;;  %3422 = vmatpush1.msra.mxu1 %v15384_v9 }
 0xd11   :  { %3352 = vmatprep.subr.mxu0 %v15385_v20  ;;  %3423 = vmatprep.subr.mxu1 %v15386_v52  ;;  %v15412_v52 = vld [vmem:[#allocation49_spill] sm:$0xff] }
 0xd12   :  { %3353 = vmatpush1.msra.mxu0 %v15387_v61  ;;  %3424 = vmatpush1.msra.mxu1 %v15388_v63 }
 0xd13   :  { %3354 = vmatprep.subr.mxu0 %v15389_v17  ;;  %3425 = vmatprep.subr.mxu1 %v15390_v6 }
 0xd14   :  { %3355 = vmatpush1.msra.mxu0 %v15391_v29  ;;  %3426 = vmatpush1.msra.mxu1 %v15392_v0  ;;  %v15403_v0 = vld [vmem:[#allocation17_spill] sm:$0xff] }
 0xd15   :  { %3356 = vmatprep.subr.mxu0 %v15393_v38  ;;  %3427 = vmatprep.subr.mxu1 %v15394_v8  ;;  %v15404_v38 = vmov 0.0   ;;  %v15405_v8 = vld [vmem:[#allocation45_spill] sm:$0xff] }
 0xd16   :  { %3357 = vmatpush1.msra.mxu0 %v15395_v59  ;;  %3428 = vmatpush1.msra.mxu1 %v15396_v58  ;;  %v15406_v58 = vld [vmem:[#allocation60_spill] sm:$0xff] }
 0xd17   :  { %3358 = vmatprep.subr.mxu0 %v15397_v51  ;;  %3429 = vmatprep.subr.mxu1 %v15398_v27  ;;  %v15407_v51 = vld [vmem:[#allocation15_spill] sm:$0xff] }
 0xd18   :  { %3359 = vmatpush1.msra.mxu0 %v15399_v25  ;;  %3430 = vmatpush1.msra.mxu1 %v15400_v31  ;;  %v15408_v27 = vld [vmem:[#allocation7_spill] sm:$0xff] }
 0xd19   :  { %3360 = vmatprep.subr.mxu0 %v15401_v32  ;;  %3431 = vmatprep.subr.mxu1 %v15402_v60  ;;  %v15409_v25 = vld [vmem:[#allocation51_spill] sm:$0xff]  ;;  %v15410_v32 = vld [vmem:[#allocation52_spill] sm:$0xff] }
 0xd1a   :  { %3361 = vmatpush1.msra.mxu0 %v15403_v0  ;;  %3394 = vmatprep.mubr.f32.mxu0 %v15404_v38  ;;  %v2051_v59 = vadd.f32 %v15409_v25, %v15408_v27  ;;  %v2053_v29 = vadd.f32 %v15410_v32, %v10557_v26  ;;  %v2164_v25 = vadd.f32 %v15412_v52, %v10572_v28 }
 0xd1b   :  { %3432 = vmatpush1.msra.mxu1 %v15405_v8  ;;  %3465 = vmatprep.mubr.f32.mxu1 %v15404_v38 }
 0xd1c   :  { %3505 = vmatprep.subr.mxu0 %v15406_v58  ;;  %3576 = vmatprep.subr.mxu1 %v15407_v51  ;;  %v15411_v58 = vld [vmem:[#allocation50_spill] sm:$0xff] }
 0xd1d   :  { %v2166_v61 = vadd.f32 %v15411_v58, %v15308_v30 }
 0xdbb   :  { %v3221_v31 = vpop.f32.mrf.mxu0  ;;  %v3292_v63 = vpop.f32.mrf.mxu1 }
 0xdbc   :  { %v3297_v60 = vadd.f32 %v3221_v31, %v2051_v59  ;;  %v3299_v27 = vadd.f32 %v3292_v63, %v2164_v25 }
 0xdbd   :  { %v3223_v6 = vpop.f32.mrf.mxu0  ;;  %v3294_v38 = vpop.f32.mrf.mxu1 }
 0xdbe   :  { %v7345_v0 = vmul.f32 -1.442695, %v3297_v60  ;;  %v3298_v17 = vadd.f32 %v3223_v6, %v2053_v29  ;;  %v3300_v51 = vadd.f32 %v3294_v38, %v2166_v61 }
 0xdc0   :  { %7611 = vpow2.f32 %v7345_v0  ;;  %v7346_v8 = vmul.f32 -1.442695, %v3298_v17  ;;  %v7347_v20 = vmul.f32 -1.442695, %v3300_v51 }
 0xdc2   :  { %7613 = vpow2.f32 %v7346_v8 }
 0xdc3   :  { %7615 = vtanh.f32 %v3299_v27 }
 0xdc4   :  { %7617 = vpow2.f32 %v7347_v20 }
 0xdcd   :  { %v7612_v9 = vpop.eup %7611 }
 0xdce   :  { %v3304_v32 = vadd.f32 1.0, %v7612_v9 }
 0xdcf   :  { %v7614_v59 = vpop.eup %7613 }
 0xdd0   :  { %7619 = vrcp.f32 %v3304_v32  ;;  %v3310_v60 = vadd.f32 1.0, %v7614_v59  ;;  %v7616_v17 = vpop.eup %7615 }
 0xdd1   :  { %v7618_v6 = vpop.eup %7617 }
 0xdd2   :  { %7621 = vrcp.f32 %v3310_v60  ;;  %v3317_v31 = vadd.f32 1.0, %v7618_v6 }
 0xdd4   :  { %7623 = vrcp.f32 %v3317_v31 }
 0xddd   :  { %v7620_v29 = vpop.eup %7619 }
 0xdde   :  { %v3321_v0 = vmul.f32 %v7620_v29, %v7616_v17 }
 0xddf   :  { %v7622_v8 = vpop.eup %7621 }
 0xde0   :  { %v3320_v61 = vmul.f32 %v7622_v8, %v11223_v3 }
 0xde1   :  { %v7624_v9 = vpop.eup %7623 }
 0xde2   :  { %v11305_v38 = vadd.f32 %v3321_v0, %v3320_v61 }
 0xde4   :  { %7625 = vtanh.f32 %v11305_v38 }
 0xdf1   :  { %v7626_v52 = vpop.eup %7625 }
 0xdf2   :  { %v11308_v63 = vmul.f32 %v7626_v52, %v7624_v9 }
 0xdf4   :  { %3395 = vmatmul.mubr.f32.vlgmr.msra.gmra.mxu0 %v11308_v63  ;;  %3466 = vmatmul.mubr.f32.vlgmr.msra.gmra.mxu1 %v11308_v63 }
 0xdf5   :  { %3506 = vmatpush1.msra.mxu0 %v10749_v4  ;;  %3577 = vmatpush1.msra.mxu1 %v10755_v55  ;;  %v15413_v4 = vld [vmem:[#allocation34_spill] sm:$0xff] }
 0xdf6   :  { %3507 = vmatprep.subr.mxu0 %v10761_v57  ;;  %3578 = vmatprep.subr.mxu1 %v10767_v7  ;;  %v15414_v55 = vld [vmem:[#allocation26_spill] sm:$0xff]  ;;  %v15415_v57 = vld [vmem:[#allocation39_spill] sm:$0xff]  ;;  %v15416_v7 = vld [vmem:[#allocation37_spill] sm:$0xff] }
 0xdf7   :  { %3508 = vmatpush1.msra.mxu0 %v10773_v12  ;;  %3579 = vmatpush1.msra.mxu1 %v10779_v54  ;;  %v15417_v12 = vld [vmem:[#allocation40_spill] sm:$0xff]  ;;  %v15418_v54 = vld [vmem:[#allocation38_spill] sm:$0xff] }
 0xdf8   :  { %3509 = vmatprep.subr.mxu0 %v10785_v2  ;;  %3580 = vmatprep.subr.mxu1 %v10791_v49  ;;  %v15419_v2 = vld [vmem:[#allocation29_spill] sm:$0xff]  ;;  %v15420_v49 = vld [vmem:[#allocation43_spill] sm:$0xff] }
 0xdf9   :  { %3510 = vmatpush1.msra.mxu0 %v10797_v10  ;;  %3581 = vmatpush1.msra.mxu1 %v10803_v48  ;;  %v15421_v10 = vld [vmem:[#allocation41_spill] sm:$0xff]  ;;  %v15422_v48 = vld [vmem:[#allocation44_spill] sm:$0xff] }
 0xdfa   :  { %3511 = vmatprep.subr.mxu0 %v10809_v13  ;;  %3582 = vmatprep.subr.mxu1 %v10815_v16  ;;  %v15423_v13 = vld [vmem:[#allocation42_spill] sm:$0xff]  ;;  %v15424_v16 = vld [vmem:[#allocation32_spill] sm:$0xff] }
 0xdfb   :  { %3512 = vmatpush1.msra.mxu0 %v10821_v53  ;;  %3583 = vmatpush1.msra.mxu1 %v10827_v18  ;;  %v15425_v53 = vld [vmem:[#allocation30_spill] sm:$0xff]  ;;  %v15426_v18 = vld [vmem:[#allocation47_spill] sm:$0xff] }
 0xdfc   :  { %3513 = vmatprep.subr.mxu0 %v10925_v21  ;;  %3584 = vmatprep.subr.mxu1 %v10931_v1  ;;  %v15427_v21 = vld [vmem:[#allocation33_spill] sm:$0xff]  ;;  %v15428_v1 = vld [vmem:[#allocation36_spill] sm:$0xff] }
 0xdfd   :  { %3514 = vmatpush1.msra.mxu0 %v10937_v62  ;;  %3585 = vmatpush1.msra.mxu1 %v10943_v19  ;;  %v15429_v62 = vld [vmem:[#allocation16_spill] sm:$0xff]  ;;  %v15430_v19 = vld [vmem:[#allocation18_spill] sm:$0xff] }
 0xdfe   :  { %3515 = vmatprep.subr.mxu0 %v10949_v22  ;;  %3586 = vmatprep.subr.mxu1 %v10955_v23  ;;  %v15431_v22 = vld [vmem:[#allocation19_spill] sm:$0xff]  ;;  %v15432_v23 = vld [vmem:[#allocation17_spill] sm:$0xff] }
 0xdff   :  { %3516 = vmatpush1.msra.mxu0 %v10961_v24  ;;  %3587 = vmatpush1.msra.mxu1 %v10967_v47  ;;  %v15433_v24 = vld [vmem:[#allocation45_spill] sm:$0xff]  ;;  %v15434_v47 = vmov 0.0  }
 0xe00   :  { %3517 = vmatprep.subr.mxu0 %v10973_v33  ;;  %3588 = vmatprep.subr.mxu1 %v10979_v34  ;;  %v3745_v33 = vld [vmem:[%s14540_s7 + $0x1e8] sm:$0xff]  ;;  %v3747_v34 = vld [vmem:[%s14540_s7 + $0x1f8] sm:$0xff] }
 0xe01   :  { %3518 = vmatpush1.msra.mxu0 %v10985_v35  ;;  %3589 = vmatpush1.msra.mxu1 %v10991_v36  ;;  %v15435_v35 = vld [vmem:[#allocation7_spill] sm:$0xff] }
 0xe02   :  { %3519 = vmatprep.subr.mxu0 %v10997_v37  ;;  %3590 = vmatprep.subr.mxu1 %v11003_v39  ;;  %v15436_v36 = vld [vmem:[#allocation59_spill] sm:$0xff] }
 0xe03   :  { %3520 = vmatpush1.msra.mxu0 %v11009_v40  ;;  %3591 = vmatpush1.msra.mxu1 %v11015_v41  ;;  %v2057_v37 = vadd.f32 %v15436_v36, %v15435_v35  ;;  %v15437_v40 = vld [vmem:[#allocation31_spill] sm:$0xff]  ;;  %v3720_v36 = vld [vmem:[%s14540_s7 + $0x120] sm:$0xff] }
 0xe04   :  { %3521 = vmatprep.subr.mxu0 %v11021_v42  ;;  %3592 = vmatprep.subr.mxu1 %v11027_v43  ;;  %v2059_v41 = vadd.f32 %v15437_v40, %v10557_v26  ;;  %v3719_v40 = vld [vmem:[%s14540_s7 + $0x118] sm:$0xff] }
 0xe05   :  { %3522 = vmatpush1.msra.mxu0 %v11033_v44  ;;  %3593 = vmatpush1.msra.mxu1 %v11039_v45 }
 0xe06   :  { %3523 = vmatprep.subr.mxu0 %v11045_v46  ;;  %3594 = vmatprep.subr.mxu1 %v11051_v5 }
 0xe07   :  { %3524 = vmatpush1.msra.mxu0 %v11057_v15  ;;  %3595 = vmatpush1.msra.mxu1 %v11063_v50  ;;  %v15438_v50 = vld [vmem:[#allocation35_spill] sm:$0xff] }
 0xe08   :  { %3525 = vmatprep.subr.mxu0 %v11069_v14  ;;  %3596 = vmatprep.subr.mxu1 %v11075_v56  ;;  %v2172_v14 = vadd.f32 %v15438_v50, %v15308_v30  ;;  %v3708_v50 = vld [vmem:[%s14540_s7 + $0xc0] sm:$0xff] }
 0xe09   :  { %3526 = vmatpush1.msra.mxu0 %v11081_v11  ;;  %3597 = vmatpush1.msra.mxu1 %v15413_v4  ;;  %v15439_v11 = vld [vmem:[#allocation6_spill] sm:$0xff]  ;;  %v3744_v4 = vld [vmem:[%s14540_s7 + $0x1e0] sm:$0xff] }
 0xe0a   :  { %3527 = vmatprep.subr.mxu0 %v15414_v55  ;;  %3598 = vmatprep.subr.mxu1 %v15415_v57  ;;  %v2170_v3 = vadd.f32 %v15439_v11, %v10572_v28  ;;  %v3746_v55 = vld [vmem:[%s14540_s7 + $0x1f0] sm:$0xff]  ;;  %v3743_v57 = vld [vmem:[%s14540_s7 + $0x1d8] sm:$0xff] }
 0xe0b   :  { %3528 = vmatpush1.msra.mxu0 %v15416_v7  ;;  %3599 = vmatpush1.msra.mxu1 %v15417_v12  ;;  %v3740_v7 = vld [vmem:[%s14540_s7 + $0x1c0] sm:$0xff]  ;;  %v3742_v12 = vld [vmem:[%s14540_s7 + $0x1d0] sm:$0xff]  ;;  %v3707_v11 = vld [vmem:[%s14540_s7 + $0xb8] sm:$0xff] }
 0xe0c   :  { %3529 = vmatprep.subr.mxu0 %v15418_v54  ;;  %3600 = vmatprep.subr.mxu1 %v15419_v2  ;;  %v3737_v54 = vld [vmem:[%s14540_s7 + $0x1a8] sm:$0xff]  ;;  %v3739_v2 = vld [vmem:[%s14540_s7 + $0x1b8] sm:$0xff] }
 0xe0d   :  { %3530 = vmatpush1.msra.mxu0 %v15420_v49  ;;  %3601 = vmatpush1.msra.mxu1 %v15421_v10  ;;  %v3736_v49 = vld [vmem:[%s14540_s7 + $0x1a0] sm:$0xff]  ;;  %v3738_v10 = vld [vmem:[%s14540_s7 + $0x1b0] sm:$0xff] }
 0xe0e   :  { %3531 = vmatprep.subr.mxu0 %v15422_v48  ;;  %3602 = vmatprep.subr.mxu1 %v15423_v13  ;;  %v3733_v48 = vld [vmem:[%s14540_s7 + $0x188] sm:$0xff]  ;;  %v3735_v13 = vld [vmem:[%s14540_s7 + $0x198] sm:$0xff] }
 0xe0f   :  { %3532 = vmatpush1.msra.mxu0 %v15424_v16  ;;  %3603 = vmatpush1.msra.mxu1 %v15425_v53  ;;  %v3732_v16 = vld [vmem:[%s14540_s7 + $0x180] sm:$0xff]  ;;  %v3734_v53 = vld [vmem:[%s14540_s7 + $0x190] sm:$0xff] }
 0xe10   :  { %3533 = vmatprep.subr.mxu0 %v15426_v18  ;;  %3604 = vmatprep.subr.mxu1 %v15427_v21  ;;  %v3729_v18 = vld [vmem:[%s14540_s7 + $0x168] sm:$0xff]  ;;  %v3731_v21 = vld [vmem:[%s14540_s7 + $0x178] sm:$0xff] }
 0xe11   :  { %3534 = vmatpush1.msra.mxu0 %v15428_v1  ;;  %3605 = vmatpush1.msra.mxu1 %v15429_v62  ;;  %v3728_v1 = vld [vmem:[%s14540_s7 + $0x160] sm:$0xff]  ;;  %v3730_v62 = vld [vmem:[%s14540_s7 + $0x170] sm:$0xff] }
 0xe12   :  { %3535 = vmatprep.subr.mxu0 %v15430_v19  ;;  %3606 = vmatprep.subr.mxu1 %v15431_v22  ;;  %v3725_v19 = vld [vmem:[%s14540_s7 + $0x148] sm:$0xff]  ;;  %v3727_v22 = vld [vmem:[%s14540_s7 + $0x158] sm:$0xff] }
 0xe13   :  { %3536 = vmatpush1.msra.mxu0 %v15432_v23  ;;  %3607 = vmatpush1.msra.mxu1 %v15433_v24  ;;  %v3724_v23 = vld [vmem:[%s14540_s7 + $0x140] sm:$0xff]  ;;  %v3726_v24 = vld [vmem:[%s14540_s7 + $0x150] sm:$0xff] }
 0xe14   :  { %3569 = vmatprep.mubr.f32.mxu0 %v15434_v47  ;;  %3640 = vmatprep.mubr.f32.mxu1 %v15434_v47 }
 0xe15   :  { %3770 = vmatprep.subr.mxu0 %v3745_v33  ;;  %3883 = vmatprep.subr.mxu1 %v3747_v34  ;;  %v3721_v33 = vld [vmem:[%s14540_s7 + $0x128] sm:$0xff]  ;;  %v3723_v34 = vld [vmem:[%s14540_s7 + $0x138] sm:$0xff] }
 0xeb4   :  { %v3396_v39 = vpop.f32.mrf.mxu0  ;;  %v3467_v46 = vpop.f32.mrf.mxu1 }
 0xeb5   :  { %v3472_v42 = vadd.f32 %v3396_v39, %v2057_v37  ;;  %v3474_v20 = vadd.f32 %v3467_v46, %v2170_v3  ;;  %v3722_v37 = vld [vmem:[%s14540_s7 + $0x130] sm:$0xff]  ;;  %v3717_v39 = vld [vmem:[%s14540_s7 + $0x108] sm:$0xff]  ;;  %v3704_v3 = vld [vmem:[%s14540_s7 + $0xa0] sm:$0xff] }
 0xeb6   :  { %v3398_v43 = vpop.f32.mrf.mxu0  ;;  %v3469_v15 = vpop.f32.mrf.mxu1  ;;  %v3714_v46 = vld [vmem:[%s14540_s7 + $0xf0] sm:$0xff] }
 0xeb7   :  { %v7348_v44 = vmul.f32 -1.442695, %v3472_v42  ;;  %v3473_v45 = vadd.f32 %v3398_v43, %v2059_v41  ;;  %v3475_v56 = vadd.f32 %v3469_v15, %v2172_v14  ;;  %v3716_v41 = vld [vmem:[%s14540_s7 + $0x100] sm:$0xff]  ;;  %v3718_v42 = vld [vmem:[%s14540_s7 + $0x110] sm:$0xff]  ;;  %v3713_v43 = vld [vmem:[%s14540_s7 + $0xe8] sm:$0xff] }
 0xeb8   :  { %v3711_v15 = vld [vmem:[%s14540_s7 + $0xd8] sm:$0xff]  ;;  %v3710_v14 = vld [vmem:[%s14540_s7 + $0xd0] sm:$0xff] }
 0xeb9   :  { %7627 = vpow2.f32 %v7348_v44  ;;  %v7349_v5 = vmul.f32 -1.442695, %v3473_v45  ;;  %v7350_v27 = vmul.f32 -1.442695, %v3475_v56  ;;  %v3715_v44 = vld [vmem:[%s14540_s7 + $0xf8] sm:$0xff]  ;;  %v3712_v45 = vld [vmem:[%s14540_s7 + $0xe0] sm:$0xff] }
 0xeba   :  { %v3705_v56 = vld [vmem:[%s14540_s7 + $0xa8] sm:$0xff] }
 0xebb   :  { %7629 = vpow2.f32 %v7349_v5  ;;  %v3709_v5 = vld [vmem:[%s14540_s7 + $0xc8] sm:$0xff] }
 0xebc   :  { %7631 = vtanh.f32 %v3474_v20  ;;  %v3706_v20 = vld [vmem:[%s14540_s7 + $0xb0] sm:$0xff] }
 0xebd   :  { %7633 = vpow2.f32 %v7350_v27  ;;  %v3701_v27 = vld [vmem:[%s14540_s7 + $0x88] sm:$0xff] }
 0xec6   :  { %v7628_v58 = vpop.eup %7627 }
 0xec7   :  { %v3479_v51 = vadd.f32 1.0, %v7628_v58  ;;  %v3703_v58 = vld [vmem:[%s14540_s7 + $0x98] sm:$0xff] }
 0xec8   :  { %v7630_v25 = vpop.eup %7629 }
 0xec9   :  { %7635 = vrcp.f32 %v3479_v51  ;;  %v3485_v32 = vadd.f32 1.0, %v7630_v25  ;;  %v7632_v59 = vpop.eup %7631  ;;  %v3700_v51 = vld [vmem:[%s14540_s7 + $0x80] sm:$0xff]  ;;  %v3702_v25 = vld [vmem:[%s14540_s7 + $0x90] sm:$0xff] }
 0xeca   :  { %v7634_v60 = vpop.eup %7633 }
 0xecb   :  { %7637 = vrcp.f32 %v3485_v32  ;;  %v3492_v0 = vadd.f32 1.0, %v7634_v60  ;;  %v3697_v32 = vld [vmem:[%s14540_s7 + $0x68] sm:$0xff]  ;;  %v3696_v60 = vld [vmem:[%s14540_s7 + $0x60] sm:$0xff] }
 0xecd   :  { %7639 = vrcp.f32 %v3492_v0  ;;  %v3692_v0 = vld [vmem:[%s14540_s7 + $0x40] sm:$0xff] }
 0xed6   :  { %v7636_v17 = vpop.eup %7635 }
 0xed7   :  { %v3496_v6 = vmul.f32 %v7636_v17, %v7632_v59  ;;  %v3699_v59 = vld [vmem:[%s14540_s7 + $0x78] sm:$0xff]  ;;  %v3698_v17 = vld [vmem:[%s14540_s7 + $0x70] sm:$0xff] }
 0xed8   :  { %v7638_v29 = vpop.eup %7637 }
 0xed9   :  { %v3495_v8 = vmul.f32 %v7638_v29, %v11305_v38  ;;  %v3741_v38 = vld [vmem:[%s14540_s7 + $0x1c8] sm:$0xff]  ;;  %v3695_v29 = vld [vmem:[%s14540_s7 + $0x58] sm:$0xff] }
 0xeda   :  { %v7640_v61 = vpop.eup %7639 }
 0xedb   :  { %v11391_v31 = vadd.f32 %v3496_v6, %v3495_v8  ;;  %v3693_v6 = vld [vmem:[%s14540_s7 + $0x48] sm:$0xff]  ;;  %v3694_v8 = vld [vmem:[%s14540_s7 + $0x50] sm:$0xff] }
 0xedd   :  { %7641 = vtanh.f32 %v11391_v31 }
 0xeea   :  { %v7642_v9 = vpop.eup %7641 }
 0xeeb   :  { %v11394_v52 = vmul.f32 %v7642_v9, %v7640_v61  ;;  %v3689_v61 = vld [vmem:[%s14540_s7 + $0x28] sm:$0xff]  ;;  %v3691_v9 = vld [vmem:[%s14540_s7 + $0x38] sm:$0xff] }
 0xeed   :  { %3570 = vmatmul.mubr.f32.vlgmr.msra.gmra.mxu0 %v11394_v52  ;;  %3641 = vmatmul.mubr.f32.vlgmr.msra.gmra.mxu1 %v11394_v52 }
 0xeee   :  { %3771 = vmatpush1.msra.mxu0 %v3744_v4  ;;  %3884 = vmatpush1.msra.mxu1 %v3746_v55  ;;  %v3688_v4 = vld [vmem:[%s14540_s7 + $0x20] sm:$0xff]  ;;  %v3690_v55 = vld [vmem:[%s14540_s7 + $0x30] sm:$0xff] }
 0xeef   :  { %3772 = vmatprep.subr.mxu0 %v3741_v38  ;;  %3885 = vmatprep.subr.mxu1 %v3743_v57  ;;  %v3685_v38 = vld [vmem:[%s14540_s7 + $0x8] sm:$0xff]  ;;  %v3687_v57 = vld [vmem:[%s14540_s7 + $0x18] sm:$0xff] }
 0xef0   :  { %3773 = vmatpush1.msra.mxu0 %v3740_v7  ;;  %3886 = vmatpush1.msra.mxu1 %v3742_v12  ;;  %v3684_v7 = vld [vmem:[%s14540_s7] sm:$0xff]  ;;  %v3686_v12 = vld [vmem:[%s14540_s7 + $0x10] sm:$0xff] }
 0xef1   :  { %3774 = vmatprep.subr.mxu0 %v3737_v54  ;;  %3887 = vmatprep.subr.mxu1 %v3739_v2  ;;  %v15440_v54 = vld [vmem:[#allocation61_spill] sm:$0xff]  ;;  %v15441_v2 = vld [vmem:[#allocation12_spill] sm:$0xff] }
 0xef2   :  { %3775 = vmatpush1.msra.mxu0 %v3736_v49  ;;  %3888 = vmatpush1.msra.mxu1 %v3738_v10  ;;  %v15442_v49 = vld [vmem:[#allocation14_spill] sm:$0xff]  ;;  %v15443_v10 = vld [vmem:[#allocation13_spill] sm:$0xff] }
 0xef3   :  { %3776 = vmatprep.subr.mxu0 %v3733_v48  ;;  %3889 = vmatprep.subr.mxu1 %v3735_v13  ;;  %v15444_v48 = vld [vmem:[#allocation48_spill] sm:$0xff]  ;;  %v11617_v13 = vld [vmem:[%s14541_s8 + $0x1e8] sm:$0xff] }
 0xef4   :  { %3777 = vmatpush1.msra.mxu0 %v3732_v16  ;;  %3890 = vmatpush1.msra.mxu1 %v3734_v53  ;;  %15445 = vst [vmem:[#allocation46_spill] sm:$0xff] %v11617_v13  ;;  %v11634_v16 = vld [vmem:[%s14541_s8 + $0x1f0] sm:$0xff]  ;;  %v11641_v53 = vld [vmem:[%s14541_s8 + $0x1c8] sm:$0xff] }
 0xef5   :  { %3778 = vmatprep.subr.mxu0 %v3729_v18  ;;  %3891 = vmatprep.subr.mxu1 %v3731_v21  ;;  %v11646_v18 = vld [vmem:[%s14541_s8 + $0x1d8] sm:$0xff]  ;;  %v11653_v21 = vld [vmem:[%s14541_s8 + $0x1c0] sm:$0xff] }
 0xef6   :  { %3779 = vmatpush1.msra.mxu0 %v3728_v1  ;;  %3892 = vmatpush1.msra.mxu1 %v3730_v62  ;;  %v11658_v1 = vld [vmem:[%s14541_s8 + $0x1d0] sm:$0xff]  ;;  %v11665_v62 = vld [vmem:[%s14541_s8 + $0x1a8] sm:$0xff] }
 0xef7   :  { %3780 = vmatprep.subr.mxu0 %v3725_v19  ;;  %3893 = vmatprep.subr.mxu1 %v3727_v22  ;;  %v11670_v19 = vld [vmem:[%s14541_s8 + $0x1b8] sm:$0xff]  ;;  %v11677_v22 = vld [vmem:[%s14541_s8 + $0x1a0] sm:$0xff] }
 0xef8   :  { %3781 = vmatpush1.msra.mxu0 %v3724_v23  ;;  %3894 = vmatpush1.msra.mxu1 %v3726_v24  ;;  %v11682_v23 = vld [vmem:[%s14541_s8 + $0x1b0] sm:$0xff]  ;;  %v11689_v24 = vld [vmem:[%s14541_s8 + $0x188] sm:$0xff] }
 0xef9   :  { %3782 = vmatprep.subr.mxu0 %v3721_v33  ;;  %3895 = vmatprep.subr.mxu1 %v3723_v34  ;;  %v11694_v33 = vld [vmem:[%s14541_s8 + $0x198] sm:$0xff]  ;;  %v11701_v34 = vld [vmem:[%s14541_s8 + $0x180] sm:$0xff] }
 0xefa   :  { %3783 = vmatpush1.msra.mxu0 %v3720_v36  ;;  %3896 = vmatpush1.msra.mxu1 %v3722_v37  ;;  %v11706_v36 = vld [vmem:[%s14541_s8 + $0x190] sm:$0xff]  ;;  %v11713_v37 = vld [vmem:[%s14541_s8 + $0x168] sm:$0xff] }
 0xefb   :  { %3784 = vmatprep.subr.mxu0 %v3717_v39  ;;  %3897 = vmatprep.subr.mxu1 %v3719_v40  ;;  %v11718_v39 = vld [vmem:[%s14541_s8 + $0x178] sm:$0xff]  ;;  %v11725_v40 = vld [vmem:[%s14541_s8 + $0x160] sm:$0xff] }
 0xefc   :  { %3785 = vmatpush1.msra.mxu0 %v3716_v41  ;;  %3898 = vmatpush1.msra.mxu1 %v3718_v42  ;;  %v11730_v41 = vld [vmem:[%s14541_s8 + $0x170] sm:$0xff]  ;;  %v11737_v42 = vld [vmem:[%s14541_s8 + $0x148] sm:$0xff] }
 0xefd   :  { %3786 = vmatprep.subr.mxu0 %v3713_v43  ;;  %3899 = vmatprep.subr.mxu1 %v3715_v44  ;;  %v11742_v43 = vld [vmem:[%s14541_s8 + $0x158] sm:$0xff]  ;;  %v11749_v44 = vld [vmem:[%s14541_s8 + $0x140] sm:$0xff] }
 0xefe   :  { %3787 = vmatpush1.msra.mxu0 %v3712_v45  ;;  %3900 = vmatpush1.msra.mxu1 %v3714_v46  ;;  %v11754_v45 = vld [vmem:[%s14541_s8 + $0x150] sm:$0xff]  ;;  %v11761_v46 = vld [vmem:[%s14541_s8 + $0x128] sm:$0xff] }
 0xeff   :  { %3788 = vmatprep.subr.mxu0 %v3709_v5  ;;  %3901 = vmatprep.subr.mxu1 %v3711_v15  ;;  %v11766_v5 = vld [vmem:[%s14541_s8 + $0x138] sm:$0xff]  ;;  %v11773_v15 = vld [vmem:[%s14541_s8 + $0x120] sm:$0xff] }
 0xf00   :  { %3789 = vmatpush1.msra.mxu0 %v3708_v50  ;;  %3902 = vmatpush1.msra.mxu1 %v3710_v14  ;;  %v11778_v50 = vld [vmem:[%s14541_s8 + $0x130] sm:$0xff]  ;;  %v11785_v14 = vld [vmem:[%s14541_s8 + $0x108] sm:$0xff] }
 0xf01   :  { %3790 = vmatprep.subr.mxu0 %v3705_v56  ;;  %3903 = vmatprep.subr.mxu1 %v3707_v11  ;;  %v11790_v56 = vld [vmem:[%s14541_s8 + $0x118] sm:$0xff]  ;;  %v11797_v11 = vld [vmem:[%s14541_s8 + $0x100] sm:$0xff] }
 0xf02   :  { %3791 = vmatpush1.msra.mxu0 %v3704_v3  ;;  %3904 = vmatpush1.msra.mxu1 %v3706_v20  ;;  %v11802_v3 = vld [vmem:[%s14541_s8 + $0x110] sm:$0xff]  ;;  %v11809_v20 = vld [vmem:[%s14541_s8 + $0xe8] sm:$0xff] }
 0xf03   :  { %3792 = vmatprep.subr.mxu0 %v3701_v27  ;;  %3905 = vmatprep.subr.mxu1 %v3703_v58  ;;  %v11814_v27 = vld [vmem:[%s14541_s8 + $0xf8] sm:$0xff]  ;;  %v11821_v58 = vld [vmem:[%s14541_s8 + $0xe0] sm:$0xff] }
 0xf04   :  { %3793 = vmatpush1.msra.mxu0 %v3700_v51  ;;  %3906 = vmatpush1.msra.mxu1 %v3702_v25  ;;  %v11826_v51 = vld [vmem:[%s14541_s8 + $0xf0] sm:$0xff]  ;;  %v11833_v25 = vld [vmem:[%s14541_s8 + $0xc8] sm:$0xff] }
 0xf05   :  { %3794 = vmatprep.subr.mxu0 %v3697_v32  ;;  %3907 = vmatprep.subr.mxu1 %v3699_v59  ;;  %v11838_v32 = vld [vmem:[%s14541_s8 + $0xd8] sm:$0xff]  ;;  %v11845_v59 = vld [vmem:[%s14541_s8 + $0xc0] sm:$0xff] }
 0xf06   :  { %3795 = vmatpush1.msra.mxu0 %v3696_v60  ;;  %3908 = vmatpush1.msra.mxu1 %v3698_v17  ;;  %v11850_v60 = vld [vmem:[%s14541_s8 + $0xd0] sm:$0xff]  ;;  %v11857_v17 = vld [vmem:[%s14541_s8 + $0xa8] sm:$0xff] }
 0xf07   :  { %3796 = vmatprep.subr.mxu0 %v3693_v6  ;;  %3909 = vmatprep.subr.mxu1 %v3695_v29  ;;  %v11862_v6 = vld [vmem:[%s14541_s8 + $0xb8] sm:$0xff]  ;;  %v11869_v29 = vld [vmem:[%s14541_s8 + $0xa0] sm:$0xff] }
 0xf08   :  { %3797 = vmatpush1.msra.mxu0 %v3692_v0  ;;  %3910 = vmatpush1.msra.mxu1 %v3694_v8  ;;  %15447 = vst [vmem:[#allocation9_spill] sm:$0xff] %v11869_v29  ;;  %v11874_v0 = vld [vmem:[%s14541_s8 + $0xb0] sm:$0xff]  ;;  %v11881_v8 = vld [vmem:[%s14541_s8 + $0x88] sm:$0xff] }
 0xf09   :  { %3798 = vmatprep.subr.mxu0 %v3689_v61  ;;  %3911 = vmatprep.subr.mxu1 %v3691_v9  ;;  %15448 = vst [vmem:[#allocation10_spill] sm:$0xff] %v11874_v0  ;;  %15449 = vst [vmem:[#allocation11_spill] sm:$0xff] %v11881_v8  ;;  %v11886_v61 = vld [vmem:[%s14541_s8 + $0x98] sm:$0xff]  ;;  %v11893_v9 = vld [vmem:[%s14541_s8 + $0x80] sm:$0xff] }
 0xf0a   :  { %3799 = vmatpush1.msra.mxu0 %v3688_v4  ;;  %3912 = vmatpush1.msra.mxu1 %v3690_v55  ;;  %15450 = vst [vmem:[#allocation20_spill] sm:$0xff] %v11886_v61  ;;  %15451 = vst [vmem:[#allocation22_spill] sm:$0xff] %v11893_v9  ;;  %v11898_v4 = vld [vmem:[%s14541_s8 + $0x90] sm:$0xff]  ;;  %v11905_v55 = vld [vmem:[%s14541_s8 + $0x68] sm:$0xff] }
 0xf0b   :  { %3800 = vmatprep.subr.mxu0 %v3685_v38  ;;  %3913 = vmatprep.subr.mxu1 %v3687_v57  ;;  %15452 = vst [vmem:[#allocation23_spill] sm:$0xff] %v11898_v4  ;;  %15453 = vst [vmem:[#allocation21_spill] sm:$0xff] %v11905_v55  ;;  %v11910_v38 = vld [vmem:[%s14541_s8 + $0x78] sm:$0xff]  ;;  %v11917_v57 = vld [vmem:[%s14541_s8 + $0x60] sm:$0xff] }
 0xf0c   :  { %3801 = vmatpush1.msra.mxu0 %v3684_v7  ;;  %3834 = vmatprep.mubr.f32.mxu0 %v15434_v47  ;;  %15454 = vst [vmem:[#allocation24_spill] sm:$0xff] %v11910_v38  ;;  %15455 = vst [vmem:[#allocation4_spill] sm:$0xff] %v11917_v57  ;;  %v11922_v7 = vld [vmem:[%s14541_s8 + $0x70] sm:$0xff] }
 0xf0d   :  { %3914 = vmatpush1.msra.mxu1 %v3686_v12  ;;  %3947 = vmatprep.mubr.f32.mxu1 %v15434_v47  ;;  %15456 = vst [vmem:[#allocation5_spill] sm:$0xff] %v11922_v7  ;;  %v11929_v12 = vld [vmem:[%s14541_s8 + $0x48] sm:$0xff] }
 0xf0e   :  { %3835 = vmatmul.mubr.f32.vlgmr.msra.gmra.mxu0 %v15440_v54  ;;  %3948 = vmatmul.mubr.f32.vlgmr.msra.gmra.mxu1 %v15440_v54  ;;  %15457 = vst [vmem:[#allocation25_spill] sm:$0xff] %v11929_v12  ;;  %v11934_v54 = vld [vmem:[%s14541_s8 + $0x58] sm:$0xff] }
 0xf0f   :  { %3840 = vmatprep.mubr.f32.mxu0 %v15434_v47  ;;  %3953 = vmatprep.mubr.f32.mxu1 %v15434_v47  ;;  %15458 = vst [vmem:[#allocation60_spill] sm:$0xff] %v11934_v54 }
 0xf10   :  { %4096 = vmatprep.subr.mxu0 %v11617_v13 }
 0xf12   :  { %3841 = vmatmul.mubr.f32.gmra.mxu0 %v15441_v2  ;;  %3954 = vmatmul.mubr.f32.gmra.mxu1 %v15441_v2  ;;  %v11941_v2 = vld [vmem:[%s14541_s8 + $0x40] sm:$0xff] }
 0xf13   :  { %3846 = vmatprep.mubr.f32.mxu0 %v15434_v47  ;;  %3959 = vmatprep.mubr.f32.mxu1 %v15434_v47  ;;  %15459 = vst [vmem:[#allocation15_spill] sm:$0xff] %v11941_v2 }
 0xf16   :  { %3847 = vmatmul.mubr.f32.gmra.mxu0 %v15442_v49  ;;  %3960 = vmatmul.mubr.f32.gmra.mxu1 %v15442_v49  ;;  %v11946_v49 = vld [vmem:[%s14541_s8 + $0x50] sm:$0xff] }
 0xf17   :  { %3852 = vmatprep.mubr.f32.mxu0 %v15434_v47  ;;  %3965 = vmatprep.mubr.f32.mxu1 %v15434_v47  ;;  %15460 = vst [vmem:[#allocation51_spill] sm:$0xff] %v11946_v49 }
 0xf1a   :  { %3853 = vmatmul.mubr.f32.gmra.mxu0 %v15443_v10  ;;  %3966 = vmatmul.mubr.f32.gmra.mxu1 %v15443_v10  ;;  %v11953_v10 = vld [vmem:[%s14541_s8 + $0x28] sm:$0xff] }
 0xf1b   :  { %3858 = vmatprep.mubr.f32.mxu0 %v15434_v47  ;;  %3971 = vmatprep.mubr.f32.mxu1 %v15434_v47  ;;  %15461 = vst [vmem:[#allocation52_spill] sm:$0xff] %v11953_v10 }
 0xf1e   :  { %3859 = vmatmul.mubr.f32.gmra.mxu0 %v15444_v48  ;;  %3972 = vmatmul.mubr.f32.gmra.mxu1 %v15444_v48  ;;  %v11958_v48 = vld [vmem:[%s14541_s8 + $0x38] sm:$0xff] }
 0xf1f   :  { %3864 = vmatprep.mubr.f32.mxu0 %v15434_v47  ;;  %3977 = vmatprep.mubr.f32.mxu1 %v15434_v47  ;;  %15462 = vst [vmem:[#allocation50_spill] sm:$0xff] %v11958_v48 }
 0xf22   :  { %3865 = vmatmul.mubr.f32.gmra.mxu0 %v11308_v63  ;;  %3978 = vmatmul.mubr.f32.gmra.mxu1 %v11308_v63  ;;  %v11622_v63 = vld [vmem:[%s14541_s8 + $0x1f8] sm:$0xff] }
 0xf23   :  { %3870 = vmatprep.mubr.f32.mxu0 %v15434_v47  ;;  %3983 = vmatprep.mubr.f32.mxu1 %v15434_v47  ;;  %15446 = vst [vmem:[#allocation8_spill] sm:$0xff] %v11622_v63 }
 0xf24   :  { %4167 = vmatprep.subr.mxu1 %v11622_v63 }
 0xf25   :  { %4168 = vmatpush1.msra.mxu1 %v11634_v16 }
 0xf26   :  { %3871 = vmatmul.mubr.f32.gmra.mxu0 %v11394_v52  ;;  %3984 = vmatmul.mubr.f32.gmra.mxu1 %v11394_v52  ;;  %v11629_v52 = vld [vmem:[%s14541_s8 + $0x1e0] sm:$0xff] }
 0xf27   :  { %3876 = vmatprep.mubr.f32.mxu0 %v15434_v47  ;;  %3989 = vmatprep.mubr.f32.mxu1 %v15434_v47 }
 0xf28   :  { %4097 = vmatpush1.msra.mxu0 %v11629_v52  ;;  %4169 = vmatprep.subr.mxu1 %v11646_v18 }
 0xf29   :  { %4098 = vmatprep.subr.mxu0 %v11641_v53  ;;  %4170 = vmatpush1.msra.mxu1 %v11658_v1 }
 0xf2a   :  { %4099 = vmatpush1.msra.mxu0 %v11653_v21  ;;  %4171 = vmatprep.subr.mxu1 %v11670_v19 }
 0xf2b   :  { %4100 = vmatprep.subr.mxu0 %v11665_v62  ;;  %4172 = vmatpush1.msra.mxu1 %v11682_v23 }
 0xf2c   :  { %4101 = vmatpush1.msra.mxu0 %v11677_v22  ;;  %4173 = vmatprep.subr.mxu1 %v11694_v33 }
 0xf2d   :  { %4102 = vmatprep.subr.mxu0 %v11689_v24  ;;  %4174 = vmatpush1.msra.mxu1 %v11706_v36 }
 0xf2e   :  { %4103 = vmatpush1.msra.mxu0 %v11701_v34  ;;  %4175 = vmatprep.subr.mxu1 %v11718_v39 }
 0xf2f   :  { %4104 = vmatprep.subr.mxu0 %v11713_v37  ;;  %4176 = vmatpush1.msra.mxu1 %v11730_v41 }
 0xf30   :  { %4105 = vmatpush1.msra.mxu0 %v11725_v40  ;;  %4177 = vmatprep.subr.mxu1 %v11742_v43 }
 0xf31   :  { %4106 = vmatprep.subr.mxu0 %v11737_v42  ;;  %4178 = vmatpush1.msra.mxu1 %v11754_v45 }
 0xf32   :  { %4107 = vmatpush1.msra.mxu0 %v11749_v44  ;;  %4179 = vmatprep.subr.mxu1 %v11766_v5 }
 0xf33   :  { %4108 = vmatprep.subr.mxu0 %v11761_v46  ;;  %4180 = vmatpush1.msra.mxu1 %v11778_v50 }
 0xf34   :  { %4109 = vmatpush1.msra.mxu0 %v11773_v15  ;;  %4181 = vmatprep.subr.mxu1 %v11790_v56 }
 0xf35   :  { %4110 = vmatprep.subr.mxu0 %v11785_v14  ;;  %4182 = vmatpush1.msra.mxu1 %v11802_v3 }
 0xf36   :  { %4111 = vmatpush1.msra.mxu0 %v11797_v11  ;;  %4183 = vmatprep.subr.mxu1 %v11814_v27 }
 0xf37   :  { %4112 = vmatprep.subr.mxu0 %v11809_v20  ;;  %4184 = vmatpush1.msra.mxu1 %v11826_v51 }
 0xf38   :  { %4113 = vmatpush1.msra.mxu0 %v11821_v58  ;;  %4185 = vmatprep.subr.mxu1 %v11838_v32 }
 0xf39   :  { %4114 = vmatprep.subr.mxu0 %v11833_v25  ;;  %4186 = vmatpush1.msra.mxu1 %v11850_v60 }
 0xf3a   :  { %4115 = vmatpush1.msra.mxu0 %v11845_v59  ;;  %4187 = vmatprep.subr.mxu1 %v11862_v6 }
 0xf3b   :  { %4116 = vmatprep.subr.mxu0 %v11857_v17  ;;  %4188 = vmatpush1.msra.mxu1 %v11874_v0 }
 0xf3c   :  { %4117 = vmatpush1.msra.mxu0 %v11869_v29  ;;  %4189 = vmatprep.subr.mxu1 %v11886_v61 }
 0xf3d   :  { %4118 = vmatprep.subr.mxu0 %v11881_v8  ;;  %4190 = vmatpush1.msra.mxu1 %v11898_v4  ;;  %v15472_v8 = vld [vmem:[#allocation54_spill] sm:$0xff] }
 0xf3e   :  { %4119 = vmatpush1.msra.mxu0 %v11893_v9  ;;  %4191 = vmatprep.subr.mxu1 %v11910_v38 }
 0xf3f   :  { %4120 = vmatprep.subr.mxu0 %v11905_v55  ;;  %4192 = vmatpush1.msra.mxu1 %v11922_v7 }
 0xf40   :  { %4121 = vmatpush1.msra.mxu0 %v11917_v57  ;;  %4193 = vmatprep.subr.mxu1 %v11934_v54  ;;  %v11987_v54 = vld [vmem:[%s14541_s8] sm:$0xff] }
 0xf41   :  { %4122 = vmatprep.subr.mxu0 %v11929_v12  ;;  %4194 = vmatpush1.msra.mxu1 %v11946_v49  ;;  %v11970_v49 = vld [vmem:[%s14541_s8 + $0x30] sm:$0xff]  ;;  %15467 = vst [vmem:[#allocation37_spill] sm:$0xff] %v11987_v54 }
 0xf42   :  { %4123 = vmatpush1.msra.mxu0 %v11941_v2  ;;  %4195 = vmatprep.subr.mxu1 %v11958_v48  ;;  %v11965_v2 = vld [vmem:[%s14541_s8 + $0x20] sm:$0xff]  ;;  %15464 = vst [vmem:[#allocation34_spill] sm:$0xff] %v11970_v49  ;;  %v11982_v48 = vld [vmem:[%s14541_s8 + $0x18] sm:$0xff] }
 0xf43   :  { %4124 = vmatprep.subr.mxu0 %v11953_v10  ;;  %15463 = vst [vmem:[#allocation49_spill] sm:$0xff] %v11965_v2  ;;  %4196 = vmatpush1.msra.mxu1 %v11970_v49  ;;  %v11977_v10 = vld [vmem:[%s14541_s8 + $0x8] sm:$0xff]  ;;  %15466 = vst [vmem:[#allocation39_spill] sm:$0xff] %v11982_v48  ;;  %v11994_v49 = vld [vmem:[%s14541_s8 + $0x10] sm:$0xff] }
 0xf44   :  { %4125 = vmatpush1.msra.mxu0 %v11965_v2  ;;  %15465 = vst [vmem:[#allocation26_spill] sm:$0xff] %v11977_v10  ;;  %4197 = vmatprep.subr.mxu1 %v11982_v48  ;;  %15468 = vst [vmem:[#allocation40_spill] sm:$0xff] %v11994_v49  ;;  %v15469_v2 = vld [vmem:[#allocation56_spill] sm:$0xff] }
 0xf45   :  { %4126 = vmatprep.subr.mxu0 %v11977_v10  ;;  %4198 = vmatpush1.msra.mxu1 %v11994_v49  ;;  %v2063_v12 = vadd.f32 %v15469_v2, %v15435_v35  ;;  %v15470_v10 = vld [vmem:[#allocation57_spill] sm:$0xff]  ;;  %v2176_v35 = vadd.f32 %v15472_v8, %v10572_v28  ;;  %v15475_v8 = vld [vmem:[#allocation11_spill] sm:$0xff] }
 0xf46   :  { %4127 = vmatpush1.msra.mxu0 %v11987_v54  ;;  %4342 = vmatprep.subr.mxu1 %v11622_v63  ;;  %v2065_v48 = vadd.f32 %v15470_v10, %v10557_v26  ;;  %v15478_v10 = vld [vmem:[#allocation23_spill] sm:$0xff] }
 0xf47   :  { %4271 = vmatprep.subr.mxu0 %v11617_v13  ;;  %v15471_v13 = vld [vmem:[#allocation55_spill] sm:$0xff] }
 0xf48   :  { %v2178_v61 = vadd.f32 %v15471_v13, %v15308_v30 }
 0xfad   :  { %v3571_v7 = vpop.f32.mrf.mxu0  ;;  %v3642_v9 = vpop.f32.mrf.mxu1 }
 0xfae   :  { %v3647_v57 = vadd.f32 %v3571_v7, %v2063_v12  ;;  %v3649_v2 = vadd.f32 %v3642_v9, %v2176_v35  ;;  %v15476_v9 = vld [vmem:[#allocation20_spill] sm:$0xff] }
 0xfaf   :  { %v3573_v38 = vpop.f32.mrf.mxu0  ;;  %v3644_v49 = vpop.f32.mrf.mxu1  ;;  %v15480_v35 = vld [vmem:[#allocation24_spill] sm:$0xff] }
 0xfb0   :  { %v7351_v55 = vmul.f32 -1.442695, %v3647_v57  ;;  %v3648_v4 = vadd.f32 %v3573_v38, %v2065_v48  ;;  %v3650_v63 = vadd.f32 %v3644_v49, %v2178_v61  ;;  %v15477_v49 = vld [vmem:[#allocation22_spill] sm:$0xff]  ;;  %v15479_v48 = vld [vmem:[#allocation21_spill] sm:$0xff] }
 0xfb2   :  { %7643 = vpow2.f32 %v7351_v55  ;;  %v7352_v54 = vmul.f32 -1.442695, %v3648_v4  ;;  %v7353_v0 = vmul.f32 -1.442695, %v3650_v63 }
 0xfb4   :  { %7645 = vpow2.f32 %v7352_v54 }
 0xfb5   :  { %7647 = vtanh.f32 %v3649_v2  ;;  %v15481_v2 = vld [vmem:[#allocation4_spill] sm:$0xff] }
 0xfb6   :  { %7649 = vpow2.f32 %v7353_v0  ;;  %v15474_v0 = vld [vmem:[#allocation10_spill] sm:$0xff] }
 0xfbf   :  { %v7644_v29 = vpop.eup %7643 }
 0xfc0   :  { %v3654_v26 = vadd.f32 1.0, %v7644_v29 }
 0xfc1   :  { %v7646_v7 = vpop.eup %7645 }
 0xfc2   :  { %7651 = vrcp.f32 %v3654_v26  ;;  %v3660_v55 = vadd.f32 1.0, %v7646_v7  ;;  %v7648_v4 = vpop.eup %7647  ;;  %v15482_v26 = vld [vmem:[#allocation5_spill] sm:$0xff] }
 0xfc3   :  { %v7650_v38 = vpop.eup %7649  ;;  %v15483_v7 = vld [vmem:[#allocation25_spill] sm:$0xff] }
 0xfc4   :  { %7653 = vrcp.f32 %v3660_v55  ;;  %v3667_v30 = vadd.f32 1.0, %v7650_v38  ;;  %v15484_v55 = vld [vmem:[#allocation60_spill] sm:$0xff]  ;;  %v15486_v38 = vld [vmem:[#allocation51_spill] sm:$0xff] }
 0xfc6   :  { %7655 = vrcp.f32 %v3667_v30  ;;  %v15490_v30 = vld [vmem:[#allocation34_spill] sm:$0xff] }
 0xfcf   :  { %v7652_v57 = vpop.eup %7651 }
 0xfd0   :  { %v3671_v12 = vmul.f32 %v7652_v57, %v7648_v4  ;;  %v15485_v4 = vld [vmem:[#allocation15_spill] sm:$0xff]  ;;  %v15487_v57 = vld [vmem:[#allocation52_spill] sm:$0xff] }
 0xfd1   :  { %v7654_v54 = vpop.eup %7653 }
 0xfd2   :  { %v3670_v13 = vmul.f32 %v7654_v54, %v11391_v31  ;;  %v15473_v31 = vld [vmem:[#allocation9_spill] sm:$0xff] }
 0xfd3   :  { %v7656_v28 = vpop.eup %7655  ;;  %v15489_v54 = vld [vmem:[#allocation49_spill] sm:$0xff] }
 0xfd4   :  { %v3672_v61 = vadd.f32 %v3671_v12, %v3670_v13  ;;  %v15488_v12 = vld [vmem:[#allocation50_spill] sm:$0xff] }
 0xfd5   :  { %v15491_v13 = vld [vmem:[#allocation26_spill] sm:$0xff] }
 0xfd6   :  { %7657 = vtanh.f32 %v3672_v61  ;;  %v15492_v61 = vld [vmem:[#allocation39_spill] sm:$0xff] }
 0xfe3   :  { %v7658_v63 = vpop.eup %7657 }
 0xfe4   :  { %v3674_v29 = vmul.f32 %v7658_v63, %v7656_v28  ;;  %v15493_v28 = vld [vmem:[#allocation37_spill] sm:$0xff]  ;;  %v15494_v63 = vld [vmem:[#allocation40_spill] sm:$0xff] }
 0xfe6   :  { %3877 = vmatmul.mubr.f32.gmra.mxu0 %v3674_v29  ;;  %3990 = vmatmul.mubr.f32.gmra.mxu1 %v3674_v29  ;;  %v15495_v29 = vld [vmem:[#allocation46_spill] sm:$0xff] }
 0xfe7   :  { %4160 = vmatprep.mubr.f32.mxu0 %v15434_v47  ;;  %4231 = vmatprep.mubr.f32.mxu1 %v15434_v47 }
 0xfea   :  { %4161 = vmatmul.mubr.f32.vlgmr.msra.gmra.mxu0 %v15434_v47  ;;  %4232 = vmatmul.mubr.f32.vlgmr.msra.gmra.mxu1 %v15434_v47 }
 0xfeb   :  { %4272 = vmatpush1.msra.mxu0 %v11629_v52  ;;  %4343 = vmatpush1.msra.mxu1 %v11634_v16 }
 0xfec   :  { %4273 = vmatprep.subr.mxu0 %v11641_v53  ;;  %4344 = vmatprep.subr.mxu1 %v11646_v18 }
 0xfed   :  { %4274 = vmatpush1.msra.mxu0 %v11653_v21  ;;  %4345 = vmatpush1.msra.mxu1 %v11658_v1 }
 0xfee   :  { %4275 = vmatprep.subr.mxu0 %v11665_v62  ;;  %4346 = vmatprep.subr.mxu1 %v11670_v19 }
 0xfef   :  { %4276 = vmatpush1.msra.mxu0 %v11677_v22  ;;  %4347 = vmatpush1.msra.mxu1 %v11682_v23 }
 0xff0   :  { %4277 = vmatprep.subr.mxu0 %v11689_v24  ;;  %4348 = vmatprep.subr.mxu1 %v11694_v33 }
 0xff1   :  { %4278 = vmatpush1.msra.mxu0 %v11701_v34  ;;  %4349 = vmatpush1.msra.mxu1 %v11706_v36 }
 0xff2   :  { %4279 = vmatprep.subr.mxu0 %v11713_v37  ;;  %4350 = vmatprep.subr.mxu1 %v11718_v39 }
 0xff3   :  { %4280 = vmatpush1.msra.mxu0 %v11725_v40  ;;  %4351 = vmatpush1.msra.mxu1 %v11730_v41 }
 0xff4   :  { %4281 = vmatprep.subr.mxu0 %v11737_v42  ;;  %4352 = vmatprep.subr.mxu1 %v11742_v43 }
 0xff5   :  { %4282 = vmatpush1.msra.mxu0 %v11749_v44  ;;  %4353 = vmatpush1.msra.mxu1 %v11754_v45 }
 0xff6   :  { %4283 = vmatprep.subr.mxu0 %v11761_v46  ;;  %4354 = vmatprep.subr.mxu1 %v11766_v5 }
 0xff7   :  { %4284 = vmatpush1.msra.mxu0 %v11773_v15  ;;  %4355 = vmatpush1.msra.mxu1 %v11778_v50 }
 0xff8   :  { %4285 = vmatprep.subr.mxu0 %v11785_v14  ;;  %4356 = vmatprep.subr.mxu1 %v11790_v56 }
 0xff9   :  { %4286 = vmatpush1.msra.mxu0 %v11797_v11  ;;  %4357 = vmatpush1.msra.mxu1 %v11802_v3 }
 0xffa   :  { %4287 = vmatprep.subr.mxu0 %v11809_v20  ;;  %4358 = vmatprep.subr.mxu1 %v11814_v27 }
 0xffb   :  { %4288 = vmatpush1.msra.mxu0 %v11821_v58  ;;  %4359 = vmatpush1.msra.mxu1 %v11826_v51 }
 0xffc   :  { %4289 = vmatprep.subr.mxu0 %v11833_v25  ;;  %4360 = vmatprep.subr.mxu1 %v11838_v32 }
 0xffd   :  { %4290 = vmatpush1.msra.mxu0 %v11845_v59  ;;  %4361 = vmatpush1.msra.mxu1 %v11850_v60 }
 0xffe   :  { %4291 = vmatprep.subr.mxu0 %v11857_v17  ;;  %4362 = vmatprep.subr.mxu1 %v11862_v6 }
 0xfff   :  { %4292 = vmatpush1.msra.mxu0 %v15473_v31  ;;  %4363 = vmatpush1.msra.mxu1 %v15474_v0 }
0x1000   :  { %4293 = vmatprep.subr.mxu0 %v15475_v8  ;;  %4364 = vmatprep.subr.mxu1 %v15476_v9 }
0x1001   :  { %4294 = vmatpush1.msra.mxu0 %v15477_v49  ;;  %4365 = vmatpush1.msra.mxu1 %v15478_v10 }
0x1002   :  { %4295 = vmatprep.subr.mxu0 %v15479_v48  ;;  %4366 = vmatprep.subr.mxu1 %v15480_v35 }
0x1003   :  { %4296 = vmatpush1.msra.mxu0 %v15481_v2  ;;  %4367 = vmatpush1.msra.mxu1 %v15482_v26 }
0x1004   :  { %4297 = vmatprep.subr.mxu0 %v15483_v7  ;;  %4368 = vmatprep.subr.mxu1 %v15484_v55 }
0x1005   :  { %4298 = vmatpush1.msra.mxu0 %v15485_v4  ;;  %4369 = vmatpush1.msra.mxu1 %v15486_v38 }
0x1006   :  { %4299 = vmatprep.subr.mxu0 %v15487_v57  ;;  %4370 = vmatprep.subr.mxu1 %v15488_v12  ;;  %v15496_v57 = vld [vmem:[#allocation8_spill] sm:$0xff]  ;;  %v3836_v12 = vpop.f32.mrf.mxu0 }
0x1007   :  { %4300 = vmatpush1.msra.mxu0 %v15489_v54  ;;  %4371 = vmatpush1.msra.mxu1 %v15490_v30  ;;  %v3949_v54 = vpop.f32.mrf.mxu1 }
0x1008   :  { %4301 = vmatprep.subr.mxu0 %v15491_v13  ;;  %4372 = vmatprep.subr.mxu1 %v15492_v61  ;;  %v3838_v38 = vpop.f32.mrf.mxu0 }
0x1009   :  { %4302 = vmatpush1.msra.mxu0 %v15493_v28  ;;  %4335 = vmatprep.mubr.f32.mxu0 %v15434_v47  ;;  %v3951_v30 = vpop.f32.mrf.mxu1 }
0x100a   :  { %4373 = vmatpush1.msra.mxu1 %v15494_v63  ;;  %4406 = vmatprep.mubr.f32.mxu1 %v15434_v47  ;;  %v12079_v4 = vpop.f32.mrf.mxu0 }
0x100b   :  { %4446 = vmatprep.subr.mxu0 %v15495_v29  ;;  %4517 = vmatprep.subr.mxu1 %v15496_v57  ;;  %15497 = vst [vmem:[#allocation38_spill] sm:$0xff] %v12079_v4  ;;  %v12081_v13 = vpop.f32.mrf.mxu1 }
0x100c   :  { %15498 = vst [vmem:[#allocation29_spill] sm:$0xff] %v12081_v13  ;;  %v12083_v61 = vpop.f32.mrf.mxu0 }
0x100d   :  { %15499 = vst [vmem:[#allocation43_spill] sm:$0xff] %v12083_v61  ;;  %v12085_v28 = vpop.f32.mrf.mxu1 }
0x100e   :  { %15500 = vst [vmem:[#allocation41_spill] sm:$0xff] %v12085_v28  ;;  %v12087_v55 = vpop.f32.mrf.mxu0 }
0x100f   :  { %15501 = vst [vmem:[#allocation44_spill] sm:$0xff] %v12087_v55  ;;  %v12089_v63 = vpop.f32.mrf.mxu1 }
0x1010   :  { %15502 = vst [vmem:[#allocation42_spill] sm:$0xff] %v12089_v63  ;;  %v12091_v47 = vpop.f32.mrf.mxu0 }
0x1011   :  { %15503 = vst [vmem:[#allocation32_spill] sm:$0xff] %v12091_v47  ;;  %v12093_v29 = vpop.f32.mrf.mxu1 }
0x1012   :  { %15504 = vst [vmem:[#allocation30_spill] sm:$0xff] %v12093_v29  ;;  %v12095_v57 = vpop.f32.mrf.mxu0 }
0x1013   :  { %15505 = vst [vmem:[#allocation47_spill] sm:$0xff] %v12095_v57  ;;  %v12097_v7 = vpop.f32.mrf.mxu1 }
0x1014   :  { %15506 = vst [vmem:[#allocation33_spill] sm:$0xff] %v12097_v7  ;;  %v12099_v26 = vpop.f32.mrf.mxu0 }
0x1015   :  { %15507 = vst [vmem:[#allocation36_spill] sm:$0xff] %v12099_v26  ;;  %v12101_v4 = vpop.f32.mrf.mxu1 }
0x1016   :  { %15508 = vst [vmem:[#allocation16_spill] sm:$0xff] %v12101_v4  ;;  %v12103_v13 = vpop.f32.mrf.mxu0 }
0x1017   :  { %15509 = vst [vmem:[#allocation18_spill] sm:$0xff] %v12103_v13  ;;  %v12105_v61 = vpop.f32.mrf.mxu1 }
0x1018   :  { %15510 = vst [vmem:[#allocation19_spill] sm:$0xff] %v12105_v61  ;;  %v12107_v28 = vpop.f32.mrf.mxu0  ;;  %v3748_v61 = vld [vmem:[%s14542_s9] sm:$0xf] }
0x1019   :  { %15511 = vst [vmem:[#allocation17_spill] sm:$0xff] %v12107_v28  ;;  %v12109_v55 = vpop.f32.mrf.mxu1  ;;  %v15520_v28 = vld [vmem:[#allocation27_spill] sm:$0xff] }
0x101a   :  { %15512 = vst [vmem:[#allocation45_spill] sm:$0xff] %v12109_v55  ;;  %v12111_v63 = vpop.f32.mrf.mxu0  ;;  %v12129_v55 = vrot.slane %v3748_v61, %v15520_v28 }
0x101b   :  { %15513 = vst [vmem:[#allocation7_spill] sm:$0xff] %v12111_v63  ;;  %v12113_v47 = vpop.f32.mrf.mxu1 }
0x101c   :  { %15514 = vst [vmem:[#allocation59_spill] sm:$0xff] %v12113_v47  ;;  %v12115_v29 = vpop.f32.mrf.mxu0  ;;  %15521 = vst [vmem:[#allocation14_spill] sm:$0xff] %v12129_v55 }
0x101d   :  { %15515 = vst [vmem:[#allocation31_spill] sm:$0xff] %v12115_v29  ;;  %v12117_v57 = vpop.f32.mrf.mxu1  ;;  %v15524_v29 = vld [vmem:[#allocation53_spill] sm:$0xff] }
0x101e   :  { %15516 = vst [vmem:[#allocation35_spill] sm:$0xff] %v12117_v57  ;;  %v12119_v7 = vpop.f32.mrf.mxu0  ;;  %v12136_v4 = vrot.slane %v3748_v61, %v15524_v29  ;;  %v15528_v29 = vld [vmem:[#allocation58_spill] sm:$0xff] }
0x101f   :  { %15517 = vst [vmem:[#allocation6_spill] sm:$0xff] %v12119_v7  ;;  %v12121_v26 = vpop.f32.mrf.mxu1  ;;  %v12147_v9 = vrot.slane %v3748_v61, %v15528_v29 }
0x1020   :  { %15518 = vst [vmem:[#allocation61_spill] sm:$0xff] %v12121_v26  ;;  %v12126_v13 = vpop.f32.mrf.mxu0  ;;  %v3837_v26 = vadd.f32 %v3836_v12, %v12129_v55  ;;  %v3839_v35 = vadd.f32 %v3838_v38, %v12136_v4  ;;  %v15530_v12 = vld [vmem:[#allocation28_spill] sm:$0xff] }
0x1021   :  { %15519 = vst [vmem:[#allocation12_spill] sm:$0xff] %v12126_v13  ;;  %v12131_v63 = vpop.f32.mrf.mxu1  ;;  %15529 = vst [vmem:[#allocation54_spill] sm:$0xff] %v12147_v9  ;;  %v12151_v55 = vrot.slane %v3748_v61, %v15530_v12 }
0x1022   :  { %15522 = vst [vmem:[#allocation13_spill] sm:$0xff] %v12131_v63 }
0x10a6   :  { %v12133_v47 = vpop.f32.mrf.mxu0  ;;  %v12138_v57 = vpop.f32.mrf.mxu1 }
0x10a7   :  { %15523 = vst [vmem:[#allocation48_spill] sm:$0xff] %v12133_v47  ;;  %15525 = vst [vmem:[#allocation56_spill] sm:$0xff] %v12138_v57 }
0x10a8   :  { %v12140_v7 = vpop.f32.mrf.mxu0  ;;  %v12144_v13 = vpop.f32.mrf.mxu1 }
0x10a9   :  { %15526 = vst [vmem:[#allocation57_spill] sm:$0xff] %v12140_v7  ;;  %15527 = vst [vmem:[#allocation55_spill] sm:$0xff] %v12144_v13  ;;  %v3952_v7 = vadd.f32 %v3951_v30, %v12147_v9  ;;  %v3950_v13 = vadd.f32 %v3949_v54, %v12151_v55 }
0x10aa   :  { %v4162_v2 = vpop.f32.mrf.mxu0  ;;  %v4233_v47 = vpop.f32.mrf.mxu1 }
0x10ab   :  { %v4238_v28 = vadd.f32 %v4162_v2, %v3837_v26 }
0x10ac   :  { %v4164_v48 = vpop.f32.mrf.mxu0  ;;  %v4235_v57 = vpop.f32.mrf.mxu1 }
0x10ad   :  { %v7354_v10 = vmul.f32 -1.442695, %v4238_v28  ;;  %v4239_v63 = vadd.f32 %v4164_v48, %v3839_v35  ;;  %v4241_v38 = vadd.f32 %v4235_v57, %v3952_v7  ;;  %v4240_v28 = vadd.f32 %v4233_v47, %v3950_v13  ;;  %v15533_v13 = vld [vmem:[#allocation22_spill] sm:$0xff] }
0x10af   :  { %7659 = vpow2.f32 %v7354_v10  ;;  %v7355_v49 = vmul.f32 -1.442695, %v4239_v63  ;;  %v7356_v2 = vmul.f32 -1.442695, %v4241_v38  ;;  %v15536_v38 = vld [vmem:[#allocation24_spill] sm:$0xff] }
0x10b1   :  { %7661 = vpow2.f32 %v7355_v49 }
0x10b2   :  { %7663 = vpow2.f32 %v7356_v2  ;;  %v15537_v2 = vld [vmem:[#allocation4_spill] sm:$0xff] }
0x10bc   :  { %v7660_v26 = vpop.eup %7659 }
0x10bd   :  { %v4245_v48 = vadd.f32 1.0, %v7660_v26  ;;  %v15538_v26 = vld [vmem:[#allocation5_spill] sm:$0xff] }
0x10be   :  { %v7662_v10 = vpop.eup %7661 }
0x10bf   :  { %7665 = vrcp.f32 %v4245_v48  ;;  %v4251_v35 = vadd.f32 1.0, %v7662_v10  ;;  %v7664_v49 = vpop.eup %7663  ;;  %v15540_v48 = vld [vmem:[#allocation60_spill] sm:$0xff]  ;;  %v15541_v10 = vld [vmem:[#allocation15_spill] sm:$0xff] }
0x10c0   :  { %7667 = vtanh.f32 %v4240_v28  ;;  %v4258_v9 = vadd.f32 1.0, %v7664_v49  ;;  %v15539_v28 = vld [vmem:[#allocation25_spill] sm:$0xff]  ;;  %v15543_v49 = vld [vmem:[#allocation52_spill] sm:$0xff] }
0x10c1   :  { %7669 = vrcp.f32 %v4251_v35  ;;  %v15542_v35 = vld [vmem:[#allocation51_spill] sm:$0xff] }
0x10c2   :  { %7671 = vrcp.f32 %v4258_v9  ;;  %v15532_v9 = vld [vmem:[#allocation20_spill] sm:$0xff] }
0x10cc   :  { %v7666_v63 = vpop.eup %7665 }
0x10cd   :  { %v7668_v29 = vpop.eup %7667 }
0x10ce   :  { %v7670_v30 = vpop.eup %7669  ;;  %v4262_v12 = vmul.f32 %v7668_v29, %v7666_v63  ;;  %v15534_v29 = vld [vmem:[#allocation23_spill] sm:$0xff]  ;;  %v15544_v63 = vld [vmem:[#allocation50_spill] sm:$0xff] }
0x10cf   :  { %v4261_v61 = vmul.f32 0.0, %v7670_v30  ;;  %v7672_v47 = vpop.eup %7671  ;;  %v15545_v30 = vld [vmem:[#allocation49_spill] sm:$0xff] }
0x10d1   :  { %v12154_v7 = vadd.f32 %v4262_v12, %v4261_v61  ;;  %v15535_v12 = vld [vmem:[#allocation21_spill] sm:$0xff]  ;;  %v15546_v61 = vld [vmem:[#allocation34_spill] sm:$0xff] }
0x10d3   :  { %7673 = vtanh.f32 %v12154_v7 }
0x10e0   :  { %v7674_v57 = vpop.eup %7673 }
0x10e1   :  { %v12157_v54 = vmul.f32 %v7674_v57, %v7672_v47  ;;  %v15547_v47 = vld [vmem:[#allocation26_spill] sm:$0xff]  ;;  %v15548_v57 = vld [vmem:[#allocation39_spill] sm:$0xff] }
0x10e3   :  { %15531 = vst [vmem:[#allocation9_spill] sm:$0xff] %v12157_v54  ;;  %4336 = vmatmul.mubr.f32.vlgmr.msra.gmra.mxu0 %v12157_v54  ;;  %4407 = vmatmul.mubr.f32.vlgmr.msra.gmra.mxu1 %v12157_v54  ;;  %v15549_v54 = vld [vmem:[#allocation37_spill] sm:$0xff] }
0x10e4   :  { %4447 = vmatpush1.msra.mxu0 %v11629_v52  ;;  %4518 = vmatpush1.msra.mxu1 %v11634_v16 }
0x10e5   :  { %4448 = vmatprep.subr.mxu0 %v11641_v53  ;;  %4519 = vmatprep.subr.mxu1 %v11646_v18 }
0x10e6   :  { %4449 = vmatpush1.msra.mxu0 %v11653_v21  ;;  %4520 = vmatpush1.msra.mxu1 %v11658_v1 }
0x10e7   :  { %4450 = vmatprep.subr.mxu0 %v11665_v62  ;;  %4521 = vmatprep.subr.mxu1 %v11670_v19 }
0x10e8   :  { %4451 = vmatpush1.msra.mxu0 %v11677_v22  ;;  %4522 = vmatpush1.msra.mxu1 %v11682_v23 }
0x10e9   :  { %4452 = vmatprep.subr.mxu0 %v11689_v24  ;;  %4523 = vmatprep.subr.mxu1 %v11694_v33 }
0x10ea   :  { %4453 = vmatpush1.msra.mxu0 %v11701_v34  ;;  %4524 = vmatpush1.msra.mxu1 %v11706_v36 }
0x10eb   :  { %4454 = vmatprep.subr.mxu0 %v11713_v37  ;;  %4525 = vmatprep.subr.mxu1 %v11718_v39 }
0x10ec   :  { %4455 = vmatpush1.msra.mxu0 %v11725_v40  ;;  %4526 = vmatpush1.msra.mxu1 %v11730_v41 }
0x10ed   :  { %4456 = vmatprep.subr.mxu0 %v11737_v42  ;;  %4527 = vmatprep.subr.mxu1 %v11742_v43 }
0x10ee   :  { %4457 = vmatpush1.msra.mxu0 %v11749_v44  ;;  %4528 = vmatpush1.msra.mxu1 %v11754_v45 }
0x10ef   :  { %4458 = vmatprep.subr.mxu0 %v11761_v46  ;;  %4529 = vmatprep.subr.mxu1 %v11766_v5 }
0x10f0   :  { %4459 = vmatpush1.msra.mxu0 %v11773_v15  ;;  %4530 = vmatpush1.msra.mxu1 %v11778_v50 }
0x10f1   :  { %4460 = vmatprep.subr.mxu0 %v11785_v14  ;;  %4531 = vmatprep.subr.mxu1 %v11790_v56 }
0x10f2   :  { %4461 = vmatpush1.msra.mxu0 %v11797_v11  ;;  %4532 = vmatpush1.msra.mxu1 %v11802_v3 }
0x10f3   :  { %4462 = vmatprep.subr.mxu0 %v11809_v20  ;;  %4533 = vmatprep.subr.mxu1 %v11814_v27 }
0x10f4   :  { %4463 = vmatpush1.msra.mxu0 %v11821_v58  ;;  %4534 = vmatpush1.msra.mxu1 %v11826_v51 }
0x10f5   :  { %4464 = vmatprep.subr.mxu0 %v11833_v25  ;;  %4535 = vmatprep.subr.mxu1 %v11838_v32 }
0x10f6   :  { %4465 = vmatpush1.msra.mxu0 %v11845_v59  ;;  %4536 = vmatpush1.msra.mxu1 %v11850_v60 }
0x10f7   :  { %4466 = vmatprep.subr.mxu0 %v11857_v17  ;;  %4537 = vmatprep.subr.mxu1 %v11862_v6 }
0x10f8   :  { %4467 = vmatpush1.msra.mxu0 %v15473_v31  ;;  %4538 = vmatpush1.msra.mxu1 %v15474_v0 }
0x10f9   :  { %4468 = vmatprep.subr.mxu0 %v15475_v8  ;;  %4539 = vmatprep.subr.mxu1 %v15532_v9  ;;  %v15559_v9 = vld [vmem:[#allocation29_spill] sm:$0xff] }
0x10fa   :  { %4469 = vmatpush1.msra.mxu0 %v15533_v13  ;;  %4540 = vmatpush1.msra.mxu1 %v15534_v29  ;;  %v15557_v29 = vld [vmem:[#allocation54_spill] sm:$0xff] }
0x10fb   :  { %4470 = vmatprep.subr.mxu0 %v15535_v12  ;;  %4541 = vmatprep.subr.mxu1 %v15536_v38 }
0x10fc   :  { %4471 = vmatpush1.msra.mxu0 %v15537_v2  ;;  %4542 = vmatpush1.msra.mxu1 %v15538_v26 }
0x10fd   :  { %4472 = vmatprep.subr.mxu0 %v15539_v28  ;;  %4543 = vmatprep.subr.mxu1 %v15540_v48  ;;  %v15550_v28 = vmov 0.0   ;;  %v15551_v48 = vld [vmem:[#allocation40_spill] sm:$0xff] }
0x10fe   :  { %4473 = vmatpush1.msra.mxu0 %v15541_v10  ;;  %4544 = vmatpush1.msra.mxu1 %v15542_v35  ;;  %v15552_v35 = vld [vmem:[#allocation46_spill] sm:$0xff] }
0x10ff   :  { %4474 = vmatprep.subr.mxu0 %v15543_v49  ;;  %4545 = vmatprep.subr.mxu1 %v15544_v63  ;;  %v15553_v49 = vld [vmem:[#allocation8_spill] sm:$0xff]  ;;  %v15554_v63 = vld [vmem:[#allocation14_spill] sm:$0xff] }
0x1100   :  { %4475 = vmatpush1.msra.mxu0 %v15545_v30  ;;  %4546 = vmatpush1.msra.mxu1 %v15546_v61  ;;  %v15555_v30 = vld [vmem:[#allocation38_spill] sm:$0xff] }
0x1101   :  { %4476 = vmatprep.subr.mxu0 %v15547_v47  ;;  %4547 = vmatprep.subr.mxu1 %v15548_v57  ;;  %v3843_v10 = vadd.f32 %v15555_v30, %v15554_v63  ;;  %v15556_v47 = vld [vmem:[#allocation43_spill] sm:$0xff]  ;;  %v3956_v30 = vadd.f32 %v15559_v9, %v12151_v55 }
0x1102   :  { %4477 = vmatpush1.msra.mxu0 %v15549_v54  ;;  %4510 = vmatprep.mubr.f32.mxu0 %v15550_v28  ;;  %v3845_v26 = vadd.f32 %v15556_v47, %v12136_v4 }
0x1103   :  { %4548 = vmatpush1.msra.mxu1 %v15551_v48  ;;  %4581 = vmatprep.mubr.f32.mxu1 %v15550_v28 }
0x1104   :  { %4621 = vmatprep.subr.mxu0 %v15552_v35  ;;  %4692 = vmatprep.subr.mxu1 %v15553_v49  ;;  %v15558_v35 = vld [vmem:[#allocation41_spill] sm:$0xff] }
0x1105   :  { %v3958_v13 = vadd.f32 %v15558_v35, %v15557_v29 }
0x11a3   :  { %v4337_v61 = vpop.f32.mrf.mxu0  ;;  %v4408_v12 = vpop.f32.mrf.mxu1 }
0x11a4   :  { %v4413_v57 = vadd.f32 %v4337_v61, %v3843_v10  ;;  %v4415_v63 = vadd.f32 %v4408_v12, %v3956_v30  ;;  %v15582_v30 = vld [vmem:[#allocation40_spill] sm:$0xff] }
0x11a5   :  { %v4339_v2 = vpop.f32.mrf.mxu0  ;;  %v4410_v28 = vpop.f32.mrf.mxu1 }
0x11a6   :  { %v7357_v54 = vmul.f32 -1.442695, %v4413_v57  ;;  %v4414_v38 = vadd.f32 %v4339_v2, %v3845_v26  ;;  %v4416_v49 = vadd.f32 %v4410_v28, %v3958_v13  ;;  %v15581_v57 = vmov 0.0  }
0x11a8   :  { %7675 = vpow2.f32 %v7357_v54  ;;  %v7358_v48 = vmul.f32 -1.442695, %v4414_v38  ;;  %v7359_v8 = vmul.f32 -1.442695, %v4416_v49  ;;  %v15579_v49 = vld [vmem:[#allocation39_spill] sm:$0xff] }
0x11aa   :  { %7677 = vpow2.f32 %v7358_v48 }
0x11ab   :  { %7679 = vtanh.f32 %v4415_v63  ;;  %v15580_v63 = vld [vmem:[#allocation37_spill] sm:$0xff] }
0x11ac   :  { %7681 = vpow2.f32 %v7359_v8  ;;  %v15577_v8 = vld [vmem:[#allocation34_spill] sm:$0xff] }
0x11b5   :  { %v7676_v0 = vpop.eup %7675 }
0x11b6   :  { %v4420_v47 = vadd.f32 1.0, %v7676_v0 }
0x11b7   :  { %v7678_v10 = vpop.eup %7677 }
0x11b8   :  { %7683 = vrcp.f32 %v4420_v47  ;;  %v4426_v54 = vadd.f32 1.0, %v7678_v10  ;;  %v7680_v38 = vpop.eup %7679  ;;  %v15583_v47 = vld [vmem:[#allocation46_spill] sm:$0xff]  ;;  %v15584_v10 = vld [vmem:[#allocation8_spill] sm:$0xff] }
0x11b9   :  { %v7682_v2 = vpop.eup %7681 }
0x11ba   :  { %7685 = vrcp.f32 %v4426_v54  ;;  %v4433_v35 = vadd.f32 1.0, %v7682_v2  ;;  %v15585_v54 = vld [vmem:[#allocation14_spill] sm:$0xff] }
0x11bc   :  { %7687 = vrcp.f32 %v4433_v35 }
0x11c5   :  { %v7684_v26 = vpop.eup %7683 }
0x11c6   :  { %v4437_v48 = vmul.f32 %v7684_v26, %v7680_v38  ;;  %v15586_v38 = vld [vmem:[#allocation44_spill] sm:$0xff] }
0x11c7   :  { %v7686_v61 = vpop.eup %7685  ;;  %v3849_v2 = vadd.f32 %v15586_v38, %v15585_v54 }
0x11c8   :  { %v4436_v13 = vmul.f32 %v7686_v61, %v12154_v7  ;;  %v15578_v7 = vld [vmem:[#allocation26_spill] sm:$0xff] }
0x11c9   :  { %v7688_v0 = vpop.eup %7687 }
0x11ca   :  { %v12236_v28 = vadd.f32 %v4437_v48, %v4436_v13  ;;  %v15587_v48 = vld [vmem:[#allocation32_spill] sm:$0xff] }
0x11cb   :  { %v3851_v61 = vadd.f32 %v15587_v48, %v12136_v4 }
0x11cc   :  { %7689 = vtanh.f32 %v12236_v28 }
0x11d9   :  { %v7690_v9 = vpop.eup %7689 }
0x11da   :  { %v12239_v12 = vmul.f32 %v7690_v9, %v7688_v0 }
0x11dc   :  { %15560 = vst [vmem:[#allocation38_spill] sm:$0xff] %v12239_v12  ;;  %4511 = vmatmul.mubr.f32.vlgmr.msra.gmra.mxu0 %v12239_v12  ;;  %4582 = vmatmul.mubr.f32.vlgmr.msra.gmra.mxu1 %v12239_v12 }
0x11dd   :  { %4622 = vmatpush1.msra.mxu0 %v11629_v52  ;;  %4693 = vmatpush1.msra.mxu1 %v11634_v16  ;;  %v15561_v52 = vld [vmem:[#allocation10_spill] sm:$0xff]  ;;  %v15562_v16 = vld [vmem:[#allocation11_spill] sm:$0xff] }
0x11de   :  { %4623 = vmatprep.subr.mxu0 %v11641_v53  ;;  %4694 = vmatprep.subr.mxu1 %v11646_v18  ;;  %v15563_v53 = vld [vmem:[#allocation20_spill] sm:$0xff]  ;;  %v15564_v18 = vld [vmem:[#allocation22_spill] sm:$0xff] }
0x11df   :  { %4624 = vmatpush1.msra.mxu0 %v11653_v21  ;;  %4695 = vmatpush1.msra.mxu1 %v11658_v1  ;;  %v15565_v21 = vld [vmem:[#allocation23_spill] sm:$0xff]  ;;  %v15566_v1 = vld [vmem:[#allocation21_spill] sm:$0xff] }
0x11e0   :  { %4625 = vmatprep.subr.mxu0 %v11665_v62  ;;  %4696 = vmatprep.subr.mxu1 %v11670_v19  ;;  %v15567_v62 = vld [vmem:[#allocation24_spill] sm:$0xff] }
0x11e1   :  { %4626 = vmatpush1.msra.mxu0 %v11677_v22  ;;  %4697 = vmatpush1.msra.mxu1 %v11682_v23  ;;  %v15568_v19 = vld [vmem:[#allocation4_spill] sm:$0xff]  ;;  %v15569_v22 = vld [vmem:[#allocation5_spill] sm:$0xff] }
0x11e2   :  { %4627 = vmatprep.subr.mxu0 %v11689_v24  ;;  %4698 = vmatprep.subr.mxu1 %v11694_v33  ;;  %v15570_v23 = vld [vmem:[#allocation25_spill] sm:$0xff]  ;;  %v15571_v24 = vld [vmem:[#allocation60_spill] sm:$0xff]  ;;  %v15572_v33 = vld [vmem:[#allocation15_spill] sm:$0xff] }
0x11e3   :  { %4628 = vmatpush1.msra.mxu0 %v11701_v34  ;;  %4699 = vmatpush1.msra.mxu1 %v11706_v36  ;;  %v15573_v34 = vld [vmem:[#allocation51_spill] sm:$0xff]  ;;  %v15574_v36 = vld [vmem:[#allocation52_spill] sm:$0xff] }
0x11e4   :  { %4629 = vmatprep.subr.mxu0 %v11713_v37  ;;  %4700 = vmatprep.subr.mxu1 %v11718_v39  ;;  %v15575_v37 = vld [vmem:[#allocation50_spill] sm:$0xff]  ;;  %v15576_v39 = vld [vmem:[#allocation49_spill] sm:$0xff] }
0x11e5   :  { %4630 = vmatpush1.msra.mxu0 %v11725_v40  ;;  %4701 = vmatpush1.msra.mxu1 %v11730_v41 }
0x11e6   :  { %4631 = vmatprep.subr.mxu0 %v11737_v42  ;;  %4702 = vmatprep.subr.mxu1 %v11742_v43 }
0x11e7   :  { %4632 = vmatpush1.msra.mxu0 %v11749_v44  ;;  %4703 = vmatpush1.msra.mxu1 %v11754_v45 }
0x11e8   :  { %4633 = vmatprep.subr.mxu0 %v11761_v46  ;;  %4704 = vmatprep.subr.mxu1 %v11766_v5 }
0x11e9   :  { %4634 = vmatpush1.msra.mxu0 %v11773_v15  ;;  %4705 = vmatpush1.msra.mxu1 %v11778_v50 }
0x11ea   :  { %4635 = vmatprep.subr.mxu0 %v11785_v14  ;;  %4706 = vmatprep.subr.mxu1 %v11790_v56 }
0x11eb   :  { %4636 = vmatpush1.msra.mxu0 %v11797_v11  ;;  %4707 = vmatpush1.msra.mxu1 %v11802_v3 }
0x11ec   :  { %4637 = vmatprep.subr.mxu0 %v11809_v20  ;;  %4708 = vmatprep.subr.mxu1 %v11814_v27 }
0x11ed   :  { %4638 = vmatpush1.msra.mxu0 %v11821_v58  ;;  %4709 = vmatpush1.msra.mxu1 %v11826_v51 }
0x11ee   :  { %4639 = vmatprep.subr.mxu0 %v11833_v25  ;;  %4710 = vmatprep.subr.mxu1 %v11838_v32 }
0x11ef   :  { %4640 = vmatpush1.msra.mxu0 %v11845_v59  ;;  %4711 = vmatpush1.msra.mxu1 %v11850_v60 }
0x11f0   :  { %4641 = vmatprep.subr.mxu0 %v11857_v17  ;;  %4712 = vmatprep.subr.mxu1 %v11862_v6 }
0x11f1   :  { %4642 = vmatpush1.msra.mxu0 %v15473_v31  ;;  %4713 = vmatpush1.msra.mxu1 %v15561_v52 }
0x11f2   :  { %4643 = vmatprep.subr.mxu0 %v15562_v16  ;;  %4714 = vmatprep.subr.mxu1 %v15563_v53 }
0x11f3   :  { %4644 = vmatpush1.msra.mxu0 %v15564_v18  ;;  %4715 = vmatpush1.msra.mxu1 %v15565_v21 }
0x11f4   :  { %4645 = vmatprep.subr.mxu0 %v15566_v1  ;;  %4716 = vmatprep.subr.mxu1 %v15567_v62 }
0x11f5   :  { %4646 = vmatpush1.msra.mxu0 %v15568_v19  ;;  %4717 = vmatpush1.msra.mxu1 %v15569_v22 }
0x11f6   :  { %4647 = vmatprep.subr.mxu0 %v15570_v23  ;;  %4718 = vmatprep.subr.mxu1 %v15571_v24 }
0x11f7   :  { %4648 = vmatpush1.msra.mxu0 %v15572_v33  ;;  %4719 = vmatpush1.msra.mxu1 %v15573_v34 }
0x11f8   :  { %4649 = vmatprep.subr.mxu0 %v15574_v36  ;;  %4720 = vmatprep.subr.mxu1 %v15575_v37 }
0x11f9   :  { %4650 = vmatpush1.msra.mxu0 %v15576_v39  ;;  %4721 = vmatpush1.msra.mxu1 %v15577_v8 }
0x11fa   :  { %4651 = vmatprep.subr.mxu0 %v15578_v7  ;;  %4722 = vmatprep.subr.mxu1 %v15579_v49  ;;  %v15589_v49 = vld [vmem:[#allocation42_spill] sm:$0xff] }
0x11fb   :  { %4652 = vmatpush1.msra.mxu0 %v15580_v63  ;;  %4685 = vmatprep.mubr.f32.mxu0 %v15581_v57  ;;  %v3962_v38 = vadd.f32 %v15589_v49, %v12151_v55 }
0x11fc   :  { %4723 = vmatpush1.msra.mxu1 %v15582_v30  ;;  %4756 = vmatprep.mubr.f32.mxu1 %v15581_v57 }
0x11fd   :  { %4796 = vmatprep.subr.mxu0 %v15583_v47  ;;  %4867 = vmatprep.subr.mxu1 %v15584_v10  ;;  %v15588_v47 = vld [vmem:[#allocation30_spill] sm:$0xff] }
0x11fe   :  { %v3964_v63 = vadd.f32 %v15588_v47, %v15557_v29  ;;  %v12346_v47 = vld [vmem:[%s14541_s8 + $0x1d8] sm:$0xff] }
0x129c   :  { %v4512_v26 = vpop.f32.mrf.mxu0  ;;  %v4583_v12 = vpop.f32.mrf.mxu1 }
0x129d   :  { %v4588_v35 = vadd.f32 %v4512_v26, %v3849_v2  ;;  %v4590_v54 = vadd.f32 %v4583_v12, %v3962_v38  ;;  %v12358_v38 = vld [vmem:[%s14541_s8 + $0x1d0] sm:$0xff] }
0x129e   :  { %v4514_v13 = vpop.f32.mrf.mxu0  ;;  %v4585_v57 = vpop.f32.mrf.mxu1 }
0x129f   :  { %v7360_v0 = vmul.f32 -1.442695, %v4588_v35  ;;  %v4589_v9 = vadd.f32 %v4514_v13, %v3851_v61  ;;  %v4591_v10 = vadd.f32 %v4585_v57, %v3964_v63 }
0x12a1   :  { %7691 = vpow2.f32 %v7360_v0  ;;  %v7361_v30 = vmul.f32 -1.442695, %v4589_v9  ;;  %v7362_v7 = vmul.f32 -1.442695, %v4591_v10  ;;  %v12352_v10 = vld [vmem:[%s14541_s8 + $0x1c0] sm:$0xff] }
0x12a3   :  { %7693 = vpow2.f32 %v7361_v30 }
0x12a4   :  { %7695 = vtanh.f32 %v4590_v54  ;;  %v12340_v54 = vld [vmem:[%s14541_s8 + $0x1c8] sm:$0xff] }
0x12a5   :  { %7697 = vpow2.f32 %v7362_v7  ;;  %v12328_v7 = vld [vmem:[%s14541_s8 + $0x1e0] sm:$0xff] }
0x12ae   :  { %v7692_v8 = vpop.eup %7691 }
0x12af   :  { %v4595_v48 = vadd.f32 1.0, %v7692_v8 }
0x12b0   :  { %v7694_v2 = vpop.eup %7693 }
0x12b1   :  { %7699 = vrcp.f32 %v4595_v48  ;;  %v4601_v26 = vadd.f32 1.0, %v7694_v2  ;;  %v7696_v61 = vpop.eup %7695  ;;  %v12364_v48 = vld [vmem:[%s14541_s8 + $0x1a8] sm:$0xff]  ;;  %v12370_v2 = vld [vmem:[%s14541_s8 + $0x1b8] sm:$0xff] }
0x12b2   :  { %v7698_v30 = vpop.eup %7697 }
0x12b3   :  { %7701 = vrcp.f32 %v4601_v26  ;;  %v4608_v9 = vadd.f32 1.0, %v7698_v30  ;;  %v12376_v26 = vld [vmem:[%s14541_s8 + $0x1a0] sm:$0xff]  ;;  %v12388_v30 = vld [vmem:[%s14541_s8 + $0x188] sm:$0xff] }
0x12b5   :  { %7703 = vrcp.f32 %v4608_v9  ;;  %v12412_v9 = vld [vmem:[%s14541_s8 + $0x168] sm:$0xff] }
0x12be   :  { %v7700_v35 = vpop.eup %7699 }
0x12bf   :  { %v4612_v13 = vmul.f32 %v7700_v35, %v7696_v61  ;;  %v12382_v61 = vld [vmem:[%s14541_s8 + $0x1b0] sm:$0xff]  ;;  %v12394_v35 = vld [vmem:[%s14541_s8 + $0x198] sm:$0xff] }
0x12c0   :  { %v7702_v0 = vpop.eup %7701 }
0x12c1   :  { %v4611_v63 = vmul.f32 %v7702_v0, %v12236_v28  ;;  %v12334_v28 = vld [vmem:[%s14541_s8 + $0x1f0] sm:$0xff] }
0x12c2   :  { %v7704_v12 = vpop.eup %7703  ;;  %v12406_v0 = vld [vmem:[%s14541_s8 + $0x190] sm:$0xff] }
0x12c3   :  { %v12318_v57 = vadd.f32 %v4612_v13, %v4611_v63  ;;  %v12400_v13 = vld [vmem:[%s14541_s8 + $0x180] sm:$0xff]  ;;  %v12418_v63 = vld [vmem:[%s14541_s8 + $0x178] sm:$0xff] }
0x12c5   :  { %7705 = vtanh.f32 %v12318_v57 }
0x12d2   :  { %v7706_v8 = vpop.eup %7705 }
0x12d3   :  { %v12321_v49 = vmul.f32 %v7706_v8, %v7704_v12 }
0x12d5   :  { %15590 = vst [vmem:[#allocation43_spill] sm:$0xff] %v12321_v49  ;;  %4686 = vmatmul.mubr.f32.vlgmr.msra.gmra.mxu0 %v12321_v49  ;;  %4757 = vmatmul.mubr.f32.vlgmr.msra.gmra.mxu1 %v12321_v49  ;;  %v12750_v49 = vld [vmem:[%s14541_s8 + $0x38] sm:$0xff] }
0x12d6   :  { %4797 = vmatpush1.msra.mxu0 %v12328_v7  ;;  %4868 = vmatpush1.msra.mxu1 %v12334_v28  ;;  %15619 = vst [vmem:[#allocation50_spill] sm:$0xff] %v12750_v49 }
0x12d7   :  { %4798 = vmatprep.subr.mxu0 %v12340_v54  ;;  %4869 = vmatprep.subr.mxu1 %v12346_v47 }
0x12d8   :  { %4799 = vmatpush1.msra.mxu0 %v12352_v10  ;;  %4870 = vmatpush1.msra.mxu1 %v12358_v38 }
0x12d9   :  { %4800 = vmatprep.subr.mxu0 %v12364_v48  ;;  %4871 = vmatprep.subr.mxu1 %v12370_v2 }
0x12da   :  { %4801 = vmatpush1.msra.mxu0 %v12376_v26  ;;  %4872 = vmatpush1.msra.mxu1 %v12382_v61 }
0x12db   :  { %4802 = vmatprep.subr.mxu0 %v12388_v30  ;;  %4873 = vmatprep.subr.mxu1 %v12394_v35 }
0x12dc   :  { %4803 = vmatpush1.msra.mxu0 %v12400_v13  ;;  %4874 = vmatpush1.msra.mxu1 %v12406_v0 }
0x12dd   :  { %4804 = vmatprep.subr.mxu0 %v12412_v9  ;;  %4875 = vmatprep.subr.mxu1 %v12418_v63 }
0x12de   :  { %4805 = vmatpush1.msra.mxu0 %v11725_v40  ;;  %4876 = vmatpush1.msra.mxu1 %v11730_v41  ;;  %v15591_v40 = vld [vmem:[#allocation34_spill] sm:$0xff] }
0x12df   :  { %4806 = vmatprep.subr.mxu0 %v11737_v42  ;;  %4877 = vmatprep.subr.mxu1 %v11742_v43  ;;  %v15592_v41 = vld [vmem:[#allocation26_spill] sm:$0xff]  ;;  %v15593_v42 = vld [vmem:[#allocation39_spill] sm:$0xff]  ;;  %v15594_v43 = vld [vmem:[#allocation37_spill] sm:$0xff] }
0x12e0   :  { %4807 = vmatpush1.msra.mxu0 %v11749_v44  ;;  %4878 = vmatpush1.msra.mxu1 %v11754_v45  ;;  %v15595_v44 = vmov 0.0   ;;  %v15596_v45 = vld [vmem:[#allocation40_spill] sm:$0xff] }
0x12e1   :  { %4808 = vmatprep.subr.mxu0 %v11761_v46  ;;  %4879 = vmatprep.subr.mxu1 %v11766_v5  ;;  %v12472_v46 = vld [vmem:[%s14541_s8 + $0x1e8] sm:$0xff]  ;;  %v12478_v5 = vld [vmem:[%s14541_s8 + $0x1f8] sm:$0xff] }
0x12e2   :  { %4809 = vmatpush1.msra.mxu0 %v11773_v15  ;;  %4880 = vmatpush1.msra.mxu1 %v11778_v50  ;;  %15597 = vst [vmem:[#allocation54_spill] sm:$0xff] %v12472_v46  ;;  %15598 = vst [vmem:[#allocation41_spill] sm:$0xff] %v12478_v5  ;;  %v15599_v15 = vld [vmem:[#allocation14_spill] sm:$0xff]  ;;  %v15600_v50 = vld [vmem:[#allocation47_spill] sm:$0xff] }
0x12e3   :  { %4810 = vmatprep.subr.mxu0 %v11785_v14  ;;  %4881 = vmatprep.subr.mxu1 %v11790_v56  ;;  %v3855_v14 = vadd.f32 %v15600_v50, %v15599_v15  ;;  %v12552_v50 = vld [vmem:[%s14541_s8 + $0x128] sm:$0xff] }
0x12e4   :  { %4811 = vmatpush1.msra.mxu0 %v11797_v11  ;;  %4882 = vmatpush1.msra.mxu1 %v11802_v3  ;;  %v15601_v11 = vld [vmem:[#allocation36_spill] sm:$0xff] }
0x12e5   :  { %4812 = vmatprep.subr.mxu0 %v11809_v20  ;;  %4883 = vmatprep.subr.mxu1 %v11814_v27  ;;  %v3857_v3 = vadd.f32 %v15601_v11, %v12136_v4  ;;  %v12570_v11 = vld [vmem:[%s14541_s8 + $0x130] sm:$0xff] }
0x12e6   :  { %4813 = vmatpush1.msra.mxu0 %v11821_v58  ;;  %4884 = vmatpush1.msra.mxu1 %v11826_v51 }
0x12e7   :  { %4814 = vmatprep.subr.mxu0 %v11833_v25  ;;  %4885 = vmatprep.subr.mxu1 %v11838_v32 }
0x12e8   :  { %4815 = vmatpush1.msra.mxu0 %v11845_v59  ;;  %4886 = vmatpush1.msra.mxu1 %v11850_v60  ;;  %v15602_v60 = vld [vmem:[#allocation16_spill] sm:$0xff] }
0x12e9   :  { %4816 = vmatprep.subr.mxu0 %v11857_v17  ;;  %4887 = vmatprep.subr.mxu1 %v11862_v6  ;;  %v3970_v17 = vadd.f32 %v15602_v60, %v15557_v29  ;;  %v12624_v60 = vld [vmem:[%s14541_s8 + $0xc8] sm:$0xff] }
0x12ea   :  { %4817 = vmatpush1.msra.mxu0 %v15473_v31  ;;  %4888 = vmatpush1.msra.mxu1 %v15561_v52  ;;  %v15603_v31 = vld [vmem:[#allocation33_spill] sm:$0xff] }
0x12eb   :  { %4818 = vmatprep.subr.mxu0 %v15562_v16  ;;  %4889 = vmatprep.subr.mxu1 %v15563_v53  ;;  %v3968_v52 = vadd.f32 %v15603_v31, %v12151_v55  ;;  %v12642_v31 = vld [vmem:[%s14541_s8 + $0xd0] sm:$0xff] }
0x12ec   :  { %4819 = vmatpush1.msra.mxu0 %v15564_v18  ;;  %4890 = vmatpush1.msra.mxu1 %v15565_v21 }
0x12ed   :  { %4820 = vmatprep.subr.mxu0 %v15566_v1  ;;  %4891 = vmatprep.subr.mxu1 %v15567_v62 }
0x12ee   :  { %4821 = vmatpush1.msra.mxu0 %v15568_v19  ;;  %4892 = vmatpush1.msra.mxu1 %v15569_v22 }
0x12ef   :  { %4822 = vmatprep.subr.mxu0 %v15570_v23  ;;  %4893 = vmatprep.subr.mxu1 %v15571_v24 }
0x12f0   :  { %4823 = vmatpush1.msra.mxu0 %v15572_v33  ;;  %4894 = vmatpush1.msra.mxu1 %v15573_v34 }
0x12f1   :  { %4824 = vmatprep.subr.mxu0 %v15574_v36  ;;  %4895 = vmatprep.subr.mxu1 %v15575_v37 }
0x12f2   :  { %4825 = vmatpush1.msra.mxu0 %v15576_v39  ;;  %4896 = vmatpush1.msra.mxu1 %v15591_v40  ;;  %v12522_v40 = vld [vmem:[%s14541_s8 + $0x170] sm:$0xff] }
0x12f3   :  { %4826 = vmatprep.subr.mxu0 %v15592_v41  ;;  %4897 = vmatprep.subr.mxu1 %v15593_v42  ;;  %v12528_v41 = vld [vmem:[%s14541_s8 + $0x148] sm:$0xff]  ;;  %v12534_v42 = vld [vmem:[%s14541_s8 + $0x158] sm:$0xff] }
0x12f4   :  { %4827 = vmatpush1.msra.mxu0 %v15594_v43  ;;  %4860 = vmatprep.mubr.f32.mxu0 %v15595_v44  ;;  %v12540_v43 = vld [vmem:[%s14541_s8 + $0x140] sm:$0xff] }
0x12f5   :  { %4898 = vmatpush1.msra.mxu1 %v15596_v45  ;;  %4931 = vmatprep.mubr.f32.mxu1 %v15595_v44  ;;  %v12546_v45 = vld [vmem:[%s14541_s8 + $0x150] sm:$0xff] }
0x12f6   :  { %4971 = vmatprep.subr.mxu0 %v12472_v46  ;;  %5042 = vmatprep.subr.mxu1 %v12478_v5 }
0x1395   :  { %v4687_v56 = vpop.f32.mrf.mxu0  ;;  %v4758_v25 = vpop.f32.mrf.mxu1 }
0x1396   :  { %v4763_v20 = vadd.f32 %v4687_v56, %v3855_v14  ;;  %v4765_v16 = vadd.f32 %v4758_v25, %v3968_v52  ;;  %v12558_v14 = vld [vmem:[%s14541_s8 + $0x138] sm:$0xff]  ;;  %v12564_v56 = vld [vmem:[%s14541_s8 + $0x120] sm:$0xff]  ;;  %v12648_v52 = vld [vmem:[%s14541_s8 + $0xa8] sm:$0xff] }
0x1397   :  { %v4689_v27 = vpop.f32.mrf.mxu0  ;;  %v4760_v59 = vpop.f32.mrf.mxu1  ;;  %v12606_v25 = vld [vmem:[%s14541_s8 + $0xf8] sm:$0xff] }
0x1398   :  { %v7363_v58 = vmul.f32 -1.442695, %v4763_v20  ;;  %v4764_v51 = vadd.f32 %v4689_v27, %v3857_v3  ;;  %v4766_v6 = vadd.f32 %v4760_v59, %v3970_v17  ;;  %v12576_v3 = vld [vmem:[%s14541_s8 + $0x108] sm:$0xff]  ;;  %v12582_v20 = vld [vmem:[%s14541_s8 + $0x118] sm:$0xff]  ;;  %v12588_v27 = vld [vmem:[%s14541_s8 + $0x100] sm:$0xff] }
0x1399   :  { %v12618_v59 = vld [vmem:[%s14541_s8 + $0xf0] sm:$0xff]  ;;  %v12630_v17 = vld [vmem:[%s14541_s8 + $0xd8] sm:$0xff] }
0x139a   :  { %7707 = vpow2.f32 %v7363_v58  ;;  %v7364_v32 = vmul.f32 -1.442695, %v4764_v51  ;;  %v7365_v53 = vmul.f32 -1.442695, %v4766_v6  ;;  %v12594_v58 = vld [vmem:[%s14541_s8 + $0x110] sm:$0xff]  ;;  %v12600_v51 = vld [vmem:[%s14541_s8 + $0xe8] sm:$0xff] }
0x139b   :  { %v12636_v6 = vld [vmem:[%s14541_s8 + $0xc0] sm:$0xff] }
0x139c   :  { %7709 = vpow2.f32 %v7364_v32  ;;  %v12612_v32 = vld [vmem:[%s14541_s8 + $0xe0] sm:$0xff] }
0x139d   :  { %7711 = vtanh.f32 %v4765_v16  ;;  %v12654_v16 = vld [vmem:[%s14541_s8 + $0xb8] sm:$0xff] }
0x139e   :  { %7713 = vpow2.f32 %v7365_v53  ;;  %v12660_v53 = vld [vmem:[%s14541_s8 + $0xa0] sm:$0xff] }
0x13a7   :  { %v7708_v18 = vpop.eup %7707 }
0x13a8   :  { %v4770_v21 = vadd.f32 1.0, %v7708_v18  ;;  %v12666_v18 = vld [vmem:[%s14541_s8 + $0xb0] sm:$0xff] }
0x13a9   :  { %v7710_v1 = vpop.eup %7709  ;;  %15605 = vst [vmem:[#allocation10_spill] sm:$0xff] %v12666_v18 }
0x13aa   :  { %7715 = vrcp.f32 %v4770_v21  ;;  %v4776_v62 = vadd.f32 1.0, %v7710_v1  ;;  %v7712_v19 = vpop.eup %7711  ;;  %v12672_v21 = vld [vmem:[%s14541_s8 + $0x88] sm:$0xff]  ;;  %v12678_v1 = vld [vmem:[%s14541_s8 + $0x98] sm:$0xff] }
0x13ab   :  { %v7714_v22 = vpop.eup %7713  ;;  %15606 = vst [vmem:[#allocation11_spill] sm:$0xff] %v12672_v21  ;;  %15607 = vst [vmem:[#allocation20_spill] sm:$0xff] %v12678_v1 }
0x13ac   :  { %7717 = vrcp.f32 %v4776_v62  ;;  %v4783_v34 = vadd.f32 1.0, %v7714_v22  ;;  %v12684_v62 = vld [vmem:[%s14541_s8 + $0x80] sm:$0xff]  ;;  %v12696_v22 = vld [vmem:[%s14541_s8 + $0x68] sm:$0xff] }
0x13ad   :  { %15608 = vst [vmem:[#allocation22_spill] sm:$0xff] %v12684_v62  ;;  %15610 = vst [vmem:[#allocation21_spill] sm:$0xff] %v12696_v22 }
0x13ae   :  { %7719 = vrcp.f32 %v4783_v34  ;;  %v12720_v34 = vld [vmem:[%s14541_s8 + $0x48] sm:$0xff] }
0x13af   :  { %15614 = vst [vmem:[#allocation25_spill] sm:$0xff] %v12720_v34 }
0x13b7   :  { %v7716_v23 = vpop.eup %7715 }
0x13b8   :  { %v4787_v24 = vmul.f32 %v7716_v23, %v7712_v19  ;;  %v12690_v19 = vld [vmem:[%s14541_s8 + $0x90] sm:$0xff]  ;;  %v12702_v23 = vld [vmem:[%s14541_s8 + $0x78] sm:$0xff] }
0x13b9   :  { %v7718_v33 = vpop.eup %7717  ;;  %15609 = vst [vmem:[#allocation23_spill] sm:$0xff] %v12690_v19  ;;  %15611 = vst [vmem:[#allocation24_spill] sm:$0xff] %v12702_v23 }
0x13ba   :  { %v4786_v36 = vmul.f32 %v7718_v33, %v12318_v57  ;;  %v12516_v57 = vld [vmem:[%s14541_s8 + $0x160] sm:$0xff]  ;;  %v12714_v33 = vld [vmem:[%s14541_s8 + $0x70] sm:$0xff] }
0x13bb   :  { %v7720_v39 = vpop.eup %7719  ;;  %15613 = vst [vmem:[#allocation5_spill] sm:$0xff] %v12714_v33 }
0x13bc   :  { %v12490_v37 = vadd.f32 %v4787_v24, %v4786_v36  ;;  %v12708_v24 = vld [vmem:[%s14541_s8 + $0x60] sm:$0xff]  ;;  %v12726_v36 = vld [vmem:[%s14541_s8 + $0x58] sm:$0xff] }
0x13bd   :  { %15612 = vst [vmem:[#allocation4_spill] sm:$0xff] %v12708_v24  ;;  %15615 = vst [vmem:[#allocation60_spill] sm:$0xff] %v12726_v36 }
0x13be   :  { %7721 = vtanh.f32 %v12490_v37 }
0x13cb   :  { %v7722_v12 = vpop.eup %7721 }
0x13cc   :  { %v12493_v8 = vmul.f32 %v7722_v12, %v7720_v39  ;;  %v12732_v39 = vld [vmem:[%s14541_s8 + $0x40] sm:$0xff]  ;;  %v12738_v12 = vld [vmem:[%s14541_s8 + $0x50] sm:$0xff] }
0x13cd   :  { %15616 = vst [vmem:[#allocation15_spill] sm:$0xff] %v12732_v39  ;;  %15617 = vst [vmem:[#allocation51_spill] sm:$0xff] %v12738_v12 }
0x13ce   :  { %15604 = vst [vmem:[#allocation29_spill] sm:$0xff] %v12493_v8  ;;  %4861 = vmatmul.mubr.f32.vlgmr.msra.gmra.mxu0 %v12493_v8  ;;  %4932 = vmatmul.mubr.f32.vlgmr.msra.gmra.mxu1 %v12493_v8  ;;  %v12744_v8 = vld [vmem:[%s14541_s8 + $0x28] sm:$0xff] }
0x13cf   :  { %4972 = vmatpush1.msra.mxu0 %v12328_v7  ;;  %5043 = vmatpush1.msra.mxu1 %v12334_v28  ;;  %15618 = vst [vmem:[#allocation52_spill] sm:$0xff] %v12744_v8 }
0x13d0   :  { %4973 = vmatprep.subr.mxu0 %v12340_v54  ;;  %5044 = vmatprep.subr.mxu1 %v12346_v47 }
0x13d1   :  { %4974 = vmatpush1.msra.mxu0 %v12352_v10  ;;  %5045 = vmatpush1.msra.mxu1 %v12358_v38 }
0x13d2   :  { %4975 = vmatprep.subr.mxu0 %v12364_v48  ;;  %5046 = vmatprep.subr.mxu1 %v12370_v2 }
0x13d3   :  { %4976 = vmatpush1.msra.mxu0 %v12376_v26  ;;  %5047 = vmatpush1.msra.mxu1 %v12382_v61 }
0x13d4   :  { %4977 = vmatprep.subr.mxu0 %v12388_v30  ;;  %5048 = vmatprep.subr.mxu1 %v12394_v35 }
0x13d5   :  { %4978 = vmatpush1.msra.mxu0 %v12400_v13  ;;  %5049 = vmatpush1.msra.mxu1 %v12406_v0 }
0x13d6   :  { %4979 = vmatprep.subr.mxu0 %v12412_v9  ;;  %5050 = vmatprep.subr.mxu1 %v12418_v63 }
0x13d7   :  { %4980 = vmatpush1.msra.mxu0 %v12516_v57  ;;  %5051 = vmatpush1.msra.mxu1 %v12522_v40 }
0x13d8   :  { %4981 = vmatprep.subr.mxu0 %v12528_v41  ;;  %5052 = vmatprep.subr.mxu1 %v12534_v42 }
0x13d9   :  { %4982 = vmatpush1.msra.mxu0 %v12540_v43  ;;  %5053 = vmatpush1.msra.mxu1 %v12546_v45 }
0x13da   :  { %4983 = vmatprep.subr.mxu0 %v12552_v50  ;;  %5054 = vmatprep.subr.mxu1 %v12558_v14 }
0x13db   :  { %4984 = vmatpush1.msra.mxu0 %v12564_v56  ;;  %5055 = vmatpush1.msra.mxu1 %v12570_v11 }
0x13dc   :  { %4985 = vmatprep.subr.mxu0 %v12576_v3  ;;  %5056 = vmatprep.subr.mxu1 %v12582_v20 }
0x13dd   :  { %4986 = vmatpush1.msra.mxu0 %v12588_v27  ;;  %5057 = vmatpush1.msra.mxu1 %v12594_v58 }
0x13de   :  { %4987 = vmatprep.subr.mxu0 %v12600_v51  ;;  %5058 = vmatprep.subr.mxu1 %v12606_v25 }
0x13df   :  { %4988 = vmatpush1.msra.mxu0 %v12612_v32  ;;  %5059 = vmatpush1.msra.mxu1 %v12618_v59 }
0x13e0   :  { %4989 = vmatprep.subr.mxu0 %v12624_v60  ;;  %5060 = vmatprep.subr.mxu1 %v12630_v17 }
0x13e1   :  { %4990 = vmatpush1.msra.mxu0 %v12636_v6  ;;  %5061 = vmatpush1.msra.mxu1 %v12642_v31 }
0x13e2   :  { %4991 = vmatprep.subr.mxu0 %v12648_v52  ;;  %5062 = vmatprep.subr.mxu1 %v12654_v16 }
0x13e3   :  { %4992 = vmatpush1.msra.mxu0 %v12660_v53  ;;  %5063 = vmatpush1.msra.mxu1 %v12666_v18 }
0x13e4   :  { %4993 = vmatprep.subr.mxu0 %v12672_v21  ;;  %5064 = vmatprep.subr.mxu1 %v12678_v1  ;;  %v15629_v1 = vld [vmem:[#allocation19_spill] sm:$0xff] }
0x13e5   :  { %4994 = vmatpush1.msra.mxu0 %v12684_v62  ;;  %5065 = vmatpush1.msra.mxu1 %v12690_v19 }
0x13e6   :  { %4995 = vmatprep.subr.mxu0 %v12696_v22  ;;  %5066 = vmatprep.subr.mxu1 %v12702_v23 }
0x13e7   :  { %4996 = vmatpush1.msra.mxu0 %v12708_v24  ;;  %5067 = vmatpush1.msra.mxu1 %v12714_v33 }
0x13e8   :  { %4997 = vmatprep.subr.mxu0 %v12720_v34  ;;  %5068 = vmatprep.subr.mxu1 %v12726_v36 }
0x13e9   :  { %4998 = vmatpush1.msra.mxu0 %v12732_v39  ;;  %5069 = vmatpush1.msra.mxu1 %v12738_v12  ;;  %v12756_v39 = vld [vmem:[%s14541_s8 + $0x20] sm:$0xff]  ;;  %v12762_v12 = vld [vmem:[%s14541_s8 + $0x30] sm:$0xff] }
0x13ea   :  { %4999 = vmatprep.subr.mxu0 %v12744_v8  ;;  %5070 = vmatprep.subr.mxu1 %v12750_v49  ;;  %15620 = vst [vmem:[#allocation49_spill] sm:$0xff] %v12756_v39  ;;  %15621 = vst [vmem:[#allocation46_spill] sm:$0xff] %v12762_v12  ;;  %v12768_v8 = vld [vmem:[%s14541_s8 + $0x8] sm:$0xff]  ;;  %v12774_v49 = vld [vmem:[%s14541_s8 + $0x18] sm:$0xff] }
0x13eb   :  { %5000 = vmatpush1.msra.mxu0 %v12756_v39  ;;  %5071 = vmatpush1.msra.mxu1 %v12762_v12  ;;  %15622 = vst [vmem:[#allocation8_spill] sm:$0xff] %v12768_v8  ;;  %15623 = vst [vmem:[#allocation44_spill] sm:$0xff] %v12774_v49  ;;  %v12780_v39 = vld [vmem:[%s14541_s8] sm:$0xff] }
0x13ec   :  { %5001 = vmatprep.subr.mxu0 %v12768_v8  ;;  %5072 = vmatprep.subr.mxu1 %v12774_v49  ;;  %15624 = vst [vmem:[#allocation32_spill] sm:$0xff] %v12780_v39  ;;  %v12787_v8 = vld [vmem:[%s14541_s8 + $0x10] sm:$0xff] }
0x13ed   :  { %5002 = vmatpush1.msra.mxu0 %v12780_v39  ;;  %5035 = vmatprep.mubr.f32.mxu0 %v15595_v44  ;;  %15625 = vst [vmem:[#allocation30_spill] sm:$0xff] %v12787_v8  ;;  %v15626_v49 = vld [vmem:[#allocation18_spill] sm:$0xff]  ;;  %v15627_v39 = vld [vmem:[#allocation17_spill] sm:$0xff] }
0x13ee   :  { %5073 = vmatpush1.msra.mxu1 %v12787_v8  ;;  %5106 = vmatprep.mubr.f32.mxu1 %v15595_v44  ;;  %v3861_v12 = vadd.f32 %v15626_v49, %v15599_v15  ;;  %v3863_v34 = vadd.f32 %v15627_v39, %v12136_v4  ;;  %v3974_v49 = vadd.f32 %v15629_v1, %v12151_v55  ;;  %v15633_v1 = vld [vmem:[#allocation20_spill] sm:$0xff] }
0x13ef   :  { %5146 = vmatprep.subr.mxu0 %v12472_v46  ;;  %5217 = vmatprep.subr.mxu1 %v12478_v5  ;;  %v15628_v46 = vld [vmem:[#allocation45_spill] sm:$0xff] }
0x13f0   :  { %v3976_v62 = vadd.f32 %v15628_v46, %v15557_v29 }
0x148e   :  { %v4862_v36 = vpop.f32.mrf.mxu0  ;;  %v4933_v19 = vpop.f32.mrf.mxu1 }
0x148f   :  { %v4938_v33 = vadd.f32 %v4862_v36, %v3861_v12  ;;  %v4940_v15 = vadd.f32 %v4933_v19, %v3974_v49  ;;  %v15634_v19 = vld [vmem:[#allocation22_spill] sm:$0xff]  ;;  %v15635_v12 = vld [vmem:[#allocation23_spill] sm:$0xff]  ;;  %v15636_v49 = vld [vmem:[#allocation21_spill] sm:$0xff] }
0x1490   :  { %v4864_v24 = vpop.f32.mrf.mxu0  ;;  %v4935_v44 = vpop.f32.mrf.mxu1 }
0x1491   :  { %v7366_v23 = vmul.f32 -1.442695, %v4938_v33  ;;  %v4939_v22 = vadd.f32 %v4864_v24, %v3863_v34  ;;  %v4941_v5 = vadd.f32 %v4935_v44, %v3976_v62 }
0x1493   :  { %7723 = vpow2.f32 %v7366_v23  ;;  %v7367_v8 = vmul.f32 -1.442695, %v4939_v22  ;;  %v7368_v21 = vmul.f32 -1.442695, %v4941_v5 }
0x1495   :  { %7725 = vpow2.f32 %v7367_v8 }
0x1496   :  { %7727 = vtanh.f32 %v4940_v15 }
0x1497   :  { %7729 = vpow2.f32 %v7368_v21  ;;  %v15632_v21 = vld [vmem:[#allocation11_spill] sm:$0xff] }
0x14a0   :  { %v7724_v18 = vpop.eup %7723 }
0x14a1   :  { %v4945_v39 = vadd.f32 1.0, %v7724_v18 }
0x14a2   :  { %v7726_v36 = vpop.eup %7725 }
0x14a3   :  { %7731 = vrcp.f32 %v4945_v39  ;;  %v4951_v23 = vadd.f32 1.0, %v7726_v36  ;;  %v7728_v22 = vpop.eup %7727  ;;  %v15637_v39 = vld [vmem:[#allocation24_spill] sm:$0xff] }
0x14a4   :  { %v7730_v8 = vpop.eup %7729  ;;  %v15638_v36 = vld [vmem:[#allocation4_spill] sm:$0xff] }
0x14a5   :  { %7733 = vrcp.f32 %v4951_v23  ;;  %v4958_v46 = vadd.f32 1.0, %v7730_v8  ;;  %v15639_v23 = vld [vmem:[#allocation5_spill] sm:$0xff]  ;;  %v15641_v8 = vld [vmem:[#allocation60_spill] sm:$0xff] }
0x14a7   :  { %7735 = vrcp.f32 %v4958_v46  ;;  %v15645_v46 = vld [vmem:[#allocation50_spill] sm:$0xff] }
0x14b0   :  { %v7732_v24 = vpop.eup %7731 }
0x14b1   :  { %v4962_v33 = vmul.f32 %v7732_v24, %v7728_v22  ;;  %v15640_v22 = vld [vmem:[#allocation25_spill] sm:$0xff]  ;;  %v15642_v24 = vld [vmem:[#allocation15_spill] sm:$0xff] }
0x14b2   :  { %v7734_v34 = vpop.eup %7733 }
0x14b3   :  { %v4961_v44 = vmul.f32 %v7734_v34, %v12490_v37  ;;  %v15631_v37 = vld [vmem:[#allocation10_spill] sm:$0xff]  ;;  %v15644_v34 = vld [vmem:[#allocation52_spill] sm:$0xff] }
0x14b4   :  { %v7736_v5 = vpop.eup %7735 }
0x14b5   :  { %v12802_v62 = vadd.f32 %v4962_v33, %v4961_v44  ;;  %v15643_v33 = vld [vmem:[#allocation51_spill] sm:$0xff]  ;;  %v15646_v44 = vld [vmem:[#allocation49_spill] sm:$0xff] }
0x14b7   :  { %7737 = vtanh.f32 %v12802_v62 }
0x14c4   :  { %v7738_v15 = vpop.eup %7737 }
0x14c5   :  { %v12805_v18 = vmul.f32 %v7738_v15, %v7736_v5  ;;  %v15647_v5 = vld [vmem:[#allocation46_spill] sm:$0xff]  ;;  %v15648_v15 = vld [vmem:[#allocation8_spill] sm:$0xff] }
0x14c7   :  { %15630 = vst [vmem:[#allocation42_spill] sm:$0xff] %v12805_v18  ;;  %5036 = vmatmul.mubr.f32.vlgmr.msra.gmra.mxu0 %v12805_v18  ;;  %5107 = vmatmul.mubr.f32.vlgmr.msra.gmra.mxu1 %v12805_v18  ;;  %v15649_v18 = vld [vmem:[#allocation44_spill] sm:$0xff] }
0x14c8   :  { %5147 = vmatpush1.msra.mxu0 %v12328_v7  ;;  %5218 = vmatpush1.msra.mxu1 %v12334_v28 }
0x14c9   :  { %5148 = vmatprep.subr.mxu0 %v12340_v54  ;;  %5219 = vmatprep.subr.mxu1 %v12346_v47 }
0x14ca   :  { %5149 = vmatpush1.msra.mxu0 %v12352_v10  ;;  %5220 = vmatpush1.msra.mxu1 %v12358_v38 }
0x14cb   :  { %5150 = vmatprep.subr.mxu0 %v12364_v48  ;;  %5221 = vmatprep.subr.mxu1 %v12370_v2 }
0x14cc   :  { %5151 = vmatpush1.msra.mxu0 %v12376_v26  ;;  %5222 = vmatpush1.msra.mxu1 %v12382_v61 }
0x14cd   :  { %5152 = vmatprep.subr.mxu0 %v12388_v30  ;;  %5223 = vmatprep.subr.mxu1 %v12394_v35 }
0x14ce   :  { %5153 = vmatpush1.msra.mxu0 %v12400_v13  ;;  %5224 = vmatpush1.msra.mxu1 %v12406_v0 }
0x14cf   :  { %5154 = vmatprep.subr.mxu0 %v12412_v9  ;;  %5225 = vmatprep.subr.mxu1 %v12418_v63 }
0x14d0   :  { %5155 = vmatpush1.msra.mxu0 %v12516_v57  ;;  %5226 = vmatpush1.msra.mxu1 %v12522_v40 }
0x14d1   :  { %5156 = vmatprep.subr.mxu0 %v12528_v41  ;;  %5227 = vmatprep.subr.mxu1 %v12534_v42 }
0x14d2   :  { %5157 = vmatpush1.msra.mxu0 %v12540_v43  ;;  %5228 = vmatpush1.msra.mxu1 %v12546_v45 }
0x14d3   :  { %5158 = vmatprep.subr.mxu0 %v12552_v50  ;;  %5229 = vmatprep.subr.mxu1 %v12558_v14 }
0x14d4   :  { %5159 = vmatpush1.msra.mxu0 %v12564_v56  ;;  %5230 = vmatpush1.msra.mxu1 %v12570_v11 }
0x14d5   :  { %5160 = vmatprep.subr.mxu0 %v12576_v3  ;;  %5231 = vmatprep.subr.mxu1 %v12582_v20 }
0x14d6   :  { %5161 = vmatpush1.msra.mxu0 %v12588_v27  ;;  %5232 = vmatpush1.msra.mxu1 %v12594_v58 }
0x14d7   :  { %5162 = vmatprep.subr.mxu0 %v12600_v51  ;;  %5233 = vmatprep.subr.mxu1 %v12606_v25 }
0x14d8   :  { %5163 = vmatpush1.msra.mxu0 %v12612_v32  ;;  %5234 = vmatpush1.msra.mxu1 %v12618_v59 }
0x14d9   :  { %5164 = vmatprep.subr.mxu0 %v12624_v60  ;;  %5235 = vmatprep.subr.mxu1 %v12630_v17 }
0x14da   :  { %5165 = vmatpush1.msra.mxu0 %v12636_v6  ;;  %5236 = vmatpush1.msra.mxu1 %v12642_v31 }
0x14db   :  { %5166 = vmatprep.subr.mxu0 %v12648_v52  ;;  %5237 = vmatprep.subr.mxu1 %v12654_v16 }
0x14dc   :  { %5167 = vmatpush1.msra.mxu0 %v12660_v53  ;;  %5238 = vmatpush1.msra.mxu1 %v15631_v37 }
0x14dd   :  { %5168 = vmatprep.subr.mxu0 %v15632_v21  ;;  %5239 = vmatprep.subr.mxu1 %v15633_v1  ;;  %v15659_v1 = vld [vmem:[#allocation59_spill] sm:$0xff] }
0x14de   :  { %5169 = vmatpush1.msra.mxu0 %v15634_v19  ;;  %5240 = vmatpush1.msra.mxu1 %v15635_v12 }
0x14df   :  { %5170 = vmatprep.subr.mxu0 %v15636_v49  ;;  %5241 = vmatprep.subr.mxu1 %v15637_v39 }
0x14e0   :  { %5171 = vmatpush1.msra.mxu0 %v15638_v36  ;;  %5242 = vmatpush1.msra.mxu1 %v15639_v23  ;;  %v15650_v23 = vld [vmem:[#allocation32_spill] sm:$0xff] }
0x14e1   :  { %5172 = vmatprep.subr.mxu0 %v15640_v22  ;;  %5243 = vmatprep.subr.mxu1 %v15641_v8  ;;  %v15651_v22 = vmov 0.0   ;;  %v15652_v8 = vld [vmem:[#allocation30_spill] sm:$0xff] }
0x14e2   :  { %5173 = vmatpush1.msra.mxu0 %v15642_v24  ;;  %5244 = vmatpush1.msra.mxu1 %v15643_v33  ;;  %v15653_v33 = vld [vmem:[#allocation54_spill] sm:$0xff] }
0x14e3   :  { %5174 = vmatprep.subr.mxu0 %v15644_v34  ;;  %5245 = vmatprep.subr.mxu1 %v15645_v46  ;;  %v15654_v34 = vld [vmem:[#allocation41_spill] sm:$0xff]  ;;  %v15655_v46 = vld [vmem:[#allocation14_spill] sm:$0xff] }
0x14e4   :  { %5175 = vmatpush1.msra.mxu0 %v15646_v44  ;;  %5246 = vmatpush1.msra.mxu1 %v15647_v5  ;;  %v15656_v44 = vld [vmem:[#allocation7_spill] sm:$0xff] }
0x14e5   :  { %5176 = vmatprep.subr.mxu0 %v15648_v15  ;;  %5247 = vmatprep.subr.mxu1 %v15649_v18  ;;  %v3867_v24 = vadd.f32 %v15656_v44, %v15655_v46  ;;  %v15657_v15 = vld [vmem:[#allocation31_spill] sm:$0xff]  ;;  %v3980_v44 = vadd.f32 %v15659_v1, %v12151_v55 }
0x14e6   :  { %5177 = vmatpush1.msra.mxu0 %v15650_v23  ;;  %5210 = vmatprep.mubr.f32.mxu0 %v15651_v22  ;;  %v3869_v36 = vadd.f32 %v15657_v15, %v12136_v4 }
0x14e7   :  { %5248 = vmatpush1.msra.mxu1 %v15652_v8  ;;  %5281 = vmatprep.mubr.f32.mxu1 %v15651_v22 }
0x14e8   :  { %5321 = vmatprep.subr.mxu0 %v15653_v33  ;;  %5392 = vmatprep.subr.mxu1 %v15654_v34  ;;  %v15658_v33 = vld [vmem:[#allocation35_spill] sm:$0xff] }
0x14e9   :  { %v3982_v19 = vadd.f32 %v15658_v33, %v15557_v29 }
0x1587   :  { %v5037_v5 = vpop.f32.mrf.mxu0  ;;  %v5108_v12 = vpop.f32.mrf.mxu1 }
0x1588   :  { %v5113_v18 = vadd.f32 %v5037_v5, %v3867_v24  ;;  %v5115_v46 = vadd.f32 %v5108_v12, %v3980_v44 }
0x1589   :  { %v5039_v39 = vpop.f32.mrf.mxu0  ;;  %v5110_v22 = vpop.f32.mrf.mxu1 }
0x158a   :  { %v7369_v23 = vmul.f32 -1.442695, %v5113_v18  ;;  %v5114_v49 = vadd.f32 %v5039_v39, %v3869_v36  ;;  %v5116_v34 = vadd.f32 %v5110_v22, %v3982_v19 }
0x158c   :  { %7739 = vpow2.f32 %v7369_v23  ;;  %v7370_v8 = vmul.f32 -1.442695, %v5114_v49  ;;  %v7371_v21 = vmul.f32 -1.442695, %v5116_v34 }
0x158e   :  { %7741 = vpow2.f32 %v7370_v8 }
0x158f   :  { %7743 = vtanh.f32 %v5115_v46 }
0x1590   :  { %7745 = vpow2.f32 %v7371_v21 }
0x1599   :  { %v7740_v37 = vpop.eup %7739 }
0x159a   :  { %v5120_v15 = vadd.f32 1.0, %v7740_v37 }
0x159b   :  { %v7742_v24 = vpop.eup %7741 }
0x159c   :  { %7747 = vrcp.f32 %v5120_v15  ;;  %v5126_v18 = vadd.f32 1.0, %v7742_v24  ;;  %v7744_v49 = vpop.eup %7743 }
0x159d   :  { %v7746_v39 = vpop.eup %7745 }
0x159e   :  { %7749 = vrcp.f32 %v5126_v18  ;;  %v5133_v5 = vadd.f32 1.0, %v7746_v39 }
0x15a0   :  { %7751 = vrcp.f32 %v5133_v5 }
0x15a9   :  { %v7748_v36 = vpop.eup %7747 }
0x15aa   :  { %v5137_v23 = vmul.f32 %v7748_v36, %v7744_v49 }
0x15ab   :  { %v7750_v8 = vpop.eup %7749 }
0x15ac   :  { %v5136_v19 = vmul.f32 %v7750_v8, %v12802_v62 }
0x15ad   :  { %v7752_v37 = vpop.eup %7751 }
0x15ae   :  { %v12884_v22 = vadd.f32 %v5137_v23, %v5136_v19 }
0x15b0   :  { %7753 = vtanh.f32 %v12884_v22 }
0x15bd   :  { %v7754_v1 = vpop.eup %7753 }
0x15be   :  { %v12887_v12 = vmul.f32 %v7754_v1, %v7752_v37 }
0x15c0   :  { %5211 = vmatmul.mubr.f32.vlgmr.msra.gmra.mxu0 %v12887_v12  ;;  %5282 = vmatmul.mubr.f32.vlgmr.msra.gmra.mxu1 %v12887_v12 }
0x15c1   :  { %5322 = vmatpush1.msra.mxu0 %v12328_v7  ;;  %5393 = vmatpush1.msra.mxu1 %v12334_v28  ;;  %v15660_v7 = vld [vmem:[#allocation10_spill] sm:$0xff]  ;;  %v15661_v28 = vld [vmem:[#allocation11_spill] sm:$0xff] }
0x15c2   :  { %5323 = vmatprep.subr.mxu0 %v12340_v54  ;;  %5394 = vmatprep.subr.mxu1 %v12346_v47  ;;  %v15662_v54 = vld [vmem:[#allocation20_spill] sm:$0xff]  ;;  %v15663_v47 = vld [vmem:[#allocation22_spill] sm:$0xff] }
0x15c3   :  { %5324 = vmatpush1.msra.mxu0 %v12352_v10  ;;  %5395 = vmatpush1.msra.mxu1 %v12358_v38  ;;  %v15664_v10 = vld [vmem:[#allocation23_spill] sm:$0xff]  ;;  %v15665_v38 = vld [vmem:[#allocation21_spill] sm:$0xff] }
0x15c4   :  { %5325 = vmatprep.subr.mxu0 %v12364_v48  ;;  %5396 = vmatprep.subr.mxu1 %v12370_v2  ;;  %v15666_v48 = vld [vmem:[#allocation24_spill] sm:$0xff] }
0x15c5   :  { %5326 = vmatpush1.msra.mxu0 %v12376_v26  ;;  %5397 = vmatpush1.msra.mxu1 %v12382_v61  ;;  %v15667_v2 = vld [vmem:[#allocation4_spill] sm:$0xff]  ;;  %v15668_v26 = vld [vmem:[#allocation5_spill] sm:$0xff] }
0x15c6   :  { %5327 = vmatprep.subr.mxu0 %v12388_v30  ;;  %5398 = vmatprep.subr.mxu1 %v12394_v35  ;;  %v15669_v61 = vld [vmem:[#allocation25_spill] sm:$0xff]  ;;  %v15670_v30 = vld [vmem:[#allocation60_spill] sm:$0xff]  ;;  %v15671_v35 = vld [vmem:[#allocation15_spill] sm:$0xff] }
0x15c7   :  { %5328 = vmatpush1.msra.mxu0 %v12400_v13  ;;  %5399 = vmatpush1.msra.mxu1 %v12406_v0  ;;  %v15672_v13 = vld [vmem:[#allocation51_spill] sm:$0xff]  ;;  %v15673_v0 = vld [vmem:[#allocation52_spill] sm:$0xff] }
0x15c8   :  { %5329 = vmatprep.subr.mxu0 %v12412_v9  ;;  %5400 = vmatprep.subr.mxu1 %v12418_v63  ;;  %v15674_v9 = vld [vmem:[#allocation50_spill] sm:$0xff]  ;;  %v15675_v63 = vld [vmem:[#allocation49_spill] sm:$0xff] }
0x15c9   :  { %5330 = vmatpush1.msra.mxu0 %v12516_v57  ;;  %5401 = vmatpush1.msra.mxu1 %v12522_v40  ;;  %v15676_v57 = vld [vmem:[#allocation46_spill] sm:$0xff]  ;;  %v15677_v40 = vld [vmem:[#allocation8_spill] sm:$0xff] }
0x15ca   :  { %5331 = vmatprep.subr.mxu0 %v12528_v41  ;;  %5402 = vmatprep.subr.mxu1 %v12534_v42  ;;  %v15678_v41 = vld [vmem:[#allocation44_spill] sm:$0xff] }
0x15cb   :  { %5332 = vmatpush1.msra.mxu0 %v12540_v43  ;;  %5403 = vmatpush1.msra.mxu1 %v12546_v45  ;;  %v15679_v42 = vld [vmem:[#allocation32_spill] sm:$0xff]  ;;  %v15680_v43 = vld [vmem:[#allocation30_spill] sm:$0xff]  ;;  %v15681_v45 = vmov 0.0  }
0x15cc   :  { %5333 = vmatprep.subr.mxu0 %v12552_v50  ;;  %5404 = vmatprep.subr.mxu1 %v12558_v14  ;;  %v5561_v50 = vld [vmem:[%s14543_s10 + $0x1e8] sm:$0xff]  ;;  %v5563_v14 = vld [vmem:[%s14543_s10 + $0x1f8] sm:$0xff] }
0x15cd   :  { %5334 = vmatpush1.msra.mxu0 %v12564_v56  ;;  %5405 = vmatpush1.msra.mxu1 %v12570_v11  ;;  %v15682_v56 = vld [vmem:[#allocation14_spill] sm:$0xff] }
0x15ce   :  { %5335 = vmatprep.subr.mxu0 %v12576_v3  ;;  %5406 = vmatprep.subr.mxu1 %v12582_v20  ;;  %v15683_v11 = vld [vmem:[#allocation6_spill] sm:$0xff] }
0x15cf   :  { %5336 = vmatpush1.msra.mxu0 %v12588_v27  ;;  %5407 = vmatpush1.msra.mxu1 %v12594_v58  ;;  %v3873_v3 = vadd.f32 %v15683_v11, %v15682_v56  ;;  %v15684_v27 = vld [vmem:[#allocation12_spill] sm:$0xff] }
0x15d0   :  { %5337 = vmatprep.subr.mxu0 %v12600_v51  ;;  %5408 = vmatprep.subr.mxu1 %v12606_v25  ;;  %v3875_v58 = vadd.f32 %v15684_v27, %v12136_v4  ;;  %v5536_v11 = vld [vmem:[%s14543_s10 + $0x120] sm:$0xff]  ;;  %v5535_v27 = vld [vmem:[%s14543_s10 + $0x118] sm:$0xff] }
0x15d1   :  { %5338 = vmatpush1.msra.mxu0 %v12612_v32  ;;  %5409 = vmatpush1.msra.mxu1 %v12618_v59 }
0x15d2   :  { %5339 = vmatprep.subr.mxu0 %v12624_v60  ;;  %5410 = vmatprep.subr.mxu1 %v12630_v17 }
0x15d3   :  { %5340 = vmatpush1.msra.mxu0 %v12636_v6  ;;  %5411 = vmatpush1.msra.mxu1 %v12642_v31  ;;  %v15685_v31 = vld [vmem:[#allocation13_spill] sm:$0xff] }
0x15d4   :  { %5341 = vmatprep.subr.mxu0 %v12648_v52  ;;  %5412 = vmatprep.subr.mxu1 %v12654_v16  ;;  %v3988_v52 = vadd.f32 %v15685_v31, %v15557_v29  ;;  %v5524_v31 = vld [vmem:[%s14543_s10 + $0xc0] sm:$0xff] }
0x15d5   :  { %5342 = vmatpush1.msra.mxu0 %v12660_v53  ;;  %5413 = vmatpush1.msra.mxu1 %v15660_v7  ;;  %v15686_v53 = vld [vmem:[#allocation61_spill] sm:$0xff]  ;;  %v5560_v7 = vld [vmem:[%s14543_s10 + $0x1e0] sm:$0xff] }
0x15d6   :  { %5343 = vmatprep.subr.mxu0 %v15661_v28  ;;  %5414 = vmatprep.subr.mxu1 %v15662_v54  ;;  %v3986_v62 = vadd.f32 %v15686_v53, %v12151_v55  ;;  %v5562_v28 = vld [vmem:[%s14543_s10 + $0x1f0] sm:$0xff]  ;;  %v5559_v54 = vld [vmem:[%s14543_s10 + $0x1d8] sm:$0xff] }
0x15d7   :  { %5344 = vmatpush1.msra.mxu0 %v15663_v47  ;;  %5415 = vmatpush1.msra.mxu1 %v15664_v10  ;;  %v5556_v47 = vld [vmem:[%s14543_s10 + $0x1c0] sm:$0xff]  ;;  %v5558_v10 = vld [vmem:[%s14543_s10 + $0x1d0] sm:$0xff]  ;;  %v5523_v53 = vld [vmem:[%s14543_s10 + $0xb8] sm:$0xff] }
0x15d8   :  { %5345 = vmatprep.subr.mxu0 %v15665_v38  ;;  %5416 = vmatprep.subr.mxu1 %v15666_v48  ;;  %v5553_v38 = vld [vmem:[%s14543_s10 + $0x1a8] sm:$0xff]  ;;  %v5555_v48 = vld [vmem:[%s14543_s10 + $0x1b8] sm:$0xff] }
0x15d9   :  { %5346 = vmatpush1.msra.mxu0 %v15667_v2  ;;  %5417 = vmatpush1.msra.mxu1 %v15668_v26  ;;  %v5552_v2 = vld [vmem:[%s14543_s10 + $0x1a0] sm:$0xff]  ;;  %v5554_v26 = vld [vmem:[%s14543_s10 + $0x1b0] sm:$0xff] }
0x15da   :  { %5347 = vmatprep.subr.mxu0 %v15669_v61  ;;  %5418 = vmatprep.subr.mxu1 %v15670_v30  ;;  %v5549_v61 = vld [vmem:[%s14543_s10 + $0x188] sm:$0xff]  ;;  %v5551_v30 = vld [vmem:[%s14543_s10 + $0x198] sm:$0xff] }
0x15db   :  { %5348 = vmatpush1.msra.mxu0 %v15671_v35  ;;  %5419 = vmatpush1.msra.mxu1 %v15672_v13  ;;  %v5548_v35 = vld [vmem:[%s14543_s10 + $0x180] sm:$0xff]  ;;  %v5550_v13 = vld [vmem:[%s14543_s10 + $0x190] sm:$0xff] }
0x15dc   :  { %5349 = vmatprep.subr.mxu0 %v15673_v0  ;;  %5420 = vmatprep.subr.mxu1 %v15674_v9  ;;  %v5545_v0 = vld [vmem:[%s14543_s10 + $0x168] sm:$0xff]  ;;  %v5547_v9 = vld [vmem:[%s14543_s10 + $0x178] sm:$0xff] }
0x15dd   :  { %5350 = vmatpush1.msra.mxu0 %v15675_v63  ;;  %5421 = vmatpush1.msra.mxu1 %v15676_v57  ;;  %v5544_v63 = vld [vmem:[%s14543_s10 + $0x160] sm:$0xff]  ;;  %v5546_v57 = vld [vmem:[%s14543_s10 + $0x170] sm:$0xff] }
0x15de   :  { %5351 = vmatprep.subr.mxu0 %v15677_v40  ;;  %5422 = vmatprep.subr.mxu1 %v15678_v41  ;;  %v5541_v40 = vld [vmem:[%s14543_s10 + $0x148] sm:$0xff]  ;;  %v5543_v41 = vld [vmem:[%s14543_s10 + $0x158] sm:$0xff] }
0x15df   :  { %5352 = vmatpush1.msra.mxu0 %v15679_v42  ;;  %5423 = vmatpush1.msra.mxu1 %v15680_v43  ;;  %v5540_v42 = vld [vmem:[%s14543_s10 + $0x140] sm:$0xff]  ;;  %v5542_v43 = vld [vmem:[%s14543_s10 + $0x150] sm:$0xff] }
0x15e0   :  { %5385 = vmatprep.mubr.f32.mxu0 %v15681_v45  ;;  %5456 = vmatprep.mubr.f32.mxu1 %v15681_v45 }
0x15e1   :  { %5586 = vmatprep.subr.mxu0 %v5561_v50  ;;  %5699 = vmatprep.subr.mxu1 %v5563_v14  ;;  %v5537_v50 = vld [vmem:[%s14543_s10 + $0x128] sm:$0xff]  ;;  %v5539_v14 = vld [vmem:[%s14543_s10 + $0x138] sm:$0xff] }
0x1680   :  { %v5212_v20 = vpop.f32.mrf.mxu0  ;;  %v5283_v60 = vpop.f32.mrf.mxu1 }
0x1681   :  { %v5288_v51 = vadd.f32 %v5212_v20, %v3873_v3  ;;  %v5290_v21 = vadd.f32 %v5283_v60, %v3986_v62  ;;  %v5538_v3 = vld [vmem:[%s14543_s10 + $0x130] sm:$0xff]  ;;  %v5533_v20 = vld [vmem:[%s14543_s10 + $0x108] sm:$0xff]  ;;  %v5520_v62 = vld [vmem:[%s14543_s10 + $0xa0] sm:$0xff] }
0x1682   :  { %v5214_v25 = vpop.f32.mrf.mxu0  ;;  %v5285_v6 = vpop.f32.mrf.mxu1  ;;  %v5530_v60 = vld [vmem:[%s14543_s10 + $0xf0] sm:$0xff] }
0x1683   :  { %v7372_v32 = vmul.f32 -1.442695, %v5288_v51  ;;  %v5289_v59 = vadd.f32 %v5214_v25, %v3875_v58  ;;  %v5291_v16 = vadd.f32 %v5285_v6, %v3988_v52  ;;  %v5532_v58 = vld [vmem:[%s14543_s10 + $0x100] sm:$0xff]  ;;  %v5534_v51 = vld [vmem:[%s14543_s10 + $0x110] sm:$0xff]  ;;  %v5529_v25 = vld [vmem:[%s14543_s10 + $0xe8] sm:$0xff] }
0x1684   :  { %v5527_v6 = vld [vmem:[%s14543_s10 + $0xd8] sm:$0xff]  ;;  %v5526_v52 = vld [vmem:[%s14543_s10 + $0xd0] sm:$0xff] }
0x1685   :  { %7755 = vpow2.f32 %v7372_v32  ;;  %v7373_v17 = vmul.f32 -1.442695, %v5289_v59  ;;  %v7374_v46 = vmul.f32 -1.442695, %v5291_v16  ;;  %v5531_v32 = vld [vmem:[%s14543_s10 + $0xf8] sm:$0xff]  ;;  %v5528_v59 = vld [vmem:[%s14543_s10 + $0xe0] sm:$0xff] }
0x1686   :  { %v5521_v16 = vld [vmem:[%s14543_s10 + $0xa8] sm:$0xff] }
0x1687   :  { %7757 = vpow2.f32 %v7373_v17  ;;  %v5525_v17 = vld [vmem:[%s14543_s10 + $0xc8] sm:$0xff] }
0x1688   :  { %7759 = vtanh.f32 %v5290_v21  ;;  %v5522_v21 = vld [vmem:[%s14543_s10 + $0xb0] sm:$0xff] }
0x1689   :  { %7761 = vpow2.f32 %v7374_v46  ;;  %v5517_v46 = vld [vmem:[%s14543_s10 + $0x88] sm:$0xff] }
0x1692   :  { %v7756_v33 = vpop.eup %7755 }
0x1693   :  { %v5295_v34 = vadd.f32 1.0, %v7756_v33  ;;  %v5519_v33 = vld [vmem:[%s14543_s10 + $0x98] sm:$0xff] }
0x1694   :  { %v7758_v44 = vpop.eup %7757 }
0x1695   :  { %7763 = vrcp.f32 %v5295_v34  ;;  %v5301_v15 = vadd.f32 1.0, %v7758_v44  ;;  %v7760_v24 = vpop.eup %7759  ;;  %v5516_v34 = vld [vmem:[%s14543_s10 + $0x80] sm:$0xff]  ;;  %v5518_v44 = vld [vmem:[%s14543_s10 + $0x90] sm:$0xff] }
0x1696   :  { %v7762_v18 = vpop.eup %7761 }
0x1697   :  { %7765 = vrcp.f32 %v5301_v15  ;;  %v5308_v23 = vadd.f32 1.0, %v7762_v18  ;;  %v5513_v15 = vld [vmem:[%s14543_s10 + $0x68] sm:$0xff]  ;;  %v5512_v18 = vld [vmem:[%s14543_s10 + $0x60] sm:$0xff] }
0x1699   :  { %7767 = vrcp.f32 %v5308_v23  ;;  %v5508_v23 = vld [vmem:[%s14543_s10 + $0x40] sm:$0xff] }
0x16a2   :  { %v7764_v49 = vpop.eup %7763 }
0x16a3   :  { %v5312_v39 = vmul.f32 %v7764_v49, %v7760_v24  ;;  %v5515_v24 = vld [vmem:[%s14543_s10 + $0x78] sm:$0xff]  ;;  %v5514_v49 = vld [vmem:[%s14543_s10 + $0x70] sm:$0xff] }
0x16a4   :  { %v7766_v36 = vpop.eup %7765 }
0x16a5   :  { %v5311_v8 = vmul.f32 %v7766_v36, %v12884_v22  ;;  %v5557_v22 = vld [vmem:[%s14543_s10 + $0x1c8] sm:$0xff]  ;;  %v5511_v36 = vld [vmem:[%s14543_s10 + $0x58] sm:$0xff] }
0x16a6   :  { %v7768_v19 = vpop.eup %7767 }
0x16a7   :  { %v12970_v5 = vadd.f32 %v5312_v39, %v5311_v8  ;;  %v5509_v39 = vld [vmem:[%s14543_s10 + $0x48] sm:$0xff]  ;;  %v5510_v8 = vld [vmem:[%s14543_s10 + $0x50] sm:$0xff] }
0x16a9   :  { %7769 = vtanh.f32 %v12970_v5 }
0x16b6   :  { %v7770_v37 = vpop.eup %7769 }
0x16b7   :  { %v12973_v1 = vmul.f32 %v7770_v37, %v7768_v19  ;;  %v5505_v19 = vld [vmem:[%s14543_s10 + $0x28] sm:$0xff]  ;;  %v5507_v37 = vld [vmem:[%s14543_s10 + $0x38] sm:$0xff] }
0x16b9   :  { %5386 = vmatmul.mubr.f32.vlgmr.msra.gmra.mxu0 %v12973_v1  ;;  %5457 = vmatmul.mubr.f32.vlgmr.msra.gmra.mxu1 %v12973_v1 }
0x16ba   :  { %5587 = vmatpush1.msra.mxu0 %v5560_v7  ;;  %5700 = vmatpush1.msra.mxu1 %v5562_v28  ;;  %v5504_v7 = vld [vmem:[%s14543_s10 + $0x20] sm:$0xff]  ;;  %v5506_v28 = vld [vmem:[%s14543_s10 + $0x30] sm:$0xff] }
0x16bb   :  { %5588 = vmatprep.subr.mxu0 %v5557_v22  ;;  %5701 = vmatprep.subr.mxu1 %v5559_v54  ;;  %v5501_v22 = vld [vmem:[%s14543_s10 + $0x8] sm:$0xff]  ;;  %v5503_v54 = vld [vmem:[%s14543_s10 + $0x18] sm:$0xff] }
0x16bc   :  { %5589 = vmatpush1.msra.mxu0 %v5556_v47  ;;  %5702 = vmatpush1.msra.mxu1 %v5558_v10  ;;  %v5500_v47 = vld [vmem:[%s14543_s10] sm:$0xff]  ;;  %v5502_v10 = vld [vmem:[%s14543_s10 + $0x10] sm:$0xff] }
0x16bd   :  { %5590 = vmatprep.subr.mxu0 %v5553_v38  ;;  %5703 = vmatprep.subr.mxu1 %v5555_v48  ;;  %v15687_v38 = vld [vmem:[#allocation9_spill] sm:$0xff]  ;;  %v15688_v48 = vld [vmem:[#allocation38_spill] sm:$0xff] }
0x16be   :  { %5591 = vmatpush1.msra.mxu0 %v5552_v2  ;;  %5704 = vmatpush1.msra.mxu1 %v5554_v26  ;;  %v15689_v2 = vld [vmem:[#allocation43_spill] sm:$0xff]  ;;  %v15690_v26 = vld [vmem:[#allocation29_spill] sm:$0xff] }
0x16bf   :  { %5592 = vmatprep.subr.mxu0 %v5549_v61  ;;  %5705 = vmatprep.subr.mxu1 %v5551_v30  ;;  %v15691_v61 = vld [vmem:[#allocation42_spill] sm:$0xff]  ;;  %v13196_v30 = vld [vmem:[%s14544_s11 + $0x1e8] sm:$0xff] }
0x16c0   :  { %5593 = vmatpush1.msra.mxu0 %v5548_v35  ;;  %5706 = vmatpush1.msra.mxu1 %v5550_v13  ;;  %15692 = vst [vmem:[#allocation34_spill] sm:$0xff] %v13196_v30  ;;  %v13213_v35 = vld [vmem:[%s14544_s11 + $0x1f0] sm:$0xff]  ;;  %v13220_v13 = vld [vmem:[%s14544_s11 + $0x1c8] sm:$0xff] }
0x16c1   :  { %5594 = vmatprep.subr.mxu0 %v5545_v0  ;;  %5707 = vmatprep.subr.mxu1 %v5547_v9  ;;  %v13225_v0 = vld [vmem:[%s14544_s11 + $0x1d8] sm:$0xff]  ;;  %v13232_v9 = vld [vmem:[%s14544_s11 + $0x1c0] sm:$0xff] }
0x16c2   :  { %5595 = vmatpush1.msra.mxu0 %v5544_v63  ;;  %5708 = vmatpush1.msra.mxu1 %v5546_v57  ;;  %v13237_v63 = vld [vmem:[%s14544_s11 + $0x1d0] sm:$0xff]  ;;  %v13244_v57 = vld [vmem:[%s14544_s11 + $0x1a8] sm:$0xff] }
0x16c3   :  { %5596 = vmatprep.subr.mxu0 %v5541_v40  ;;  %5709 = vmatprep.subr.mxu1 %v5543_v41  ;;  %v13249_v40 = vld [vmem:[%s14544_s11 + $0x1b8] sm:$0xff]  ;;  %v13256_v41 = vld [vmem:[%s14544_s11 + $0x1a0] sm:$0xff] }
0x16c4   :  { %5597 = vmatpush1.msra.mxu0 %v5540_v42  ;;  %5710 = vmatpush1.msra.mxu1 %v5542_v43  ;;  %v13261_v42 = vld [vmem:[%s14544_s11 + $0x1b0] sm:$0xff]  ;;  %v13268_v43 = vld [vmem:[%s14544_s11 + $0x188] sm:$0xff] }
0x16c5   :  { %5598 = vmatprep.subr.mxu0 %v5537_v50  ;;  %5711 = vmatprep.subr.mxu1 %v5539_v14  ;;  %v13273_v50 = vld [vmem:[%s14544_s11 + $0x198] sm:$0xff]  ;;  %v13280_v14 = vld [vmem:[%s14544_s11 + $0x180] sm:$0xff] }
0x16c6   :  { %5599 = vmatpush1.msra.mxu0 %v5536_v11  ;;  %5712 = vmatpush1.msra.mxu1 %v5538_v3  ;;  %v13285_v11 = vld [vmem:[%s14544_s11 + $0x190] sm:$0xff]  ;;  %v13292_v3 = vld [vmem:[%s14544_s11 + $0x168] sm:$0xff] }
0x16c7   :  { %5600 = vmatprep.subr.mxu0 %v5533_v20  ;;  %5713 = vmatprep.subr.mxu1 %v5535_v27  ;;  %v13297_v20 = vld [vmem:[%s14544_s11 + $0x178] sm:$0xff]  ;;  %v13304_v27 = vld [vmem:[%s14544_s11 + $0x160] sm:$0xff] }
0x16c8   :  { %5601 = vmatpush1.msra.mxu0 %v5532_v58  ;;  %5714 = vmatpush1.msra.mxu1 %v5534_v51  ;;  %v13309_v58 = vld [vmem:[%s14544_s11 + $0x170] sm:$0xff]  ;;  %v13316_v51 = vld [vmem:[%s14544_s11 + $0x148] sm:$0xff] }
0x16c9   :  { %5602 = vmatprep.subr.mxu0 %v5529_v25  ;;  %5715 = vmatprep.subr.mxu1 %v5531_v32  ;;  %v13321_v25 = vld [vmem:[%s14544_s11 + $0x158] sm:$0xff]  ;;  %v13328_v32 = vld [vmem:[%s14544_s11 + $0x140] sm:$0xff] }
0x16ca   :  { %5603 = vmatpush1.msra.mxu0 %v5528_v59  ;;  %5716 = vmatpush1.msra.mxu1 %v5530_v60  ;;  %v13333_v59 = vld [vmem:[%s14544_s11 + $0x150] sm:$0xff]  ;;  %v13340_v60 = vld [vmem:[%s14544_s11 + $0x128] sm:$0xff] }
0x16cb   :  { %5604 = vmatprep.subr.mxu0 %v5525_v17  ;;  %5717 = vmatprep.subr.mxu1 %v5527_v6  ;;  %v13345_v17 = vld [vmem:[%s14544_s11 + $0x138] sm:$0xff]  ;;  %v13352_v6 = vld [vmem:[%s14544_s11 + $0x120] sm:$0xff] }
0x16cc   :  { %5605 = vmatpush1.msra.mxu0 %v5524_v31  ;;  %5718 = vmatpush1.msra.mxu1 %v5526_v52  ;;  %v13357_v31 = vld [vmem:[%s14544_s11 + $0x130] sm:$0xff]  ;;  %v13364_v52 = vld [vmem:[%s14544_s11 + $0x108] sm:$0xff] }
0x16cd   :  { %5606 = vmatprep.subr.mxu0 %v5521_v16  ;;  %5719 = vmatprep.subr.mxu1 %v5523_v53  ;;  %v13369_v16 = vld [vmem:[%s14544_s11 + $0x118] sm:$0xff]  ;;  %v13376_v53 = vld [vmem:[%s14544_s11 + $0x100] sm:$0xff] }
0x16ce   :  { %5607 = vmatpush1.msra.mxu0 %v5520_v62  ;;  %5720 = vmatpush1.msra.mxu1 %v5522_v21  ;;  %v13381_v62 = vld [vmem:[%s14544_s11 + $0x110] sm:$0xff]  ;;  %v13388_v21 = vld [vmem:[%s14544_s11 + $0xe8] sm:$0xff] }
0x16cf   :  { %5608 = vmatprep.subr.mxu0 %v5517_v46  ;;  %5721 = vmatprep.subr.mxu1 %v5519_v33  ;;  %v13393_v46 = vld [vmem:[%s14544_s11 + $0xf8] sm:$0xff]  ;;  %v13400_v33 = vld [vmem:[%s14544_s11 + $0xe0] sm:$0xff] }
0x16d0   :  { %5609 = vmatpush1.msra.mxu0 %v5516_v34  ;;  %5722 = vmatpush1.msra.mxu1 %v5518_v44  ;;  %v13405_v34 = vld [vmem:[%s14544_s11 + $0xf0] sm:$0xff]  ;;  %v13412_v44 = vld [vmem:[%s14544_s11 + $0xc8] sm:$0xff] }
0x16d1   :  { %5610 = vmatprep.subr.mxu0 %v5513_v15  ;;  %5723 = vmatprep.subr.mxu1 %v5515_v24  ;;  %v13417_v15 = vld [vmem:[%s14544_s11 + $0xd8] sm:$0xff]  ;;  %v13424_v24 = vld [vmem:[%s14544_s11 + $0xc0] sm:$0xff] }
0x16d2   :  { %5611 = vmatpush1.msra.mxu0 %v5512_v18  ;;  %5724 = vmatpush1.msra.mxu1 %v5514_v49  ;;  %v13429_v18 = vld [vmem:[%s14544_s11 + $0xd0] sm:$0xff]  ;;  %v13436_v49 = vld [vmem:[%s14544_s11 + $0xa8] sm:$0xff] }
0x16d3   :  { %5612 = vmatprep.subr.mxu0 %v5509_v39  ;;  %5725 = vmatprep.subr.mxu1 %v5511_v36  ;;  %v13441_v39 = vld [vmem:[%s14544_s11 + $0xb8] sm:$0xff]  ;;  %v13448_v36 = vld [vmem:[%s14544_s11 + $0xa0] sm:$0xff] }
0x16d4   :  { %5613 = vmatpush1.msra.mxu0 %v5508_v23  ;;  %5726 = vmatpush1.msra.mxu1 %v5510_v8  ;;  %15694 = vst [vmem:[#allocation39_spill] sm:$0xff] %v13448_v36  ;;  %v13453_v23 = vld [vmem:[%s14544_s11 + $0xb0] sm:$0xff]  ;;  %v13460_v8 = vld [vmem:[%s14544_s11 + $0x88] sm:$0xff] }
0x16d5   :  { %5614 = vmatprep.subr.mxu0 %v5505_v19  ;;  %5727 = vmatprep.subr.mxu1 %v5507_v37  ;;  %15695 = vst [vmem:[#allocation37_spill] sm:$0xff] %v13453_v23  ;;  %15696 = vst [vmem:[#allocation40_spill] sm:$0xff] %v13460_v8  ;;  %v13465_v19 = vld [vmem:[%s14544_s11 + $0x98] sm:$0xff]  ;;  %v13472_v37 = vld [vmem:[%s14544_s11 + $0x80] sm:$0xff] }
0x16d6   :  { %5615 = vmatpush1.msra.mxu0 %v5504_v7  ;;  %5728 = vmatpush1.msra.mxu1 %v5506_v28  ;;  %15697 = vst [vmem:[#allocation47_spill] sm:$0xff] %v13465_v19  ;;  %15698 = vst [vmem:[#allocation36_spill] sm:$0xff] %v13472_v37  ;;  %v13477_v7 = vld [vmem:[%s14544_s11 + $0x90] sm:$0xff]  ;;  %v13484_v28 = vld [vmem:[%s14544_s11 + $0x68] sm:$0xff] }
0x16d7   :  { %5616 = vmatprep.subr.mxu0 %v5501_v22  ;;  %5729 = vmatprep.subr.mxu1 %v5503_v54  ;;  %15699 = vst [vmem:[#allocation16_spill] sm:$0xff] %v13477_v7  ;;  %15700 = vst [vmem:[#allocation33_spill] sm:$0xff] %v13484_v28  ;;  %v13489_v22 = vld [vmem:[%s14544_s11 + $0x78] sm:$0xff]  ;;  %v13496_v54 = vld [vmem:[%s14544_s11 + $0x60] sm:$0xff] }
0x16d8   :  { %5617 = vmatpush1.msra.mxu0 %v5500_v47  ;;  %5650 = vmatprep.mubr.f32.mxu0 %v15681_v45  ;;  %15701 = vst [vmem:[#allocation18_spill] sm:$0xff] %v13489_v22  ;;  %15702 = vst [vmem:[#allocation17_spill] sm:$0xff] %v13496_v54  ;;  %v13501_v47 = vld [vmem:[%s14544_s11 + $0x70] sm:$0xff] }
0x16d9   :  { %5730 = vmatpush1.msra.mxu1 %v5502_v10  ;;  %5763 = vmatprep.mubr.f32.mxu1 %v15681_v45  ;;  %15703 = vst [vmem:[#allocation45_spill] sm:$0xff] %v13501_v47  ;;  %v13508_v10 = vld [vmem:[%s14544_s11 + $0x48] sm:$0xff] }
0x16da   :  { %5651 = vmatmul.mubr.f32.vlgmr.msra.gmra.mxu0 %v15687_v38  ;;  %5764 = vmatmul.mubr.f32.vlgmr.msra.gmra.mxu1 %v15687_v38  ;;  %15704 = vst [vmem:[#allocation19_spill] sm:$0xff] %v13508_v10  ;;  %v13513_v38 = vld [vmem:[%s14544_s11 + $0x58] sm:$0xff] }
0x16db   :  { %5656 = vmatprep.mubr.f32.mxu0 %v15681_v45  ;;  %5769 = vmatprep.mubr.f32.mxu1 %v15681_v45  ;;  %15705 = vst [vmem:[#allocation54_spill] sm:$0xff] %v13513_v38 }
0x16dc   :  { %5912 = vmatprep.subr.mxu0 %v13196_v30 }
0x16de   :  { %5657 = vmatmul.mubr.f32.gmra.mxu0 %v15688_v48  ;;  %5770 = vmatmul.mubr.f32.gmra.mxu1 %v15688_v48  ;;  %v13520_v48 = vld [vmem:[%s14544_s11 + $0x40] sm:$0xff] }
0x16df   :  { %5662 = vmatprep.mubr.f32.mxu0 %v15681_v45  ;;  %5775 = vmatprep.mubr.f32.mxu1 %v15681_v45  ;;  %15706 = vst [vmem:[#allocation41_spill] sm:$0xff] %v13520_v48 }
0x16e2   :  { %5663 = vmatmul.mubr.f32.gmra.mxu0 %v15689_v2  ;;  %5776 = vmatmul.mubr.f32.gmra.mxu1 %v15689_v2  ;;  %v13525_v2 = vld [vmem:[%s14544_s11 + $0x50] sm:$0xff] }
0x16e3   :  { %5668 = vmatprep.mubr.f32.mxu0 %v15681_v45  ;;  %5781 = vmatprep.mubr.f32.mxu1 %v15681_v45  ;;  %15707 = vst [vmem:[#allocation7_spill] sm:$0xff] %v13525_v2 }
0x16e6   :  { %5669 = vmatmul.mubr.f32.gmra.mxu0 %v15690_v26  ;;  %5782 = vmatmul.mubr.f32.gmra.mxu1 %v15690_v26  ;;  %v13532_v26 = vld [vmem:[%s14544_s11 + $0x28] sm:$0xff] }
0x16e7   :  { %5674 = vmatprep.mubr.f32.mxu0 %v15681_v45  ;;  %5787 = vmatprep.mubr.f32.mxu1 %v15681_v45  ;;  %15708 = vst [vmem:[#allocation31_spill] sm:$0xff] %v13532_v26 }
0x16ea   :  { %5675 = vmatmul.mubr.f32.gmra.mxu0 %v15691_v61  ;;  %5788 = vmatmul.mubr.f32.gmra.mxu1 %v15691_v61  ;;  %v13537_v61 = vld [vmem:[%s14544_s11 + $0x38] sm:$0xff] }
0x16eb   :  { %5680 = vmatprep.mubr.f32.mxu0 %v15681_v45  ;;  %5793 = vmatprep.mubr.f32.mxu1 %v15681_v45  ;;  %15709 = vst [vmem:[#allocation35_spill] sm:$0xff] %v13537_v61 }
0x16ee   :  { %5681 = vmatmul.mubr.f32.gmra.mxu0 %v12887_v12  ;;  %5794 = vmatmul.mubr.f32.gmra.mxu1 %v12887_v12  ;;  %v13201_v12 = vld [vmem:[%s14544_s11 + $0x1f8] sm:$0xff] }
0x16ef   :  { %5686 = vmatprep.mubr.f32.mxu0 %v15681_v45  ;;  %5799 = vmatprep.mubr.f32.mxu1 %v15681_v45  ;;  %15693 = vst [vmem:[#allocation26_spill] sm:$0xff] %v13201_v12 }
0x16f0   :  { %5983 = vmatprep.subr.mxu1 %v13201_v12 }
0x16f1   :  { %5984 = vmatpush1.msra.mxu1 %v13213_v35 }
0x16f2   :  { %5687 = vmatmul.mubr.f32.gmra.mxu0 %v12973_v1  ;;  %5800 = vmatmul.mubr.f32.gmra.mxu1 %v12973_v1  ;;  %v13208_v1 = vld [vmem:[%s14544_s11 + $0x1e0] sm:$0xff] }
0x16f3   :  { %5692 = vmatprep.mubr.f32.mxu0 %v15681_v45  ;;  %5805 = vmatprep.mubr.f32.mxu1 %v15681_v45 }
0x16f4   :  { %5913 = vmatpush1.msra.mxu0 %v13208_v1  ;;  %5985 = vmatprep.subr.mxu1 %v13225_v0 }
0x16f5   :  { %5914 = vmatprep.subr.mxu0 %v13220_v13  ;;  %5986 = vmatpush1.msra.mxu1 %v13237_v63 }
0x16f6   :  { %5915 = vmatpush1.msra.mxu0 %v13232_v9  ;;  %5987 = vmatprep.subr.mxu1 %v13249_v40 }
0x16f7   :  { %5916 = vmatprep.subr.mxu0 %v13244_v57  ;;  %5988 = vmatpush1.msra.mxu1 %v13261_v42 }
0x16f8   :  { %5917 = vmatpush1.msra.mxu0 %v13256_v41  ;;  %5989 = vmatprep.subr.mxu1 %v13273_v50 }
0x16f9   :  { %5918 = vmatprep.subr.mxu0 %v13268_v43  ;;  %5990 = vmatpush1.msra.mxu1 %v13285_v11 }
0x16fa   :  { %5919 = vmatpush1.msra.mxu0 %v13280_v14  ;;  %5991 = vmatprep.subr.mxu1 %v13297_v20 }
0x16fb   :  { %5920 = vmatprep.subr.mxu0 %v13292_v3  ;;  %5992 = vmatpush1.msra.mxu1 %v13309_v58 }
0x16fc   :  { %5921 = vmatpush1.msra.mxu0 %v13304_v27  ;;  %5993 = vmatprep.subr.mxu1 %v13321_v25 }
0x16fd   :  { %5922 = vmatprep.subr.mxu0 %v13316_v51  ;;  %5994 = vmatpush1.msra.mxu1 %v13333_v59 }
0x16fe   :  { %5923 = vmatpush1.msra.mxu0 %v13328_v32  ;;  %5995 = vmatprep.subr.mxu1 %v13345_v17 }
0x16ff   :  { %5924 = vmatprep.subr.mxu0 %v13340_v60  ;;  %5996 = vmatpush1.msra.mxu1 %v13357_v31 }
0x1700   :  { %5925 = vmatpush1.msra.mxu0 %v13352_v6  ;;  %5997 = vmatprep.subr.mxu1 %v13369_v16 }
0x1701   :  { %5926 = vmatprep.subr.mxu0 %v13364_v52  ;;  %5998 = vmatpush1.msra.mxu1 %v13381_v62 }
0x1702   :  { %5927 = vmatpush1.msra.mxu0 %v13376_v53  ;;  %5999 = vmatprep.subr.mxu1 %v13393_v46 }
0x1703   :  { %5928 = vmatprep.subr.mxu0 %v13388_v21  ;;  %6000 = vmatpush1.msra.mxu1 %v13405_v34 }
0x1704   :  { %5929 = vmatpush1.msra.mxu0 %v13400_v33  ;;  %6001 = vmatprep.subr.mxu1 %v13417_v15 }
0x1705   :  { %5930 = vmatprep.subr.mxu0 %v13412_v44  ;;  %6002 = vmatpush1.msra.mxu1 %v13429_v18 }
0x1706   :  { %5931 = vmatpush1.msra.mxu0 %v13424_v24  ;;  %6003 = vmatprep.subr.mxu1 %v13441_v39 }
0x1707   :  { %5932 = vmatprep.subr.mxu0 %v13436_v49  ;;  %6004 = vmatpush1.msra.mxu1 %v13453_v23 }
0x1708   :  { %5933 = vmatpush1.msra.mxu0 %v13448_v36  ;;  %6005 = vmatprep.subr.mxu1 %v13465_v19 }
0x1709   :  { %5934 = vmatprep.subr.mxu0 %v13460_v8  ;;  %6006 = vmatpush1.msra.mxu1 %v13477_v7  ;;  %v15719_v8 = vld [vmem:[#allocation56_spill] sm:$0xff] }
0x170a   :  { %5935 = vmatpush1.msra.mxu0 %v13472_v37  ;;  %6007 = vmatprep.subr.mxu1 %v13489_v22 }
0x170b   :  { %5936 = vmatprep.subr.mxu0 %v13484_v28  ;;  %6008 = vmatpush1.msra.mxu1 %v13501_v47 }
0x170c   :  { %5937 = vmatpush1.msra.mxu0 %v13496_v54  ;;  %6009 = vmatprep.subr.mxu1 %v13513_v38  ;;  %v13566_v38 = vld [vmem:[%s14544_s11] sm:$0xff] }
0x170d   :  { %5938 = vmatprep.subr.mxu0 %v13508_v10  ;;  %6010 = vmatpush1.msra.mxu1 %v13525_v2  ;;  %v13549_v2 = vld [vmem:[%s14544_s11 + $0x30] sm:$0xff]  ;;  %15714 = vst [vmem:[#allocation22_spill] sm:$0xff] %v13566_v38 }
0x170e   :  { %5939 = vmatpush1.msra.mxu0 %v13520_v48  ;;  %6011 = vmatprep.subr.mxu1 %v13537_v61  ;;  %v13544_v48 = vld [vmem:[%s14544_s11 + $0x20] sm:$0xff]  ;;  %15711 = vst [vmem:[#allocation10_spill] sm:$0xff] %v13549_v2  ;;  %v13561_v61 = vld [vmem:[%s14544_s11 + $0x18] sm:$0xff] }
0x170f   :  { %5940 = vmatprep.subr.mxu0 %v13532_v26  ;;  %15710 = vst [vmem:[#allocation59_spill] sm:$0xff] %v13544_v48  ;;  %6012 = vmatpush1.msra.mxu1 %v13549_v2  ;;  %v13556_v26 = vld [vmem:[%s14544_s11 + $0x8] sm:$0xff]  ;;  %15713 = vst [vmem:[#allocation20_spill] sm:$0xff] %v13561_v61  ;;  %v13573_v2 = vld [vmem:[%s14544_s11 + $0x10] sm:$0xff] }
0x1710   :  { %5941 = vmatpush1.msra.mxu0 %v13544_v48  ;;  %15712 = vst [vmem:[#allocation11_spill] sm:$0xff] %v13556_v26  ;;  %6013 = vmatprep.subr.mxu1 %v13561_v61  ;;  %15715 = vst [vmem:[#allocation23_spill] sm:$0xff] %v13573_v2  ;;  %v15716_v48 = vld [vmem:[#allocation48_spill] sm:$0xff] }
0x1711   :  { %5942 = vmatprep.subr.mxu0 %v13556_v26  ;;  %6014 = vmatpush1.msra.mxu1 %v13573_v2  ;;  %v3879_v10 = vadd.f32 %v15716_v48, %v15682_v56  ;;  %v15717_v26 = vld [vmem:[#allocation57_spill] sm:$0xff]  ;;  %v3992_v56 = vadd.f32 %v15719_v8, %v12151_v55  ;;  %v15722_v8 = vld [vmem:[#allocation40_spill] sm:$0xff] }
0x1712   :  { %5943 = vmatpush1.msra.mxu0 %v13566_v38  ;;  %6157 = vmatprep.subr.mxu1 %v13201_v12  ;;  %v3881_v61 = vadd.f32 %v15717_v26, %v12136_v4  ;;  %v15725_v26 = vld [vmem:[#allocation16_spill] sm:$0xff] }
0x1713   :  { %6086 = vmatprep.subr.mxu0 %v13196_v30  ;;  %v15718_v30 = vld [vmem:[#allocation55_spill] sm:$0xff] }
0x1714   :  { %v3994_v19 = vadd.f32 %v15718_v30, %v15557_v29 }
0x1779   :  { %v5387_v47 = vpop.f32.mrf.mxu0  ;;  %v5458_v37 = vpop.f32.mrf.mxu1 }
0x177a   :  { %v5463_v54 = vadd.f32 %v5387_v47, %v3879_v10  ;;  %v5465_v48 = vadd.f32 %v5458_v37, %v3992_v56  ;;  %v15723_v37 = vld [vmem:[#allocation47_spill] sm:$0xff]  ;;  %v15727_v56 = vld [vmem:[#allocation18_spill] sm:$0xff] }
0x177b   :  { %v5389_v22 = vpop.f32.mrf.mxu0  ;;  %v5460_v2 = vpop.f32.mrf.mxu1 }
0x177c   :  { %v7375_v28 = vmul.f32 -1.442695, %v5463_v54  ;;  %v5464_v7 = vadd.f32 %v5389_v22, %v3881_v61  ;;  %v5466_v12 = vadd.f32 %v5460_v2, %v3994_v19  ;;  %v15724_v2 = vld [vmem:[#allocation36_spill] sm:$0xff]  ;;  %v15726_v61 = vld [vmem:[#allocation33_spill] sm:$0xff] }
0x177e   :  { %7771 = vpow2.f32 %v7375_v28  ;;  %v7376_v38 = vmul.f32 -1.442695, %v5464_v7  ;;  %v7377_v23 = vmul.f32 -1.442695, %v5466_v12 }
0x1780   :  { %7773 = vpow2.f32 %v7376_v38 }
0x1781   :  { %7775 = vtanh.f32 %v5465_v48  ;;  %v15728_v48 = vld [vmem:[#allocation17_spill] sm:$0xff] }
0x1782   :  { %7777 = vpow2.f32 %v7377_v23  ;;  %v15721_v23 = vld [vmem:[#allocation37_spill] sm:$0xff] }
0x178b   :  { %v7772_v36 = vpop.eup %7771 }
0x178c   :  { %v5470_v4 = vadd.f32 1.0, %v7772_v36 }
0x178d   :  { %v7774_v47 = vpop.eup %7773 }
0x178e   :  { %7779 = vrcp.f32 %v5470_v4  ;;  %v5476_v28 = vadd.f32 1.0, %v7774_v47  ;;  %v7776_v7 = vpop.eup %7775  ;;  %v15729_v4 = vld [vmem:[#allocation45_spill] sm:$0xff]  ;;  %v15730_v47 = vld [vmem:[#allocation19_spill] sm:$0xff] }
0x178f   :  { %v7778_v22 = vpop.eup %7777 }
0x1790   :  { %7781 = vrcp.f32 %v5476_v28  ;;  %v5483_v29 = vadd.f32 1.0, %v7778_v22  ;;  %v15731_v28 = vld [vmem:[#allocation54_spill] sm:$0xff]  ;;  %v15733_v22 = vld [vmem:[#allocation7_spill] sm:$0xff] }
0x1792   :  { %7783 = vrcp.f32 %v5483_v29  ;;  %v15737_v29 = vld [vmem:[#allocation10_spill] sm:$0xff] }
0x179b   :  { %v7780_v54 = vpop.eup %7779 }
0x179c   :  { %v5487_v10 = vmul.f32 %v7780_v54, %v7776_v7  ;;  %v15732_v7 = vld [vmem:[#allocation41_spill] sm:$0xff]  ;;  %v15734_v54 = vld [vmem:[#allocation31_spill] sm:$0xff] }
0x179d   :  { %v7782_v38 = vpop.eup %7781 }
0x179e   :  { %v5486_v30 = vmul.f32 %v7782_v38, %v12970_v5  ;;  %v15720_v5 = vld [vmem:[#allocation39_spill] sm:$0xff] }
0x179f   :  { %v7784_v55 = vpop.eup %7783  ;;  %v15736_v38 = vld [vmem:[#allocation59_spill] sm:$0xff] }
0x17a0   :  { %v5488_v19 = vadd.f32 %v5487_v10, %v5486_v30  ;;  %v15735_v10 = vld [vmem:[#allocation35_spill] sm:$0xff] }
0x17a1   :  { %v15738_v30 = vld [vmem:[#allocation11_spill] sm:$0xff] }
0x17a2   :  { %7785 = vtanh.f32 %v5488_v19  ;;  %v15739_v19 = vld [vmem:[#allocation20_spill] sm:$0xff] }
0x17af   :  { %v7786_v12 = vpop.eup %7785 }
0x17b0   :  { %v5490_v36 = vmul.f32 %v7786_v12, %v7784_v55  ;;  %v15740_v55 = vld [vmem:[#allocation22_spill] sm:$0xff]  ;;  %v15741_v12 = vld [vmem:[#allocation23_spill] sm:$0xff] }
0x17b2   :  { %5693 = vmatmul.mubr.f32.gmra.mxu0 %v5490_v36  ;;  %7300 = vst [vmem:[%s14545_s13] sm:$0xff] %v5490_v36  ;;  %5806 = vmatmul.mubr.f32.gmra.mxu1 %v5490_v36  ;;  %v15742_v36 = vld [vmem:[#allocation34_spill] sm:$0xff] }
0x17b3   :  { %5976 = vmatprep.mubr.f32.mxu0 %v15681_v45  ;;  %6047 = vmatprep.mubr.f32.mxu1 %v15681_v45 }
0x17b6   :  { %5977 = vmatmul.mubr.f32.vlgmr.msra.gmra.mxu0 %v15681_v45  ;;  %6048 = vmatmul.mubr.f32.vlgmr.msra.gmra.mxu1 %v15681_v45 }
0x17b7   :  { %6087 = vmatpush1.msra.mxu0 %v13208_v1  ;;  %6158 = vmatpush1.msra.mxu1 %v13213_v35 }
0x17b8   :  { %6088 = vmatprep.subr.mxu0 %v13220_v13  ;;  %6159 = vmatprep.subr.mxu1 %v13225_v0 }
0x17b9   :  { %6089 = vmatpush1.msra.mxu0 %v13232_v9  ;;  %6160 = vmatpush1.msra.mxu1 %v13237_v63 }
0x17ba   :  { %6090 = vmatprep.subr.mxu0 %v13244_v57  ;;  %6161 = vmatprep.subr.mxu1 %v13249_v40 }
0x17bb   :  { %6091 = vmatpush1.msra.mxu0 %v13256_v41  ;;  %6162 = vmatpush1.msra.mxu1 %v13261_v42 }
0x17bc   :  { %6092 = vmatprep.subr.mxu0 %v13268_v43  ;;  %6163 = vmatprep.subr.mxu1 %v13273_v50 }
0x17bd   :  { %6093 = vmatpush1.msra.mxu0 %v13280_v14  ;;  %6164 = vmatpush1.msra.mxu1 %v13285_v11 }
0x17be   :  { %6094 = vmatprep.subr.mxu0 %v13292_v3  ;;  %6165 = vmatprep.subr.mxu1 %v13297_v20 }
0x17bf   :  { %6095 = vmatpush1.msra.mxu0 %v13304_v27  ;;  %6166 = vmatpush1.msra.mxu1 %v13309_v58 }
0x17c0   :  { %6096 = vmatprep.subr.mxu0 %v13316_v51  ;;  %6167 = vmatprep.subr.mxu1 %v13321_v25 }
0x17c1   :  { %6097 = vmatpush1.msra.mxu0 %v13328_v32  ;;  %6168 = vmatpush1.msra.mxu1 %v13333_v59 }
0x17c2   :  { %6098 = vmatprep.subr.mxu0 %v13340_v60  ;;  %6169 = vmatprep.subr.mxu1 %v13345_v17 }
0x17c3   :  { %6099 = vmatpush1.msra.mxu0 %v13352_v6  ;;  %6170 = vmatpush1.msra.mxu1 %v13357_v31 }
0x17c4   :  { %6100 = vmatprep.subr.mxu0 %v13364_v52  ;;  %6171 = vmatprep.subr.mxu1 %v13369_v16 }
0x17c5   :  { %6101 = vmatpush1.msra.mxu0 %v13376_v53  ;;  %6172 = vmatpush1.msra.mxu1 %v13381_v62 }
0x17c6   :  { %6102 = vmatprep.subr.mxu0 %v13388_v21  ;;  %6173 = vmatprep.subr.mxu1 %v13393_v46 }
0x17c7   :  { %6103 = vmatpush1.msra.mxu0 %v13400_v33  ;;  %6174 = vmatpush1.msra.mxu1 %v13405_v34 }
0x17c8   :  { %6104 = vmatprep.subr.mxu0 %v13412_v44  ;;  %6175 = vmatprep.subr.mxu1 %v13417_v15 }
0x17c9   :  { %6105 = vmatpush1.msra.mxu0 %v13424_v24  ;;  %6176 = vmatpush1.msra.mxu1 %v13429_v18 }
0x17ca   :  { %6106 = vmatprep.subr.mxu0 %v13436_v49  ;;  %6177 = vmatprep.subr.mxu1 %v13441_v39 }
0x17cb   :  { %6107 = vmatpush1.msra.mxu0 %v15720_v5  ;;  %6178 = vmatpush1.msra.mxu1 %v15721_v23 }
0x17cc   :  { %6108 = vmatprep.subr.mxu0 %v15722_v8  ;;  %6179 = vmatprep.subr.mxu1 %v15723_v37 }
0x17cd   :  { %6109 = vmatpush1.msra.mxu0 %v15724_v2  ;;  %6180 = vmatpush1.msra.mxu1 %v15725_v26 }
0x17ce   :  { %6110 = vmatprep.subr.mxu0 %v15726_v61  ;;  %6181 = vmatprep.subr.mxu1 %v15727_v56 }
0x17cf   :  { %6111 = vmatpush1.msra.mxu0 %v15728_v48  ;;  %6182 = vmatpush1.msra.mxu1 %v15729_v4 }
0x17d0   :  { %6112 = vmatprep.subr.mxu0 %v15730_v47  ;;  %6183 = vmatprep.subr.mxu1 %v15731_v28 }
0x17d1   :  { %6113 = vmatpush1.msra.mxu0 %v15732_v7  ;;  %6184 = vmatpush1.msra.mxu1 %v15733_v22 }
0x17d2   :  { %6114 = vmatprep.subr.mxu0 %v15734_v54  ;;  %6185 = vmatprep.subr.mxu1 %v15735_v10  ;;  %v15743_v54 = vld [vmem:[#allocation26_spill] sm:$0xff]  ;;  %v5652_v10 = vpop.f32.mrf.mxu0 }
0x17d3   :  { %6115 = vmatpush1.msra.mxu0 %v15736_v38  ;;  %6186 = vmatpush1.msra.mxu1 %v15737_v29  ;;  %v5765_v38 = vpop.f32.mrf.mxu1 }
0x17d4   :  { %6116 = vmatprep.subr.mxu0 %v15738_v30  ;;  %6187 = vmatprep.subr.mxu1 %v15739_v19  ;;  %v5654_v22 = vpop.f32.mrf.mxu0 }
0x17d5   :  { %6117 = vmatpush1.msra.mxu0 %v15740_v55  ;;  %6150 = vmatprep.mubr.f32.mxu0 %v15681_v45  ;;  %v5767_v29 = vpop.f32.mrf.mxu1 }
0x17d6   :  { %6188 = vmatpush1.msra.mxu1 %v15741_v12  ;;  %6221 = vmatprep.mubr.f32.mxu1 %v15681_v45  ;;  %v13661_v7 = vpop.f32.mrf.mxu0 }
0x17d7   :  { %6260 = vmatprep.subr.mxu0 %v15742_v36  ;;  %6331 = vmatprep.subr.mxu1 %v15743_v54  ;;  %15744 = vst [vmem:[#allocation21_spill] sm:$0xff] %v13661_v7  ;;  %v13663_v30 = vpop.f32.mrf.mxu1 }
0x17d8   :  { %15745 = vst [vmem:[#allocation24_spill] sm:$0xff] %v13663_v30  ;;  %v13665_v19 = vpop.f32.mrf.mxu0 }
0x17d9   :  { %15746 = vst [vmem:[#allocation4_spill] sm:$0xff] %v13665_v19  ;;  %v13667_v55 = vpop.f32.mrf.mxu1 }
0x17da   :  { %15747 = vst [vmem:[#allocation5_spill] sm:$0xff] %v13667_v55  ;;  %v13669_v28 = vpop.f32.mrf.mxu0 }
0x17db   :  { %15748 = vst [vmem:[#allocation25_spill] sm:$0xff] %v13669_v28  ;;  %v13671_v12 = vpop.f32.mrf.mxu1 }
0x17dc   :  { %15749 = vst [vmem:[#allocation60_spill] sm:$0xff] %v13671_v12  ;;  %v13673_v45 = vpop.f32.mrf.mxu0 }
0x17dd   :  { %15750 = vst [vmem:[#allocation15_spill] sm:$0xff] %v13673_v45  ;;  %v13675_v36 = vpop.f32.mrf.mxu1 }
0x17de   :  { %15751 = vst [vmem:[#allocation51_spill] sm:$0xff] %v13675_v36  ;;  %v13677_v54 = vpop.f32.mrf.mxu0 }
0x17df   :  { %15752 = vst [vmem:[#allocation52_spill] sm:$0xff] %v13677_v54  ;;  %v13679_v47 = vpop.f32.mrf.mxu1 }
0x17e0   :  { %15753 = vst [vmem:[#allocation50_spill] sm:$0xff] %v13679_v47  ;;  %v13681_v4 = vpop.f32.mrf.mxu0 }
0x17e1   :  { %15754 = vst [vmem:[#allocation49_spill] sm:$0xff] %v13681_v4  ;;  %v13683_v7 = vpop.f32.mrf.mxu1 }
0x17e2   :  { %15755 = vst [vmem:[#allocation46_spill] sm:$0xff] %v13683_v7  ;;  %v13685_v30 = vpop.f32.mrf.mxu0 }
0x17e3   :  { %15756 = vst [vmem:[#allocation8_spill] sm:$0xff] %v13685_v30  ;;  %v13687_v19 = vpop.f32.mrf.mxu1 }
0x17e4   :  { %15757 = vst [vmem:[#allocation44_spill] sm:$0xff] %v13687_v19  ;;  %v13689_v55 = vpop.f32.mrf.mxu0  ;;  %v5564_v19 = vld [vmem:[%s14546_s12] sm:$0xf] }
0x17e5   :  { %15758 = vst [vmem:[#allocation32_spill] sm:$0xff] %v13689_v55  ;;  %v13691_v28 = vpop.f32.mrf.mxu1  ;;  %v15767_v55 = vld [vmem:[#allocation27_spill] sm:$0xff] }
0x17e6   :  { %15759 = vst [vmem:[#allocation30_spill] sm:$0xff] %v13691_v28  ;;  %v13693_v12 = vpop.f32.mrf.mxu0  ;;  %v13711_v28 = vrot.slane %v5564_v19, %v15767_v55 }
0x17e7   :  { %15760 = vst [vmem:[#allocation14_spill] sm:$0xff] %v13693_v12  ;;  %v13695_v45 = vpop.f32.mrf.mxu1 }
0x17e8   :  { %15761 = vst [vmem:[#allocation6_spill] sm:$0xff] %v13695_v45  ;;  %v13697_v36 = vpop.f32.mrf.mxu0  ;;  %15768 = vst [vmem:[#allocation43_spill] sm:$0xff] %v13711_v28 }
0x17e9   :  { %15762 = vst [vmem:[#allocation12_spill] sm:$0xff] %v13697_v36  ;;  %v13699_v54 = vpop.f32.mrf.mxu1  ;;  %v15771_v36 = vld [vmem:[#allocation53_spill] sm:$0xff] }
0x17ea   :  { %15763 = vst [vmem:[#allocation13_spill] sm:$0xff] %v13699_v54  ;;  %v13701_v47 = vpop.f32.mrf.mxu0  ;;  %v13718_v7 = vrot.slane %v5564_v19, %v15771_v36  ;;  %v15775_v36 = vld [vmem:[#allocation58_spill] sm:$0xff] }
0x17eb   :  { %15764 = vst [vmem:[#allocation61_spill] sm:$0xff] %v13701_v47  ;;  %v13703_v4 = vpop.f32.mrf.mxu1  ;;  %v13729_v37 = vrot.slane %v5564_v19, %v15775_v36 }
0x17ec   :  { %15765 = vst [vmem:[#allocation9_spill] sm:$0xff] %v13703_v4  ;;  %v13708_v30 = vpop.f32.mrf.mxu0  ;;  %v5653_v4 = vadd.f32 %v5652_v10, %v13711_v28  ;;  %v5655_v56 = vadd.f32 %v5654_v22, %v13718_v7  ;;  %v15777_v10 = vld [vmem:[#allocation28_spill] sm:$0xff] }
0x17ed   :  { %15766 = vst [vmem:[#allocation38_spill] sm:$0xff] %v13708_v30  ;;  %v13713_v12 = vpop.f32.mrf.mxu1  ;;  %15776 = vst [vmem:[#allocation56_spill] sm:$0xff] %v13729_v37  ;;  %v13733_v28 = vrot.slane %v5564_v19, %v15777_v10 }
0x17ee   :  { %15769 = vst [vmem:[#allocation29_spill] sm:$0xff] %v13713_v12 }
0x1872   :  { %v13715_v45 = vpop.f32.mrf.mxu0  ;;  %v13720_v54 = vpop.f32.mrf.mxu1 }
0x1873   :  { %15770 = vst [vmem:[#allocation42_spill] sm:$0xff] %v13715_v45  ;;  %15772 = vst [vmem:[#allocation48_spill] sm:$0xff] %v13720_v54 }
0x1874   :  { %v13722_v47 = vpop.f32.mrf.mxu0  ;;  %v13726_v30 = vpop.f32.mrf.mxu1 }
0x1875   :  { %15773 = vst [vmem:[#allocation57_spill] sm:$0xff] %v13722_v47  ;;  %15774 = vst [vmem:[#allocation55_spill] sm:$0xff] %v13726_v30  ;;  %v5768_v47 = vadd.f32 %v5767_v29, %v13729_v37  ;;  %v5766_v30 = vadd.f32 %v5765_v38, %v13733_v28 }
0x1876   :  { %v5978_v48 = vpop.f32.mrf.mxu0  ;;  %v6049_v45 = vpop.f32.mrf.mxu1 }
0x1877   :  { %v6054_v55 = vadd.f32 %v5978_v48, %v5653_v4 }
0x1878   :  { %v5980_v61 = vpop.f32.mrf.mxu0  ;;  %v6051_v54 = vpop.f32.mrf.mxu1 }
0x1879   :  { %v7378_v26 = vmul.f32 -1.442695, %v6054_v55  ;;  %v6055_v12 = vadd.f32 %v5980_v61, %v5655_v56  ;;  %v6057_v22 = vadd.f32 %v6051_v54, %v5768_v47  ;;  %v6056_v55 = vadd.f32 %v6049_v45, %v5766_v30  ;;  %v15779_v30 = vld [vmem:[#allocation36_spill] sm:$0xff] }
0x187b   :  { %7787 = vpow2.f32 %v7378_v26  ;;  %v7379_v2 = vmul.f32 -1.442695, %v6055_v12  ;;  %v7380_v48 = vmul.f32 -1.442695, %v6057_v22  ;;  %v15780_v22 = vld [vmem:[#allocation16_spill] sm:$0xff] }
0x187d   :  { %7789 = vpow2.f32 %v7379_v2 }
0x187e   :  { %7791 = vpow2.f32 %v7380_v48  ;;  %v15781_v48 = vld [vmem:[#allocation33_spill] sm:$0xff] }
0x1888   :  { %v7788_v4 = vpop.eup %7787 }
0x1889   :  { %v6061_v61 = vadd.f32 1.0, %v7788_v4  ;;  %v15782_v4 = vld [vmem:[#allocation18_spill] sm:$0xff] }
0x188a   :  { %v7790_v26 = vpop.eup %7789 }
0x188b   :  { %7793 = vrcp.f32 %v6061_v61  ;;  %v6067_v56 = vadd.f32 1.0, %v7790_v26  ;;  %v7792_v2 = vpop.eup %7791  ;;  %v15784_v61 = vld [vmem:[#allocation45_spill] sm:$0xff]  ;;  %v15785_v26 = vld [vmem:[#allocation19_spill] sm:$0xff] }
0x188c   :  { %7795 = vtanh.f32 %v6056_v55  ;;  %v6074_v37 = vadd.f32 1.0, %v7792_v2  ;;  %v15783_v55 = vld [vmem:[#allocation17_spill] sm:$0xff] }
0x188d   :  { %7797 = vrcp.f32 %v6067_v56  ;;  %v15786_v56 = vld [vmem:[#allocation54_spill] sm:$0xff]  ;;  %v15787_v2 = vld [vmem:[#allocation41_spill] sm:$0xff] }
0x188e   :  { %7799 = vrcp.f32 %v6074_v37  ;;  %v15778_v37 = vld [vmem:[#allocation47_spill] sm:$0xff] }
0x1898   :  { %v7794_v12 = vpop.eup %7793 }
0x1899   :  { %v7796_v36 = vpop.eup %7795 }
0x189a   :  { %v7798_v29 = vpop.eup %7797  ;;  %v6078_v10 = vmul.f32 %v7796_v36, %v7794_v12  ;;  %v15788_v12 = vld [vmem:[#allocation7_spill] sm:$0xff] }
0x189b   :  { %v6077_v19 = vmul.f32 0.0, %v7798_v29  ;;  %v7800_v45 = vpop.eup %7799  ;;  %v15789_v36 = vld [vmem:[#allocation31_spill] sm:$0xff] }
0x189c   :  { %v15790_v29 = vld [vmem:[#allocation35_spill] sm:$0xff] }
0x189d   :  { %v13736_v47 = vadd.f32 %v6078_v10, %v6077_v19  ;;  %v15791_v19 = vld [vmem:[#allocation59_spill] sm:$0xff]  ;;  %v15792_v10 = vld [vmem:[#allocation10_spill] sm:$0xff] }
0x189f   :  { %7801 = vtanh.f32 %v13736_v47 }
0x18ac   :  { %v7802_v54 = vpop.eup %7801 }
0x18ad   :  { %v6081_v38 = vmul.f32 %v7802_v54, %v7800_v45  ;;  %v15793_v45 = vld [vmem:[#allocation11_spill] sm:$0xff]  ;;  %v15794_v54 = vld [vmem:[#allocation20_spill] sm:$0xff] }
0x18af   :  { %6151 = vmatmul.mubr.f32.vlgmr.msra.gmra.mxu0 %v6081_v38  ;;  %6222 = vmatmul.mubr.f32.vlgmr.msra.gmra.mxu1 %v6081_v38  ;;  %v15795_v38 = vld [vmem:[#allocation22_spill] sm:$0xff] }
0x18b0   :  { %6261 = vmatpush1.msra.mxu0 %v13208_v1  ;;  %6332 = vmatpush1.msra.mxu1 %v13213_v35 }
0x18b1   :  { %6262 = vmatprep.subr.mxu0 %v13220_v13  ;;  %6333 = vmatprep.subr.mxu1 %v13225_v0 }
0x18b2   :  { %6263 = vmatpush1.msra.mxu0 %v13232_v9  ;;  %6334 = vmatpush1.msra.mxu1 %v13237_v63 }
0x18b3   :  { %6264 = vmatprep.subr.mxu0 %v13244_v57  ;;  %6335 = vmatprep.subr.mxu1 %v13249_v40 }
0x18b4   :  { %6265 = vmatpush1.msra.mxu0 %v13256_v41  ;;  %6336 = vmatpush1.msra.mxu1 %v13261_v42 }
0x18b5   :  { %6266 = vmatprep.subr.mxu0 %v13268_v43  ;;  %6337 = vmatprep.subr.mxu1 %v13273_v50 }
0x18b6   :  { %6267 = vmatpush1.msra.mxu0 %v13280_v14  ;;  %6338 = vmatpush1.msra.mxu1 %v13285_v11 }
0x18b7   :  { %6268 = vmatprep.subr.mxu0 %v13292_v3  ;;  %6339 = vmatprep.subr.mxu1 %v13297_v20 }
0x18b8   :  { %6269 = vmatpush1.msra.mxu0 %v13304_v27  ;;  %6340 = vmatpush1.msra.mxu1 %v13309_v58 }
0x18b9   :  { %6270 = vmatprep.subr.mxu0 %v13316_v51  ;;  %6341 = vmatprep.subr.mxu1 %v13321_v25 }
0x18ba   :  { %6271 = vmatpush1.msra.mxu0 %v13328_v32  ;;  %6342 = vmatpush1.msra.mxu1 %v13333_v59 }
0x18bb   :  { %6272 = vmatprep.subr.mxu0 %v13340_v60  ;;  %6343 = vmatprep.subr.mxu1 %v13345_v17 }
0x18bc   :  { %6273 = vmatpush1.msra.mxu0 %v13352_v6  ;;  %6344 = vmatpush1.msra.mxu1 %v13357_v31 }
0x18bd   :  { %6274 = vmatprep.subr.mxu0 %v13364_v52  ;;  %6345 = vmatprep.subr.mxu1 %v13369_v16 }
0x18be   :  { %6275 = vmatpush1.msra.mxu0 %v13376_v53  ;;  %6346 = vmatpush1.msra.mxu1 %v13381_v62 }
0x18bf   :  { %6276 = vmatprep.subr.mxu0 %v13388_v21  ;;  %6347 = vmatprep.subr.mxu1 %v13393_v46 }
0x18c0   :  { %6277 = vmatpush1.msra.mxu0 %v13400_v33  ;;  %6348 = vmatpush1.msra.mxu1 %v13405_v34 }
0x18c1   :  { %6278 = vmatprep.subr.mxu0 %v13412_v44  ;;  %6349 = vmatprep.subr.mxu1 %v13417_v15 }
0x18c2   :  { %6279 = vmatpush1.msra.mxu0 %v13424_v24  ;;  %6350 = vmatpush1.msra.mxu1 %v13429_v18 }
0x18c3   :  { %6280 = vmatprep.subr.mxu0 %v13436_v49  ;;  %6351 = vmatprep.subr.mxu1 %v13441_v39 }
0x18c4   :  { %6281 = vmatpush1.msra.mxu0 %v15720_v5  ;;  %6352 = vmatpush1.msra.mxu1 %v15721_v23 }
0x18c5   :  { %6282 = vmatprep.subr.mxu0 %v15722_v8  ;;  %6353 = vmatprep.subr.mxu1 %v15778_v37  ;;  %v15805_v37 = vld [vmem:[#allocation24_spill] sm:$0xff] }
0x18c6   :  { %6283 = vmatpush1.msra.mxu0 %v15779_v30  ;;  %6354 = vmatpush1.msra.mxu1 %v15780_v22  ;;  %v15803_v22 = vld [vmem:[#allocation56_spill] sm:$0xff] }
0x18c7   :  { %6284 = vmatprep.subr.mxu0 %v15781_v48  ;;  %6355 = vmatprep.subr.mxu1 %v15782_v4 }
0x18c8   :  { %6285 = vmatpush1.msra.mxu0 %v15783_v55  ;;  %6356 = vmatpush1.msra.mxu1 %v15784_v61 }
0x18c9   :  { %6286 = vmatprep.subr.mxu0 %v15785_v26  ;;  %6357 = vmatprep.subr.mxu1 %v15786_v56  ;;  %v15796_v26 = vmov 0.0   ;;  %v15797_v56 = vld [vmem:[#allocation23_spill] sm:$0xff] }
0x18ca   :  { %6287 = vmatpush1.msra.mxu0 %v15787_v2  ;;  %6358 = vmatpush1.msra.mxu1 %v15788_v12  ;;  %v15798_v12 = vld [vmem:[#allocation34_spill] sm:$0xff] }
0x18cb   :  { %6288 = vmatprep.subr.mxu0 %v15789_v36  ;;  %6359 = vmatprep.subr.mxu1 %v15790_v29  ;;  %v15799_v36 = vld [vmem:[#allocation26_spill] sm:$0xff]  ;;  %v15800_v29 = vld [vmem:[#allocation43_spill] sm:$0xff] }
0x18cc   :  { %6289 = vmatpush1.msra.mxu0 %v15791_v19  ;;  %6360 = vmatpush1.msra.mxu1 %v15792_v10  ;;  %v15801_v19 = vld [vmem:[#allocation21_spill] sm:$0xff] }
0x18cd   :  { %6290 = vmatprep.subr.mxu0 %v15793_v45  ;;  %6361 = vmatprep.subr.mxu1 %v15794_v54  ;;  %v5659_v2 = vadd.f32 %v15801_v19, %v15800_v29  ;;  %v15802_v45 = vld [vmem:[#allocation4_spill] sm:$0xff]  ;;  %v5772_v19 = vadd.f32 %v15805_v37, %v13733_v28 }
0x18ce   :  { %6291 = vmatpush1.msra.mxu0 %v15795_v38  ;;  %6324 = vmatprep.mubr.f32.mxu0 %v15796_v26  ;;  %v5661_v61 = vadd.f32 %v15802_v45, %v13718_v7 }
0x18cf   :  { %6362 = vmatpush1.msra.mxu1 %v15797_v56  ;;  %6395 = vmatprep.mubr.f32.mxu1 %v15796_v26 }
0x18d0   :  { %6434 = vmatprep.subr.mxu0 %v15798_v12  ;;  %6505 = vmatprep.subr.mxu1 %v15799_v36  ;;  %v15804_v12 = vld [vmem:[#allocation5_spill] sm:$0xff] }
0x18d1   :  { %v5774_v30 = vadd.f32 %v15804_v12, %v15803_v22 }
0x196f   :  { %v6152_v10 = vpop.f32.mrf.mxu0  ;;  %v6223_v48 = vpop.f32.mrf.mxu1 }
0x1970   :  { %v6228_v54 = vadd.f32 %v6152_v10, %v5659_v2  ;;  %v6230_v29 = vadd.f32 %v6223_v48, %v5772_v19  ;;  %v15829_v19 = vld [vmem:[#allocation26_spill] sm:$0xff] }
0x1971   :  { %v6154_v55 = vpop.f32.mrf.mxu0  ;;  %v6225_v26 = vpop.f32.mrf.mxu1 }
0x1972   :  { %v7381_v38 = vmul.f32 -1.442695, %v6228_v54  ;;  %v6229_v4 = vadd.f32 %v6154_v55, %v5661_v61  ;;  %v6231_v36 = vadd.f32 %v6225_v26, %v5774_v30 }
0x1974   :  { %7803 = vpow2.f32 %v7381_v38  ;;  %v7382_v56 = vmul.f32 -1.442695, %v6229_v4  ;;  %v7383_v8 = vmul.f32 -1.442695, %v6231_v36  ;;  %v15826_v36 = vmov 0.0   ;;  %v15828_v38 = vld [vmem:[#allocation34_spill] sm:$0xff] }
0x1976   :  { %7805 = vpow2.f32 %v7382_v56 }
0x1977   :  { %7807 = vtanh.f32 %v6230_v29  ;;  %v15827_v29 = vld [vmem:[#allocation23_spill] sm:$0xff] }
0x1978   :  { %7809 = vpow2.f32 %v7383_v8  ;;  %v15824_v8 = vld [vmem:[#allocation20_spill] sm:$0xff] }
0x1981   :  { %v7804_v23 = vpop.eup %7803 }
0x1982   :  { %v6235_v45 = vadd.f32 1.0, %v7804_v23 }
0x1983   :  { %v7806_v2 = vpop.eup %7805 }
0x1984   :  { %7811 = vrcp.f32 %v6235_v45  ;;  %v6241_v55 = vadd.f32 1.0, %v7806_v2  ;;  %v7808_v4 = vpop.eup %7807  ;;  %v15830_v45 = vld [vmem:[#allocation43_spill] sm:$0xff]  ;;  %v15831_v2 = vld [vmem:[#allocation25_spill] sm:$0xff] }
0x1985   :  { %v7810_v61 = vpop.eup %7809 }
0x1986   :  { %7813 = vrcp.f32 %v6241_v55  ;;  %v6248_v12 = vadd.f32 1.0, %v7810_v61  ;;  %v5665_v55 = vadd.f32 %v15831_v2, %v15830_v45  ;;  %v15832_v61 = vld [vmem:[#allocation15_spill] sm:$0xff] }
0x1988   :  { %7815 = vrcp.f32 %v6248_v12 }
0x1991   :  { %v7812_v56 = vpop.eup %7811 }
0x1992   :  { %v6252_v10 = vmul.f32 %v7812_v56, %v7808_v4  ;;  %v5667_v56 = vadd.f32 %v15832_v61, %v13718_v7 }
0x1993   :  { %v7814_v54 = vpop.eup %7813 }
0x1994   :  { %v6251_v30 = vmul.f32 %v7814_v54, %v13736_v47  ;;  %v15825_v47 = vld [vmem:[#allocation22_spill] sm:$0xff] }
0x1995   :  { %v7816_v23 = vpop.eup %7815 }
0x1996   :  { %v13814_v26 = vadd.f32 %v6252_v10, %v6251_v30 }
0x1998   :  { %7817 = vtanh.f32 %v13814_v26 }
0x19a5   :  { %v7818_v37 = vpop.eup %7817 }
0x19a6   :  { %v6255_v48 = vmul.f32 %v7818_v37, %v7816_v23 }
0x19a8   :  { %6325 = vmatmul.mubr.f32.vlgmr.msra.gmra.mxu0 %v6255_v48  ;;  %6396 = vmatmul.mubr.f32.vlgmr.msra.gmra.mxu1 %v6255_v48 }
0x19a9   :  { %6435 = vmatpush1.msra.mxu0 %v13208_v1  ;;  %6506 = vmatpush1.msra.mxu1 %v13213_v35  ;;  %v15806_v1 = vld [vmem:[#allocation37_spill] sm:$0xff]  ;;  %v15807_v35 = vld [vmem:[#allocation40_spill] sm:$0xff] }
0x19aa   :  { %6436 = vmatprep.subr.mxu0 %v13220_v13  ;;  %6507 = vmatprep.subr.mxu1 %v13225_v0  ;;  %v15808_v13 = vld [vmem:[#allocation47_spill] sm:$0xff]  ;;  %v15809_v0 = vld [vmem:[#allocation36_spill] sm:$0xff] }
0x19ab   :  { %6437 = vmatpush1.msra.mxu0 %v13232_v9  ;;  %6508 = vmatpush1.msra.mxu1 %v13237_v63  ;;  %v15810_v9 = vld [vmem:[#allocation16_spill] sm:$0xff]  ;;  %v15811_v63 = vld [vmem:[#allocation33_spill] sm:$0xff] }
0x19ac   :  { %6438 = vmatprep.subr.mxu0 %v13244_v57  ;;  %6509 = vmatprep.subr.mxu1 %v13249_v40  ;;  %v15812_v57 = vld [vmem:[#allocation18_spill] sm:$0xff]  ;;  %v15813_v40 = vld [vmem:[#allocation17_spill] sm:$0xff] }
0x19ad   :  { %6439 = vmatpush1.msra.mxu0 %v13256_v41  ;;  %6510 = vmatpush1.msra.mxu1 %v13261_v42  ;;  %v15814_v41 = vld [vmem:[#allocation45_spill] sm:$0xff]  ;;  %v15815_v42 = vld [vmem:[#allocation19_spill] sm:$0xff] }
0x19ae   :  { %6440 = vmatprep.subr.mxu0 %v13268_v43  ;;  %6511 = vmatprep.subr.mxu1 %v13273_v50  ;;  %v15816_v43 = vld [vmem:[#allocation54_spill] sm:$0xff]  ;;  %v15817_v50 = vld [vmem:[#allocation41_spill] sm:$0xff] }
0x19af   :  { %6441 = vmatpush1.msra.mxu0 %v13280_v14  ;;  %6512 = vmatpush1.msra.mxu1 %v13285_v11  ;;  %v15818_v14 = vld [vmem:[#allocation7_spill] sm:$0xff] }
0x19b0   :  { %6442 = vmatprep.subr.mxu0 %v13292_v3  ;;  %6513 = vmatprep.subr.mxu1 %v13297_v20  ;;  %v15819_v11 = vld [vmem:[#allocation31_spill] sm:$0xff] }
0x19b1   :  { %6443 = vmatpush1.msra.mxu0 %v13304_v27  ;;  %6514 = vmatpush1.msra.mxu1 %v13309_v58  ;;  %v15820_v3 = vld [vmem:[#allocation35_spill] sm:$0xff]  ;;  %v15822_v27 = vld [vmem:[#allocation10_spill] sm:$0xff] }
0x19b2   :  { %6444 = vmatprep.subr.mxu0 %v13316_v51  ;;  %6515 = vmatprep.subr.mxu1 %v13321_v25  ;;  %v15821_v20 = vld [vmem:[#allocation59_spill] sm:$0xff] }
0x19b3   :  { %6445 = vmatpush1.msra.mxu0 %v13328_v32  ;;  %6516 = vmatpush1.msra.mxu1 %v13333_v59  ;;  %v15823_v58 = vld [vmem:[#allocation11_spill] sm:$0xff] }
0x19b4   :  { %6446 = vmatprep.subr.mxu0 %v13340_v60  ;;  %6517 = vmatprep.subr.mxu1 %v13345_v17 }
0x19b5   :  { %6447 = vmatpush1.msra.mxu0 %v13352_v6  ;;  %6518 = vmatpush1.msra.mxu1 %v13357_v31 }
0x19b6   :  { %6448 = vmatprep.subr.mxu0 %v13364_v52  ;;  %6519 = vmatprep.subr.mxu1 %v13369_v16 }
0x19b7   :  { %6449 = vmatpush1.msra.mxu0 %v13376_v53  ;;  %6520 = vmatpush1.msra.mxu1 %v13381_v62 }
0x19b8   :  { %6450 = vmatprep.subr.mxu0 %v13388_v21  ;;  %6521 = vmatprep.subr.mxu1 %v13393_v46 }
0x19b9   :  { %6451 = vmatpush1.msra.mxu0 %v13400_v33  ;;  %6522 = vmatpush1.msra.mxu1 %v13405_v34 }
0x19ba   :  { %6452 = vmatprep.subr.mxu0 %v13412_v44  ;;  %6523 = vmatprep.subr.mxu1 %v13417_v15 }
0x19bb   :  { %6453 = vmatpush1.msra.mxu0 %v13424_v24  ;;  %6524 = vmatpush1.msra.mxu1 %v13429_v18 }
0x19bc   :  { %6454 = vmatprep.subr.mxu0 %v13436_v49  ;;  %6525 = vmatprep.subr.mxu1 %v13441_v39 }
0x19bd   :  { %6455 = vmatpush1.msra.mxu0 %v15720_v5  ;;  %6526 = vmatpush1.msra.mxu1 %v15806_v1 }
0x19be   :  { %6456 = vmatprep.subr.mxu0 %v15807_v35  ;;  %6527 = vmatprep.subr.mxu1 %v15808_v13 }
0x19bf   :  { %6457 = vmatpush1.msra.mxu0 %v15809_v0  ;;  %6528 = vmatpush1.msra.mxu1 %v15810_v9 }
0x19c0   :  { %6458 = vmatprep.subr.mxu0 %v15811_v63  ;;  %6529 = vmatprep.subr.mxu1 %v15812_v57 }
0x19c1   :  { %6459 = vmatpush1.msra.mxu0 %v15813_v40  ;;  %6530 = vmatpush1.msra.mxu1 %v15814_v41 }
0x19c2   :  { %6460 = vmatprep.subr.mxu0 %v15815_v42  ;;  %6531 = vmatprep.subr.mxu1 %v15816_v43 }
0x19c3   :  { %6461 = vmatpush1.msra.mxu0 %v15817_v50  ;;  %6532 = vmatpush1.msra.mxu1 %v15818_v14 }
0x19c4   :  { %6462 = vmatprep.subr.mxu0 %v15819_v11  ;;  %6533 = vmatprep.subr.mxu1 %v15820_v3 }
0x19c5   :  { %6463 = vmatpush1.msra.mxu0 %v15821_v20  ;;  %6534 = vmatpush1.msra.mxu1 %v15822_v27 }
0x19c6   :  { %6464 = vmatprep.subr.mxu0 %v15823_v58  ;;  %6535 = vmatprep.subr.mxu1 %v15824_v8 }
0x19c7   :  { %6465 = vmatpush1.msra.mxu0 %v15825_v47  ;;  %6498 = vmatprep.mubr.f32.mxu0 %v15826_v36 }
0x19c8   :  { %6536 = vmatpush1.msra.mxu1 %v15827_v29  ;;  %6569 = vmatprep.mubr.f32.mxu1 %v15826_v36  ;;  %v15834_v36 = vld [vmem:[#allocation60_spill] sm:$0xff] }
0x19c9   :  { %6608 = vmatprep.subr.mxu0 %v15828_v38  ;;  %6679 = vmatprep.subr.mxu1 %v15829_v19  ;;  %v15833_v38 = vld [vmem:[#allocation51_spill] sm:$0xff]  ;;  %v5778_v2 = vadd.f32 %v15834_v36, %v13733_v28 }
0x19ca   :  { %v5780_v29 = vadd.f32 %v15833_v38, %v15803_v22  ;;  %v13916_v38 = vld [vmem:[%s14544_s11 + $0x1d8] sm:$0xff] }
0x1a68   :  { %v6326_v4 = vpop.f32.mrf.mxu0  ;;  %v6397_v23 = vpop.f32.mrf.mxu1 }
0x1a69   :  { %v6402_v10 = vadd.f32 %v6326_v4, %v5665_v55  ;;  %v6404_v45 = vadd.f32 %v6397_v23, %v5778_v2  ;;  %v13910_v23 = vld [vmem:[%s14544_s11 + $0x1c8] sm:$0xff]  ;;  %v13928_v2 = vld [vmem:[%s14544_s11 + $0x1d0] sm:$0xff] }
0x1a6a   :  { %v6328_v54 = vpop.f32.mrf.mxu0  ;;  %v6399_v48 = vpop.f32.mrf.mxu1 }
0x1a6b   :  { %v7384_v12 = vmul.f32 -1.442695, %v6402_v10  ;;  %v6403_v30 = vadd.f32 %v6328_v54, %v5667_v56  ;;  %v6405_v19 = vadd.f32 %v6399_v48, %v5780_v29 }
0x1a6d   :  { %7819 = vpow2.f32 %v7384_v12  ;;  %v7385_v37 = vmul.f32 -1.442695, %v6403_v30  ;;  %v7386_v47 = vmul.f32 -1.442695, %v6405_v19  ;;  %v13922_v19 = vld [vmem:[%s14544_s11 + $0x1c0] sm:$0xff] }
0x1a6f   :  { %7821 = vpow2.f32 %v7385_v37 }
0x1a70   :  { %7823 = vtanh.f32 %v6404_v45 }
0x1a71   :  { %7825 = vpow2.f32 %v7386_v47  ;;  %v13898_v47 = vld [vmem:[%s14544_s11 + $0x1e0] sm:$0xff] }
0x1a7a   :  { %v7820_v8 = vpop.eup %7819 }
0x1a7b   :  { %v6409_v61 = vadd.f32 1.0, %v7820_v8 }
0x1a7c   :  { %v7822_v55 = vpop.eup %7821 }
0x1a7d   :  { %7827 = vrcp.f32 %v6409_v61  ;;  %v6415_v4 = vadd.f32 1.0, %v7822_v55  ;;  %v7824_v56 = vpop.eup %7823  ;;  %v13934_v61 = vld [vmem:[%s14544_s11 + $0x1a8] sm:$0xff]  ;;  %v13940_v55 = vld [vmem:[%s14544_s11 + $0x1b8] sm:$0xff] }
0x1a7e   :  { %v7826_v10 = vpop.eup %7825 }
0x1a7f   :  { %7829 = vrcp.f32 %v6415_v4  ;;  %v6422_v37 = vadd.f32 1.0, %v7826_v10  ;;  %v13946_v4 = vld [vmem:[%s14544_s11 + $0x1a0] sm:$0xff]  ;;  %v13958_v10 = vld [vmem:[%s14544_s11 + $0x188] sm:$0xff] }
0x1a81   :  { %7831 = vrcp.f32 %v6422_v37  ;;  %v13982_v37 = vld [vmem:[%s14544_s11 + $0x168] sm:$0xff] }
0x1a8a   :  { %v7828_v54 = vpop.eup %7827 }
0x1a8b   :  { %v6426_v12 = vmul.f32 %v7828_v54, %v7824_v56  ;;  %v13952_v56 = vld [vmem:[%s14544_s11 + $0x1b0] sm:$0xff]  ;;  %v13964_v54 = vld [vmem:[%s14544_s11 + $0x198] sm:$0xff] }
0x1a8c   :  { %v7830_v30 = vpop.eup %7829 }
0x1a8d   :  { %v6425_v29 = vmul.f32 %v7830_v30, %v13814_v26  ;;  %v13904_v26 = vld [vmem:[%s14544_s11 + $0x1f0] sm:$0xff] }
0x1a8e   :  { %v7832_v8 = vpop.eup %7831  ;;  %v13976_v30 = vld [vmem:[%s14544_s11 + $0x190] sm:$0xff] }
0x1a8f   :  { %v13892_v48 = vadd.f32 %v6426_v12, %v6425_v29  ;;  %v13970_v12 = vld [vmem:[%s14544_s11 + $0x180] sm:$0xff]  ;;  %v13988_v29 = vld [vmem:[%s14544_s11 + $0x178] sm:$0xff] }
0x1a91   :  { %7833 = vtanh.f32 %v13892_v48 }
0x1a9e   :  { %v7834_v36 = vpop.eup %7833 }
0x1a9f   :  { %v6429_v45 = vmul.f32 %v7834_v36, %v7832_v8  ;;  %v13994_v8 = vld [vmem:[%s14544_s11 + $0x160] sm:$0xff]  ;;  %v14000_v36 = vld [vmem:[%s14544_s11 + $0x170] sm:$0xff] }
0x1aa1   :  { %6499 = vmatmul.mubr.f32.vlgmr.msra.gmra.mxu0 %v6429_v45  ;;  %6570 = vmatmul.mubr.f32.vlgmr.msra.gmra.mxu1 %v6429_v45  ;;  %v14100_v45 = vld [vmem:[%s14544_s11 + $0x158] sm:$0xff] }
0x1aa2   :  { %6609 = vmatpush1.msra.mxu0 %v13898_v47  ;;  %6680 = vmatpush1.msra.mxu1 %v13904_v26 }
0x1aa3   :  { %6610 = vmatprep.subr.mxu0 %v13910_v23  ;;  %6681 = vmatprep.subr.mxu1 %v13916_v38 }
0x1aa4   :  { %6611 = vmatpush1.msra.mxu0 %v13922_v19  ;;  %6682 = vmatpush1.msra.mxu1 %v13928_v2 }
0x1aa5   :  { %6612 = vmatprep.subr.mxu0 %v13934_v61  ;;  %6683 = vmatprep.subr.mxu1 %v13940_v55 }
0x1aa6   :  { %6613 = vmatpush1.msra.mxu0 %v13946_v4  ;;  %6684 = vmatpush1.msra.mxu1 %v13952_v56 }
0x1aa7   :  { %6614 = vmatprep.subr.mxu0 %v13958_v10  ;;  %6685 = vmatprep.subr.mxu1 %v13964_v54 }
0x1aa8   :  { %6615 = vmatpush1.msra.mxu0 %v13970_v12  ;;  %6686 = vmatpush1.msra.mxu1 %v13976_v30 }
0x1aa9   :  { %6616 = vmatprep.subr.mxu0 %v13982_v37  ;;  %6687 = vmatprep.subr.mxu1 %v13988_v29 }
0x1aaa   :  { %6617 = vmatpush1.msra.mxu0 %v13994_v8  ;;  %6688 = vmatpush1.msra.mxu1 %v14000_v36 }
0x1aab   :  { %6618 = vmatprep.subr.mxu0 %v13316_v51  ;;  %6689 = vmatprep.subr.mxu1 %v13321_v25  ;;  %v15835_v51 = vld [vmem:[#allocation20_spill] sm:$0xff]  ;;  %v15836_v25 = vld [vmem:[#allocation22_spill] sm:$0xff] }
0x1aac   :  { %6619 = vmatpush1.msra.mxu0 %v13328_v32  ;;  %6690 = vmatpush1.msra.mxu1 %v13333_v59  ;;  %v15837_v32 = vmov 0.0   ;;  %v15838_v59 = vld [vmem:[#allocation23_spill] sm:$0xff] }
0x1aad   :  { %6620 = vmatprep.subr.mxu0 %v13340_v60  ;;  %6691 = vmatprep.subr.mxu1 %v13345_v17  ;;  %v14052_v60 = vld [vmem:[%s14544_s11 + $0x1e8] sm:$0xff]  ;;  %v14058_v17 = vld [vmem:[%s14544_s11 + $0x1f8] sm:$0xff] }
0x1aae   :  { %6621 = vmatpush1.msra.mxu0 %v13352_v6  ;;  %6692 = vmatpush1.msra.mxu1 %v13357_v31  ;;  %15839 = vst [vmem:[#allocation39_spill] sm:$0xff] %v14052_v60  ;;  %15840 = vst [vmem:[#allocation27_spill] sm:$0xff] %v14058_v17  ;;  %v15841_v6 = vld [vmem:[#allocation43_spill] sm:$0xff]  ;;  %v15842_v31 = vld [vmem:[#allocation52_spill] sm:$0xff] }
0x1aaf   :  { %6622 = vmatprep.subr.mxu0 %v13364_v52  ;;  %6693 = vmatprep.subr.mxu1 %v13369_v16  ;;  %v5671_v52 = vadd.f32 %v15842_v31, %v15841_v6  ;;  %v14124_v31 = vld [vmem:[%s14544_s11 + $0x138] sm:$0xff] }
0x1ab0   :  { %6623 = vmatpush1.msra.mxu0 %v13376_v53  ;;  %6694 = vmatpush1.msra.mxu1 %v13381_v62  ;;  %v15843_v53 = vld [vmem:[#allocation49_spill] sm:$0xff] }
0x1ab1   :  { %6624 = vmatprep.subr.mxu0 %v13388_v21  ;;  %6695 = vmatprep.subr.mxu1 %v13393_v46  ;;  %v5673_v62 = vadd.f32 %v15843_v53, %v13718_v7  ;;  %v14142_v53 = vld [vmem:[%s14544_s11 + $0x108] sm:$0xff] }
0x1ab2   :  { %6625 = vmatpush1.msra.mxu0 %v13400_v33  ;;  %6696 = vmatpush1.msra.mxu1 %v13405_v34 }
0x1ab3   :  { %6626 = vmatprep.subr.mxu0 %v13412_v44  ;;  %6697 = vmatprep.subr.mxu1 %v13417_v15 }
0x1ab4   :  { %6627 = vmatpush1.msra.mxu0 %v13424_v24  ;;  %6698 = vmatpush1.msra.mxu1 %v13429_v18  ;;  %v15844_v18 = vld [vmem:[#allocation46_spill] sm:$0xff] }
0x1ab5   :  { %6628 = vmatprep.subr.mxu0 %v13436_v49  ;;  %6699 = vmatprep.subr.mxu1 %v13441_v39  ;;  %v5786_v49 = vadd.f32 %v15844_v18, %v15803_v22  ;;  %v14196_v18 = vld [vmem:[%s14544_s11 + $0xd8] sm:$0xff] }
0x1ab6   :  { %6629 = vmatpush1.msra.mxu0 %v15720_v5  ;;  %6700 = vmatpush1.msra.mxu1 %v15806_v1  ;;  %v15845_v5 = vld [vmem:[#allocation50_spill] sm:$0xff] }
0x1ab7   :  { %6630 = vmatprep.subr.mxu0 %v15807_v35  ;;  %6701 = vmatprep.subr.mxu1 %v15808_v13  ;;  %v5784_v1 = vadd.f32 %v15845_v5, %v13733_v28  ;;  %v14214_v5 = vld [vmem:[%s14544_s11 + $0xa8] sm:$0xff] }
0x1ab8   :  { %6631 = vmatpush1.msra.mxu0 %v15809_v0  ;;  %6702 = vmatpush1.msra.mxu1 %v15810_v9 }
0x1ab9   :  { %6632 = vmatprep.subr.mxu0 %v15811_v63  ;;  %6703 = vmatprep.subr.mxu1 %v15812_v57 }
0x1aba   :  { %6633 = vmatpush1.msra.mxu0 %v15813_v40  ;;  %6704 = vmatpush1.msra.mxu1 %v15814_v41 }
0x1abb   :  { %6634 = vmatprep.subr.mxu0 %v15815_v42  ;;  %6705 = vmatprep.subr.mxu1 %v15816_v43 }
0x1abc   :  { %6635 = vmatpush1.msra.mxu0 %v15817_v50  ;;  %6706 = vmatpush1.msra.mxu1 %v15818_v14 }
0x1abd   :  { %6636 = vmatprep.subr.mxu0 %v15819_v11  ;;  %6707 = vmatprep.subr.mxu1 %v15820_v3 }
0x1abe   :  { %6637 = vmatpush1.msra.mxu0 %v15821_v20  ;;  %6708 = vmatpush1.msra.mxu1 %v15822_v27 }
0x1abf   :  { %6638 = vmatprep.subr.mxu0 %v15823_v58  ;;  %6709 = vmatprep.subr.mxu1 %v15835_v51  ;;  %v14106_v51 = vld [vmem:[%s14544_s11 + $0x140] sm:$0xff] }
0x1ac0   :  { %6639 = vmatpush1.msra.mxu0 %v15836_v25  ;;  %6672 = vmatprep.mubr.f32.mxu0 %v15837_v32  ;;  %v14112_v25 = vld [vmem:[%s14544_s11 + $0x150] sm:$0xff] }
0x1ac1   :  { %6710 = vmatpush1.msra.mxu1 %v15838_v59  ;;  %6743 = vmatprep.mubr.f32.mxu1 %v15837_v32  ;;  %v14118_v59 = vld [vmem:[%s14544_s11 + $0x128] sm:$0xff] }
0x1ac2   :  { %6782 = vmatprep.subr.mxu0 %v14052_v60  ;;  %6853 = vmatprep.subr.mxu1 %v14058_v17 }
0x1b61   :  { %v6500_v16 = vpop.f32.mrf.mxu0  ;;  %v6571_v44 = vpop.f32.mrf.mxu1 }
0x1b62   :  { %v6576_v21 = vadd.f32 %v6500_v16, %v5671_v52  ;;  %v6578_v35 = vadd.f32 %v6571_v44, %v5784_v1  ;;  %v14130_v52 = vld [vmem:[%s14544_s11 + $0x120] sm:$0xff]  ;;  %v14136_v16 = vld [vmem:[%s14544_s11 + $0x130] sm:$0xff]  ;;  %v14220_v1 = vld [vmem:[%s14544_s11 + $0xb8] sm:$0xff] }
0x1b63   :  { %v6502_v46 = vpop.f32.mrf.mxu0  ;;  %v6573_v24 = vpop.f32.mrf.mxu1  ;;  %v14178_v44 = vld [vmem:[%s14544_s11 + $0xe0] sm:$0xff] }
0x1b64   :  { %v7387_v33 = vmul.f32 -1.442695, %v6576_v21  ;;  %v6577_v34 = vadd.f32 %v6502_v46, %v5673_v62  ;;  %v6579_v39 = vadd.f32 %v6573_v24, %v5786_v49  ;;  %v14148_v62 = vld [vmem:[%s14544_s11 + $0x118] sm:$0xff]  ;;  %v14154_v21 = vld [vmem:[%s14544_s11 + $0x100] sm:$0xff]  ;;  %v14160_v46 = vld [vmem:[%s14544_s11 + $0x110] sm:$0xff] }
0x1b65   :  { %v14190_v24 = vld [vmem:[%s14544_s11 + $0xc8] sm:$0xff]  ;;  %v14202_v49 = vld [vmem:[%s14544_s11 + $0xc0] sm:$0xff] }
0x1b66   :  { %7835 = vpow2.f32 %v7387_v33  ;;  %v7388_v15 = vmul.f32 -1.442695, %v6577_v34  ;;  %v7389_v13 = vmul.f32 -1.442695, %v6579_v39  ;;  %v14166_v33 = vld [vmem:[%s14544_s11 + $0xe8] sm:$0xff]  ;;  %v14172_v34 = vld [vmem:[%s14544_s11 + $0xf8] sm:$0xff] }
0x1b67   :  { %v14208_v39 = vld [vmem:[%s14544_s11 + $0xd0] sm:$0xff] }
0x1b68   :  { %7837 = vpow2.f32 %v7388_v15  ;;  %v14184_v15 = vld [vmem:[%s14544_s11 + $0xf0] sm:$0xff] }
0x1b69   :  { %7839 = vtanh.f32 %v6578_v35  ;;  %v14226_v35 = vld [vmem:[%s14544_s11 + $0xa0] sm:$0xff] }
0x1b6a   :  { %7841 = vpow2.f32 %v7389_v13  ;;  %v14232_v13 = vld [vmem:[%s14544_s11 + $0xb0] sm:$0xff] }
0x1b6b   :  { %15846 = vst [vmem:[#allocation53_spill] sm:$0xff] %v14232_v13 }
0x1b73   :  { %v7836_v0 = vpop.eup %7835 }
0x1b74   :  { %v6583_v9 = vadd.f32 1.0, %v7836_v0  ;;  %v14238_v0 = vld [vmem:[%s14544_s11 + $0x88] sm:$0xff] }
0x1b75   :  { %v7838_v63 = vpop.eup %7837  ;;  %15847 = vst [vmem:[#allocation58_spill] sm:$0xff] %v14238_v0 }
0x1b76   :  { %7843 = vrcp.f32 %v6583_v9  ;;  %v6589_v57 = vadd.f32 1.0, %v7838_v63  ;;  %v7840_v40 = vpop.eup %7839  ;;  %v14244_v9 = vld [vmem:[%s14544_s11 + $0x98] sm:$0xff]  ;;  %v14250_v63 = vld [vmem:[%s14544_s11 + $0x80] sm:$0xff] }
0x1b77   :  { %v7842_v41 = vpop.eup %7841  ;;  %15848 = vst [vmem:[#allocation28_spill] sm:$0xff] %v14244_v9  ;;  %15849 = vst [vmem:[#allocation21_spill] sm:$0xff] %v14250_v63 }
0x1b78   :  { %7845 = vrcp.f32 %v6589_v57  ;;  %v6596_v14 = vadd.f32 1.0, %v7842_v41  ;;  %v14256_v57 = vld [vmem:[%s14544_s11 + $0x90] sm:$0xff]  ;;  %v14268_v41 = vld [vmem:[%s14544_s11 + $0x78] sm:$0xff] }
0x1b79   :  { %15850 = vst [vmem:[#allocation4_spill] sm:$0xff] %v14256_v57  ;;  %15852 = vst [vmem:[#allocation5_spill] sm:$0xff] %v14268_v41 }
0x1b7a   :  { %7847 = vrcp.f32 %v6596_v14  ;;  %v14292_v14 = vld [vmem:[%s14544_s11 + $0x58] sm:$0xff] }
0x1b7b   :  { %15856 = vst [vmem:[#allocation47_spill] sm:$0xff] %v14292_v14 }
0x1b83   :  { %v7844_v42 = vpop.eup %7843 }
0x1b84   :  { %v6600_v43 = vmul.f32 %v7844_v42, %v7840_v40  ;;  %v14262_v40 = vld [vmem:[%s14544_s11 + $0x68] sm:$0xff]  ;;  %v14274_v42 = vld [vmem:[%s14544_s11 + $0x60] sm:$0xff] }
0x1b85   :  { %v7846_v50 = vpop.eup %7845  ;;  %15851 = vst [vmem:[#allocation56_spill] sm:$0xff] %v14262_v40  ;;  %15853 = vst [vmem:[#allocation24_spill] sm:$0xff] %v14274_v42 }
0x1b86   :  { %v6599_v11 = vmul.f32 %v7846_v50, %v13892_v48  ;;  %v14094_v48 = vld [vmem:[%s14544_s11 + $0x148] sm:$0xff] }
0x1b87   :  { %v7848_v20 = vpop.eup %7847  ;;  %v14286_v50 = vld [vmem:[%s14544_s11 + $0x48] sm:$0xff] }
0x1b88   :  { %v14070_v3 = vadd.f32 %v6600_v43, %v6599_v11  ;;  %v14280_v43 = vld [vmem:[%s14544_s11 + $0x70] sm:$0xff]  ;;  %15855 = vst [vmem:[#allocation40_spill] sm:$0xff] %v14286_v50  ;;  %v14298_v11 = vld [vmem:[%s14544_s11 + $0x40] sm:$0xff] }
0x1b89   :  { %15854 = vst [vmem:[#allocation37_spill] sm:$0xff] %v14280_v43  ;;  %15857 = vst [vmem:[#allocation36_spill] sm:$0xff] %v14298_v11 }
0x1b8a   :  { %7849 = vtanh.f32 %v14070_v3 }
0x1b97   :  { %v7850_v27 = vpop.eup %7849 }
0x1b98   :  { %v6603_v58 = vmul.f32 %v7850_v27, %v7848_v20  ;;  %v14304_v20 = vld [vmem:[%s14544_s11 + $0x50] sm:$0xff]  ;;  %v14310_v27 = vld [vmem:[%s14544_s11 + $0x28] sm:$0xff] }
0x1b99   :  { %15858 = vst [vmem:[#allocation16_spill] sm:$0xff] %v14304_v20  ;;  %15859 = vst [vmem:[#allocation33_spill] sm:$0xff] %v14310_v27 }
0x1b9a   :  { %6673 = vmatmul.mubr.f32.vlgmr.msra.gmra.mxu0 %v6603_v58  ;;  %6744 = vmatmul.mubr.f32.vlgmr.msra.gmra.mxu1 %v6603_v58  ;;  %v14316_v58 = vld [vmem:[%s14544_s11 + $0x38] sm:$0xff] }
0x1b9b   :  { %6783 = vmatpush1.msra.mxu0 %v13898_v47  ;;  %6854 = vmatpush1.msra.mxu1 %v13904_v26  ;;  %15860 = vst [vmem:[#allocation18_spill] sm:$0xff] %v14316_v58 }
0x1b9c   :  { %6784 = vmatprep.subr.mxu0 %v13910_v23  ;;  %6855 = vmatprep.subr.mxu1 %v13916_v38 }
0x1b9d   :  { %6785 = vmatpush1.msra.mxu0 %v13922_v19  ;;  %6856 = vmatpush1.msra.mxu1 %v13928_v2 }
0x1b9e   :  { %6786 = vmatprep.subr.mxu0 %v13934_v61  ;;  %6857 = vmatprep.subr.mxu1 %v13940_v55 }
0x1b9f   :  { %6787 = vmatpush1.msra.mxu0 %v13946_v4  ;;  %6858 = vmatpush1.msra.mxu1 %v13952_v56 }
0x1ba0   :  { %6788 = vmatprep.subr.mxu0 %v13958_v10  ;;  %6859 = vmatprep.subr.mxu1 %v13964_v54 }
0x1ba1   :  { %6789 = vmatpush1.msra.mxu0 %v13970_v12  ;;  %6860 = vmatpush1.msra.mxu1 %v13976_v30 }
0x1ba2   :  { %6790 = vmatprep.subr.mxu0 %v13982_v37  ;;  %6861 = vmatprep.subr.mxu1 %v13988_v29 }
0x1ba3   :  { %6791 = vmatpush1.msra.mxu0 %v13994_v8  ;;  %6862 = vmatpush1.msra.mxu1 %v14000_v36 }
0x1ba4   :  { %6792 = vmatprep.subr.mxu0 %v14094_v48  ;;  %6863 = vmatprep.subr.mxu1 %v14100_v45 }
0x1ba5   :  { %6793 = vmatpush1.msra.mxu0 %v14106_v51  ;;  %6864 = vmatpush1.msra.mxu1 %v14112_v25 }
0x1ba6   :  { %6794 = vmatprep.subr.mxu0 %v14118_v59  ;;  %6865 = vmatprep.subr.mxu1 %v14124_v31 }
0x1ba7   :  { %6795 = vmatpush1.msra.mxu0 %v14130_v52  ;;  %6866 = vmatpush1.msra.mxu1 %v14136_v16 }
0x1ba8   :  { %6796 = vmatprep.subr.mxu0 %v14142_v53  ;;  %6867 = vmatprep.subr.mxu1 %v14148_v62 }
0x1ba9   :  { %6797 = vmatpush1.msra.mxu0 %v14154_v21  ;;  %6868 = vmatpush1.msra.mxu1 %v14160_v46 }
0x1baa   :  { %6798 = vmatprep.subr.mxu0 %v14166_v33  ;;  %6869 = vmatprep.subr.mxu1 %v14172_v34 }
0x1bab   :  { %6799 = vmatpush1.msra.mxu0 %v14178_v44  ;;  %6870 = vmatpush1.msra.mxu1 %v14184_v15 }
0x1bac   :  { %6800 = vmatprep.subr.mxu0 %v14190_v24  ;;  %6871 = vmatprep.subr.mxu1 %v14196_v18 }
0x1bad   :  { %6801 = vmatpush1.msra.mxu0 %v14202_v49  ;;  %6872 = vmatpush1.msra.mxu1 %v14208_v39 }
0x1bae   :  { %6802 = vmatprep.subr.mxu0 %v14214_v5  ;;  %6873 = vmatprep.subr.mxu1 %v14220_v1 }
0x1baf   :  { %6803 = vmatpush1.msra.mxu0 %v14226_v35  ;;  %6874 = vmatpush1.msra.mxu1 %v14232_v13 }
0x1bb0   :  { %6804 = vmatprep.subr.mxu0 %v14238_v0  ;;  %6875 = vmatprep.subr.mxu1 %v14244_v9  ;;  %v15870_v9 = vld [vmem:[#allocation44_spill] sm:$0xff] }
0x1bb1   :  { %6805 = vmatpush1.msra.mxu0 %v14250_v63  ;;  %6876 = vmatpush1.msra.mxu1 %v14256_v57 }
0x1bb2   :  { %6806 = vmatprep.subr.mxu0 %v14262_v40  ;;  %6877 = vmatprep.subr.mxu1 %v14268_v41 }
0x1bb3   :  { %6807 = vmatpush1.msra.mxu0 %v14274_v42  ;;  %6878 = vmatpush1.msra.mxu1 %v14280_v43 }
0x1bb4   :  { %6808 = vmatprep.subr.mxu0 %v14286_v50  ;;  %6879 = vmatprep.subr.mxu1 %v14292_v14 }
0x1bb5   :  { %6809 = vmatpush1.msra.mxu0 %v14298_v11  ;;  %6880 = vmatpush1.msra.mxu1 %v14304_v20  ;;  %v14322_v11 = vld [vmem:[%s14544_s11 + $0x20] sm:$0xff]  ;;  %v14328_v20 = vld [vmem:[%s14544_s11 + $0x30] sm:$0xff] }
0x1bb6   :  { %6810 = vmatprep.subr.mxu0 %v14310_v27  ;;  %6881 = vmatprep.subr.mxu1 %v14316_v58  ;;  %15861 = vst [vmem:[#allocation17_spill] sm:$0xff] %v14322_v11  ;;  %15862 = vst [vmem:[#allocation45_spill] sm:$0xff] %v14328_v20  ;;  %v14334_v27 = vld [vmem:[%s14544_s11 + $0x8] sm:$0xff]  ;;  %v14340_v58 = vld [vmem:[%s14544_s11 + $0x18] sm:$0xff] }
0x1bb7   :  { %6811 = vmatpush1.msra.mxu0 %v14322_v11  ;;  %6882 = vmatpush1.msra.mxu1 %v14328_v20  ;;  %15863 = vst [vmem:[#allocation19_spill] sm:$0xff] %v14334_v27  ;;  %15864 = vst [vmem:[#allocation54_spill] sm:$0xff] %v14340_v58  ;;  %v14346_v11 = vld [vmem:[%s14544_s11] sm:$0xff] }
0x1bb8   :  { %6812 = vmatprep.subr.mxu0 %v14334_v27  ;;  %6883 = vmatprep.subr.mxu1 %v14340_v58  ;;  %15865 = vst [vmem:[#allocation41_spill] sm:$0xff] %v14346_v11  ;;  %v14353_v27 = vld [vmem:[%s14544_s11 + $0x10] sm:$0xff]  ;;  %v15867_v58 = vld [vmem:[#allocation8_spill] sm:$0xff] }
0x1bb9   :  { %6813 = vmatpush1.msra.mxu0 %v14346_v11  ;;  %6846 = vmatprep.mubr.f32.mxu0 %v15837_v32  ;;  %15866 = vst [vmem:[#allocation7_spill] sm:$0xff] %v14353_v27  ;;  %v5677_v20 = vadd.f32 %v15867_v58, %v15841_v6  ;;  %v15868_v11 = vld [vmem:[#allocation32_spill] sm:$0xff]  ;;  %v5790_v58 = vadd.f32 %v15870_v9, %v13733_v28 }
0x1bba   :  { %6884 = vmatpush1.msra.mxu1 %v14353_v27  ;;  %6917 = vmatprep.mubr.f32.mxu1 %v15837_v32  ;;  %v5679_v50 = vadd.f32 %v15868_v11, %v13718_v7  ;;  %v15873_v9 = vld [vmem:[#allocation28_spill] sm:$0xff] }
0x1bbb   :  { %6956 = vmatprep.subr.mxu0 %v14052_v60  ;;  %7027 = vmatprep.subr.mxu1 %v14058_v17  ;;  %v15869_v60 = vld [vmem:[#allocation30_spill] sm:$0xff] }
0x1bbc   :  { %v5792_v63 = vadd.f32 %v15869_v60, %v15803_v22 }
0x1c5a   :  { %v6674_v14 = vpop.f32.mrf.mxu0  ;;  %v6745_v57 = vpop.f32.mrf.mxu1 }
0x1c5b   :  { %v6750_v43 = vadd.f32 %v6674_v14, %v5677_v20  ;;  %v6752_v6 = vadd.f32 %v6745_v57, %v5790_v58  ;;  %v15874_v57 = vld [vmem:[#allocation21_spill] sm:$0xff]  ;;  %v15876_v58 = vld [vmem:[#allocation56_spill] sm:$0xff] }
0x1c5c   :  { %v6676_v42 = vpop.f32.mrf.mxu0  ;;  %v6747_v32 = vpop.f32.mrf.mxu1 }
0x1c5d   :  { %v7390_v41 = vmul.f32 -1.442695, %v6750_v43  ;;  %v6751_v40 = vadd.f32 %v6676_v42, %v5679_v50  ;;  %v6753_v17 = vadd.f32 %v6747_v32, %v5792_v63 }
0x1c5f   :  { %7851 = vpow2.f32 %v7390_v41  ;;  %v7391_v27 = vmul.f32 -1.442695, %v6751_v40  ;;  %v7392_v0 = vmul.f32 -1.442695, %v6753_v17 }
0x1c61   :  { %7853 = vpow2.f32 %v7391_v27  ;;  %v15875_v27 = vld [vmem:[#allocation4_spill] sm:$0xff] }
0x1c62   :  { %7855 = vtanh.f32 %v6752_v6 }
0x1c63   :  { %7857 = vpow2.f32 %v7392_v0  ;;  %v15872_v0 = vld [vmem:[#allocation58_spill] sm:$0xff] }
0x1c6c   :  { %v7852_v13 = vpop.eup %7851 }
0x1c6d   :  { %v6757_v11 = vadd.f32 1.0, %v7852_v13 }
0x1c6e   :  { %v7854_v14 = vpop.eup %7853 }
0x1c6f   :  { %7859 = vrcp.f32 %v6757_v11  ;;  %v6763_v41 = vadd.f32 1.0, %v7854_v14  ;;  %v7856_v40 = vpop.eup %7855  ;;  %v15877_v11 = vld [vmem:[#allocation5_spill] sm:$0xff]  ;;  %v15878_v14 = vld [vmem:[#allocation24_spill] sm:$0xff] }
0x1c70   :  { %v7858_v42 = vpop.eup %7857 }
0x1c71   :  { %7861 = vrcp.f32 %v6763_v41  ;;  %v6770_v60 = vadd.f32 1.0, %v7858_v42  ;;  %v15879_v41 = vld [vmem:[#allocation37_spill] sm:$0xff]  ;;  %v15881_v42 = vld [vmem:[#allocation47_spill] sm:$0xff] }
0x1c73   :  { %7863 = vrcp.f32 %v6770_v60  ;;  %v15885_v60 = vld [vmem:[#allocation18_spill] sm:$0xff] }
0x1c7c   :  { %v7860_v43 = vpop.eup %7859 }
0x1c7d   :  { %v6774_v50 = vmul.f32 %v7860_v43, %v7856_v40  ;;  %v15880_v40 = vld [vmem:[#allocation40_spill] sm:$0xff] }
0x1c7e   :  { %v7862_v20 = vpop.eup %7861  ;;  %v15882_v43 = vld [vmem:[#allocation36_spill] sm:$0xff] }
0x1c7f   :  { %v6773_v32 = vmul.f32 %v7862_v20, %v14070_v3  ;;  %v15871_v3 = vld [vmem:[#allocation53_spill] sm:$0xff] }
0x1c80   :  { %v7864_v17 = vpop.eup %7863  ;;  %v15884_v20 = vld [vmem:[#allocation33_spill] sm:$0xff] }
0x1c81   :  { %v14368_v63 = vadd.f32 %v6774_v50, %v6773_v32  ;;  %v15883_v50 = vld [vmem:[#allocation16_spill] sm:$0xff]  ;;  %v15886_v32 = vld [vmem:[#allocation17_spill] sm:$0xff] }
0x1c83   :  { %7865 = vtanh.f32 %v14368_v63 }
0x1c90   :  { %v7866_v6 = vpop.eup %7865 }
0x1c91   :  { %v6777_v13 = vmul.f32 %v7866_v6, %v7864_v17  ;;  %v15887_v17 = vld [vmem:[#allocation45_spill] sm:$0xff]  ;;  %v15888_v6 = vld [vmem:[#allocation19_spill] sm:$0xff] }
0x1c93   :  { %6847 = vmatmul.mubr.f32.vlgmr.msra.gmra.mxu0 %v6777_v13  ;;  %6918 = vmatmul.mubr.f32.vlgmr.msra.gmra.mxu1 %v6777_v13  ;;  %v15889_v13 = vld [vmem:[#allocation54_spill] sm:$0xff] }
0x1c94   :  { %6957 = vmatpush1.msra.mxu0 %v13898_v47  ;;  %7028 = vmatpush1.msra.mxu1 %v13904_v26 }
0x1c95   :  { %6958 = vmatprep.subr.mxu0 %v13910_v23  ;;  %7029 = vmatprep.subr.mxu1 %v13916_v38 }
0x1c96   :  { %6959 = vmatpush1.msra.mxu0 %v13922_v19  ;;  %7030 = vmatpush1.msra.mxu1 %v13928_v2 }
0x1c97   :  { %6960 = vmatprep.subr.mxu0 %v13934_v61  ;;  %7031 = vmatprep.subr.mxu1 %v13940_v55 }
0x1c98   :  { %6961 = vmatpush1.msra.mxu0 %v13946_v4  ;;  %7032 = vmatpush1.msra.mxu1 %v13952_v56 }
0x1c99   :  { %6962 = vmatprep.subr.mxu0 %v13958_v10  ;;  %7033 = vmatprep.subr.mxu1 %v13964_v54 }
0x1c9a   :  { %6963 = vmatpush1.msra.mxu0 %v13970_v12  ;;  %7034 = vmatpush1.msra.mxu1 %v13976_v30 }
0x1c9b   :  { %6964 = vmatprep.subr.mxu0 %v13982_v37  ;;  %7035 = vmatprep.subr.mxu1 %v13988_v29 }
0x1c9c   :  { %6965 = vmatpush1.msra.mxu0 %v13994_v8  ;;  %7036 = vmatpush1.msra.mxu1 %v14000_v36 }
0x1c9d   :  { %6966 = vmatprep.subr.mxu0 %v14094_v48  ;;  %7037 = vmatprep.subr.mxu1 %v14100_v45 }
0x1c9e   :  { %6967 = vmatpush1.msra.mxu0 %v14106_v51  ;;  %7038 = vmatpush1.msra.mxu1 %v14112_v25 }
0x1c9f   :  { %6968 = vmatprep.subr.mxu0 %v14118_v59  ;;  %7039 = vmatprep.subr.mxu1 %v14124_v31 }
0x1ca0   :  { %6969 = vmatpush1.msra.mxu0 %v14130_v52  ;;  %7040 = vmatpush1.msra.mxu1 %v14136_v16 }
0x1ca1   :  { %6970 = vmatprep.subr.mxu0 %v14142_v53  ;;  %7041 = vmatprep.subr.mxu1 %v14148_v62 }
0x1ca2   :  { %6971 = vmatpush1.msra.mxu0 %v14154_v21  ;;  %7042 = vmatpush1.msra.mxu1 %v14160_v46 }
0x1ca3   :  { %6972 = vmatprep.subr.mxu0 %v14166_v33  ;;  %7043 = vmatprep.subr.mxu1 %v14172_v34 }
0x1ca4   :  { %6973 = vmatpush1.msra.mxu0 %v14178_v44  ;;  %7044 = vmatpush1.msra.mxu1 %v14184_v15 }
0x1ca5   :  { %6974 = vmatprep.subr.mxu0 %v14190_v24  ;;  %7045 = vmatprep.subr.mxu1 %v14196_v18 }
0x1ca6   :  { %6975 = vmatpush1.msra.mxu0 %v14202_v49  ;;  %7046 = vmatpush1.msra.mxu1 %v14208_v39 }
0x1ca7   :  { %6976 = vmatprep.subr.mxu0 %v14214_v5  ;;  %7047 = vmatprep.subr.mxu1 %v14220_v1 }
0x1ca8   :  { %6977 = vmatpush1.msra.mxu0 %v14226_v35  ;;  %7048 = vmatpush1.msra.mxu1 %v15871_v3 }
0x1ca9   :  { %6978 = vmatprep.subr.mxu0 %v15872_v0  ;;  %7049 = vmatprep.subr.mxu1 %v15873_v9  ;;  %v15899_v9 = vld [vmem:[#allocation6_spill] sm:$0xff] }
0x1caa   :  { %6979 = vmatpush1.msra.mxu0 %v15874_v57  ;;  %7050 = vmatpush1.msra.mxu1 %v15875_v27 }
0x1cab   :  { %6980 = vmatprep.subr.mxu0 %v15876_v58  ;;  %7051 = vmatprep.subr.mxu1 %v15877_v11 }
0x1cac   :  { %6981 = vmatpush1.msra.mxu0 %v15878_v14  ;;  %7052 = vmatpush1.msra.mxu1 %v15879_v41  ;;  %v15890_v41 = vld [vmem:[#allocation41_spill] sm:$0xff] }
0x1cad   :  { %6982 = vmatprep.subr.mxu0 %v15880_v40  ;;  %7053 = vmatprep.subr.mxu1 %v15881_v42  ;;  %v15891_v40 = vmov 0.0   ;;  %v15892_v42 = vld [vmem:[#allocation7_spill] sm:$0xff] }
0x1cae   :  { %6983 = vmatpush1.msra.mxu0 %v15882_v43  ;;  %7054 = vmatpush1.msra.mxu1 %v15883_v50  ;;  %v15893_v50 = vld [vmem:[#allocation39_spill] sm:$0xff] }
0x1caf   :  { %6984 = vmatprep.subr.mxu0 %v15884_v20  ;;  %7055 = vmatprep.subr.mxu1 %v15885_v60  ;;  %v15894_v20 = vld [vmem:[#allocation27_spill] sm:$0xff] }
0x1cb0   :  { %6985 = vmatpush1.msra.mxu0 %v15886_v32  ;;  %7056 = vmatpush1.msra.mxu1 %v15887_v17  ;;  %v15895_v60 = vld [vmem:[#allocation43_spill] sm:$0xff]  ;;  %v15896_v32 = vld [vmem:[#allocation14_spill] sm:$0xff] }
0x1cb1   :  { %6986 = vmatprep.subr.mxu0 %v15888_v6  ;;  %7057 = vmatprep.subr.mxu1 %v15889_v13  ;;  %v5683_v43 = vadd.f32 %v15896_v32, %v15895_v60  ;;  %v15897_v6 = vld [vmem:[#allocation12_spill] sm:$0xff]  ;;  %v5796_v32 = vadd.f32 %v15899_v9, %v13733_v28 }
0x1cb2   :  { %6987 = vmatpush1.msra.mxu0 %v15890_v41  ;;  %7020 = vmatprep.mubr.f32.mxu0 %v15891_v40  ;;  %v5685_v14 = vadd.f32 %v15897_v6, %v13718_v7 }
0x1cb3   :  { %7058 = vmatpush1.msra.mxu1 %v15892_v42  ;;  %7091 = vmatprep.mubr.f32.mxu1 %v15891_v40 }
0x1cb4   :  { %7130 = vmatprep.subr.mxu0 %v15893_v50  ;;  %7201 = vmatprep.subr.mxu1 %v15894_v20  ;;  %v15898_v50 = vld [vmem:[#allocation13_spill] sm:$0xff] }
0x1cb5   :  { %v5798_v57 = vadd.f32 %v15898_v50, %v15803_v22 }
0x1d53   :  { %v6848_v17 = vpop.f32.mrf.mxu0  ;;  %v6919_v27 = vpop.f32.mrf.mxu1 }
0x1d54   :  { %v6924_v13 = vadd.f32 %v6848_v17, %v5683_v43  ;;  %v6926_v60 = vadd.f32 %v6919_v27, %v5796_v32 }
0x1d55   :  { %v6850_v11 = vpop.f32.mrf.mxu0  ;;  %v6921_v40 = vpop.f32.mrf.mxu1 }
0x1d56   :  { %v7393_v41 = vmul.f32 -1.442695, %v6924_v13  ;;  %v6925_v58 = vadd.f32 %v6850_v11, %v5685_v14  ;;  %v6927_v20 = vadd.f32 %v6921_v40, %v5798_v57 }
0x1d58   :  { %7867 = vpow2.f32 %v7393_v41  ;;  %v7394_v42 = vmul.f32 -1.442695, %v6925_v58  ;;  %v7395_v0 = vmul.f32 -1.442695, %v6927_v20 }
0x1d5a   :  { %7869 = vpow2.f32 %v7394_v42 }
0x1d5b   :  { %7871 = vtanh.f32 %v6926_v60 }
0x1d5c   :  { %7873 = vpow2.f32 %v7395_v0 }
0x1d65   :  { %v7868_v3 = vpop.eup %7867 }
0x1d66   :  { %v6931_v6 = vadd.f32 1.0, %v7868_v3 }
0x1d67   :  { %v7870_v43 = vpop.eup %7869 }
0x1d68   :  { %7875 = vrcp.f32 %v6931_v6  ;;  %v6937_v11 = vadd.f32 1.0, %v7870_v43  ;;  %v7872_v58 = vpop.eup %7871 }
0x1d69   :  { %v7874_v14 = vpop.eup %7873 }
0x1d6a   :  { %7877 = vrcp.f32 %v6937_v11  ;;  %v6944_v13 = vadd.f32 1.0, %v7874_v14 }
0x1d6c   :  { %7879 = vrcp.f32 %v6944_v13 }
0x1d75   :  { %v7876_v41 = vpop.eup %7875 }
0x1d76   :  { %v6948_v42 = vmul.f32 %v7876_v41, %v7872_v58 }
0x1d77   :  { %v7878_v17 = vpop.eup %7877 }
0x1d78   :  { %v6947_v57 = vmul.f32 %v7878_v17, %v14368_v63 }
0x1d79   :  { %v7880_v3 = vpop.eup %7879 }
0x1d7a   :  { %v14446_v40 = vadd.f32 %v6948_v42, %v6947_v57 }
0x1d7c   :  { %7881 = vtanh.f32 %v14446_v40 }
0x1d89   :  { %v7882_v9 = vpop.eup %7881 }
0x1d8a   :  { %v6951_v27 = vmul.f32 %v7882_v9, %v7880_v3  ;;  %v15927_v3 = vld [vmem:[#allocation42_spill] sm:$0xff] }
0x1d8c   :  { %7021 = vmatmul.mubr.f32.vlgmr.msra.gmra.mxu0 %v6951_v27  ;;  %7092 = vmatmul.mubr.f32.vlgmr.msra.gmra.mxu1 %v6951_v27 }
0x1d8d   :  { %7131 = vmatpush1.msra.mxu0 %v13898_v47  ;;  %7202 = vmatpush1.msra.mxu1 %v13904_v26  ;;  %v15900_v47 = vld [vmem:[#allocation53_spill] sm:$0xff]  ;;  %v15901_v26 = vld [vmem:[#allocation58_spill] sm:$0xff] }
0x1d8e   :  { %7132 = vmatprep.subr.mxu0 %v13910_v23  ;;  %7203 = vmatprep.subr.mxu1 %v13916_v38  ;;  %v15902_v23 = vld [vmem:[#allocation28_spill] sm:$0xff]  ;;  %v15903_v38 = vld [vmem:[#allocation21_spill] sm:$0xff] }
0x1d8f   :  { %7133 = vmatpush1.msra.mxu0 %v13922_v19  ;;  %7204 = vmatpush1.msra.mxu1 %v13928_v2  ;;  %v15904_v19 = vld [vmem:[#allocation4_spill] sm:$0xff] }
0x1d90   :  { %7134 = vmatprep.subr.mxu0 %v13934_v61  ;;  %7205 = vmatprep.subr.mxu1 %v13940_v55  ;;  %v15905_v2 = vld [vmem:[#allocation56_spill] sm:$0xff]  ;;  %v15906_v61 = vld [vmem:[#allocation5_spill] sm:$0xff] }
0x1d91   :  { %7135 = vmatpush1.msra.mxu0 %v13946_v4  ;;  %7206 = vmatpush1.msra.mxu1 %v13952_v56  ;;  %v15907_v55 = vld [vmem:[#allocation24_spill] sm:$0xff]  ;;  %v15908_v4 = vld [vmem:[#allocation37_spill] sm:$0xff] }
0x1d92   :  { %7136 = vmatprep.subr.mxu0 %v13958_v10  ;;  %7207 = vmatprep.subr.mxu1 %v13964_v54  ;;  %v15909_v56 = vld [vmem:[#allocation40_spill] sm:$0xff]  ;;  %v15910_v10 = vld [vmem:[#allocation47_spill] sm:$0xff] }
0x1d93   :  { %7137 = vmatpush1.msra.mxu0 %v13970_v12  ;;  %7208 = vmatpush1.msra.mxu1 %v13976_v30  ;;  %v15911_v54 = vld [vmem:[#allocation36_spill] sm:$0xff]  ;;  %v15913_v30 = vld [vmem:[#allocation33_spill] sm:$0xff] }
0x1d94   :  { %7138 = vmatprep.subr.mxu0 %v13982_v37  ;;  %7209 = vmatprep.subr.mxu1 %v13988_v29  ;;  %v15912_v12 = vld [vmem:[#allocation16_spill] sm:$0xff]  ;;  %v15914_v37 = vld [vmem:[#allocation18_spill] sm:$0xff]  ;;  %v15915_v29 = vld [vmem:[#allocation17_spill] sm:$0xff] }
0x1d95   :  { %7139 = vmatpush1.msra.mxu0 %v13994_v8  ;;  %7210 = vmatpush1.msra.mxu1 %v14000_v36  ;;  %v15916_v8 = vld [vmem:[#allocation45_spill] sm:$0xff]  ;;  %v15917_v36 = vld [vmem:[#allocation19_spill] sm:$0xff] }
0x1d96   :  { %7140 = vmatprep.subr.mxu0 %v14094_v48  ;;  %7211 = vmatprep.subr.mxu1 %v14100_v45  ;;  %v15918_v48 = vld [vmem:[#allocation54_spill] sm:$0xff]  ;;  %v15919_v45 = vld [vmem:[#allocation41_spill] sm:$0xff] }
0x1d97   :  { %7141 = vmatpush1.msra.mxu0 %v14106_v51  ;;  %7212 = vmatpush1.msra.mxu1 %v14112_v25  ;;  %v15920_v51 = vmov 0.0   ;;  %v15921_v25 = vld [vmem:[#allocation7_spill] sm:$0xff] }
0x1d98   :  { %7142 = vmatprep.subr.mxu0 %v14118_v59  ;;  %7213 = vmatprep.subr.mxu1 %v14124_v31  ;;  %v15922_v59 = vld [vmem:[#allocation43_spill] sm:$0xff]  ;;  %v15923_v31 = vld [vmem:[#allocation61_spill] sm:$0xff] }
0x1d99   :  { %7143 = vmatpush1.msra.mxu0 %v14130_v52  ;;  %7214 = vmatpush1.msra.mxu1 %v14136_v16  ;;  %v5689_v52 = vadd.f32 %v15923_v31, %v15922_v59  ;;  %v5695_v9 = vadd.f32 %v15927_v3, %v15922_v59 }
0x1d9a   :  { %7144 = vmatprep.subr.mxu0 %v14142_v53  ;;  %7215 = vmatprep.subr.mxu1 %v14148_v62  ;;  %v15924_v53 = vld [vmem:[#allocation38_spill] sm:$0xff] }
0x1d9b   :  { %7145 = vmatpush1.msra.mxu0 %v14154_v21  ;;  %7216 = vmatpush1.msra.mxu1 %v14160_v46  ;;  %v5691_v62 = vadd.f32 %v15924_v53, %v13718_v7 }
0x1d9c   :  { %7146 = vmatprep.subr.mxu0 %v14166_v33  ;;  %7217 = vmatprep.subr.mxu1 %v14172_v34 }
0x1d9d   :  { %7147 = vmatpush1.msra.mxu0 %v14178_v44  ;;  %7218 = vmatpush1.msra.mxu1 %v14184_v15 }
0x1d9e   :  { %7148 = vmatprep.subr.mxu0 %v14190_v24  ;;  %7219 = vmatprep.subr.mxu1 %v14196_v18  ;;  %v15925_v18 = vld [vmem:[#allocation29_spill] sm:$0xff] }
0x1d9f   :  { %7149 = vmatpush1.msra.mxu0 %v14202_v49  ;;  %7220 = vmatpush1.msra.mxu1 %v14208_v39  ;;  %v5804_v49 = vadd.f32 %v15925_v18, %v15803_v22 }
0x1da0   :  { %7150 = vmatprep.subr.mxu0 %v14214_v5  ;;  %7221 = vmatprep.subr.mxu1 %v14220_v1  ;;  %v15926_v5 = vld [vmem:[#allocation9_spill] sm:$0xff] }
0x1da1   :  { %7151 = vmatpush1.msra.mxu0 %v14226_v35  ;;  %7222 = vmatpush1.msra.mxu1 %v15900_v47  ;;  %v5802_v1 = vadd.f32 %v15926_v5, %v13733_v28  ;;  %v15928_v47 = vld [vmem:[#allocation57_spill] sm:$0xff] }
0x1da2   :  { %7152 = vmatprep.subr.mxu0 %v15901_v26  ;;  %7223 = vmatprep.subr.mxu1 %v15902_v23  ;;  %v5697_v26 = vadd.f32 %v15928_v47, %v13718_v7 }
0x1da3   :  { %7153 = vmatpush1.msra.mxu0 %v15903_v38  ;;  %7224 = vmatpush1.msra.mxu1 %v15904_v19 }
0x1da4   :  { %7154 = vmatprep.subr.mxu0 %v15905_v2  ;;  %7225 = vmatprep.subr.mxu1 %v15906_v61 }
0x1da5   :  { %7155 = vmatpush1.msra.mxu0 %v15907_v55  ;;  %7226 = vmatpush1.msra.mxu1 %v15908_v4  ;;  %v15929_v4 = vld [vmem:[#allocation55_spill] sm:$0xff] }
0x1da6   :  { %7156 = vmatprep.subr.mxu0 %v15909_v56  ;;  %7227 = vmatprep.subr.mxu1 %v15910_v10  ;;  %v5810_v56 = vadd.f32 %v15929_v4, %v15803_v22 }
0x1da7   :  { %7157 = vmatpush1.msra.mxu0 %v15911_v54  ;;  %7228 = vmatpush1.msra.mxu1 %v15912_v12  ;;  %v15930_v54 = vld [vmem:[#allocation48_spill] sm:$0xff] }
0x1da8   :  { %7158 = vmatprep.subr.mxu0 %v15913_v30  ;;  %7229 = vmatprep.subr.mxu1 %v15914_v37  ;;  %v5808_v12 = vadd.f32 %v15930_v54, %v13733_v28 }
0x1da9   :  { %7159 = vmatpush1.msra.mxu0 %v15915_v29  ;;  %7230 = vmatpush1.msra.mxu1 %v15916_v8 }
0x1daa   :  { %7160 = vmatprep.subr.mxu0 %v15917_v36  ;;  %7231 = vmatprep.subr.mxu1 %v15918_v48 }
0x1dab   :  { %7161 = vmatpush1.msra.mxu0 %v15919_v45  ;;  %7194 = vmatprep.mubr.f32.mxu0 %v15920_v51 }
0x1dac   :  { %7232 = vmatpush1.msra.mxu1 %v15921_v25  ;;  %7265 = vmatprep.mubr.f32.mxu1 %v15920_v51 }
0x1e4c   :  { %v7022_v16 = vpop.f32.mrf.mxu0  ;;  %v7093_v44 = vpop.f32.mrf.mxu1 }
0x1e4d   :  { %v7098_v21 = vadd.f32 %v7022_v16, %v5689_v52  ;;  %v7100_v35 = vadd.f32 %v7093_v44, %v5802_v1 }
0x1e4e   :  { %v7024_v46 = vpop.f32.mrf.mxu0  ;;  %v7095_v24 = vpop.f32.mrf.mxu1 }
0x1e4f   :  { %v7396_v33 = vmul.f32 -1.442695, %v7098_v21  ;;  %v7099_v34 = vadd.f32 %v7024_v46, %v5691_v62  ;;  %v7101_v39 = vadd.f32 %v7095_v24, %v5804_v49 }
0x1e51   :  { %7883 = vpow2.f32 %v7396_v33  ;;  %v7397_v15 = vmul.f32 -1.442695, %v7099_v34  ;;  %v7398_v63 = vmul.f32 -1.442695, %v7101_v39 }
0x1e53   :  { %7885 = vpow2.f32 %v7397_v15 }
0x1e54   :  { %7887 = vtanh.f32 %v7100_v35 }
0x1e55   :  { %7889 = vpow2.f32 %v7398_v63 }
0x1e5e   :  { %v7884_v0 = vpop.eup %7883 }
0x1e5f   :  { %v7105_v60 = vadd.f32 1.0, %v7884_v0 }
0x1e60   :  { %v7886_v50 = vpop.eup %7885 }
0x1e61   :  { %7891 = vrcp.f32 %v7105_v60  ;;  %v7111_v20 = vadd.f32 1.0, %v7886_v50  ;;  %v7888_v32 = vpop.eup %7887 }
0x1e62   :  { %v7890_v6 = vpop.eup %7889 }
0x1e63   :  { %7893 = vrcp.f32 %v7111_v20  ;;  %v7118_v14 = vadd.f32 1.0, %v7890_v6 }
0x1e65   :  { %7895 = vrcp.f32 %v7118_v14 }
0x1e6e   :  { %v7892_v43 = vpop.eup %7891 }
0x1e6f   :  { %v7122_v11 = vmul.f32 %v7892_v43, %v7888_v32 }
0x1e70   :  { %v7894_v58 = vpop.eup %7893 }
0x1e71   :  { %v7121_v41 = vmul.f32 %v7894_v58, %v14446_v40 }
0x1e72   :  { %v7896_v17 = vpop.eup %7895 }
0x1e73   :  { %v7123_v42 = vadd.f32 %v7122_v11, %v7121_v41 }
0x1e75   :  { %7897 = vtanh.f32 %v7123_v42 }
0x1e82   :  { %v7898_v13 = vpop.eup %7897 }
0x1e83   :  { %v7125_v57 = vmul.f32 %v7898_v13, %v7896_v17 }
0x1e85   :  { %7195 = vmatmul.mubr.f32.vlgmr.msra.gmra.mxu0 %v7125_v57  ;;  %7266 = vmatmul.mubr.f32.vlgmr.msra.gmra.mxu1 %v7125_v57 }
0x1f45   :  { %v7196_v27 = vpop.f32.mrf.mxu0  ;;  %v7267_v40 = vpop.f32.mrf.mxu1 }
0x1f46   :  { %v7272_v23 = vadd.f32 %v7196_v27, %v5695_v9  ;;  %v7274_v30 = vadd.f32 %v7267_v40, %v5808_v12 }
0x1f47   :  { %v7198_v38 = vpop.f32.mrf.mxu0  ;;  %v7269_v55 = vpop.f32.mrf.mxu1 }
0x1f48   :  { %v7399_v19 = vmul.f32 -1.442695, %v7272_v23  ;;  %v7273_v2 = vadd.f32 %v7198_v38, %v5697_v26  ;;  %v7275_v10 = vadd.f32 %v7269_v55, %v5810_v56 }
0x1f4a   :  { %7899 = vpow2.f32 %v7399_v19  ;;  %v7400_v61 = vmul.f32 -1.442695, %v7273_v2  ;;  %v7401_v37 = vmul.f32 -1.442695, %v7275_v10 }
0x1f4c   :  { %7901 = vpow2.f32 %v7400_v61 }
0x1f4d   :  { %7903 = vtanh.f32 %v7274_v30 }
0x1f4e   :  { %7905 = vpow2.f32 %v7401_v37 }
0x1f57   :  { %v7900_v29 = vpop.eup %7899 }
0x1f58   :  { %v7279_v7 = vadd.f32 1.0, %v7900_v29 }
0x1f59   :  { %v7902_v8 = vpop.eup %7901 }
0x1f5a   :  { %7907 = vrcp.f32 %v7279_v7  ;;  %v7285_v36 = vadd.f32 1.0, %v7902_v8  ;;  %v7904_v48 = vpop.eup %7903 }
0x1f5b   :  { %v7906_v45 = vpop.eup %7905 }
0x1f5c   :  { %7909 = vrcp.f32 %v7285_v36  ;;  %v7292_v22 = vadd.f32 1.0, %v7906_v45 }
0x1f5e   :  { %7911 = vrcp.f32 %v7292_v22 }
0x1f67   :  { %v7908_v51 = vpop.eup %7907 }
0x1f68   :  { %v7296_v25 = vmul.f32 %v7908_v51, %v7904_v48 }
0x1f69   :  { %v7910_v59 = vpop.eup %7909 }
0x1f6a   :  { %v7295_v31 = vmul.f32 %v7910_v59, %v7123_v42 }
0x1f6b   :  { %v7912_v28 = vpop.eup %7911 }
0x1f6c   :  { %v7297_v52 = vadd.f32 %v7296_v25, %v7295_v31 }
0x1f6e   :  { %7913 = vtanh.f32 %v7297_v52 }
0x1f7b   :  { %v7914_v16 = vpop.eup %7913 }
0x1f7c   :  { %v7299_v53 = vmul.f32 %v7914_v16, %v7912_v28 }
0x1f7e   :  { %7301 = vst [vmem:[%s14545_s13 + $0x8] sm:$0xff] %v7299_v53 }

</bundles_post_ra>
